<compile_context>
chip_gen: v5e
topology: v5e:2x2
jax: 0.10.0
libtpu: 0.0.40
codegen_flags: <defaults>
</compile_context>

<pallas_src>
import functools

import jax
import jax.numpy as jnp
import numpy as np
from jax.experimental import pallas as pl
from jax.experimental.pallas import tpu as pltpu


# --------------------------------------------------------------------------- #
# Fused kernel: ball query (rank-based) + one-hot MXU gather + fill + center   #
# --------------------------------------------------------------------------- #
def _fused_query_group_kernel(xyz_ref, cent_ref, pts_ref, ltri_ref, out_ref,
                              count_scr, pts0_scr, *,
                              radius2, nsample, n_center, precise):
    """One (batch b, npoint-tile t, N-chunk c) grid step.

    xyz_ref:   (1, Nc, 3)     point coordinates of this N-chunk (sublane = N)
    cent_ref:  (1, 3, TP)     query centroids, channel-major (lane = npoint tile)
    pts_ref:   (1, R, Nc)     rows to gather ([xyz^T ; feat], xyz^T or feat), lane = N
    ltri_ref:  (SUB, SUB)     strictly-lower-triangular 0/1 matrix (bf16)
    out_ref:   (1, R, ns*TP)  rank-major output block, also the gather accumulator
    count_scr: (1, TP)        running in-ball count per centroid (f32)
    pts0_scr:  (R, 1)         channel values of point index 0 (fallback if no hit)
    """
    f32 = jnp.float32
    bf16 = jnp.bfloat16
    c = pl.program_id(2)
    n_chunks = pl.num_programs(2)

    nc = xyz_ref.shape[1]
    tp = cent_ref.shape[2]
    sub = ltri_ref.shape[0]
    nsub = nc // sub

    @pl.when(c == 0)
    def _init():
        out_ref[...] = jnp.zeros_like(out_ref)
        count_scr[...] = jnp.zeros_like(count_scr)
        pts0_scr[...] = pts_ref[0, :, 0:1].astype(f32)

    # ---- selection: dist2 -> in-ball -> global rank (prefix count via MXU) ----
    xyz_c = xyz_ref[0].astype(f32)                         # (Nc, 3)
    cent = cent_ref[0].astype(f32)                         # (3, TP)
    d0 = xyz_c[:, 0:1] - cent[0:1, :]
    d1 = xyz_c[:, 1:2] - cent[1:2, :]
    d2 = xyz_c[:, 2:3] - cent[2:3, :]
    dist2 = (d0 * d0 + d1 * d1) + d2 * d2                  # (Nc, TP)
    in_ball = dist2 < f32(radius2)                         # strict '<' like CUDA kernel
    ib_f = in_ball.astype(f32)
    ib_bf = in_ball.astype(bf16)
    ltri = ltri_ref[...]

    run = count_scr[...]                                   # in-ball count before chunk
    rank_parts = []
    for s in range(nsub):                                  # static, small (Nc/128)
        lo_i, hi_i = s * sub, (s + 1) * sub
        r_s = jnp.dot(ltri, ib_bf[lo_i:hi_i, :],
                      preferred_element_type=f32) + run    # exclusive prefix count
        rank_parts.append(r_s)
        run = run + jnp.sum(ib_f[lo_i:hi_i, :], axis=0, keepdims=True)
    count_scr[...] = run
    rank = rank_parts[0] if nsub == 1 else jnp.concatenate(rank_parts, axis=0)
    code = jnp.where(in_ball, rank, f32(-1.0))             # (Nc, TP), small exact ints

    # ---- rank-major selection one-hot + MXU gather, accumulated into out ----
    # Column r*TP + j selects the point of group j whose rank is exactly r.
    onehot = jnp.concatenate(
        [(code == f32(r)).astype(bf16) for r in range(nsample)], axis=1)   # (Nc, ns*TP)
    pts_c = pts_ref[0].astype(f32)                         # (R, Nc)
    hi = pts_c.astype(bf16)
    contrib = jnp.dot(hi, onehot, preferred_element_type=f32)              # (R, ns*TP)
    if precise:
        # hi/lo bf16 split: near-f32-exact gather with 2 fast bf16 MXU matmuls.
        lo = (pts_c - hi.astype(f32)).astype(bf16)
        contrib = contrib + jnp.dot(lo, onehot, preferred_element_type=f32)
    # Each output column receives its value from exactly one chunk, so this
    # accumulation is exact in the output dtype (all other chunks add 0).
    out_ref[0, :, :] = (out_ref[0, :, :].astype(f32) + contrib).astype(out_ref.dtype)

    # ---- last chunk: fill rule (CUDA ball-query semantics) + centroid subtraction ----
    @pl.when(c == n_chunks - 1)
    def _finalize():
        acc = out_ref[0, :, :].astype(f32)                 # (R, ns*TP)
        count = count_scr[...]                             # (1, TP)
        pts0 = pts0_scr[...]                               # (R, 1)
        first = acc[:, 0:tp]                               # rank-0 block (first hit)
        fallback = jnp.where(count > f32(0.0), first, pts0)
        blocks = []
        for r in range(nsample):
            blk = acc[:, r * tp:(r + 1) * tp]
            blocks.append(jnp.where(count > f32(r), blk, fallback))
        full = jnp.concatenate(blocks, axis=1) if nsample > 1 else blocks[0]
        if n_center > 0:
            cent_rep = (jnp.concatenate([cent] * nsample, axis=1)
                        if nsample > 1 else cent)          # (3, ns*TP)
            top = full[0:n_center, :] - cent_rep
            if full.shape[0] > n_center:
                full = jnp.concatenate([top, full[n_center:, :]], axis=0)
            else:
                full = top
        out_ref[0, :, :] = full.astype(out_ref.dtype)      # single lane-dense store


# --------------------------------------------------------------------------- #
# Tiling heuristic (targets the v5e 16 MiB scoped-VMEM default; v6e/v7x fit)   #
# --------------------------------------------------------------------------- #
def _pick_tiles(npoint, n, nsample, r_rows, out_bytes):
    def est(tp, nc):
        onehot = nc * nsample * tp * 2                      # bf16 one-hot chunk
        outblk = 2 * r_rows * nsample * tp * out_bytes      # double-buffered out block
        fill = 2 * r_rows * nsample * tp * 4                # f32 temps in finalize
        ptsblk = 2 * r_rows * nc * 4 + 2 * r_rows * nc * 2  # points block + bf16 copies
        misc = 2 * (nc * 3 + 3 * tp) * 4 + 128 * 128 * 2
        return onehot + outblk + fill + ptsblk + misc

    tp_cands = [c for c in (512, 256, 128) if npoint % c == 0] or [npoint]
    nc_cands = [c for c in (1024, 512, 256, 128) if n % c == 0] or [n]
    budget = 12 * 1024 * 1024
    for tp in tp_cands:
        for nc in nc_cands:
            if est(tp, nc) <= budget:
                return tp, nc
    return tp_cands[-1], nc_cands[-1]


# --------------------------------------------------------------------------- #
# Wrapper                                                                      #
# --------------------------------------------------------------------------- #
def query_and_group(xyz, new_xyz, features=None, *, radius, nsample, use_xyz=True,
                    tile_npoint=None, chunk_n=None, precise_gather=None):
    """Pallas TPU implementation of QueryAndGroup.forward.

    xyz:      (B, N, 3) point coordinates
    new_xyz:  (B, npoint, 3) centroids
    features: (B, C, N) descriptors or None
    returns:  (B, 3+C, npoint, nsample) / (B, C, npoint, nsample) / (B, 3, npoint, nsample)
    """
    B, N, _ = xyz.shape
    npoint = new_xyz.shape[1]
    nsample = int(nsample)

    if features is None:
        assert use_xyz, "Cannot have no features and not use xyz as a feature!"

    # --- wrapper-side layout plumbing (cheap XLA ops) ---
    xyz_t = jnp.swapaxes(xyz, 1, 2)                  # (B, 3, N)   lane dense
    new_xyz_t = jnp.swapaxes(new_xyz, 1, 2)          # (B, 3, npoint)

    if features is None:
        out_dtype = xyz.dtype
        points = xyz_t
        n_center = 3
    elif use_xyz:
        out_dtype = jnp.result_type(xyz.dtype, features.dtype)
        points = jnp.concatenate(
            [xyz_t.astype(out_dtype), features.astype(out_dtype)], axis=1)  # (B, 3+C, N)
        n_center = 3
    else:
        out_dtype = features.dtype
        points = features
        n_center = 0
    R = points.shape[1]

    if precise_gather is None:
        precise_gather = jnp.dtype(out_dtype) == jnp.dtype(jnp.float32)

    out_bytes = jnp.dtype(out_dtype).itemsize
    auto_tp, auto_nc = _pick_tiles(npoint, N, nsample, R, out_bytes)
    if tile_npoint is None:
        tile_npoint = auto_tp
    if chunk_n is None:
        chunk_n = auto_nc
    assert npoint % tile_npoint == 0
    assert N % chunk_n == 0
    n_tiles = npoint // tile_npoint
    n_chunks = N // chunk_n
    # (8, 128) block alignment: blocks are either full-extent or 128-aligned.
    assert n_tiles == 1 or tile_npoint % 128 == 0, "tile_npoint must be 128-aligned"
    assert n_chunks == 1 or chunk_n % 128 == 0, "chunk_n must be 128-aligned"
    p_block = tile_npoint * nsample

    # Strictly-lower-triangular 0/1 matrix used for the MXU prefix count.
    sub = 128 if chunk_n % 128 == 0 else chunk_n
    ltri = (jnp.arange(sub)[:, None] > jnp.arange(sub)[None, :]).astype(jnp.bfloat16)

    kernel = functools.partial(
        _fused_query_group_kernel,
        radius2=float(radius) * float(radius),
        nsample=nsample, n_center=n_center, precise=bool(precise_gather))

    gather_flops = 2 * B * R * N * npoint * nsample * (2 if precise_gather else 1)
    prefix_flops = 2 * B * N * sub * npoint
    bytes_accessed = int(xyz.size * xyz.dtype.itemsize
                         + new_xyz_t.size * new_xyz_t.dtype.itemsize
                         + points.size * points.dtype.itemsize * n_tiles
                         + B * R * npoint * nsample * out_bytes)

    # NOTE: the per-batch slabs only change on the outer grid axes, so Pallas skips
    # their re-DMA across the inner N-chunk loop; pipeline_mode=pl.Buffered(1) could
    # reclaim their second buffer on v7x but is left at the default for portability.
    out_flat = pl.pallas_call(
        kernel,
        out_shape=jax.ShapeDtypeStruct((B, R, n_tiles * p_block), out_dtype),
        grid_spec=pltpu.PrefetchScalarGridSpec(
            num_scalar_prefetch=0,
            grid=(B, n_tiles, n_chunks),
            in_specs=[
                pl.BlockSpec((1, chunk_n, 3), lambda b, t, c: (b, c, 0)),      # xyz
                pl.BlockSpec((1, 3, tile_npoint), lambda b, t, c: (b, 0, t)),  # centroids
                pl.BlockSpec((1, R, chunk_n), lambda b, t, c: (b, 0, c)),      # points
                pl.BlockSpec((sub, sub), lambda b, t, c: (0, 0)),              # tri matrix
            ],
            out_specs=pl.BlockSpec((1, R, p_block), lambda b, t, c: (b, 0, t)),
            scratch_shapes=[
                pltpu.VMEM((1, tile_npoint), jnp.float32),   # running in-ball count
                pltpu.VMEM((R, 1), jnp.float32),             # point-0 fallback values
            ],
        ),
        compiler_params=pltpu.CompilerParams(
            dimension_semantics=("parallel", "arbitrary", "arbitrary")),
        cost_estimate=pl.CostEstimate(
            flops=gather_flops + prefix_flops,
            transcendentals=0,
            bytes_accessed=bytes_accessed),
    )(xyz, new_xyz_t, points, ltri)

    # Rank-major (tile, nsample, TP) lanes -> (npoint, nsample); cheap XLA glue.
    out = out_flat.reshape(B, R, n_tiles, nsample, tile_npoint)
    out = jnp.transpose(out, (0, 1, 2, 4, 3)).reshape(B, R, npoint, nsample)
    return out


class QueryAndGroup:
    """Parameter-free module mirroring the PyTorch QueryAndGroup."""

    def __init__(self, radius, nsample, use_xyz=True):
        self.radius, self.nsample, self.use_xyz = radius, nsample, use_xyz

    def __call__(self, xyz, new_xyz, features=None):
        return query_and_group(xyz, new_xyz, features, radius=self.radius,
                               nsample=self.nsample, use_xyz=self.use_xyz)


# --------------------------------------------------------------------------- #
# Pure-numpy reference (mirrors the CUDA ball_query / grouping_operation)      #
# --------------------------------------------------------------------------- #
def _reference_query_and_group(xyz, new_xyz, features, radius, nsample, use_xyz):
    xyz = np.asarray(xyz, dtype=np.float32)
    new_xyz = np.asarray(new_xyz, dtype=np.float32)
    B, N, _ = xyz.shape
    npoint = new_xyz.shape[1]
    r2 = np.float32(float(radius) * float(radius))
    idx = np.zeros((B, npoint, nsample), dtype=np.int64)
    for b in range(B):
        for j in range(npoint):
            cnt = 0
            for i in range(N):
                d = xyz[b, i] - new_xyz[b, j]
                d2 = (d[0] * d[0] + d[1] * d[1]) + d[2] * d[2]
                if d2 < r2:
                    if cnt == 0:
                        idx[b, j, :] = i
                    idx[b, j, cnt] = i
                    cnt += 1
                    if cnt >= nsample:
                        break
    grouped_xyz = np.stack([xyz[b][idx[b]] for b in range(B)])       # (B, npoint, nsample, 3)
    grouped_xyz = np.transpose(grouped_xyz, (0, 3, 1, 2))            # (B, 3, npoint, nsample)
    grouped_xyz = grouped_xyz - np.transpose(new_xyz, (0, 2, 1))[:, :, :, None]
    if features is not None:
        feats = np.asarray(features, dtype=np.float32)
        C = feats.shape[1]
        gf = np.stack([feats[b][:, idx[b].reshape(-1)].reshape(C, npoint, nsample)
                       for b in range(B)])
        if use_xyz:
            return np.concatenate([grouped_xyz, gf], axis=1)
        return gf
    return grouped_xyz


if __name__ == "__main__":
    B, N, NPOINT, NSAMPLE, C = 2, 256, 256, 8, 4
    RADIUS = 0.6

    key = jax.random.PRNGKey(0)
    k_xyz, k_feat, k_cent = jax.random.split(key, 3)
    xyz = jax.random.normal(k_xyz, (B, N, 3), dtype=jnp.float32)
    features = jax.random.normal(k_feat, (B, C, N), dtype=jnp.float32)
    # Independent centroids: gives a mix of empty, partially-filled and full groups.
    new_xyz = jax.random.normal(k_cent, (B, NPOINT, 3), dtype=jnp.float32)

    ref = _reference_query_and_group(xyz, new_xyz, features, RADIUS, NSAMPLE, True)

    # 1) default auto-tiled configuration (single tile / single chunk at this size)
    module = QueryAndGroup(radius=RADIUS, nsample=NSAMPLE, use_xyz=True)
    out_auto = jax.block_until_ready(module(xyz, new_xyz, features))
    assert out_auto.shape == (B, 3 + C, NPOINT, NSAMPLE), out_auto.shape
    np.testing.assert_allclose(np.asarray(out_auto), ref, rtol=1e-4, atol=1e-4)

    # 2) explicitly tiled/chunked configuration (exercises the grid-carried
    #    rank/count accumulation across N-chunks and multiple npoint tiles)
    out_tiled = jax.block_until_ready(
        query_and_group(xyz, new_xyz, features, radius=RADIUS, nsample=NSAMPLE,
                        use_xyz=True, tile_npoint=128, chunk_n=128))
    assert out_tiled.shape == (B, 3 + C, NPOINT, NSAMPLE), out_tiled.shape
    np.testing.assert_allclose(np.asarray(out_tiled), ref, rtol=1e-4, atol=1e-4)

    print("KERNEL_OK")
</pallas_src>

<mosaic_0001>
module attributes {stable_mosaic.version = 11 : i64} {
  func.func @_fused_query_group_kernel(%arg0: i32, %arg1: i32, %arg2: i32, %arg3: memref<1x256x3xf32, #tpu.memory_space<vmem>>, %arg4: memref<1x3x256xf32, #tpu.memory_space<vmem>>, %arg5: memref<1x7x256xf32, #tpu.memory_space<vmem>>, %arg6: memref<128x128xbf16, #tpu.memory_space<vmem>>, %arg7: memref<1x7x2048xf32, #tpu.memory_space<vmem>>, %arg8: memref<1x256xf32, #tpu.memory_space<vmem>>, %arg9: memref<7x1xf32, #tpu.memory_space<vmem>>) attributes {dimension_semantics = [#tpu.dimension_semantics<parallel>, #tpu.dimension_semantics<arbitrary>, #tpu.dimension_semantics<arbitrary>], iteration_bounds = array<i64: 2, 1, 1>, scalar_prefetch = 0 : i64, scratch_operands = 2 : i64, tpu.core_type = #tpu.core_type<tc>, window_params = [{transform_indices = @transform_0, window_bounds = array<i64: 1, 256, 3>}, {transform_indices = @transform_1, window_bounds = array<i64: 1, 3, 256>}, {transform_indices = @transform_2, window_bounds = array<i64: 1, 7, 256>}, {pipeline_mode = #tpu.pipeline_mode<synchronous>, transform_indices = @transform_3, window_bounds = array<i64: 128, 128>}, {transform_indices = @transform_4, window_bounds = array<i64: 1, 7, 2048>}]} {
    %c0_i32 = arith.constant 0 : i32
    %0 = arith.cmpi eq, %arg2, %c0_i32 : i32
    %1 = arith.extui %0 : i1 to i32
    %c0_i32_0 = arith.constant 0 : i32
    %2 = arith.cmpi ne, %1, %c0_i32_0 : i32
    scf.if %2 {
      %cst_38 = arith.constant 0.000000e+00 : f32
      %115 = vector.broadcast %cst_38 : f32 to vector<1x7x2048xf32>
      %c0_39 = arith.constant 0 : index
      %c0_40 = arith.constant 0 : index
      %c0_41 = arith.constant 0 : index
      %116 = vector.load %arg7[%c0_39, %c0_40, %c0_41] : memref<1x7x2048xf32, #tpu.memory_space<vmem>>, vector<1x7x2048xf32>
      tpu.vector_store %arg7[%c0_39, %c0_40, %c0_41], %115 {strides = array<i32>} : memref<1x7x2048xf32, #tpu.memory_space<vmem>>, vector<1x7x2048xf32>,
      %cst_42 = arith.constant 0.000000e+00 : f32
      %117 = vector.broadcast %cst_42 : f32 to vector<1x256xf32>
      %c0_43 = arith.constant 0 : index
      %c0_44 = arith.constant 0 : index
      %118 = vector.load %arg8[%c0_43, %c0_44] : memref<1x256xf32, #tpu.memory_space<vmem>>, vector<1x256xf32>
      tpu.vector_store %arg8[%c0_43, %c0_44], %117 {strides = array<i32>} : memref<1x256xf32, #tpu.memory_space<vmem>>, vector<1x256xf32>,
      %c0_45 = arith.constant 0 : index
      %c0_46 = arith.constant 0 : index
      %c0_47 = arith.constant 0 : index
      %119 = vector.load %arg5[%c0_45, %c0_46, %c0_47] : memref<1x7x256xf32, #tpu.memory_space<vmem>>, vector<1x7x1xf32>
      %120 = vector.shape_cast %119 : vector<1x7x1xf32> to vector<7x1xf32>
      %c0_48 = arith.constant 0 : index
      %c0_49 = arith.constant 0 : index
      %121 = vector.load %arg9[%c0_48, %c0_49] : memref<7x1xf32, #tpu.memory_space<vmem>>, vector<7x1xf32>
      tpu.vector_store %arg9[%c0_48, %c0_49], %120 {strides = array<i32>} : memref<7x1xf32, #tpu.memory_space<vmem>>, vector<7x1xf32>,
    } else {
    }
    %c0 = arith.constant 0 : index
    %c0_1 = arith.constant 0 : index
    %c0_2 = arith.constant 0 : index
    %3 = vector.load %arg3[%c0, %c0_1, %c0_2] : memref<1x256x3xf32, #tpu.memory_space<vmem>>, vector<1x256x3xf32>
    %4 = vector.shape_cast %3 : vector<1x256x3xf32> to vector<256x3xf32>
    %c0_3 = arith.constant 0 : index
    %c0_4 = arith.constant 0 : index
    %c0_5 = arith.constant 0 : index
    %5 = vector.load %arg4[%c0_3, %c0_4, %c0_5] : memref<1x3x256xf32, #tpu.memory_space<vmem>>, vector<1x3x256xf32>
    %6 = vector.shape_cast %5 : vector<1x3x256xf32> to vector<3x256xf32>
    %7 = vector.extract_strided_slice %4 {offsets = [0, 0], sizes = [256, 1], strides = [1, 1]} : vector<256x3xf32> to vector<256x1xf32>
    %8 = vector.extract_strided_slice %6 {offsets = [0, 0], sizes = [1, 256], strides = [1, 1]} : vector<3x256xf32> to vector<1x256xf32>
    %9 = vector.broadcast %7 : vector<256x1xf32> to vector<256x256xf32>
    %10 = vector.broadcast %8 : vector<1x256xf32> to vector<256x256xf32>
    %11 = arith.subf %9, %10 : vector<256x256xf32>
    %12 = vector.extract_strided_slice %4 {offsets = [0, 1], sizes = [256, 1], strides = [1, 1]} : vector<256x3xf32> to vector<256x1xf32>
    %13 = vector.extract_strided_slice %6 {offsets = [1, 0], sizes = [1, 256], strides = [1, 1]} : vector<3x256xf32> to vector<1x256xf32>
    %14 = vector.broadcast %12 : vector<256x1xf32> to vector<256x256xf32>
    %15 = vector.broadcast %13 : vector<1x256xf32> to vector<256x256xf32>
    %16 = arith.subf %14, %15 : vector<256x256xf32>
    %17 = vector.extract_strided_slice %4 {offsets = [0, 2], sizes = [256, 1], strides = [1, 1]} : vector<256x3xf32> to vector<256x1xf32>
    %18 = vector.extract_strided_slice %6 {offsets = [2, 0], sizes = [1, 256], strides = [1, 1]} : vector<3x256xf32> to vector<1x256xf32>
    %19 = vector.broadcast %17 : vector<256x1xf32> to vector<256x256xf32>
    %20 = vector.broadcast %18 : vector<1x256xf32> to vector<256x256xf32>
    %21 = arith.subf %19, %20 : vector<256x256xf32>
    %22 = arith.mulf %11, %11 : vector<256x256xf32>
    %23 = arith.mulf %16, %16 : vector<256x256xf32>
    %24 = arith.addf %22, %23 : vector<256x256xf32>
    %25 = arith.mulf %21, %21 : vector<256x256xf32>
    %26 = arith.addf %24, %25 : vector<256x256xf32>
    %cst = arith.constant 3.600000e-01 : f32
    %27 = vector.broadcast %cst : f32 to vector<256x256xf32>
    %28 = arith.cmpf olt, %26, %27 : vector<256x256xf32>
    %29 = arith.extui %28 : vector<256x256xi1> to vector<256x256xi32>
    %30 = arith.sitofp %29 : vector<256x256xi32> to vector<256x256xf32>
    %31 = arith.extui %28 : vector<256x256xi1> to vector<256x256xi32>
    %32 = arith.sitofp %31 : vector<256x256xi32> to vector<256x256xf32>
    %33 = arith.truncf %32 : vector<256x256xf32> to vector<256x256xbf16>
    %c0_6 = arith.constant 0 : index
    %c0_7 = arith.constant 0 : index
    %34 = vector.load %arg6[%c0_6, %c0_7] : memref<128x128xbf16, #tpu.memory_space<vmem>>, vector<128x128xbf16>
    %c0_8 = arith.constant 0 : index
    %c0_9 = arith.constant 0 : index
    %35 = vector.load %arg8[%c0_8, %c0_9] : memref<1x256xf32, #tpu.memory_space<vmem>>, vector<1x256xf32>
    %36 = vector.extract_strided_slice %33 {offsets = [0, 0], sizes = [128, 256], strides = [1, 1]} : vector<256x256xbf16> to vector<128x256xbf16>
    %cst_10 = arith.constant dense<0.000000e+00> : vector<128x256xf32>
    %37 = tpu.matmul %34, %36, %cst_10 {dimension_numbers = #tpu.dot_dimension_numbers<[1], [0], [0], [1], [0, 0, 1, 1], [], []>} : vector<128x128xbf16>, vector<128x256xbf16>, vector<128x256xf32> -> vector<128x256xf32>
    %38 = vector.broadcast %35 : vector<1x256xf32> to vector<128x256xf32>
    %39 = arith.addf %37, %38 : vector<128x256xf32>
    %40 = vector.extract_strided_slice %30 {offsets = [0, 0], sizes = [128, 256], strides = [1, 1]} : vector<256x256xf32> to vector<128x256xf32>
    %cst_11 = arith.constant dense<0.000000e+00> : vector<256xf32>
    %41 = vector.multi_reduction <add>, %40, %cst_11 [0] : vector<128x256xf32> to vector<256xf32>
    %42 = vector.shape_cast %41 : vector<256xf32> to vector<1x256xf32>
    %43 = arith.addf %35, %42 : vector<1x256xf32>
    %44 = vector.extract_strided_slice %33 {offsets = [128, 0], sizes = [128, 256], strides = [1, 1]} : vector<256x256xbf16> to vector<128x256xbf16>
    %cst_12 = arith.constant dense<0.000000e+00> : vector<128x256xf32>
    %45 = tpu.matmul %34, %44, %cst_12 {dimension_numbers = #tpu.dot_dimension_numbers<[1], [0], [0], [1], [0, 0, 1, 1], [], []>} : vector<128x128xbf16>, vector<128x256xbf16>, vector<128x256xf32> -> vector<128x256xf32>
    %46 = vector.broadcast %43 : vector<1x256xf32> to vector<128x256xf32>
    %47 = arith.addf %45, %46 : vector<128x256xf32>
    %48 = vector.extract_strided_slice %30 {offsets = [128, 0], sizes = [128, 256], strides = [1, 1]} : vector<256x256xf32> to vector<128x256xf32>
    %cst_13 = arith.constant dense<0.000000e+00> : vector<256xf32>
    %49 = vector.multi_reduction <add>, %48, %cst_13 [0] : vector<128x256xf32> to vector<256xf32>
    %50 = vector.shape_cast %49 : vector<256xf32> to vector<1x256xf32>
    %51 = arith.addf %43, %50 : vector<1x256xf32>
    %c0_14 = arith.constant 0 : index
    %c0_15 = arith.constant 0 : index
    %52 = vector.load %arg8[%c0_14, %c0_15] : memref<1x256xf32, #tpu.memory_space<vmem>>, vector<1x256xf32>
    tpu.vector_store %arg8[%c0_14, %c0_15], %51 {strides = array<i32>} : memref<1x256xf32, #tpu.memory_space<vmem>>, vector<1x256xf32>,
    %53 = tpu.concatenate %39, %47 in 0 : vector<128x256xf32>, vector<128x256xf32> -> vector<256x256xf32>
    %cst_16 = arith.constant -1.000000e+00 : f32
    %54 = vector.broadcast %cst_16 : f32 to vector<256x256xf32>
    %55 = arith.select %28, %53, %54 : vector<256x256xi1>, vector<256x256xf32>
    %cst_17 = arith.constant 0.000000e+00 : f32
    %56 = vector.broadcast %cst_17 : f32 to vector<256x256xf32>
    %57 = arith.cmpf oeq, %55, %56 : vector<256x256xf32>
    %58 = arith.extui %57 : vector<256x256xi1> to vector<256x256xi32>
    %59 = arith.sitofp %58 : vector<256x256xi32> to vector<256x256xf32>
    %60 = arith.truncf %59 : vector<256x256xf32> to vector<256x256xbf16>
    %cst_18 = arith.constant 1.000000e+00 : f32
    %61 = vector.broadcast %cst_18 : f32 to vector<256x256xf32>
    %62 = arith.cmpf oeq, %55, %61 : vector<256x256xf32>
    %63 = arith.extui %62 : vector<256x256xi1> to vector<256x256xi32>
    %64 = arith.sitofp %63 : vector<256x256xi32> to vector<256x256xf32>
    %65 = arith.truncf %64 : vector<256x256xf32> to vector<256x256xbf16>
    %cst_19 = arith.constant 2.000000e+00 : f32
    %66 = vector.broadcast %cst_19 : f32 to vector<256x256xf32>
    %67 = arith.cmpf oeq, %55, %66 : vector<256x256xf32>
    %68 = arith.extui %67 : vector<256x256xi1> to vector<256x256xi32>
    %69 = arith.sitofp %68 : vector<256x256xi32> to vector<256x256xf32>
    %70 = arith.truncf %69 : vector<256x256xf32> to vector<256x256xbf16>
    %cst_20 = arith.constant 3.000000e+00 : f32
    %71 = vector.broadcast %cst_20 : f32 to vector<256x256xf32>
    %72 = arith.cmpf oeq, %55, %71 : vector<256x256xf32>
    %73 = arith.extui %72 : vector<256x256xi1> to vector<256x256xi32>
    %74 = arith.sitofp %73 : vector<256x256xi32> to vector<256x256xf32>
    %75 = arith.truncf %74 : vector<256x256xf32> to vector<256x256xbf16>
    %cst_21 = arith.constant 4.000000e+00 : f32
    %76 = vector.broadcast %cst_21 : f32 to vector<256x256xf32>
    %77 = arith.cmpf oeq, %55, %76 : vector<256x256xf32>
    %78 = arith.extui %77 : vector<256x256xi1> to vector<256x256xi32>
    %79 = arith.sitofp %78 : vector<256x256xi32> to vector<256x256xf32>
    %80 = arith.truncf %79 : vector<256x256xf32> to vector<256x256xbf16>
    %cst_22 = arith.constant 5.000000e+00 : f32
    %81 = vector.broadcast %cst_22 : f32 to vector<256x256xf32>
    %82 = arith.cmpf oeq, %55, %81 : vector<256x256xf32>
    %83 = arith.extui %82 : vector<256x256xi1> to vector<256x256xi32>
    %84 = arith.sitofp %83 : vector<256x256xi32> to vector<256x256xf32>
    %85 = arith.truncf %84 : vector<256x256xf32> to vector<256x256xbf16>
    %cst_23 = arith.constant 6.000000e+00 : f32
    %86 = vector.broadcast %cst_23 : f32 to vector<256x256xf32>
    %87 = arith.cmpf oeq, %55, %86 : vector<256x256xf32>
    %88 = arith.extui %87 : vector<256x256xi1> to vector<256x256xi32>
    %89 = arith.sitofp %88 : vector<256x256xi32> to vector<256x256xf32>
    %90 = arith.truncf %89 : vector<256x256xf32> to vector<256x256xbf16>
    %cst_24 = arith.constant 7.000000e+00 : f32
    %91 = vector.broadcast %cst_24 : f32 to vector<256x256xf32>
    %92 = arith.cmpf oeq, %55, %91 : vector<256x256xf32>
    %93 = arith.extui %92 : vector<256x256xi1> to vector<256x256xi32>
    %94 = arith.sitofp %93 : vector<256x256xi32> to vector<256x256xf32>
    %95 = arith.truncf %94 : vector<256x256xf32> to vector<256x256xbf16>
    %96 = tpu.concatenate %60, %65, %70, %75, %80, %85, %90, %95 in 1 : vector<256x256xbf16>, vector<256x256xbf16>, vector<256x256xbf16>, vector<256x256xbf16>, vector<256x256xbf16>, vector<256x256xbf16>, vector<256x256xbf16>, vector<256x256xbf16> -> vector<256x2048xbf16>
    %c0_25 = arith.constant 0 : index
    %c0_26 = arith.constant 0 : index
    %c0_27 = arith.constant 0 : index
    %97 = vector.load %arg5[%c0_25, %c0_26, %c0_27] : memref<1x7x256xf32, #tpu.memory_space<vmem>>, vector<1x7x256xf32>
    %98 = vector.shape_cast %97 : vector<1x7x256xf32> to vector<7x256xf32>
    %99 = arith.truncf %98 : vector<7x256xf32> to vector<7x256xbf16>
    %cst_28 = arith.constant dense<0.000000e+00> : vector<7x2048xf32>
    %100 = tpu.matmul %99, %96, %cst_28 {dimension_numbers = #tpu.dot_dimension_numbers<[1], [0], [0], [1], [0, 0, 1, 1], [], []>} : vector<7x256xbf16>, vector<256x2048xbf16>, vector<7x2048xf32> -> vector<7x2048xf32>
    %101 = arith.extf %99 : vector<7x256xbf16> to vector<7x256xf32>
    %102 = arith.subf %98, %101 : vector<7x256xf32>
    %103 = arith.truncf %102 : vector<7x256xf32> to vector<7x256xbf16>
    %cst_29 = arith.constant dense<0.000000e+00> : vector<7x2048xf32>
    %104 = tpu.matmul %103, %96, %cst_29 {dimension_numbers = #tpu.dot_dimension_numbers<[1], [0], [0], [1], [0, 0, 1, 1], [], []>} : vector<7x256xbf16>, vector<256x2048xbf16>, vector<7x2048xf32> -> vector<7x2048xf32>
    %105 = arith.addf %100, %104 : vector<7x2048xf32>
    %c0_30 = arith.constant 0 : index
    %c0_31 = arith.constant 0 : index
    %c0_32 = arith.constant 0 : index
    %106 = vector.load %arg7[%c0_30, %c0_31, %c0_32] : memref<1x7x2048xf32, #tpu.memory_space<vmem>>, vector<1x7x2048xf32>
    %107 = vector.shape_cast %106 : vector<1x7x2048xf32> to vector<7x2048xf32>
    %108 = arith.addf %107, %105 : vector<7x2048xf32>
    %c0_33 = arith.constant 0 : index
    %c0_34 = arith.constant 0 : index
    %c0_35 = arith.constant 0 : index
    %109 = vector.load %arg7[%c0_33, %c0_34, %c0_35] : memref<1x7x2048xf32, #tpu.memory_space<vmem>>, vector<1x7x2048xf32>
    %110 = vector.shape_cast %109 : vector<1x7x2048xf32> to vector<7x2048xf32>
    %111 = vector.shape_cast %108 : vector<7x2048xf32> to vector<1x7x2048xf32>
    tpu.vector_store %arg7[%c0_33, %c0_34, %c0_35], %111 {strides = array<i32>} : memref<1x7x2048xf32, #tpu.memory_space<vmem>>, vector<1x7x2048xf32>,
    %c0_i32_36 = arith.constant 0 : i32
    %112 = arith.cmpi eq, %arg2, %c0_i32_36 : i32
    %113 = arith.extui %112 : i1 to i32
    %c0_i32_37 = arith.constant 0 : i32
    %114 = arith.cmpi ne, %113, %c0_i32_37 : i32
    scf.if %114 {
      %c0_38 = arith.constant 0 : index
      %c0_39 = arith.constant 0 : index
      %c0_40 = arith.constant 0 : index
      %115 = vector.load %arg7[%c0_38, %c0_39, %c0_40] : memref<1x7x2048xf32, #tpu.memory_space<vmem>>, vector<1x7x2048xf32>
      %116 = vector.shape_cast %115 : vector<1x7x2048xf32> to vector<7x2048xf32>
      %c0_41 = arith.constant 0 : index
      %c0_42 = arith.constant 0 : index
      %117 = vector.load %arg8[%c0_41, %c0_42] : memref<1x256xf32, #tpu.memory_space<vmem>>, vector<1x256xf32>
      %c0_43 = arith.constant 0 : index
      %c0_44 = arith.constant 0 : index
      %118 = vector.load %arg9[%c0_43, %c0_44] : memref<7x1xf32, #tpu.memory_space<vmem>>, vector<7x1xf32>
      %119 = vector.extract_strided_slice %116 {offsets = [0, 0], sizes = [7, 256], strides = [1, 1]} : vector<7x2048xf32> to vector<7x256xf32>
      %cst_45 = arith.constant 0.000000e+00 : f32
      %120 = vector.broadcast %cst_45 : f32 to vector<1x256xf32>
      %121 = arith.cmpf ogt, %117, %120 : vector<1x256xf32>
      %122 = vector.shape_cast %121 : vector<1x256xi1> to vector<1x256xi1>
      %123 = vector.broadcast %122 : vector<1x256xi1> to vector<7x256xi1>
      %124 = vector.shape_cast %118 : vector<7x1xf32> to vector<7x1xf32>
      %125 = vector.broadcast %124 : vector<7x1xf32> to vector<7x256xf32>
      %126 = arith.select %123, %119, %125 : vector<7x256xi1>, vector<7x256xf32>
      %127 = vector.extract_strided_slice %116 {offsets = [0, 0], sizes = [7, 256], strides = [1, 1]} : vector<7x2048xf32> to vector<7x256xf32>
      %cst_46 = arith.constant 0.000000e+00 : f32
      %128 = vector.broadcast %cst_46 : f32 to vector<1x256xf32>
      %129 = arith.cmpf ogt, %117, %128 : vector<1x256xf32>
      %130 = vector.shape_cast %129 : vector<1x256xi1> to vector<1x256xi1>
      %131 = vector.broadcast %130 : vector<1x256xi1> to vector<7x256xi1>
      %132 = arith.select %131, %127, %126 : vector<7x256xi1>, vector<7x256xf32>
      %133 = vector.extract_strided_slice %116 {offsets = [0, 256], sizes = [7, 256], strides = [1, 1]} : vector<7x2048xf32> to vector<7x256xf32>
      %cst_47 = arith.constant 1.000000e+00 : f32
      %134 = vector.broadcast %cst_47 : f32 to vector<1x256xf32>
      %135 = arith.cmpf ogt, %117, %134 : vector<1x256xf32>
      %136 = vector.shape_cast %135 : vector<1x256xi1> to vector<1x256xi1>
      %137 = vector.broadcast %136 : vector<1x256xi1> to vector<7x256xi1>
      %138 = arith.select %137, %133, %126 : vector<7x256xi1>, vector<7x256xf32>
      %139 = vector.extract_strided_slice %116 {offsets = [0, 512], sizes = [7, 256], strides = [1, 1]} : vector<7x2048xf32> to vector<7x256xf32>
      %cst_48 = arith.constant 2.000000e+00 : f32
      %140 = vector.broadcast %cst_48 : f32 to vector<1x256xf32>
      %141 = arith.cmpf ogt, %117, %140 : vector<1x256xf32>
      %142 = vector.shape_cast %141 : vector<1x256xi1> to vector<1x256xi1>
      %143 = vector.broadcast %142 : vector<1x256xi1> to vector<7x256xi1>
      %144 = arith.select %143, %139, %126 : vector<7x256xi1>, vector<7x256xf32>
      %145 = vector.extract_strided_slice %116 {offsets = [0, 768], sizes = [7, 256], strides = [1, 1]} : vector<7x2048xf32> to vector<7x256xf32>
      %cst_49 = arith.constant 3.000000e+00 : f32
      %146 = vector.broadcast %cst_49 : f32 to vector<1x256xf32>
      %147 = arith.cmpf ogt, %117, %146 : vector<1x256xf32>
      %148 = vector.shape_cast %147 : vector<1x256xi1> to vector<1x256xi1>
      %149 = vector.broadcast %148 : vector<1x256xi1> to vector<7x256xi1>
      %150 = arith.select %149, %145, %126 : vector<7x256xi1>, vector<7x256xf32>
      %151 = vector.extract_strided_slice %116 {offsets = [0, 1024], sizes = [7, 256], strides = [1, 1]} : vector<7x2048xf32> to vector<7x256xf32>
      %cst_50 = arith.constant 4.000000e+00 : f32
      %152 = vector.broadcast %cst_50 : f32 to vector<1x256xf32>
      %153 = arith.cmpf ogt, %117, %152 : vector<1x256xf32>
      %154 = vector.shape_cast %153 : vector<1x256xi1> to vector<1x256xi1>
      %155 = vector.broadcast %154 : vector<1x256xi1> to vector<7x256xi1>
      %156 = arith.select %155, %151, %126 : vector<7x256xi1>, vector<7x256xf32>
      %157 = vector.extract_strided_slice %116 {offsets = [0, 1280], sizes = [7, 256], strides = [1, 1]} : vector<7x2048xf32> to vector<7x256xf32>
      %cst_51 = arith.constant 5.000000e+00 : f32
      %158 = vector.broadcast %cst_51 : f32 to vector<1x256xf32>
      %159 = arith.cmpf ogt, %117, %158 : vector<1x256xf32>
      %160 = vector.shape_cast %159 : vector<1x256xi1> to vector<1x256xi1>
      %161 = vector.broadcast %160 : vector<1x256xi1> to vector<7x256xi1>
      %162 = arith.select %161, %157, %126 : vector<7x256xi1>, vector<7x256xf32>
      %163 = vector.extract_strided_slice %116 {offsets = [0, 1536], sizes = [7, 256], strides = [1, 1]} : vector<7x2048xf32> to vector<7x256xf32>
      %cst_52 = arith.constant 6.000000e+00 : f32
      %164 = vector.broadcast %cst_52 : f32 to vector<1x256xf32>
      %165 = arith.cmpf ogt, %117, %164 : vector<1x256xf32>
      %166 = vector.shape_cast %165 : vector<1x256xi1> to vector<1x256xi1>
      %167 = vector.broadcast %166 : vector<1x256xi1> to vector<7x256xi1>
      %168 = arith.select %167, %163, %126 : vector<7x256xi1>, vector<7x256xf32>
      %169 = vector.extract_strided_slice %116 {offsets = [0, 1792], sizes = [7, 256], strides = [1, 1]} : vector<7x2048xf32> to vector<7x256xf32>
      %cst_53 = arith.constant 7.000000e+00 : f32
      %170 = vector.broadcast %cst_53 : f32 to vector<1x256xf32>
      %171 = arith.cmpf ogt, %117, %170 : vector<1x256xf32>
      %172 = vector.shape_cast %171 : vector<1x256xi1> to vector<1x256xi1>
      %173 = vector.broadcast %172 : vector<1x256xi1> to vector<7x256xi1>
      %174 = arith.select %173, %169, %126 : vector<7x256xi1>, vector<7x256xf32>
      %175 = tpu.concatenate %132, %138, %144, %150, %156, %162, %168, %174 in 1 : vector<7x256xf32>, vector<7x256xf32>, vector<7x256xf32>, vector<7x256xf32>, vector<7x256xf32>, vector<7x256xf32>, vector<7x256xf32>, vector<7x256xf32> -> vector<7x2048xf32>
      %176 = tpu.concatenate %6, %6, %6, %6, %6, %6, %6, %6 in 1 : vector<3x256xf32>, vector<3x256xf32>, vector<3x256xf32>, vector<3x256xf32>, vector<3x256xf32>, vector<3x256xf32>, vector<3x256xf32>, vector<3x256xf32> -> vector<3x2048xf32>
      %177 = vector.extract_strided_slice %175 {offsets = [0, 0], sizes = [3, 2048], strides = [1, 1]} : vector<7x2048xf32> to vector<3x2048xf32>
      %178 = arith.subf %177, %176 : vector<3x2048xf32>
      %179 = vector.extract_strided_slice %175 {offsets = [3, 0], sizes = [4, 2048], strides = [1, 1]} : vector<7x2048xf32> to vector<4x2048xf32>
      %180 = tpu.concatenate %178, %179 in 0 : vector<3x2048xf32>, vector<4x2048xf32> -> vector<7x2048xf32>
      %c0_54 = arith.constant 0 : index
      %c0_55 = arith.constant 0 : index
      %c0_56 = arith.constant 0 : index
      %181 = vector.load %arg7[%c0_54, %c0_55, %c0_56] : memref<1x7x2048xf32, #tpu.memory_space<vmem>>, vector<1x7x2048xf32>
      %182 = vector.shape_cast %181 : vector<1x7x2048xf32> to vector<7x2048xf32>
      %183 = vector.shape_cast %180 : vector<7x2048xf32> to vector<1x7x2048xf32>
      tpu.vector_store %arg7[%c0_54, %c0_55, %c0_56], %183 {strides = array<i32>} : memref<1x7x2048xf32, #tpu.memory_space<vmem>>, vector<1x7x2048xf32>,
    } else {
    }
    return
  }
  func.func @transform_0(%arg0: i32, %arg1: i32, %arg2: i32) -> (i32, i32, i32) {
    %c0_i32 = arith.constant 0 : i32
    %c0_i32_0 = arith.constant 0 : i32
    return %arg0, %arg2, %c0_i32 : i32, i32, i32
  }
  func.func @transform_1(%arg0: i32, %arg1: i32, %arg2: i32) -> (i32, i32, i32) {
    %c0_i32 = arith.constant 0 : i32
    %c0_i32_0 = arith.constant 0 : i32
    return %arg0, %c0_i32, %arg1 : i32, i32, i32
  }
  func.func @transform_2(%arg0: i32, %arg1: i32, %arg2: i32) -> (i32, i32, i32) {
    %c0_i32 = arith.constant 0 : i32
    %c0_i32_0 = arith.constant 0 : i32
    return %arg0, %c0_i32, %arg2 : i32, i32, i32
  }
  func.func @transform_3(%arg0: i32, %arg1: i32, %arg2: i32) -> (i32, i32) {
    %c0_i32 = arith.constant 0 : i32
    %c0_i32_0 = arith.constant 0 : i32
    %c0_i32_1 = arith.constant 0 : i32
    return %c0_i32, %c0_i32_0 : i32, i32
  }
  func.func @transform_4(%arg0: i32, %arg1: i32, %arg2: i32) -> (i32, i32, i32) {
    %c0_i32 = arith.constant 0 : i32
    %c0_i32_0 = arith.constant 0 : i32
    return %arg0, %c0_i32, %arg1 : i32, i32, i32
  }
}

</mosaic_0001>

<bundles_post_ra>
// kernel: tpu_custom_call.1
= control target key start
LH: loop header
LB: loop body
LE: loop exit
PB: predicated region body
PF: predicated region fallthrough
CT: control target
= control target key end

     0   :  { %s7189_s15 = smov 0   ;;  %s7191_s16 = smov 0   ;;  %s11301_s0 = inlined_call_operand.vmem [shape: f32[2,256,3], index: 0, kind: input, shape index: {}]   ;;  %s11302_s1 = inlined_call_operand.vmem [shape: f32[2,3,256], index: 1, kind: input, shape index: {}]   ;;  %s11303_s2 = inlined_call_operand.vmem [shape: f32[2,7,256], index: 2, kind: input, shape index: {}]   ;;  %s11304_s3 = inlined_call_operand.vmem [shape: bf16[128,128], index: 3, kind: input, shape index: {}]   ;;  %s11305_s4 = inlined_call_operand.vmem [shape: f32[2,7,2048], index: 4, kind: output, shape index: {}]  }
   0x1   :  { %s7193_s17 = smov 0  }
   0x2 LB: > { %s33_s18 = sadd.s32 1, %s7154_s16  ;;  %p6422_p0 = scmp.ge.s32.totalorder %s7158_s17, 1  ;;  %s7158_s17 = sphi %s7193_s17, %s14_s17   ;;  %s7154_s16 = sphi %s7191_s16, %s12724_s16   ;;  %s7150_s15 = sphi %s7189_s15, %s12723_s15  }
   0x3   : > { %p35_p1 = scmp.ge.s32.totalorder %s33_s18, 2  ;;  %p224_p2 = scmp.lt.s32.totalorder %s7158_s17, 3 }
   0x5   : > { %s12726_s18 = smov (%p35_p1, %s33_s18), 0  ;;  %p225_p3 = pnand %p6422_p0, %p224_p2 }
   0x7   : > { %228 = sbr.rel (%p225_p3) target bundleno = 1562 (0x61a), region = 36 }
   0xc   : > { %p277_p4 = scmp.lt.s32.totalorder %s7150_s15, 1  ;;  %v11312_v0 = vmov 2   ;;  %v11306_v1 = vmov 1   ;;  %v11310_v2 = vmov 0   ;;  %v11308_v23 = vmov 0.0  }
   0xd   : > { %7083 = vset.pattern.permute.xlu2 %v11312_v0  ;;  %7082 = vset.pattern.permute.xlu1 %v11306_v1 }
   0xe   : > { %7081 = vset.pattern.permute.xlu0 %v11310_v2  ;;  %s12728_s15 = smov (!%p277_p4, %s7150_s15), 1 }
   0xf   : > { %s7041_s19 = sshll.u32 %s12728_s15, 8  ;;  %s7042_s20 = sshll.u32 %s12728_s15, 3 }
  0x10   : > { %s7217_s23 = scalar_lea.vmem %s11301_s0, %s7041_s19  ;;  %s294_s26 = scalar_lea.vmem %s11302_s1, %s7042_s20 }
  0x11   : > { %v374_v3 = vld [vmem:[%s7217_s23 + $0xf0] sm:$0xff]  ;;  %v7223_v4 = vld [vmem:[%s294_s26] sm:$0x77]  ;;  %v375_v5 = vld [vmem:[%s7217_s23 + $0xf8] sm:$0xff]  ;;  %s7044_s27 = sshll.u32 %s12728_s15, 7  ;;  %s7043_s25 = sshll.u32 %s12728_s15, 4 }
  0x12   : > { %11802 = vst [vmem:[#allocation4_spill] sm:$0xff] %v7223_v4  ;;  %927 = vperm.xlu2 %7083, %v374_v3   ;;  %729 = vperm.xlu1 %7082, %v374_v3   ;;  %v358_v6 = vld [vmem:[%s7217_s23 + $0x70] sm:$0xff]  ;;  %v7229_v7 = vld [vmem:[%s7217_s23 + $0xe0] sm:$0xff]  ;;  %v359_v8 = vld [vmem:[%s7217_s23 + $0x78] sm:$0xff]  ;;  %s7283_s30 = scalar_lea.vmem %s11305_s4, %s7044_s27  ;;  %v934_v28 = vperm.slane %v7223_v4, 2  ;;  %v935_v29 = vperm.slane %v7223_v4, 6  ;;  %s9275_s27 = scalar_lea.vmem %s11303_s2, %s7043_s25 }
  0x13   : > { %6203 = vst [vmem:[#allocation1] ss:$2 sm:$0xff] %v7223_v4  ;;  %529 = vperm.xlu0 %7081, %v374_v3   ;;  %v373_v9 = vld [vmem:[%s7217_s23 + $0xe8] sm:$0xff]  ;;  %v7239_v10 = vld [vmem:[%s7217_s23 + $0xc0] sm:$0xff]  ;;  %v371_v16 = vld [vmem:[%s7217_s23 + $0xd8] sm:$0xff]  ;;  %v736_v30 = vperm.slane %v7223_v4, 1 }
  0x14   : > { %v7244_v11 = vld [vmem:[%s7217_s23 + $0x40] sm:$0xff]  ;;  %v7250_v12 = vld [vmem:[%s7217_s23 + $0xa8] sm:$0xff]  ;;  %v370_v17 = vld [vmem:[%s7217_s23 + $0xd0] sm:$0xff]  ;;  %320 = vst [vmem:[%s7283_s30] sm:$0x7f] %v11308_v23  ;;  %v737_v31 = vperm.slane %v7223_v4, 5  ;;  %v538_v33 = vperm.slane %v7223_v4, 0 }
  0x15   : > { %v357_v13 = vld [vmem:[%s7217_s23 + $0x68] sm:$0xff]  ;;  %v7255_v14 = vld [vmem:[%s7217_s23 + $0x60] sm:$0xff]  ;;  %v7272_v18 = vld [vmem:[%s7217_s23 + $0xb0] sm:$0xff]  ;;  %321 = vst [vmem:[%s7283_s30 + $0x8] sm:$0x7f] %v11308_v23  ;;  %v539_v34 = vperm.slane %v7223_v4, 4 }
  0x16   : > { %v7261_v15 = vld [vmem:[%s7217_s23 + $0x28] sm:$0xff]  ;;  %v7278_v19 = vld [vmem:[%s7217_s23 + $0x30] sm:$0xff]  ;;  %v7287_v21 = vld [vmem:[%s7217_s23 + $0x58] sm:$0xff]  ;;  %322 = vst [vmem:[%s7283_s30 + $0x10] sm:$0x7f] %v11308_v23  ;;  %v7350_v35 = vperm.slane %v934_v28, 2 }
  0x17   : > { %v7290_v22 = vld [vmem:[%s7217_s23 + $0x50] sm:$0xff]  ;;  %v7300_v24 = vld [vmem:[%s7217_s23 + $0x98] sm:$0xff]  ;;  %323 = vst [vmem:[%s7283_s30 + $0x18] sm:$0x7f] %v11308_v23  ;;  %v7317_v26 = vld [vmem:[%s7217_s23 + $0xc8] sm:$0xff]  ;;  %v7352_v36 = vperm.slane %v935_v29, 2 }
  0x18   : > { %324 = vst [vmem:[%s7283_s30 + $0x20] sm:$0x7f] %v11308_v23  ;;  %v7325_v27 = vld [vmem:[%s7217_s23 + $0x18] sm:$0xff]  ;;  %v7354_v37 = vperm.slane %v736_v30, 1  ;;  %v7356_v38 = vperm.slane %v737_v31, 1  ;;  %v7360_v39 = vperm.slane %v538_v33, 0 }
  0x19   : > { %325 = vst [vmem:[%s7283_s30 + $0x28] sm:$0x7f] %v11308_v23  ;;  %v7362_v40 = vperm.slane %v539_v34, 0 }
  0x1a   : > { %931 = vperm.xlu2 %7083, %v375_v5   ;;  %733 = vperm.xlu1 %7082, %v375_v5   ;;  %326 = vst [vmem:[%s7283_s30 + $0x30] sm:$0x7f] %v11308_v23 }
  0x1b   : > { %534 = vperm.xlu0 %7081, %v375_v5   ;;  %327 = vst [vmem:[%s7283_s30 + $0x38] sm:$0x7f] %v11308_v23 }
  0x1c   : > { %328 = vst [vmem:[%s7283_s30 + $0x40] sm:$0x7f] %v11308_v23 }
  0x1d   : > { %329 = vst [vmem:[%s7283_s30 + $0x48] sm:$0x7f] %v11308_v23 }
  0x1e   : > { %330 = vst [vmem:[%s7283_s30 + $0x50] sm:$0x7f] %v11308_v23 }
  0x1f   : > { %331 = vst [vmem:[%s7283_s30 + $0x58] sm:$0x7f] %v11308_v23 }
  0x20   : > { %332 = vst [vmem:[%s7283_s30 + $0x60] sm:$0x7f] %v11308_v23 }
  0x21   : > { %333 = vst [vmem:[%s7283_s30 + $0x68] sm:$0x7f] %v11308_v23 }
  0x22   : > { %7085 = vset.pattern.permute.xlu2 %v11310_v2  ;;  %7084 = vset.pattern.permute.xlu1 %v11310_v2  ;;  %334 = vst [vmem:[%s7283_s30 + $0x70] sm:$0x7f] %v11308_v23 }
  0x23   : > { %449 = vperm.xlu0 %7081, %v358_v6   ;;  %519 = vperm.xlu2 %7085, %v7229_v7   ;;  %335 = vst [vmem:[%s7283_s30 + $0x78] sm:$0x7f] %v11308_v23 }
  0x24   : > { %454 = vperm.xlu1 %7084, %v359_v8  }
  0x2b   : > { %524 = vperm.xlu0 %7081, %v373_v9   ;;  %7087 = vset.pattern.permute.xlu2 %v11306_v1 }
  0x2c   : > { %7086 = vset.pattern.permute.xlu1 %v11306_v1  ;;  %669 = vperm.xlu2 %7087, %v359_v8  }
  0x2d   : > { %665 = vperm.xlu1 %7086, %v358_v6  }
  0x33   : > { %499 = vperm.xlu0 %7081, %v7239_v10  }
  0x34   : > { %7088 = vset.pattern.permute.xlu2 %v11312_v0 }
  0x35   : > { %725 = vperm.xlu1 %7086, %v373_v9   ;;  %863 = vperm.xlu2 %7088, %v358_v6  }
  0x3b   : > { %419 = vperm.xlu0 %7081, %v7244_v11  }
  0x3d   : > { %7089 = vset.pattern.permute.xlu1 %v11312_v0  ;;  %919 = vperm.xlu2 %7088, %v7229_v7  }
  0x3e   : > { %867 = vperm.xlu1 %7089, %v359_v8  }
  0x43   : > { %484 = vperm.xlu0 %7081, %v7250_v12  }
  0x45   : > { %7091 = vset.pattern.permute.xlu2 %v11310_v2 }
  0x46   : > { %7090 = vset.pattern.permute.xlu1 %v11310_v2  ;;  %444 = vperm.xlu2 %7091, %v357_v13  }
  0x47   : > { %439 = vperm.xlu1 %7090, %v7255_v14  }
  0x4b   : > { %404 = vperm.xlu0 %7081, %v7261_v15  }
  0x4e   : > { %514 = vperm.xlu2 %7091, %v371_v16  }
  0x4f   : > { %509 = vperm.xlu1 %7090, %v370_v17  }
  0x53   : > { %7115 = vset.pattern.permute.xlu0 %v11312_v0 }
  0x54   : > { %923 = vperm.xlu0 %7115, %v373_v9  }
  0x56   : > { %7093 = vset.pattern.permute.xlu2 %v11306_v1 }
  0x57   : > { %7092 = vset.pattern.permute.xlu1 %v11306_v1  ;;  %713 = vperm.xlu2 %7093, %v370_v17  }
  0x58   : > { %661 = vperm.xlu1 %7092, %v357_v13  }
  0x5c   : > { %859 = vperm.xlu0 %7115, %v357_v13  }
  0x5f   : > { %7094 = vset.pattern.permute.xlu2 %v11312_v0 }
  0x60   : > { %717 = vperm.xlu1 %7092, %v371_v16   ;;  %855 = vperm.xlu2 %7094, %v7255_v14  }
  0x64   : > { %895 = vperm.xlu0 %7115, %v7272_v18  }
  0x68   : > { %7095 = vset.pattern.permute.xlu1 %v11312_v0  ;;  %915 = vperm.xlu2 %7094, %v371_v16  }
  0x69   : > { %911 = vperm.xlu1 %7095, %v370_v17  }
  0x6c   : > { %831 = vperm.xlu0 %7115, %v7278_v19   ;;  %v928_v20 = vpop.permute.xlu2 %927 }
  0x6d   : > { %v1000_v41 = vsub.f32 %v928_v20, %v7350_v35  ;;  %v1001_v42 = vsub.f32 %v928_v20, %v7352_v36 }
  0x6f   : > { %v1256_v52 = vmul.f32 %v1000_v41, %v1000_v41  ;;  %v1257_v53 = vmul.f32 %v1001_v42, %v1001_v42 }
  0x70   : > { %7097 = vset.pattern.permute.xlu2 %v11310_v2 }
  0x71   : > { %7096 = vset.pattern.permute.xlu1 %v11310_v2  ;;  %434 = vperm.xlu2 %7097, %v7287_v21  }
  0x72   : > { %429 = vperm.xlu1 %7096, %v7290_v22  }
  0x74   : > { %883 = vperm.xlu0 %7115, %v7300_v24   ;;  %v932_v25 = vpop.permute.xlu2 %931 }
  0x75   : > { %v1002_v58 = vsub.f32 %v932_v25, %v7350_v35  ;;  %v1003_v59 = vsub.f32 %v932_v25, %v7352_v36 }
  0x77   : > { %v1258_v8 = vmul.f32 %v1002_v58, %v1002_v58  ;;  %v1259_v9 = vmul.f32 %v1003_v59, %v1003_v59  ;;  %v7442_v58 = vld [vmem:[%s7217_s23 + $0xb8] sm:$0xff] }
  0x79   : > { %7098 = vset.pattern.permute.xlu2 %v11306_v1 }
  0x7a   : > { %504 = vperm.xlu1 %7096, %v7317_v26   ;;  %649 = vperm.xlu2 %7098, %v7290_v22  }
  0x7c   : > { %819 = vperm.xlu0 %7115, %v7325_v27  }
  0x7d   : > { %v7342_v32 = vpop.permute.xlu2 %519 }
  0x82   : > { %7099 = vset.pattern.permute.xlu1 %v11306_v1  ;;  %705 = vperm.xlu2 %7098, %v7239_v10  }
  0x83   : > { %653 = vperm.xlu1 %7099, %v7287_v21  }
  0x84   : > { %7126 = vset.pattern.permute.xlu0 %v11306_v1  ;;  %v730_v43 = vpop.permute.xlu1 %729 }
  0x85   : > { %v802_v44 = vsub.f32 %v730_v43, %v7354_v37  ;;  %v803_v45 = vsub.f32 %v730_v43, %v7356_v38  ;;  %v530_v46 = vpop.permute.xlu0 %529  ;;  %721 = vperm.xlu0 %7126, %v7229_v7   ;;  %v7428_v43 = vld [vmem:[%s7217_s23 + $0x48] sm:$0xff] }
  0x86   : > { %v604_v47 = vsub.f32 %v530_v46, %v7360_v39  ;;  %v605_v48 = vsub.f32 %v530_v46, %v7362_v40  ;;  %v7373_v49 = vpop.permute.xlu2 %669 }
  0x87   : > { %v1128_v50 = vmul.f32 %v802_v44, %v802_v44  ;;  %v1129_v51 = vmul.f32 %v803_v45, %v803_v45 }
  0x88   : > { %v1064_v54 = vmul.f32 %v604_v47, %v604_v47  ;;  %v1065_v55 = vmul.f32 %v605_v48, %v605_v48 }
  0x8a   : > { %v1192_v56 = vadd.f32 %v1128_v50, %v1064_v54  ;;  %v1193_v57 = vadd.f32 %v1129_v51, %v1065_v55  ;;  %7101 = vset.pattern.permute.xlu2 %v11312_v0 }
  0x8b   : > { %7100 = vset.pattern.permute.xlu1 %v11312_v0  ;;  %851 = vperm.xlu2 %7101, %v7287_v21  }
  0x8c   : > { %v7380_v60 = vadd.f32 %v1256_v52, %v1192_v56  ;;  %v7382_v61 = vadd.f32 %v1257_v53, %v1193_v57  ;;  %847 = vperm.xlu1 %7100, %v7290_v22   ;;  %v734_v62 = vpop.permute.xlu1 %733 }
  0x8d   : > { %v804_v63 = vsub.f32 %v734_v62, %v7354_v37  ;;  %v805_v3 = vsub.f32 %v734_v62, %v7356_v38  ;;  %v535_v5 = vpop.permute.xlu0 %534  ;;  %657 = vperm.xlu0 %7126, %v7255_v14  }
  0x8e   : > { %11803 = vst [vmem:[#allocation5_spill] sm:$0xff] %v7380_v60  ;;  %v606_v6 = vsub.f32 %v535_v5, %v7360_v39  ;;  %v607_v7 = vsub.f32 %v535_v5, %v7362_v40  ;;  %vm11361_vm0 = vcmp.lt.f32.partialorder %v7380_v60, 0.36  ;;  %vm11360_vm1 = vcmp.lt.f32.partialorder %v7382_v61, 0.36 }
  0x8f   : > { %11804 = vst [vmem:[#allocation6_spill] sm:$0xff] %v7382_v61  ;;  %v1130_v13 = vmul.f32 %v804_v63, %v804_v63  ;;  %v1131_v16 = vmul.f32 %v805_v3, %v805_v3  ;;  %v864_v17 = vpop.permute.xlu2 %863  ;;  %v7396_v14 = vsel %vm11361_vm0, 1.0, %v11308_v23  ;;  %v7401_v28 = vsel %vm11360_vm1, 1.0, %v11308_v23 }
  0x90   : > { %v1066_v20 = vmul.f32 %v606_v6, %v606_v6  ;;  %v1067_v21 = vmul.f32 %v607_v7, %v607_v7  ;;  %11805 = vst [vmem:[#allocation7_spill] sm:$0xff] %v7396_v14  ;;  %v1546_v34 = vpack.c.bf16 %v7401_v28, %v7396_v14  ;;  %v968_v59 = vsub.f32 %v864_v17, %v7350_v35 }
  0x91   : > { %11806 = vst [vmem:[#allocation8_spill] sm:$0xff] %v7401_v28  ;;  %v969_v63 = vsub.f32 %v864_v17, %v7352_v36  ;;  %v11822_v60 = vmov 2  }
  0x92   : > { %v1194_v22 = vadd.f32 %v1130_v13, %v1066_v20  ;;  %v1195_v25 = vadd.f32 %v1131_v16, %v1067_v21  ;;  %v1894_v44 = vunpack.c.l.b16 %v1546_v34  ;;  %v1895_v46 = vunpack.c.h.b16 %v1546_v34 }
  0x93   : > { %907 = vperm.xlu2 %7101, %v7317_v26  }
  0x94   : > { %v7403_v29 = vadd.f32 %v1258_v8, %v1194_v22  ;;  %v7405_v30 = vadd.f32 %v1259_v9, %v1195_v25  ;;  %903 = vperm.xlu1 %7100, %v7239_v10   ;;  %v1224_v25 = vmul.f32 %v968_v59, %v968_v59 }
  0x95   : > { %709 = vperm.xlu0 %7126, %v7317_v26   ;;  %v450_v31 = vpop.permute.xlu0 %449 }
  0x96   : > { %11807 = vst [vmem:[#allocation9_spill] sm:$0xff] %v7403_v29  ;;  %v455_v33 = vpop.permute.xlu1 %454  ;;  %vm11357_vm2 = vcmp.lt.f32.partialorder %v7403_v29, 0.36  ;;  %vm11356_vm3 = vcmp.lt.f32.partialorder %v7405_v30, 0.36  ;;  %v572_v53 = vsub.f32 %v450_v31, %v7360_v39  ;;  %v573_v55 = vsub.f32 %v450_v31, %v7362_v40 }
  0x97   : > { %11808 = vst [vmem:[#allocation10_spill] sm:$0xff] %v7405_v30  ;;  %v7416_v41 = vsel %vm11357_vm2, 1.0, %v11308_v23  ;;  %v7421_v10 = vsel %vm11356_vm3, 1.0, %v11308_v23  ;;  %v7423_v26 = vpop.permute.xlu2 %919  ;;  %v1225_v31 = vmul.f32 %v969_v63, %v969_v63 }
  0x98   : > { %11809 = vst [vmem:[#allocation11_spill] sm:$0xff] %v7416_v41  ;;  %v1547_v42 = vpack.c.bf16 %v7421_v10, %v7416_v41  ;;  %v1032_v62 = vmul.f32 %v572_v53, %v572_v53  ;;  %v1033_v6 = vmul.f32 %v573_v55, %v573_v55 }
  0x99   : > { %11810 = vst [vmem:[#allocation12_spill] sm:$0xff] %v7421_v10 }
  0x9a   : > { %v1896_v45 = vunpack.c.l.b16 %v1547_v42  ;;  %v1897_v47 = vunpack.c.h.b16 %v1547_v42 }
  0x9b   : > { %7103 = vset.pattern.permute.xlu2 %v11310_v2 }
  0x9c   : > { %7102 = vset.pattern.permute.xlu1 %v11310_v2  ;;  %489 = vperm.xlu2 %7103, %v7272_v18   ;;  %v1912_v48 = vpack.c.b16 %v1896_v45, %v1894_v44  ;;  %v1913_v50 = vpack.c.b16 %v1897_v47, %v1895_v46  ;;  %v772_v46 = vsub.f32 %v7373_v49, %v7354_v37 }
  0x9d   : > { %424 = vperm.xlu1 %7102, %v7428_v43   ;;  %645 = vperm.xlu0 %7126, %v7428_v43   ;;  %v525_v51 = vpop.permute.xlu0 %524  ;;  %v773_v47 = vsub.f32 %v7373_v49, %v7356_v38 }
  0x9e   : > { %1930 = vmatpush.bf16.msra.mxu2 %v1912_v48  ;;  %1979 = vmatpush.bf16.msra.mxu3 %v1913_v50  ;;  %v602_v3 = vsub.f32 %v525_v51, %v7360_v39  ;;  %v603_v5 = vsub.f32 %v525_v51, %v7362_v40  ;;  %v574_v48 = vsub.f32 %v455_v33, %v7360_v39 }
  0x9f   : > { %v666_v52 = vpop.permute.xlu1 %665  ;;  %v575_v50 = vsub.f32 %v455_v33, %v7362_v40  ;;  %v1098_v49 = vmul.f32 %v772_v46, %v772_v46 }
  0xa0   : > { %v7436_v54 = vpop.permute.xlu2 %444  ;;  %v770_v56 = vsub.f32 %v666_v52, %v7354_v37  ;;  %v771_v57 = vsub.f32 %v666_v52, %v7356_v38  ;;  %v1062_v16 = vmul.f32 %v602_v3, %v602_v3  ;;  %v1063_v20 = vmul.f32 %v603_v5, %v603_v5 }
  0xa1   : > { %v1034_v59 = vmul.f32 %v574_v48, %v574_v48  ;;  %v1035_v33 = vmul.f32 %v575_v50, %v575_v50 }
  0xa2   : > { %v1096_v7 = vmul.f32 %v770_v56, %v770_v56  ;;  %v1097_v8 = vmul.f32 %v771_v57, %v771_v57  ;;  %v1099_v57 = vmul.f32 %v773_v47, %v773_v47 }
  0xa4   : > { %7104 = vset.pattern.permute.xlu2 %v11306_v1  ;;  %v1160_v34 = vadd.f32 %v1096_v7, %v1032_v62  ;;  %v1161_v42 = vadd.f32 %v1097_v8, %v1033_v6  ;;  %v1162_v6 = vadd.f32 %v1098_v49, %v1034_v59  ;;  %v1163_v7 = vadd.f32 %v1099_v57, %v1035_v33  ;;  %v364_v33 = vld [vmem:[%s7217_s23 + $0xa0] sm:$0xff] }
  0xa5   : > { %494 = vperm.xlu1 %7102, %v7442_v58   ;;  %v7450_v9 = vpop.permute.xlu0 %499  ;;  %641 = vperm.xlu2 %7104, %v7244_v11  }
  0xa6   : > { %v7467_v53 = vadd.f32 %v1224_v25, %v1160_v34  ;;  %v7469_v55 = vadd.f32 %v1225_v31, %v1161_v42 }
  0xa7   : > { %v726_v13 = vpop.permute.xlu1 %725 }
  0xa8   : > { %v800_v17 = vsub.f32 %v726_v13, %v7354_v37  ;;  %v801_v21 = vsub.f32 %v726_v13, %v7356_v38  ;;  %v7455_v22 = vpop.permute.xlu2 %514  ;;  %11811 = vst [vmem:[#allocation13_spill] sm:$0xff] %v7467_v53  ;;  %vm11353_vm4 = vcmp.lt.f32.partialorder %v7467_v53, 0.36  ;;  %vm11352_vm5 = vcmp.lt.f32.partialorder %v7469_v55, 0.36 }
  0xa9   : > { %11812 = vst [vmem:[#allocation14_spill] sm:$0xff] %v7469_v55 }
  0xaa   : > { %v1126_v44 = vmul.f32 %v800_v17, %v800_v17  ;;  %v1127_v45 = vmul.f32 %v801_v21, %v801_v21 }
  0xac   : > { %v7463_v51 = vadd.f32 %v1126_v44, %v1062_v16  ;;  %v7465_v52 = vadd.f32 %v1127_v45, %v1063_v20  ;;  %v7490_v16 = vsel %vm11352_vm5, 1.0, %v11308_v23 }
  0xad   : > { %7105 = vset.pattern.permute.xlu1 %v11306_v1  ;;  %701 = vperm.xlu2 %7104, %v7442_v58   ;;  %v7473_v56 = vpop.permute.xlu0 %419  ;;  %11814 = vst [vmem:[#allocation16_spill] sm:$0xff] %v7490_v16 }
  0xae   : > { %697 = vperm.xlu1 %7105, %v7272_v18   ;;  %v7485_v18 = vsel %vm11353_vm4, 1.0, %v11308_v23 }
  0xaf   : > { %11813 = vst [vmem:[#allocation15_spill] sm:$0xff] %v7485_v18  ;;  %v1530_v25 = vpack.c.bf16 %v7490_v16, %v7485_v18 }
  0xb0   : > { %v868_v62 = vpop.permute.xlu1 %867 }
  0xb1   : > { %v970_v63 = vsub.f32 %v868_v62, %v7350_v35  ;;  %v971_v3 = vsub.f32 %v868_v62, %v7352_v36  ;;  %v7478_v5 = vpop.permute.xlu2 %713  ;;  %v1662_v44 = vunpack.c.l.b16 %v1530_v25  ;;  %v1663_v46 = vunpack.c.h.b16 %v1530_v25 }
  0xb2   : > { %v795_v29 = vsub.f32 %v7478_v5, %v7356_v38 }
  0xb3   : > { %v1226_v8 = vmul.f32 %v970_v63, %v970_v63  ;;  %v1227_v13 = vmul.f32 %v971_v3, %v971_v3  ;;  %v351_v63 = vld [vmem:[%s7217_s23 + $0x38] sm:$0xff] }
  0xb5   : > { %v7492_v20 = vadd.f32 %v1226_v8, %v1162_v6  ;;  %v7494_v17 = vadd.f32 %v1227_v13, %v1163_v7  ;;  %7107 = vset.pattern.permute.xlu2 %v11312_v0  ;;  %v7497_v21 = vpop.permute.xlu0 %484  ;;  %v7536_v8 = vld [vmem:[%s7217_s23 + $0x90] sm:$0xff] }
  0xb6   : > { %11817 = vst [vmem:[#allocation19_spill] sm:$0xff] %v7497_v21  ;;  %7106 = vset.pattern.permute.xlu1 %v11312_v0  ;;  %843 = vperm.xlu2 %7107, %v7428_v43  }
  0xb7   : > { %11815 = vst [vmem:[#allocation17_spill] sm:$0xff] %v7492_v20  ;;  %vm11351_vm6 = vcmp.lt.f32.partialorder %v7492_v20, 0.36  ;;  %vm11350_vm7 = vcmp.lt.f32.partialorder %v7494_v17, 0.36  ;;  %839 = vperm.xlu1 %7106, %v7244_v11   ;;  %681 = vperm.xlu0 %7126, %v7536_v8   ;;  %v7578_v20 = vsub.f32 %v7450_v9, %v7362_v40 }
  0xb8   : > { %11816 = vst [vmem:[#allocation18_spill] sm:$0xff] %v7494_v17  ;;  %v7509_v31 = vsel %vm11351_vm6, 1.0, %v11308_v23  ;;  %v7514_v34 = vsel %vm11350_vm7, 1.0, %v11308_v23 }
  0xb9   : > { %11818 = vst [vmem:[#allocation20_spill] sm:$0xff] %v7509_v31  ;;  %v7516_v43 = vpop.permute.xlu1 %439  ;;  %v1531_v42 = vpack.c.bf16 %v7514_v34, %v7509_v31 }
  0xba   : > { %11819 = vst [vmem:[#allocation21_spill] sm:$0xff] %v7514_v34  ;;  %v7520_v11 = vpop.permute.xlu2 %855 }
  0xbb   : > { %v1664_v45 = vunpack.c.l.b16 %v1531_v42  ;;  %v1665_v47 = vunpack.c.h.b16 %v1531_v42  ;;  %v600_v42 = vsub.f32 %v7342_v32, %v7360_v39 }
  0xbd   : > { %v7522_v48 = vpop.permute.xlu0 %404  ;;  %v1680_v50 = vpack.c.b16 %v1664_v45, %v1662_v44  ;;  %v1681_v49 = vpack.c.b16 %v1665_v47, %v1663_v46  ;;  %v601_v44 = vsub.f32 %v7342_v32, %v7362_v40  ;;  %v997_v45 = vsub.f32 %v7423_v26, %v7352_v36 }
  0xbe   : > { %11820 = vst [vmem:[#allocation22_spill] sm:$0xff] %v7522_v48  ;;  %7108 = vset.pattern.permute.xlu2 %v11310_v2  ;;  %v592_v46 = vsub.f32 %v7450_v9, %v7360_v39  ;;  %v570_v47 = vsub.f32 %v7436_v54, %v7360_v39  ;;  %v598_v32 = vsub.f32 %v7455_v22, %v7360_v39 }
  0xbf   : > { %1698 = vmatpush.bf16.msra.mxu0 %v1680_v50  ;;  %1747 = vmatpush.bf16.msra.mxu1 %v1681_v49  ;;  %v571_v50 = vsub.f32 %v7436_v54, %v7362_v40  ;;  %v7562_v23 = vmul.f32 %v600_v42, %v600_v42  ;;  %v7570_v4 = vmul.f32 %v997_v45, %v997_v45 }
  0xc0   : > { %899 = vperm.xlu1 %7106, %v7442_v58   ;;  %409 = vperm.xlu2 %7108, %v7278_v19   ;;  %v794_v54 = vsub.f32 %v7478_v5, %v7354_v37  ;;  %v7580_v42 = vmul.f32 %v592_v46, %v592_v46  ;;  %v1030_v55 = vmul.f32 %v570_v47, %v570_v47 }
  0xc1   : > { %v510_v57 = vpop.permute.xlu1 %509  ;;  %v1031_v53 = vmul.f32 %v571_v50, %v571_v50 }
  0xc2   : > { %v916_v59 = vpop.permute.xlu2 %915  ;;  %v1120_v46 = vmul.f32 %v794_v54, %v794_v54  ;;  %v596_v47 = vsub.f32 %v510_v57, %v7360_v39 }
  0xc3   : > { %v995_v5 = vsub.f32 %v916_v59, %v7352_v36 }
  0xc5   : > { %v1251_v28 = vmul.f32 %v995_v5, %v995_v5 }
  0xc6   : > { %v924_v62 = vpop.permute.xlu0 %923 }
  0xc8   : > { %7109 = vset.pattern.permute.xlu1 %v11310_v2  ;;  %479 = vperm.xlu2 %7108, %v364_v33   ;;  %v7566_v2 = vmul.f32 %v601_v44, %v601_v44  ;;  %v998_v44 = vsub.f32 %v924_v62, %v7350_v35 }
  0xc9   : > { %414 = vperm.xlu1 %7109, %v351_v63  }
  0xca   : > { %v662_v3 = vpop.permute.xlu1 %661 }
  0xcb   : > { %v7530_v6 = vpop.permute.xlu2 %434  ;;  %v768_v61 = vsub.f32 %v662_v3, %v7354_v37  ;;  %v769_v50 = vsub.f32 %v662_v3, %v7356_v38 }
  0xcd   : > { %v1094_v3 = vmul.f32 %v768_v61, %v768_v61 }
  0xce   : > { %v860_v7 = vpop.permute.xlu0 %859 }
  0xcf   : > { %v967_v54 = vsub.f32 %v860_v7, %v7352_v36  ;;  %v1158_v21 = vadd.f32 %v1094_v3, %v1030_v55 }
  0xd0   : > { %7111 = vset.pattern.permute.xlu2 %v11306_v1 }
  0xd1   : > { %7110 = vset.pattern.permute.xlu1 %v11306_v1  ;;  %637 = vperm.xlu2 %7111, %v351_v63  }
  0xd2   : > { %633 = vperm.xlu1 %7110, %v7278_v19   ;;  %v718_v58 = vpop.permute.xlu1 %717  ;;  %v996_v19 = vsub.f32 %v7423_v26, %v7350_v35  ;;  %v599_v26 = vsub.f32 %v7455_v22, %v7362_v40  ;;  %v1058_v22 = vmul.f32 %v598_v32, %v598_v32  ;;  %v994_v32 = vsub.f32 %v916_v59, %v7350_v35 }
  0xd3   : > { %v796_v45 = vsub.f32 %v718_v58, %v7354_v37  ;;  %v797_v9 = vsub.f32 %v718_v58, %v7356_v38  ;;  %v1254_v58 = vmul.f32 %v998_v44, %v998_v44  ;;  %v1121_v59 = vmul.f32 %v795_v29, %v795_v29  ;;  %v7615_v29 = vld [vmem:[%s7217_s23 + $0x20] sm:$0xff] }
  0xd4   : > { %v7538_v13 = vpop.permute.xlu2 %649  ;;  %v7568_v0 = vmul.f32 %v996_v19, %v996_v19  ;;  %v999_v19 = vsub.f32 %v924_v62, %v7352_v36  ;;  %v1059_v30 = vmul.f32 %v599_v26, %v599_v26  ;;  %v597_v62 = vsub.f32 %v510_v57, %v7362_v40 }
  0xd5   : > { %v966_v26 = vsub.f32 %v860_v7, %v7350_v35  ;;  %v1122_v31 = vmul.f32 %v796_v45, %v796_v45  ;;  %v1123_v18 = vmul.f32 %v797_v9, %v797_v9  ;;  %v1056_v44 = vmul.f32 %v596_v47, %v596_v47 }
  0xd6   : > { %v7541_v25 = vpop.permute.xlu0 %895  ;;  %v1255_v34 = vmul.f32 %v999_v19, %v999_v19  ;;  %v1095_v19 = vmul.f32 %v769_v50, %v769_v50  ;;  %v1057_v7 = vmul.f32 %v597_v62, %v597_v62  ;;  %v1250_v45 = vmul.f32 %v994_v32, %v994_v32 }
  0xd7   : > { %v1222_v61 = vmul.f32 %v966_v26, %v966_v26  ;;  %v7609_v9 = vadd.f32 %v1254_v58, %v7463_v51  ;;  %v1186_v48 = vadd.f32 %v1122_v31, %v1058_v22  ;;  %v569_v62 = vsub.f32 %v7516_v43, %v7362_v40 }
  0xd8   : > { %v7612_v14 = vadd.f32 %v1255_v34, %v7465_v52  ;;  %v964_v32 = vsub.f32 %v7520_v11, %v7350_v35  ;;  %v965_v51 = vsub.f32 %v7520_v11, %v7352_v36  ;;  %v1159_v5 = vadd.f32 %v1095_v19, %v1031_v53 }
  0xd9   : > { %693 = vperm.xlu2 %7111, %v7250_v12   ;;  %11823 = vst [vmem:[#allocation24_spill] sm:$0xff] %v7609_v9  ;;  %v11825_v52 = vmov 0   ;;  %v1184_v34 = vadd.f32 %v1120_v46, %v1056_v44  ;;  %v1185_v31 = vadd.f32 %v1121_v59, %v1057_v7  ;;  %v7624_v22 = vadd.f32 %v1222_v61, %v1158_v21 }
  0xda   : > { %689 = vperm.xlu1 %7110, %v364_v33   ;;  %11824 = vst [vmem:[#allocation25_spill] sm:$0xff] %v7612_v14  ;;  %vm11372_vm8 = vcmp.lt.f32.partialorder %v7609_v9, 0.36  ;;  %vm11371_vm9 = vcmp.lt.f32.partialorder %v7612_v14, 0.36  ;;  %v7632_v55 = vadd.f32 %v1250_v45, %v1186_v48  ;;  %v566_v53 = vsub.f32 %v7530_v6, %v7360_v39 }
  0xdb   : > { %v912_v49 = vpop.permute.xlu1 %911  ;;  %11826 = vst [vmem:[#allocation26_spill] sm:$0xff] %v7624_v22  ;;  %v7648_v46 = vmul.f32 %v7578_v20, %v7578_v20  ;;  %v7652_v48 = vmul.f32 %v569_v62, %v569_v62  ;;  %v567_v58 = vsub.f32 %v7530_v6, %v7362_v40  ;;  %vm11355_vm10 = vcmp.lt.f32.partialorder %v7624_v22, 0.36 }
  0xdc   : > { %v7560_v1 = vpop.permute.xlu2 %705  ;;  %v993_v57 = vsub.f32 %v912_v49, %v7352_v36  ;;  %11828 = vst [vmem:[#allocation28_spill] sm:$0xff] %v7632_v55  ;;  %v762_v20 = vsub.f32 %v7538_v13, %v7354_v37  ;;  %v7673_v6 = vmul.f32 %v965_v51, %v965_v51  ;;  %vm11394_vm12 = vcmp.lt.f32.partialorder %v7632_v55, 0.36 }
  0xdd   : > { %v763_v44 = vsub.f32 %v7538_v13, %v7356_v38  ;;  %v790_v61 = vsub.f32 %v7560_v1, %v7354_v37 }
  0xde   : > { %v7574_v17 = vpop.permute.xlu0 %831  ;;  %v1249_v50 = vmul.f32 %v993_v57, %v993_v57  ;;  %v1026_v57 = vmul.f32 %v566_v53, %v566_v53  ;;  %v1088_v45 = vmul.f32 %v762_v20, %v762_v20 }
  0xdf   : > { %11821 = vst [vmem:[#allocation23_spill] sm:$0xff] %v7574_v17  ;;  %v1187_v17 = vadd.f32 %v1123_v18, %v1059_v30  ;;  %v1116_v22 = vmul.f32 %v790_v61, %v790_v61 }
  0xe1   : > { %7113 = vset.pattern.permute.xlu2 %v11822_v60 }
  0xe2   : > { %7112 = vset.pattern.permute.xlu1 %v11822_v60  ;;  %887 = vperm.xlu2 %7113, %v364_v33   ;;  %v992_v33 = vsub.f32 %v912_v49, %v7350_v35  ;;  %v1223_v49 = vmul.f32 %v967_v54, %v967_v54 }
  0xe3   : > { %835 = vperm.xlu1 %7112, %v351_v63   ;;  %v568_v63 = vsub.f32 %v7516_v43, %v7360_v39  ;;  %v7638_v43 = vadd.f32 %v1251_v28, %v1187_v17  ;;  %v11832_v28 = vmov 0.0  }
  0xe4   : > { %v7598_v16 = vpop.permute.xlu1 %429  ;;  %v1248_v47 = vmul.f32 %v992_v33, %v992_v33  ;;  %v7630_v30 = vadd.f32 %v1223_v49, %v1159_v5  ;;  %v7661_v17 = vsel %vm11372_vm8, 1.0, %v11832_v28  ;;  %v7666_v3 = vsel %vm11371_vm9, 1.0, %v11832_v28 }
  0xe5   : > { %v7602_v10 = vpop.permute.xlu2 %851  ;;  %11829 = vst [vmem:[#allocation29_spill] sm:$0xff] %v7638_v43  ;;  %v7650_v26 = vmul.f32 %v568_v63, %v568_v63  ;;  %v7671_v33 = vmul.f32 %v964_v32, %v964_v32  ;;  %vm11393_vm13 = vcmp.lt.f32.partialorder %v7638_v43, 0.36  ;;  %v7683_v59 = vsel %vm11355_vm10, 1.0, %v11832_v28 }
  0xe6   : > { %v7606_v41 = vpop.permute.xlu0 %883  ;;  %11827 = vst [vmem:[#allocation27_spill] sm:$0xff] %v7630_v30  ;;  %v7640_v21 = vadd.f32 %v1248_v47, %v1184_v34  ;;  %vm11354_vm11 = vcmp.lt.f32.partialorder %v7630_v30, 0.36  ;;  %v1027_v63 = vmul.f32 %v567_v58, %v567_v58  ;;  %v7689_v19 = vpack.c.bf16 %v7666_v3, %v7661_v17 }
  0xe7   : > { %11833 = vst [vmem:[#allocation32_spill] sm:$0xff] %v7661_v17  ;;  %v7694_v7 = vsel %vm11354_vm11, 1.0, %v11832_v28  ;;  %v791_v49 = vsub.f32 %v7560_v1, %v7356_v38  ;;  %v7716_v1 = vsel %vm11394_vm12, 1.0, %v11832_v28  ;;  %v564_v62 = vsub.f32 %v7598_v16, %v7360_v39 }
  0xe8   : > { %11830 = vst [vmem:[#allocation30_spill] sm:$0xff] %v7640_v21  ;;  %vm11398_vm14 = vcmp.lt.f32.partialorder %v7640_v21, 0.36  ;;  %v565_v32 = vsub.f32 %v7598_v16, %v7362_v40  ;;  %v962_v51 = vsub.f32 %v7602_v10, %v7350_v35  ;;  %v963_v5 = vsub.f32 %v7602_v10, %v7352_v36 }
  0xe9   : > { %11834 = vst [vmem:[#allocation33_spill] sm:$0xff] %v7666_v3  ;;  %v7705_v13 = vsel %vm11398_vm14, 1.0, %v11832_v28  ;;  %v7737_v30 = vpack.c.bf16 %v7694_v7, %v7683_v59  ;;  %v1117_v16 = vmul.f32 %v791_v49, %v791_v49 }
  0xea   : > { %7114 = vset.pattern.permute.xlu2 %v11825_v52  ;;  %11835 = vst [vmem:[#allocation34_spill] sm:$0xff] %v7683_v59  ;;  %v1025_v21 = vmul.f32 %v565_v32, %v565_v32  ;;  %v1218_v61 = vmul.f32 %v962_v51, %v962_v51  ;;  %v1219_v49 = vmul.f32 %v963_v5, %v963_v5 }
  0xeb   : > { %891 = vperm.xlu1 %7112, %v7250_v12   ;;  %399 = vperm.xlu2 %7114, %v7615_v29   ;;  %v7642_v12 = vadd.f32 %v1249_v50, %v1185_v31  ;;  %11836 = vst [vmem:[#allocation35_spill] sm:$0xff] %v7694_v7  ;;  %v7721_v50 = vsel %vm11393_vm13, 1.0, %v11832_v28  ;;  %v1089_v31 = vmul.f32 %v763_v44, %v763_v44 }
  0xec   : > { %v7634_v18 = vpop.permute.xlu1 %504  ;;  %11837 = vst [vmem:[#allocation36_spill] sm:$0xff] %v7705_v13  ;;  %v7745_v10 = vpack.c.bf16 %v7721_v50, %v7716_v1 }
  0xed   : > { %11831 = vst [vmem:[#allocation31_spill] sm:$0xff] %v7642_v12  ;;  %v7644_v11 = vpop.permute.xlu2 %907  ;;  %vm11397_vm15 = vcmp.lt.f32.partialorder %v7642_v12, 0.36  ;;  %v1024_v12 = vmul.f32 %v564_v62, %v564_v62  ;;  %v7759_v62 = vadd.f32 %v1116_v22, %v7580_v42  ;;  %v1153_v22 = vadd.f32 %v1089_v31, %v1025_v21 }
  0xee   : > { %v7656_v54 = vpop.permute.xlu0 %819  ;;  %v7710_v47 = vsel %vm11397_vm15, 1.0, %v11832_v28  ;;  %11839 = vst [vmem:[#allocation38_spill] sm:$0xff] %v7721_v50  ;;  %v1892_v50 = vunpack.c.l.b16 %v7689_v19 }
  0xef   : > { %11838 = vst [vmem:[#allocation37_spill] sm:$0xff] %v7710_v47  ;;  %v7741_v9 = vpack.c.bf16 %v7710_v47, %v7705_v13  ;;  %v7750_v47 = vld [vmem:[%s7217_s23 + $0x10] sm:$0xff]  ;;  %v11840_v13 = vmov 1  }
  0xf0   : > { %617 = vperm.xlu0 %7126, %v7750_v47  }
  0xf1   : > { %v1886_v42 = vunpack.c.l.b16 %v7741_v9 }
  0xf3   : > { %7116 = vset.pattern.permute.xlu1 %v11825_v52  ;;  %474 = vperm.xlu2 %7114, %v7300_v24  }
  0xf4   : > { %469 = vperm.xlu1 %7116, %v7536_v8  }
  0xf5   : > { %v654_v34 = vpop.permute.xlu1 %653 }
  0xf6   : > { %v764_v53 = vsub.f32 %v654_v34, %v7354_v37  ;;  %v765_v58 = vsub.f32 %v654_v34, %v7356_v38  ;;  %v7733_v20 = vpop.permute.xlu2 %489 }
  0xf7   : > { %v722_v14 = vpop.permute.xlu0 %721 }
  0xf8   : > { %v1090_v44 = vmul.f32 %v764_v53, %v764_v53  ;;  %v1091_v34 = vmul.f32 %v765_v58, %v765_v58  ;;  %v798_v43 = vsub.f32 %v722_v14, %v7354_v37  ;;  %v799_v55 = vsub.f32 %v722_v14, %v7356_v38 }
  0xf9   : > { %v1893_v53 = vunpack.c.h.b16 %v7689_v19  ;;  %v1888_v58 = vunpack.c.l.b16 %v7745_v10  ;;  %v1660_v14 = vunpack.c.l.b16 %v7737_v30 }
  0xfa   : > { %v1154_v7 = vadd.f32 %v1090_v44, %v1026_v57  ;;  %v1155_v59 = vadd.f32 %v1091_v34, %v1027_v63  ;;  %v1124_v3 = vmul.f32 %v798_v43, %v798_v43  ;;  %v1125_v17 = vmul.f32 %v799_v55, %v799_v55 }
  0xfb   : > { %7118 = vset.pattern.permute.xlu2 %v11840_v13  ;;  %v1889_v57 = vunpack.c.h.b16 %v7745_v10  ;;  %v7766_v63 = vadd.f32 %v1117_v16, %v7648_v46 }
  0xfc   : > { %v1188_v43 = vadd.f32 %v1124_v3, %v7562_v23  ;;  %v1189_v55 = vadd.f32 %v1125_v17, %v7566_v2  ;;  %7117 = vset.pattern.permute.xlu1 %v11840_v13  ;;  %v7768_v32 = vadd.f32 %v1218_v61, %v1154_v7  ;;  %v7770_v51 = vadd.f32 %v1219_v49, %v1155_v59 }
  0xfd   : > { %625 = vperm.xlu1 %7117, %v7615_v29   ;;  %629 = vperm.xlu2 %7118, %v7261_v15   ;;  %v1152_v23 = vadd.f32 %v1088_v45, %v1024_v12  ;;  %v594_v3 = vsub.f32 %v7634_v18, %v7360_v39  ;;  %v595_v59 = vsub.f32 %v7634_v18, %v7362_v40 }
  0xfe   : > { %11841 = vst [vmem:[#allocation39_spill] sm:$0xff] %v7768_v32  ;;  %v7776_v2 = vadd.f32 %v7568_v0, %v1188_v43  ;;  %v7779_v17 = vadd.f32 %v7570_v4, %v1189_v55  ;;  %v848_v46 = vpop.permute.xlu1 %847  ;;  %vm11370_vm5 = vcmp.lt.f32.partialorder %v7768_v32, 0.36  ;;  %vm11369_vm4 = vcmp.lt.f32.partialorder %v7770_v51, 0.36 }
  0xff   : > { %11842 = vst [vmem:[#allocation40_spill] sm:$0xff] %v7770_v51  ;;  %v960_v7 = vsub.f32 %v848_v46, %v7350_v35  ;;  %v961_v5 = vsub.f32 %v848_v46, %v7352_v36  ;;  %v658_v16 = vpop.permute.xlu0 %657  ;;  %v7787_v12 = vpop.permute.xlu2 %641  ;;  %v990_v61 = vsub.f32 %v7644_v11, %v7350_v35  ;;  %v1887_v55 = vunpack.c.h.b16 %v7741_v9 }
 0x100   : > { %11843 = vst [vmem:[#allocation41_spill] sm:$0xff] %v7776_v2  ;;  %vm11380_vm7 = vcmp.lt.f32.partialorder %v7776_v2, 0.36  ;;  %vm11379_vm6 = vcmp.lt.f32.partialorder %v7779_v17, 0.36  ;;  %v766_v0 = vsub.f32 %v658_v16, %v7354_v37  ;;  %v767_v4 = vsub.f32 %v658_v16, %v7356_v38 }
 0x101   : > { %11844 = vst [vmem:[#allocation42_spill] sm:$0xff] %v7779_v17  ;;  %v1216_v18 = vmul.f32 %v960_v7, %v960_v7  ;;  %v1217_v21 = vmul.f32 %v961_v5, %v961_v5  ;;  %v7798_v44 = vsel %vm11380_vm7, 1.0, %v11832_v28  ;;  %v7803_v34 = vsel %vm11379_vm6, 1.0, %v11832_v28 }
 0x102   : > { %v1092_v45 = vmul.f32 %v766_v0, %v766_v0  ;;  %v1093_v31 = vmul.f32 %v767_v4, %v767_v4  ;;  %v991_v46 = vsub.f32 %v7644_v11, %v7352_v36  ;;  %v1544_v16 = vpack.c.bf16 %v7803_v34, %v7798_v44 }
 0x103   : > { %v7807_v49 = vadd.f32 %v1216_v18, %v1152_v23  ;;  %v7809_v43 = vadd.f32 %v1217_v21, %v1153_v22  ;;  %v1054_v0 = vmul.f32 %v594_v3, %v594_v3  ;;  %v1055_v4 = vmul.f32 %v595_v59, %v595_v59 }
 0x104   : > { %v1156_v7 = vadd.f32 %v1092_v45, %v7650_v26  ;;  %v1157_v5 = vadd.f32 %v1093_v31, %v7652_v48  ;;  %v7823_v23 = vsel %vm11370_vm5, 1.0, %v11832_v28  ;;  %v7828_v11 = vsel %vm11369_vm4, 1.0, %v11832_v28 }
 0x105   : > { %11845 = vst [vmem:[#allocation43_spill] sm:$0xff] %v7807_v49  ;;  %685 = vperm.xlu1 %7117, %v7300_v24   ;;  %7119 = vset.pattern.permute.xlu2 %v11822_v60  ;;  %vm11374_vm11 = vcmp.lt.f32.partialorder %v7807_v49, 0.36  ;;  %vm11373_vm10 = vcmp.lt.f32.partialorder %v7809_v43, 0.36  ;;  %v1890_v18 = vunpack.c.l.b16 %v1544_v16  ;;  %v1891_v21 = vunpack.c.h.b16 %v1544_v16 }
 0x106   : > { %11846 = vst [vmem:[#allocation44_spill] sm:$0xff] %v7809_v43  ;;  %v7833_v26 = vadd.f32 %v7671_v33, %v1156_v7  ;;  %v7836_v24 = vadd.f32 %v7673_v6, %v1157_v5  ;;  %823 = vperm.xlu2 %7119, %v7615_v29   ;;  %v904_v48 = vpop.permute.xlu1 %903  ;;  %v7857_v16 = vsel %vm11374_vm11, 1.0, %v11832_v28  ;;  %v1661_v9 = vunpack.c.h.b16 %v7737_v30 }
 0x107   : > { %11847 = vst [vmem:[#allocation45_spill] sm:$0xff] %v7823_v23  ;;  %v988_v22 = vsub.f32 %v904_v48, %v7350_v35  ;;  %v989_v3 = vsub.f32 %v904_v48, %v7352_v36  ;;  %v710_v59 = vpop.permute.xlu0 %709  ;;  %v7845_v45 = vpop.permute.xlu2 %701  ;;  %v1910_v7 = vpack.c.b16 %v1892_v50, %v1890_v18  ;;  %v1911_v5 = vpack.c.b16 %v1893_v53, %v1891_v21  ;;  %v7852_v48 = vld [vmem:[%s7217_s23] sm:$0xff] }
 0x108   : > { %11848 = vst [vmem:[#allocation46_spill] sm:$0xff] %v7828_v11  ;;  %vm11359_vm3 = vcmp.lt.f32.partialorder %v7833_v26, 0.36  ;;  %vm11358_vm2 = vcmp.lt.f32.partialorder %v7836_v24, 0.36  ;;  %v792_v33 = vsub.f32 %v710_v59, %v7354_v37  ;;  %v793_v6 = vsub.f32 %v710_v59, %v7356_v38  ;;  %609 = vperm.xlu0 %7126, %v7852_v48  }
 0x109   : > { %11849 = vst [vmem:[#allocation47_spill] sm:$0xff] %v7833_v26  ;;  %v1244_v29 = vmul.f32 %v988_v22, %v988_v22  ;;  %v1245_v31 = vmul.f32 %v989_v3, %v989_v3  ;;  %v7862_v59 = vsel %vm11373_vm10, 1.0, %v11832_v28  ;;  %1931 = vmatpush.bf16.msra.mxu2 %v1910_v7  ;;  %1980 = vmatpush.bf16.msra.mxu3 %v1911_v5  ;;  %v7874_v53 = vsel %vm11359_vm3, 1.0, %v11832_v28 }
 0x10a   : > { %11850 = vst [vmem:[#allocation48_spill] sm:$0xff] %v7836_v24  ;;  %v1118_v22 = vmul.f32 %v792_v33, %v792_v33  ;;  %v1119_v3 = vmul.f32 %v793_v6, %v793_v6  ;;  %v7879_v18 = vsel %vm11358_vm2, 1.0, %v11832_v28  ;;  %v1246_v21 = vmul.f32 %v990_v61, %v990_v61 }
 0x10b   : > { %11851 = vst [vmem:[#allocation49_spill] sm:$0xff] %v7857_v16  ;;  %v7866_v50 = vadd.f32 %v1244_v29, %v7759_v62  ;;  %v7869_v19 = vadd.f32 %v1245_v31, %v7766_v63  ;;  %v1247_v33 = vmul.f32 %v991_v46, %v991_v46  ;;  %v1908_v63 = vpack.c.b16 %v1888_v58, %v1886_v42 }
 0x10c   : > { %11852 = vst [vmem:[#allocation50_spill] sm:$0xff] %v7862_v59  ;;  %v1182_v6 = vadd.f32 %v1118_v22, %v1054_v0  ;;  %v1183_v62 = vadd.f32 %v1119_v3, %v1055_v4  ;;  %v1909_v29 = vpack.c.b16 %v1889_v57, %v1887_v55  ;;  %v1528_v31 = vpack.c.bf16 %v7879_v18, %v7874_v53 }
 0x10d   : > { %11853 = vst [vmem:[#allocation51_spill] sm:$0xff] %v7866_v50  ;;  %7120 = vset.pattern.permute.xlu1 %v11822_v60  ;;  %v1526_v7 = vpack.c.bf16 %v7862_v59, %v7857_v16  ;;  %v1527_v10 = vpack.c.bf16 %v7828_v11, %v7823_v23  ;;  %vm11417_vm2 = vcmp.lt.f32.partialorder %v7866_v50, 0.36  ;;  %vm11416_vm3 = vcmp.lt.f32.partialorder %v7869_v19, 0.36  ;;  %1932 = vmatpush.bf16.msra.mxu2 %v1908_v63 }
 0x10e   : > { %11854 = vst [vmem:[#allocation52_spill] sm:$0xff] %v7869_v19  ;;  %v7892_v61 = vadd.f32 %v1246_v21, %v1182_v6  ;;  %v7894_v46 = vadd.f32 %v1247_v33, %v1183_v62  ;;  %827 = vperm.xlu1 %7120, %v7261_v15   ;;  %879 = vperm.xlu2 %7119, %v7536_v8   ;;  %v1658_v57 = vunpack.c.l.b16 %v1528_v31  ;;  %v1659_v42 = vunpack.c.h.b16 %v1528_v31 }
 0x10f   : > { %11855 = vst [vmem:[#allocation53_spill] sm:$0xff] %v7874_v53  ;;  %1981 = vmatpush.bf16.msra.mxu3 %v1909_v29  ;;  %v425_v58 = vpop.permute.xlu1 %424  ;;  %v1654_v55 = vunpack.c.l.b16 %v1526_v7  ;;  %v7909_v0 = vsel %vm11417_vm2, 1.0, %v11832_v28  ;;  %v7914_v4 = vsel %vm11416_vm3, 1.0, %v11832_v28  ;;  %v1656_v30 = vunpack.c.l.b16 %v1527_v10  ;;  %v646_v29 = vpop.permute.xlu0 %645 }
 0x110   : > { %11856 = vst [vmem:[#allocation54_spill] sm:$0xff] %v7879_v18  ;;  %vm11412_vm1 = vcmp.lt.f32.partialorder %v7892_v61, 0.36  ;;  %v1678_v15 = vpack.c.b16 %v1660_v14, %v1658_v57  ;;  %v1679_v8 = vpack.c.b16 %v1661_v9, %v1659_v42  ;;  %vm11411_vm0 = vcmp.lt.f32.partialorder %v7894_v46, 0.36  ;;  %v844_v5 = vpop.permute.xlu2 %843  ;;  %7134 = vset.pattern.permute.xlu0 %v11825_v52 }
 0x111   : > { %11857 = vst [vmem:[#allocation55_spill] sm:$0xff] %v7892_v61  ;;  %v1655_v14 = vunpack.c.h.b16 %v1526_v7  ;;  %v1657_v22 = vunpack.c.h.b16 %v1527_v10  ;;  %v7921_v3 = vsel %vm11412_vm1, 1.0, %v11832_v28  ;;  %v1676_v21 = vpack.c.b16 %v1656_v30, %v1654_v55 }
 0x112   : > { %11858 = vst [vmem:[#allocation56_spill] sm:$0xff] %v7894_v46  ;;  %1699 = vmatpush.bf16.msra.mxu0 %v1678_v15  ;;  %1748 = vmatpush.bf16.msra.mxu1 %v1679_v8  ;;  %v7926_v33 = vsel %vm11411_vm0, 1.0, %v11832_v28  ;;  %v1540_v6 = vpack.c.bf16 %v7914_v4, %v7909_v0  ;;  %v562_v10 = vsub.f32 %v425_v58, %v7360_v39 }
 0x113   : > { %v1677_v62 = vpack.c.b16 %v1657_v22, %v1655_v14  ;;  %v1541_v63 = vpack.c.bf16 %v7926_v33, %v7921_v3  ;;  %v563_v57 = vsub.f32 %v425_v58, %v7362_v40  ;;  %v760_v8 = vsub.f32 %v646_v29, %v7354_v37  ;;  %v7945_v22 = vld [vmem:[%s7217_s23 + $0x88] sm:$0xff] }
 0x114   : > { %v1882_v42 = vunpack.c.l.b16 %v1540_v6  ;;  %v1883_v15 = vunpack.c.h.b16 %v1540_v6  ;;  %v761_v55 = vsub.f32 %v646_v29, %v7356_v38  ;;  %v958_v6 = vsub.f32 %v844_v5, %v7350_v35 }
 0x115   : > { %v1884_v7 = vunpack.c.l.b16 %v1541_v63  ;;  %v1885_v9 = vunpack.c.h.b16 %v1541_v63  ;;  %v7948_v63 = vld [vmem:[%s7217_s23 + $0x80] sm:$0xff]  ;;  %v1086_v24 = vmul.f32 %v760_v8, %v760_v8  ;;  %v959_v26 = vsub.f32 %v844_v5, %v7352_v36 }
 0x116   : > { %7121 = vset.pattern.permute.xlu1 %v11825_v52  ;;  %7122 = vset.pattern.permute.xlu2 %v11825_v52  ;;  %v1087_v58 = vmul.f32 %v761_v55, %v761_v55  ;;  %v758_v8 = vsub.f32 %v7787_v12, %v7354_v37 }
 0x117   : > { %1700 = vmatpush.bf16.msra.mxu0 %v1676_v21  ;;  %394 = vperm.xlu2 %7122, %v7325_v27   ;;  %v7935_v31 = vpop.permute.xlu1 %494  ;;  %v1906_v27 = vpack.c.b16 %v1884_v7, %v1882_v42  ;;  %v1907_v14 = vpack.c.b16 %v1885_v9, %v1883_v15  ;;  %v1022_v21 = vmul.f32 %v562_v10, %v562_v10 }
 0x118   : > { %1749 = vmatpush.bf16.msra.mxu1 %v1677_v62  ;;  %389 = vperm.xlu1 %7121, %v7750_v47   ;;  %v1023_v62 = vmul.f32 %v563_v57, %v563_v57  ;;  %v1214_v42 = vmul.f32 %v958_v6, %v958_v6  ;;  %v1215_v10 = vmul.f32 %v959_v26, %v959_v26 }
 0x119   : > { %1933 = vmatpush.bf16.msra.mxu2 %v1906_v27  ;;  %1982 = vmatpush.bf16.msra.mxu3 %v1907_v14  ;;  %v1150_v7 = vadd.f32 %v1086_v24, %v1022_v21  ;;  %v560_v15 = vsub.f32 %v7473_v56, %v7360_v39  ;;  %v561_v27 = vsub.f32 %v7473_v56, %v7362_v40 }
 0x11a   : > { %v7942_v30 = vpop.permute.xlu2 %409  ;;  %v1151_v9 = vadd.f32 %v1087_v58, %v1023_v62  ;;  %v759_v24 = vsub.f32 %v7787_v12, %v7356_v38  ;;  %v984_v26 = vsub.f32 %v7541_v25, %v7350_v35  ;;  %v985_v14 = vsub.f32 %v7541_v25, %v7352_v36 }
 0x11b   : > { %v588_v21 = vsub.f32 %v7733_v20, %v7360_v39  ;;  %v589_v62 = vsub.f32 %v7733_v20, %v7362_v40  ;;  %v7974_v58 = vadd.f32 %v1214_v42, %v1150_v7  ;;  %v1020_v56 = vmul.f32 %v560_v15, %v560_v15  ;;  %v7135_v7 = vld [vmem:[%s7217_s23 + $0x18] sm:$0xff] }
 0x11c   : > { %v7976_v6 = vadd.f32 %v1215_v10, %v1151_v9  ;;  %v1021_v32 = vmul.f32 %v561_v27, %v561_v27  ;;  %v1085_v43 = vmul.f32 %v759_v24, %v759_v24  ;;  %v1240_v25 = vmul.f32 %v984_v26, %v984_v26 }
 0x11d   : > { %11859 = vst [vmem:[#allocation57_spill] sm:$0xff] %v7974_v58  ;;  %v1241_v49 = vmul.f32 %v985_v14, %v985_v14  ;;  %v1048_v20 = vmul.f32 %v588_v21, %v588_v21  ;;  %v1049_v17 = vmul.f32 %v589_v62, %v589_v62  ;;  %vm11392_vm4 = vcmp.lt.f32.partialorder %v7974_v58, 0.36 }
 0x11e   : > { %11860 = vst [vmem:[#allocation58_spill] sm:$0xff] %v7976_v6  ;;  %vm11391_vm5 = vcmp.lt.f32.partialorder %v7976_v6, 0.36  ;;  %v1149_v24 = vadd.f32 %v1085_v43, %v1021_v32  ;;  %v789_v26 = vsub.f32 %v7845_v45, %v7356_v38  ;;  %v7995_v62 = vsel %vm11392_vm4, 1.0, %v11832_v28 }
 0x11f   : > { %464 = vperm.xlu2 %7122, %v7945_v22   ;;  %11861 = vst [vmem:[#allocation59_spill] sm:$0xff] %v7995_v62  ;;  %v591_v32 = vsub.f32 %v7935_v31, %v7362_v40 }
 0x120   : > { %459 = vperm.xlu1 %7121, %v7948_v63   ;;  %v698_v29 = vpop.permute.xlu1 %697 }
 0x121   : > { %v786_v55 = vsub.f32 %v698_v29, %v7354_v37  ;;  %v787_v5 = vsub.f32 %v698_v29, %v7356_v38  ;;  %v1084_v29 = vmul.f32 %v758_v8, %v758_v8  ;;  %v788_v8 = vsub.f32 %v7845_v45, %v7354_v37 }
 0x122   : > { %v7954_v57 = vpop.permute.xlu2 %479 }
 0x123   : > { %v1112_v12 = vmul.f32 %v786_v55, %v786_v55  ;;  %v1113_v51 = vmul.f32 %v787_v5, %v787_v5  ;;  %v1148_v15 = vadd.f32 %v1084_v29, %v1020_v56  ;;  %v8000_v56 = vsel %vm11391_vm5, 1.0, %v11832_v28 }
 0x124   : > { %11862 = vst [vmem:[#allocation60_spill] sm:$0xff] %v8000_v56  ;;  %v1114_v45 = vmul.f32 %v788_v8, %v788_v8 }
 0x125   : > { %v1176_v55 = vadd.f32 %v1112_v12, %v1048_v20  ;;  %v1177_v5 = vadd.f32 %v1113_v51, %v1049_v17  ;;  %v590_v51 = vsub.f32 %v7935_v31, %v7360_v39  ;;  %v1115_v20 = vmul.f32 %v789_v26, %v789_v26 }
 0x127   : > { %7124 = vset.pattern.permute.xlu2 %v11840_v13  ;;  %v8010_v29 = vadd.f32 %v1240_v25, %v1176_v55  ;;  %v8012_v12 = vadd.f32 %v1241_v49, %v1177_v5  ;;  %v1050_v31 = vmul.f32 %v590_v51, %v590_v51 }
 0x128   : > { %7123 = vset.pattern.permute.xlu1 %v11840_v13  ;;  %673 = vperm.xlu2 %7124, %v7948_v63  }
 0x129   : > { %621 = vperm.xlu1 %7123, %v7135_v7   ;;  %v840_v9 = vpop.permute.xlu1 %839  ;;  %11865 = vst [vmem:[#allocation63_spill] sm:$0xff] %v8010_v29  ;;  %v1525_v7 = vpack.c.bf16 %v8000_v56, %v7995_v62  ;;  %vm11445_vm10 = vcmp.lt.f32.partialorder %v8010_v29, 0.36  ;;  %vm11444_vm11 = vcmp.lt.f32.partialorder %v8012_v12, 0.36 }
 0x12a   : > { %v956_v42 = vsub.f32 %v840_v9, %v7350_v35  ;;  %v957_v10 = vsub.f32 %v840_v9, %v7352_v36  ;;  %11866 = vst [vmem:[#allocation64_spill] sm:$0xff] %v8012_v12  ;;  %v1051_v9 = vmul.f32 %v591_v32, %v591_v32  ;;  %v8042_v58 = vsel %vm11445_vm10, 1.0, %v11832_v28 }
 0x12b   : > { %v7988_v27 = vpop.permute.xlu2 %637 }
 0x12c   : > { %v1212_v14 = vmul.f32 %v956_v42, %v956_v42  ;;  %v1213_v21 = vmul.f32 %v957_v10, %v957_v10 }
 0x12e   : > { %v8006_v17 = vadd.f32 %v1212_v14, %v1148_v15  ;;  %v8008_v43 = vadd.f32 %v1213_v21, %v1149_v24  ;;  %v1652_v24 = vunpack.c.l.b16 %v1525_v7  ;;  %v1653_v14 = vunpack.c.h.b16 %v1525_v7 }
 0x12f   : > { %v1178_v21 = vadd.f32 %v1114_v45, %v1050_v31 }
 0x130   : > { %11863 = vst [vmem:[#allocation61_spill] sm:$0xff] %v8006_v17  ;;  %vm11396_vm9 = vcmp.lt.f32.partialorder %v8006_v17, 0.36  ;;  %vm11395_vm8 = vcmp.lt.f32.partialorder %v8008_v43, 0.36  ;;  %7125 = vset.pattern.permute.xlu2 %v11822_v60 }
 0x131   : > { %11864 = vst [vmem:[#allocation62_spill] sm:$0xff] %v8008_v43  ;;  %v8022_v42 = vsel %vm11396_vm9, 1.0, %v11832_v28  ;;  %v8027_v49 = vsel %vm11395_vm8, 1.0, %v11832_v28  ;;  %677 = vperm.xlu1 %7123, %v7945_v22   ;;  %815 = vperm.xlu2 %7125, %v7750_v47   ;;  %v1179_v47 = vadd.f32 %v1115_v20, %v1051_v9 }
 0x132   : > { %11867 = vst [vmem:[#allocation65_spill] sm:$0xff] %v8022_v42  ;;  %v900_v25 = vpop.permute.xlu1 %899  ;;  %v1524_v10 = vpack.c.bf16 %v8027_v49, %v8022_v42 }
 0x133   : > { %11868 = vst [vmem:[#allocation66_spill] sm:$0xff] %v8027_v49  ;;  %v986_v15 = vsub.f32 %v900_v25, %v7350_v35  ;;  %v987_v8 = vsub.f32 %v900_v25, %v7352_v36  ;;  %v8037_v55 = vpop.permute.xlu2 %693  ;;  %v8047_v25 = vsel %vm11444_vm11, 1.0, %v11832_v28 }
 0x134   : > { %v1650_v5 = vunpack.c.l.b16 %v1524_v10  ;;  %v1651_v26 = vunpack.c.h.b16 %v1524_v10  ;;  %v1538_v45 = vpack.c.bf16 %v8047_v25, %v8042_v58 }
 0x135   : > { %v1242_v51 = vmul.f32 %v986_v15, %v986_v15  ;;  %v1243_v32 = vmul.f32 %v987_v8, %v987_v8 }
 0x136   : > { %v1674_v2 = vpack.c.b16 %v1652_v24, %v1650_v5  ;;  %v1675_v6 = vpack.c.b16 %v1653_v14, %v1651_v26  ;;  %v1878_v9 = vunpack.c.l.b16 %v1538_v45  ;;  %v1879_v15 = vunpack.c.h.b16 %v1538_v45  ;;  %v345_v26 = vld [vmem:[%s7217_s23 + $0x8] sm:$0xff] }
 0x137   : > { %v8049_v43 = vadd.f32 %v1242_v51, %v1178_v21  ;;  %v8051_v10 = vadd.f32 %v1243_v32, %v1179_v47  ;;  %v556_v51 = vsub.f32 %v7942_v30, %v7360_v39  ;;  %v557_v32 = vsub.f32 %v7942_v30, %v7362_v40  ;;  %v11871_v45 = vld [vmem:[#allocation23_spill] sm:$0xff] }
 0x138   : > { %1701 = vmatpush.bf16.msra.mxu0 %v1674_v2  ;;  %1750 = vmatpush.bf16.msra.mxu1 %v1675_v6  ;;  %v584_v30 = vsub.f32 %v7954_v57, %v7360_v39 }
 0x139   : > { %11869 = vst [vmem:[#allocation67_spill] sm:$0xff] %v8049_v43  ;;  %vm11433_vm6 = vcmp.lt.f32.partialorder %v8049_v43, 0.36  ;;  %vm11432_vm7 = vcmp.lt.f32.partialorder %v8051_v10, 0.36  ;;  %7127 = vset.pattern.permute.xlu1 %v11822_v60  ;;  %875 = vperm.xlu2 %7125, %v7945_v22  }
 0x13a   : > { %11870 = vst [vmem:[#allocation68_spill] sm:$0xff] %v8051_v10  ;;  %v8062_v20 = vsel %vm11433_vm6, 1.0, %v11832_v28  ;;  %v8067_v2 = vsel %vm11432_vm7, 1.0, %v11832_v28  ;;  %871 = vperm.xlu1 %7127, %v7948_v63  }
 0x13b   : > { %v415_v6 = vpop.permute.xlu1 %414  ;;  %v1539_v7 = vpack.c.bf16 %v8067_v2, %v8062_v20 }
 0x13c   : > { %v888_v31 = vpop.permute.xlu2 %887 }
 0x13d   : > { %v1880_v22 = vunpack.c.l.b16 %v1539_v7  ;;  %v1881_v8 = vunpack.c.h.b16 %v1539_v7  ;;  %v952_v7 = vsub.f32 %v11871_v45, %v7350_v35 }
 0x13f   : > { %v1904_v5 = vpack.c.b16 %v1880_v22, %v1878_v9  ;;  %v1905_v24 = vpack.c.b16 %v1881_v8, %v1879_v15  ;;  %v953_v9 = vsub.f32 %v11871_v45, %v7352_v36  ;;  %v1016_v8 = vmul.f32 %v556_v51, %v556_v51 }
 0x140   : > { %v757_v45 = vsub.f32 %v7988_v27, %v7356_v38 }
 0x141   : > { %1934 = vmatpush.bf16.msra.mxu2 %v1904_v5  ;;  %1983 = vmatpush.bf16.msra.mxu3 %v1905_v24  ;;  %v1017_v5 = vmul.f32 %v557_v32, %v557_v32  ;;  %v1208_v24 = vmul.f32 %v952_v7, %v952_v7  ;;  %v756_v32 = vsub.f32 %v7988_v27, %v7354_v37 }
 0x142   : > { %7128 = vset.pattern.permute.xlu1 %v11825_v52  ;;  %7129 = vset.pattern.permute.xlu2 %v11825_v52  ;;  %v559_v7 = vsub.f32 %v415_v6, %v7362_v40  ;;  %v1083_v10 = vmul.f32 %v757_v45, %v757_v45 }
 0x143   : > { %379 = vperm.xlu1 %7128, %v7852_v48   ;;  %384 = vperm.xlu2 %7129, %v345_v26   ;;  %v1082_v50 = vmul.f32 %v756_v32, %v756_v32 }
 0x144   : > { %v634_v63 = vpop.permute.xlu1 %633  ;;  %v1019_v27 = vmul.f32 %v559_v7, %v559_v7 }
 0x145   : > { %v754_v14 = vsub.f32 %v634_v63, %v7354_v37  ;;  %v755_v21 = vsub.f32 %v634_v63, %v7356_v38  ;;  %v8078_v47 = vpop.permute.xlu2 %399  ;;  %v1209_v63 = vmul.f32 %v953_v9, %v953_v9  ;;  %v980_v9 = vsub.f32 %v888_v31, %v7350_v35 }
 0x147   : > { %v1080_v22 = vmul.f32 %v754_v14, %v754_v14  ;;  %v1081_v15 = vmul.f32 %v755_v21, %v755_v21  ;;  %v1236_v12 = vmul.f32 %v980_v9, %v980_v9 }
 0x149   : > { %v1144_v17 = vadd.f32 %v1080_v22, %v1016_v8  ;;  %v1145_v61 = vadd.f32 %v1081_v15, %v1017_v5  ;;  %v1044_v5 = vmul.f32 %v584_v30, %v584_v30 }
 0x14b   : > { %7130 = vset.pattern.permute.xlu1 %v11840_v13  ;;  %7131 = vset.pattern.permute.xlu2 %v11822_v60  ;;  %v585_v13 = vsub.f32 %v7954_v57, %v7362_v40  ;;  %v8107_v15 = vadd.f32 %v1208_v24, %v1144_v17  ;;  %v8109_v57 = vadd.f32 %v1209_v63, %v1145_v61  ;;  %v11874_v17 = vld [vmem:[#allocation19_spill] sm:$0xff] }
 0x14c   : > { %613 = vperm.xlu1 %7130, %v345_v26   ;;  %v690_v46 = vpop.permute.xlu1 %689  ;;  %807 = vperm.xlu2 %7131, %v7852_v48   ;;  %v558_v48 = vsub.f32 %v415_v6, %v7360_v39  ;;  %v784_v61 = vsub.f32 %v8037_v55, %v7354_v37  ;;  %v587_v63 = vsub.f32 %v11874_v17, %v7362_v40 }
 0x14d   : > { %v782_v14 = vsub.f32 %v690_v46, %v7354_v37  ;;  %v783_v21 = vsub.f32 %v690_v46, %v7356_v38  ;;  %v8095_v51 = vpop.permute.xlu2 %474  ;;  %v981_v46 = vsub.f32 %v888_v31, %v7352_v36  ;;  %11872 = vst [vmem:[#allocation23_spill] sm:$0xff] %v8107_v15  ;;  %v1045_v19 = vmul.f32 %v585_v13, %v585_v13 }
 0x14e   : > { %11873 = vst [vmem:[#allocation69_spill] sm:$0xff] %v8109_v57  ;;  %v1018_v43 = vmul.f32 %v558_v48, %v558_v48  ;;  %vm11414_vm5 = vcmp.lt.f32.partialorder %v8107_v15, 0.36  ;;  %v586_v31 = vsub.f32 %v11874_v17, %v7360_v39  ;;  %vm11413_vm4 = vcmp.lt.f32.partialorder %v8109_v57, 0.36 }
 0x14f   : > { %v1108_v22 = vmul.f32 %v782_v14, %v782_v14  ;;  %v1109_v8 = vmul.f32 %v783_v21, %v783_v21  ;;  %v1237_v18 = vmul.f32 %v981_v46, %v981_v46  ;;  %v1147_v21 = vadd.f32 %v1083_v10, %v1019_v27 }
 0x150   : > { %v1146_v14 = vadd.f32 %v1082_v50, %v1018_v43  ;;  %v1110_v50 = vmul.f32 %v784_v61, %v784_v61  ;;  %v1046_v10 = vmul.f32 %v586_v31, %v586_v31  ;;  %v1047_v9 = vmul.f32 %v587_v63, %v587_v63 }
 0x151   : > { %v1172_v29 = vadd.f32 %v1108_v22, %v1044_v5  ;;  %v1173_v6 = vadd.f32 %v1109_v8, %v1045_v19  ;;  %v785_v19 = vsub.f32 %v8037_v55, %v7356_v38  ;;  %v8139_v55 = vsel %vm11413_vm4, 1.0, %v11832_v28 }
 0x152   : > { %v1174_v22 = vadd.f32 %v1110_v50, %v1046_v10 }
 0x153   : > { %v8125_v13 = vadd.f32 %v1236_v12, %v1172_v29  ;;  %v8134_v45 = vadd.f32 %v1237_v18, %v1173_v6  ;;  %v1111_v43 = vmul.f32 %v785_v19, %v785_v19 }
 0x154   : > { %7132 = vset.pattern.permute.xlu1 %v11822_v60  ;;  %7133 = vset.pattern.permute.xlu2 %v11825_v52 }
 0x155   : > { %811 = vperm.xlu1 %7132, %v345_v26   ;;  %v836_v24 = vpop.permute.xlu1 %835  ;;  %11875 = vst [vmem:[#allocation19_spill] sm:$0xff] %v8125_v13  ;;  %v8132_v26 = vsel %vm11414_vm5, 1.0, %v11832_v28  ;;  %vm11453_vm13 = vcmp.lt.f32.partialorder %v8125_v13, 0.36  ;;  %vm11452_vm12 = vcmp.lt.f32.partialorder %v8134_v45, 0.36  ;;  %v1175_v27 = vadd.f32 %v1111_v43, %v1047_v9  ;;  %v682_v9 = vpop.permute.xlu0 %681 }
 0x156   : > { %v954_v60 = vsub.f32 %v836_v24, %v7350_v35  ;;  %v955_v30 = vsub.f32 %v836_v24, %v7352_v36  ;;  %11876 = vst [vmem:[#allocation70_spill] sm:$0xff] %v8134_v45  ;;  %v1522_v18 = vpack.c.bf16 %v8139_v55, %v8132_v26  ;;  %v8168_v63 = vsel %vm11453_vm13, 1.0, %v11832_v28 }
 0x157   : > { %v8127_v32 = vpop.permute.xlu2 %629  ;;  %v8173_v19 = vsel %vm11452_vm12, 1.0, %v11832_v28 }
 0x158   : > { %v1210_v48 = vmul.f32 %v954_v60, %v954_v60  ;;  %v1211_v7 = vmul.f32 %v955_v30, %v955_v30  ;;  %v1646_v61 = vunpack.c.l.b16 %v1522_v18  ;;  %v1647_v24 = vunpack.c.h.b16 %v1522_v18 }
 0x159   : > { %v1536_v18 = vpack.c.bf16 %v8173_v19, %v8168_v63 }
 0x15a   : > { %v8141_v29 = vadd.f32 %v1210_v48, %v1146_v14  ;;  %v8143_v12 = vadd.f32 %v1211_v7, %v1147_v21 }
 0x15c   : > { %11877 = vst [vmem:[#allocation71_spill] sm:$0xff] %v8141_v29  ;;  %vm11409_vm8 = vcmp.lt.f32.partialorder %v8141_v29, 0.36  ;;  %vm11407_vm9 = vcmp.lt.f32.partialorder %v8143_v12, 0.36 }
 0x15d   : > { %11878 = vst [vmem:[#allocation72_spill] sm:$0xff] %v8143_v12  ;;  %v8154_v46 = vsel %vm11409_vm8, 1.0, %v11832_v28  ;;  %v8159_v8 = vsel %vm11407_vm9, 1.0, %v11832_v28  ;;  %v892_v5 = vpop.permute.xlu1 %891 }
 0x15e   : > { %11879 = vst [vmem:[#allocation73_spill] sm:$0xff] %v8159_v8  ;;  %v982_v6 = vsub.f32 %v892_v5, %v7350_v35  ;;  %v983_v17 = vsub.f32 %v892_v5, %v7352_v36  ;;  %v1523_v31 = vpack.c.bf16 %v8159_v8, %v8154_v46 }
 0x160   : > { %v1238_v60 = vmul.f32 %v982_v6, %v982_v6  ;;  %v1239_v30 = vmul.f32 %v983_v17, %v983_v17  ;;  %v824_v14 = vpop.permute.xlu2 %823  ;;  %v1648_v21 = vunpack.c.l.b16 %v1523_v31  ;;  %v1649_v48 = vunpack.c.h.b16 %v1523_v31 }
 0x161   : > { %v778_v17 = vsub.f32 %v682_v9, %v7354_v37  ;;  %v1874_v31 = vunpack.c.l.b16 %v1536_v18 }
 0x162   : > { %v8175_v7 = vadd.f32 %v1238_v60, %v1174_v22  ;;  %v8177_v50 = vadd.f32 %v1239_v30, %v1175_v27  ;;  %v1672_v43 = vpack.c.b16 %v1648_v21, %v1646_v61  ;;  %v1673_v10 = vpack.c.b16 %v1649_v48, %v1647_v24 }
 0x163   : > { %v1875_v60 = vunpack.c.h.b16 %v1536_v18  ;;  %v779_v48 = vsub.f32 %v682_v9, %v7356_v38  ;;  %v1104_v29 = vmul.f32 %v778_v17, %v778_v17 }
 0x164   : > { %11880 = vst [vmem:[#allocation74_spill] sm:$0xff] %v8175_v7  ;;  %vm11449_vm15 = vcmp.lt.f32.partialorder %v8175_v7, 0.36  ;;  %vm11448_vm14 = vcmp.lt.f32.partialorder %v8177_v50, 0.36  ;;  %1702 = vmatpush.bf16.msra.mxu0 %v1672_v43  ;;  %1751 = vmatpush.bf16.msra.mxu1 %v1673_v10 }
 0x165   : > { %11881 = vst [vmem:[#allocation75_spill] sm:$0xff] %v8177_v50  ;;  %v8186_v5 = vsel %vm11449_vm15, 1.0, %v11832_v28  ;;  %v8191_v22 = vsel %vm11448_vm14, 1.0, %v11832_v28  ;;  %v1105_v50 = vmul.f32 %v779_v48, %v779_v48  ;;  %v978_v48 = vsub.f32 %v7606_v41, %v7350_v35 }
 0x166   : > { %v470_v27 = vpop.permute.xlu1 %469  ;;  %v1537_v6 = vpack.c.bf16 %v8191_v22, %v8186_v5 }
 0x167   : > { %v580_v61 = vsub.f32 %v470_v27, %v7360_v39  ;;  %v581_v21 = vsub.f32 %v470_v27, %v7362_v40 }
 0x168   : > { %v1876_v24 = vunpack.c.l.b16 %v1537_v6  ;;  %v1877_v30 = vunpack.c.h.b16 %v1537_v6  ;;  %v880_v43 = vpop.permute.xlu2 %879 }
 0x169   : > { %v1040_v12 = vmul.f32 %v580_v61, %v580_v61  ;;  %v976_v57 = vsub.f32 %v880_v43, %v7350_v35  ;;  %v1041_v15 = vmul.f32 %v581_v21, %v581_v21  ;;  %v977_v7 = vsub.f32 %v880_v43, %v7352_v36 }
 0x16a   : > { %v1902_v10 = vpack.c.b16 %v1876_v24, %v1874_v31  ;;  %v1903_v52 = vpack.c.b16 %v1877_v30, %v1875_v60  ;;  %v552_v31 = vsub.f32 %v8078_v47, %v7360_v39  ;;  %v948_v60 = vsub.f32 %v824_v14, %v7350_v35 }
 0x16b   : > { %v1168_v18 = vadd.f32 %v1104_v29, %v1040_v12  ;;  %v1232_v6 = vmul.f32 %v976_v57, %v976_v57  ;;  %v1169_v61 = vadd.f32 %v1105_v50, %v1041_v15  ;;  %v1233_v17 = vmul.f32 %v977_v7, %v977_v7  ;;  %v11884_v50 = vld [vmem:[#allocation22_spill] sm:$0xff] }
 0x16c   : > { %1935 = vmatpush.bf16.msra.mxu2 %v1902_v10  ;;  %1984 = vmatpush.bf16.msra.mxu3 %v1903_v52  ;;  %v553_v52 = vsub.f32 %v8078_v47, %v7362_v40  ;;  %v949_v30 = vsub.f32 %v824_v14, %v7352_v36  ;;  %v1012_v21 = vmul.f32 %v552_v31, %v552_v31 }
 0x16d   : > { %v8211_v57 = vadd.f32 %v1232_v6, %v1168_v18  ;;  %v583_v15 = vsub.f32 %v8095_v51, %v7362_v40  ;;  %v8217_v7 = vadd.f32 %v1233_v17, %v1169_v61  ;;  %v554_v47 = vsub.f32 %v11884_v50, %v7360_v39 }
 0x16e   : > { %v1013_v14 = vmul.f32 %v553_v52, %v553_v52  ;;  %v979_v43 = vsub.f32 %v7606_v41, %v7352_v36  ;;  %v1204_v10 = vmul.f32 %v948_v60, %v948_v60  ;;  %v1205_v18 = vmul.f32 %v949_v30, %v949_v30 }
 0x16f   : > { %v626_v45 = vpop.permute.xlu1 %625  ;;  %11882 = vst [vmem:[#allocation76_spill] sm:$0xff] %v8211_v57  ;;  %vm1360_vm9 = vcmp.lt.f32.partialorder %v8211_v57, 0.36  ;;  %v555_v61 = vsub.f32 %v11884_v50, %v7362_v40  ;;  %v1043_v13 = vmul.f32 %v583_v15, %v583_v15  ;;  %vm1361_vm8 = vcmp.lt.f32.partialorder %v8217_v7, 0.36 }
 0x170   : > { %v750_v27 = vsub.f32 %v626_v45, %v7354_v37  ;;  %v751_v9 = vsub.f32 %v626_v45, %v7356_v38  ;;  %v582_v45 = vsub.f32 %v8095_v51, %v7360_v39  ;;  %11883 = vst [vmem:[#allocation77_spill] sm:$0xff] %v8217_v7  ;;  %v752_v41 = vsub.f32 %v8127_v32, %v7354_v37 }
 0x171   : > { %v8205_v24 = vpop.permute.xlu2 %394  ;;  %v753_v52 = vsub.f32 %v8127_v32, %v7356_v38  ;;  %v8240_v50 = vsel %vm1360_vm9, 1.0, %v11832_v28  ;;  %v8247_v15 = vsel %vm1361_vm8, 1.0, %v11832_v28  ;;  %v1014_v57 = vmul.f32 %v554_v47, %v554_v47 }
 0x172   : > { %v1076_v29 = vmul.f32 %v750_v27, %v750_v27  ;;  %v1077_v12 = vmul.f32 %v751_v9, %v751_v9  ;;  %v1042_v17 = vmul.f32 %v582_v45, %v582_v45 }
 0x174   : > { %v1140_v6 = vadd.f32 %v1076_v29, %v1012_v21  ;;  %v1141_v9 = vadd.f32 %v1077_v12, %v1013_v14  ;;  %v1234_v12 = vmul.f32 %v978_v48, %v978_v48  ;;  %v1235_v21 = vmul.f32 %v979_v43, %v979_v43 }
 0x176   : > { %v8242_v45 = vadd.f32 %v1204_v10, %v1140_v6  ;;  %v8249_v14 = vadd.f32 %v1205_v18, %v1141_v9  ;;  %v1534_v10 = vpack.c.bf16 %v8247_v15, %v8240_v50  ;;  %v1015_v6 = vmul.f32 %v555_v61, %v555_v61 }
 0x177   : > { %v686_v27 = vpop.permute.xlu1 %685 }
 0x178   : > { %v780_v51 = vsub.f32 %v686_v27, %v7354_v37  ;;  %v781_v31 = vsub.f32 %v686_v27, %v7356_v38  ;;  %11885 = vst [vmem:[#allocation22_spill] sm:$0xff] %v8242_v45  ;;  %vm11443_vm0 = vcmp.lt.f32.partialorder %v8242_v45, 0.36  ;;  %vm11442_vm1 = vcmp.lt.f32.partialorder %v8249_v14, 0.36 }
 0x179   : > { %v8235_v29 = vpop.permute.xlu2 %464  ;;  %11886 = vst [vmem:[#allocation78_spill] sm:$0xff] %v8249_v14 }
 0x17a   : > { %v1106_v60 = vmul.f32 %v780_v51, %v780_v51  ;;  %v1107_v30 = vmul.f32 %v781_v31, %v781_v31  ;;  %v1078_v51 = vmul.f32 %v752_v41, %v752_v41  ;;  %v1079_v31 = vmul.f32 %v753_v52, %v753_v52 }
 0x17c   : > { %v1170_v32 = vadd.f32 %v1106_v60, %v1042_v17  ;;  %v1171_v27 = vadd.f32 %v1107_v30, %v1043_v13  ;;  %v1142_v17 = vadd.f32 %v1078_v51, %v1014_v57  ;;  %v1143_v41 = vadd.f32 %v1079_v31, %v1015_v6 }
 0x17d   : > { %v8285_v57 = vsel %vm11442_vm1, 1.0, %v11832_v28 }
 0x17e   : > { %v8251_v48 = vadd.f32 %v1234_v12, %v1170_v32  ;;  %v8253_v43 = vadd.f32 %v1235_v21, %v1171_v27  ;;  %v1870_v12 = vunpack.c.l.b16 %v1534_v10  ;;  %v1871_v21 = vunpack.c.h.b16 %v1534_v10 }
 0x180   : > { %11887 = vst [vmem:[#allocation79_spill] sm:$0xff] %v8251_v48  ;;  %vm1362_vm4 = vcmp.lt.f32.partialorder %v8251_v48, 0.36  ;;  %vm1363_vm5 = vcmp.lt.f32.partialorder %v8253_v43, 0.36  ;;  %v828_v13 = vpop.permute.xlu1 %827  ;;  %v8280_v48 = vsel %vm11443_vm0, 1.0, %v11832_v28 }
 0x181   : > { %11888 = vst [vmem:[#allocation80_spill] sm:$0xff] %v8253_v43  ;;  %v950_v18 = vsub.f32 %v828_v13, %v7350_v35  ;;  %v951_v9 = vsub.f32 %v828_v13, %v7352_v36  ;;  %v8266_v47 = vsel %vm1362_vm4, 1.0, %v11832_v28  ;;  %v8271_v61 = vsel %vm1363_vm5, 1.0, %v11832_v28 }
 0x182   : > { %v1535_v52 = vpack.c.bf16 %v8271_v61, %v8266_v47  ;;  %v8275_v32 = vpop.permute.xlu2 %673 }
 0x183   : > { %v1206_v60 = vmul.f32 %v950_v18, %v950_v18  ;;  %v1207_v30 = vmul.f32 %v951_v9, %v951_v9  ;;  %v1520_v18 = vpack.c.bf16 %v8285_v57, %v8280_v48 }
 0x184   : > { %v1872_v27 = vunpack.c.l.b16 %v1535_v52  ;;  %v1873_v13 = vunpack.c.h.b16 %v1535_v52 }
 0x185   : > { %v8287_v51 = vadd.f32 %v1206_v60, %v1142_v17  ;;  %v8289_v31 = vadd.f32 %v1207_v30, %v1143_v41  ;;  %v618_v41 = vpop.permute.xlu0 %617  ;;  %v1642_v30 = vunpack.c.l.b16 %v1520_v18 }
 0x186   : > { %v1900_v6 = vpack.c.b16 %v1872_v27, %v1870_v12  ;;  %v1901_v10 = vpack.c.b16 %v1873_v13, %v1871_v21  ;;  %v1643_v21 = vunpack.c.h.b16 %v1520_v18  ;;  %v746_v13 = vsub.f32 %v618_v41, %v7354_v37 }
 0x187   : > { %11889 = vst [vmem:[#allocation81_spill] sm:$0xff] %v8287_v51  ;;  %vm11431_vm3 = vcmp.lt.f32.partialorder %v8287_v51, 0.36  ;;  %vm11430_vm2 = vcmp.lt.f32.partialorder %v8289_v31, 0.36  ;;  %v747_v51 = vsub.f32 %v618_v41, %v7356_v38 }
 0x188   : > { %11890 = vst [vmem:[#allocation82_spill] sm:$0xff] %v8289_v31  ;;  %v8298_v9 = vsel %vm11431_vm3, 1.0, %v11832_v28  ;;  %v8303_v17 = vsel %vm11430_vm2, 1.0, %v11832_v28  ;;  %1936 = vmatpush.bf16.msra.mxu2 %v1900_v6  ;;  %1985 = vmatpush.bf16.msra.mxu3 %v1901_v10  ;;  %v1072_v43 = vmul.f32 %v746_v13, %v746_v13 }
 0x189   : > { %v1521_v52 = vpack.c.bf16 %v8303_v17, %v8298_v9  ;;  %v1073_v7 = vmul.f32 %v747_v51, %v747_v51  ;;  %v946_v51 = vsub.f32 %v7656_v54, %v7350_v35 }
 0x18a   : > { %v390_v60 = vpop.permute.xlu1 %389 }
 0x18b   : > { %v1644_v12 = vunpack.c.l.b16 %v1521_v52  ;;  %v1645_v27 = vunpack.c.h.b16 %v1521_v52  ;;  %v548_v14 = vsub.f32 %v390_v60, %v7360_v39  ;;  %v549_v31 = vsub.f32 %v390_v60, %v7362_v40  ;;  %v816_v10 = vpop.permute.xlu2 %815 }
 0x18c   : > { %v944_v18 = vsub.f32 %v816_v10, %v7350_v35  ;;  %v945_v52 = vsub.f32 %v816_v10, %v7352_v36  ;;  %v550_v60 = vsub.f32 %v8205_v24, %v7360_v39 }
 0x18d   : > { %v1670_v45 = vpack.c.b16 %v1644_v12, %v1642_v30  ;;  %v1671_v6 = vpack.c.b16 %v1645_v27, %v1643_v21  ;;  %v1008_v53 = vmul.f32 %v548_v14, %v548_v14  ;;  %v1009_v11 = vmul.f32 %v549_v31, %v549_v31 }
 0x18e   : > { %v1200_v16 = vmul.f32 %v944_v18, %v944_v18  ;;  %v1201_v56 = vmul.f32 %v945_v52, %v945_v52  ;;  %v551_v14 = vsub.f32 %v8205_v24, %v7362_v40  ;;  %v947_v31 = vsub.f32 %v7656_v54, %v7352_v36 }
 0x18f   : > { %1703 = vmatpush.bf16.msra.mxu0 %v1670_v45  ;;  %1752 = vmatpush.bf16.msra.mxu1 %v1671_v6  ;;  %v1136_v59 = vadd.f32 %v1072_v43, %v1008_v53  ;;  %v1137_v41 = vadd.f32 %v1073_v7, %v1009_v11  ;;  %v1010_v43 = vmul.f32 %v550_v60, %v550_v60 }
 0x190   : > { %v1202_v21 = vmul.f32 %v946_v51, %v946_v51  ;;  %v1203_v27 = vmul.f32 %v947_v31, %v947_v31  ;;  %v774_v31 = vsub.f32 %v8275_v32, %v7354_v37 }
 0x191   : > { %v8315_v30 = vadd.f32 %v1200_v16, %v1136_v59  ;;  %v8317_v45 = vadd.f32 %v1201_v56, %v1137_v41  ;;  %v578_v16 = vsub.f32 %v8235_v29, %v7360_v39  ;;  %v1011_v59 = vmul.f32 %v551_v14, %v551_v14 }
 0x192   : > { %v460_v23 = vpop.permute.xlu1 %459  ;;  %v579_v56 = vsub.f32 %v8235_v29, %v7362_v40 }
 0x193   : > { %11891 = vst [vmem:[#allocation83_spill] sm:$0xff] %v8315_v30  ;;  %vm11451_vm2 = vcmp.lt.f32.partialorder %v8315_v30, 0.36  ;;  %vm11450_vm3 = vcmp.lt.f32.partialorder %v8317_v45, 0.36  ;;  %v876_v54 = vpop.permute.xlu2 %875  ;;  %v1038_v52 = vmul.f32 %v578_v16, %v578_v16 }
 0x194   : > { %11892 = vst [vmem:[#allocation84_spill] sm:$0xff] %v8317_v45  ;;  %v8336_v13 = vsel %vm11451_vm2, 1.0, %v11832_v28  ;;  %v8341_v6 = vsel %vm11450_vm3, 1.0, %v11832_v28  ;;  %v974_v29 = vsub.f32 %v876_v54, %v7350_v35  ;;  %v1039_v41 = vmul.f32 %v579_v56, %v579_v56 }
 0x195   : > { %v975_v51 = vsub.f32 %v876_v54, %v7352_v36  ;;  %v577_v56 = vsub.f32 %v460_v23, %v7362_v40  ;;  %vm1841_vm2 = vcmask 1040384  }
 0x197   : > { %v1037_v42 = vmul.f32 %v577_v56, %v577_v56 }
 0x19b   : > { %v622_v53 = vpop.permute.xlu1 %621 }
 0x19c   : > { %v748_v11 = vsub.f32 %v622_v53, %v7354_v37  ;;  %v749_v7 = vsub.f32 %v622_v53, %v7356_v38  ;;  %v775_v53 = vsub.f32 %v8275_v32, %v7356_v38 }
 0x19e   : > { %v1074_v24 = vmul.f32 %v748_v11, %v748_v11  ;;  %v1075_v12 = vmul.f32 %v749_v7, %v749_v7  ;;  %v576_v11 = vsub.f32 %v460_v23, %v7360_v39  ;;  %v1101_v62 = vmul.f32 %v775_v53, %v775_v53 }
 0x1a0   : > { %v1138_v10 = vadd.f32 %v1074_v24, %v1010_v43  ;;  %v1139_v18 = vadd.f32 %v1075_v12, %v1011_v59  ;;  %v1518_v43 = vpack.c.bf16 %v8341_v6, %v8336_v13  ;;  %v1230_v24 = vmul.f32 %v974_v29, %v974_v29 }
 0x1a1   : > { %v1036_v49 = vmul.f32 %v576_v11, %v576_v11  ;;  %v1165_v11 = vadd.f32 %v1101_v62, %v1037_v42  ;;  %v610_v62 = vpop.permute.xlu0 %609 }
 0x1a2   : > { %v8344_v60 = vadd.f32 %v1202_v21, %v1138_v10  ;;  %v8346_v14 = vadd.f32 %v1203_v27, %v1139_v18  ;;  %v1231_v27 = vmul.f32 %v975_v51, %v975_v51  ;;  %v1638_v18 = vunpack.c.l.b16 %v1518_v43  ;;  %v8377_v51 = vpop.permute.xlu2 %384 }
 0x1a3   : > { %v678_v7 = vpop.permute.xlu1 %677 }
 0x1a4   : > { %11893 = vst [vmem:[#allocation85_spill] sm:$0xff] %v8344_v60  ;;  %vm11447_vm7 = vcmp.lt.f32.partialorder %v8344_v60, 0.36  ;;  %vm11446_vm6 = vcmp.lt.f32.partialorder %v8346_v14, 0.36  ;;  %v776_v16 = vsub.f32 %v678_v7, %v7354_v37  ;;  %v777_v59 = vsub.f32 %v678_v7, %v7356_v38 }
 0x1a5   : > { %11894 = vst [vmem:[#allocation86_spill] sm:$0xff] %v8346_v14  ;;  %v8364_v32 = vsel %vm11447_vm7, 1.0, %v11832_v28  ;;  %v8369_v12 = vsel %vm11446_vm6, 1.0, %v11832_v28  ;;  %v1639_v7 = vunpack.c.h.b16 %v1518_v43  ;;  %v1100_v60 = vmul.f32 %v774_v31, %v774_v31 }
 0x1a6   : > { %v1102_v54 = vmul.f32 %v776_v16, %v776_v16  ;;  %v1103_v21 = vmul.f32 %v777_v59, %v777_v59  ;;  %v1519_v10 = vpack.c.bf16 %v8369_v12, %v8364_v32 }
 0x1a7   : > { %v1164_v53 = vadd.f32 %v1100_v60, %v1036_v49 }
 0x1a8   : > { %v1166_v23 = vadd.f32 %v1102_v54, %v1038_v52  ;;  %v1167_v29 = vadd.f32 %v1103_v21, %v1039_v41  ;;  %v1640_v45 = vunpack.c.l.b16 %v1519_v10  ;;  %v1641_v30 = vunpack.c.h.b16 %v1519_v10 }
 0x1aa   : > { %v8373_v8 = vadd.f32 %v1230_v24, %v1166_v23  ;;  %v8375_v14 = vadd.f32 %v1231_v27, %v1167_v29  ;;  %v1668_v16 = vpack.c.b16 %v1640_v45, %v1638_v18  ;;  %v1669_v59 = vpack.c.b16 %v1641_v30, %v1639_v7  ;;  %v808_v18 = vpop.permute.xlu2 %807 }
 0x1ac   : > { %vm1358_vm1 = vcmp.lt.f32.partialorder %v8373_v8, 0.36  ;;  %vm1359_vm0 = vcmp.lt.f32.partialorder %v8375_v14, 0.36  ;;  %1704 = vmatpush.bf16.msra.mxu0 %v1668_v16  ;;  %1753 = vmatpush.bf16.msra.mxu1 %v1669_v59  ;;  %v872_v52 = vpop.permute.xlu1 %871 }
 0x1ad   : > { %v972_v41 = vsub.f32 %v872_v52, %v7350_v35  ;;  %v973_v31 = vsub.f32 %v872_v52, %v7352_v36  ;;  %v6465_v45 = vsel %vm1358_vm1, 1.0, %v11832_v28  ;;  %v6466_v30 = vsel %vm1359_vm0, 1.0, %v11832_v28 }
 0x1ae   : > { %v1533_v21 = vpack.c.bf16 %v6466_v30, %v6465_v45 }
 0x1af   : > { %v1228_v43 = vmul.f32 %v972_v41, %v972_v41  ;;  %v1229_v56 = vmul.f32 %v973_v31, %v973_v31 }
 0x1b0   : > { %v1868_v16 = vunpack.c.l.b16 %v1533_v21  ;;  %v1869_v59 = vunpack.c.h.b16 %v1533_v21 }
 0x1b1   : > { %v8389_v24 = vadd.f32 %v1228_v43, %v1164_v53  ;;  %v8391_v54 = vadd.f32 %v1229_v56, %v1165_v11  ;;  %v742_v11 = vsub.f32 %v610_v62, %v7354_v37 }
 0x1b3   : > { %vm1356_vm11 = vcmp.lt.f32.partialorder %v8389_v24, 0.36  ;;  %vm1357_vm10 = vcmp.lt.f32.partialorder %v8391_v54, 0.36 }
 0x1b4   : > { %v6463_v42 = vsel %vm1356_vm11, 1.0, %v11832_v28  ;;  %v6464_v49 = vsel %vm1357_vm10, 1.0, %v11832_v28 }
 0x1b5   : > { %v2028_v60 = vadd.f32 %v6465_v45, %v6463_v42  ;;  %v2049_v27 = vadd.f32 %v6466_v30, %v6464_v49  ;;  %v380_v10 = vpop.permute.xlu1 %379  ;;  %v1532_v7 = vpack.c.bf16 %v6464_v49, %v6463_v42  ;;  %v743_v45 = vsub.f32 %v610_v62, %v7356_v38 }
 0x1b6   : > { %v544_v23 = vsub.f32 %v380_v10, %v7360_v39  ;;  %v545_v29 = vsub.f32 %v380_v10, %v7362_v40  ;;  %v940_v30 = vsub.f32 %v808_v18, %v7350_v35 }
 0x1b7   : > { %v2029_v52 = vadd.f32 %v8240_v50, %v2028_v60  ;;  %v2050_v41 = vadd.f32 %v8247_v15, %v2049_v27  ;;  %v1866_v31 = vunpack.c.l.b16 %v1532_v7  ;;  %v1867_v53 = vunpack.c.h.b16 %v1532_v7  ;;  %v8414_v15 = vld [vmem:[%s11304_s3] sm:$0xff] }
 0x1b8   : > { %v1004_v10 = vmul.f32 %v544_v23, %v544_v23  ;;  %v1005_v21 = vmul.f32 %v545_v29, %v545_v29  ;;  %v941_v50 = vsub.f32 %v808_v18, %v7352_v36  ;;  %v1069_v27 = vmul.f32 %v743_v45, %v743_v45 }
 0x1b9   : > { %v2030_v43 = vadd.f32 %v8266_v47, %v2029_v52  ;;  %v2051_v56 = vadd.f32 %v8271_v61, %v2050_v41  ;;  %v1898_v42 = vpack.c.b16 %v1868_v16, %v1866_v31  ;;  %v1899_v49 = vpack.c.b16 %v1869_v59, %v1867_v53 }
 0x1ba   : > { %v1068_v47 = vmul.f32 %v742_v11, %v742_v11  ;;  %v1196_v23 = vmul.f32 %v940_v30, %v940_v30  ;;  %v1133_v18 = vadd.f32 %v1069_v27, %v1005_v21  ;;  %v1197_v16 = vmul.f32 %v941_v50, %v941_v50 }
 0x1bb   : > { %v2031_v60 = vadd.f32 %v8168_v63, %v2030_v43  ;;  %v2052_v62 = vadd.f32 %v8173_v19, %v2051_v56  ;;  %1937 = vmatpush.bf16.msra.mxu2 %v1898_v42  ;;  %1986 = vmatpush.bf16.msra.mxu3 %v1899_v49  ;;  %v546_v52 = vsub.f32 %v8377_v51, %v7360_v39  ;;  %v336_v31 = vlaneseq  ;;  %v11898_v43 = vld [vmem:[#allocation37_spill] sm:$0xff] }
 0x1bc   : > { %v1132_v29 = vadd.f32 %v1068_v47, %v1004_v10  ;;  %v547_v41 = vsub.f32 %v8377_v51, %v7362_v40  ;;  %v8432_v11 = vadd.f32 %v1197_v16, %v1133_v18  ;;  %v11901_v16 = vld [vmem:[#allocation33_spill] sm:$0xff] }
 0x1bd   : > { %v2032_v61 = vadd.f32 %v8186_v5, %v2031_v60  ;;  %v2053_v7 = vadd.f32 %v8191_v22, %v2052_v62  ;;  %vm8438_vm6 = vcmp.lt.s32.totalorder %v336_v31, 256  ;;  %v1006_v51 = vmul.f32 %v546_v52, %v546_v52 }
 0x1be   : > { %1938 = vmatmul.bf16.vlgmr.msra.gmra.mxu2 %v8414_v15  ;;  %1987 = vmatmul.bf16.vlgmr.msra.gmra.mxu3 %v8414_v15  ;;  %v614_v59 = vpop.permute.xlu1 %613  ;;  %v8430_v53 = vadd.f32 %v1196_v23, %v1132_v29  ;;  %340 = vst.msk [vmem:[#allocation2] sm:$0x3] %vm8438_vm6, %v11832_v28  ;;  %vm1325_vm14 = vcmp.lt.f32.partialorder %v8432_v11, 0.36  ;;  %v11900_v29 = vld [vmem:[#allocation32_spill] sm:$0xff] }
 0x1bf   : > { %v2033_v63 = vadd.f32 %v8042_v58, %v2032_v61  ;;  %v2054_v19 = vadd.f32 %v8047_v25, %v2053_v7  ;;  %v744_v45 = vsub.f32 %v614_v59, %v7354_v37  ;;  %v745_v58 = vsub.f32 %v614_v59, %v7356_v38 }
 0x1c0   : > { %v1007_v37 = vmul.f32 %v547_v41, %v547_v41  ;;  %vm1324_vm7 = vcmp.lt.f32.partialorder %v8430_v53, 0.36  ;;  %v6432_v60 = vsel %vm1325_vm14, 1.0, %v11832_v28 }
 0x1c1   : > { %v2034_v5 = vadd.f32 %v8062_v20, %v2033_v63  ;;  %v2055_v22 = vadd.f32 %v8067_v2, %v2054_v19  ;;  %v1070_v38 = vmul.f32 %v744_v45, %v744_v45  ;;  %v6431_v50 = vsel %vm1324_vm7, 1.0, %v11832_v28  ;;  %v7052_v20 = vld [vmem:[%s11304_s3 + $0x38] sm:$0xff] }
 0x1c2   : > { %v1516_v63 = vpack.c.bf16 %v6432_v60, %v6431_v50 }
 0x1c3   : > { %v2035_v25 = vadd.f32 %v7909_v0, %v2034_v5  ;;  %v2056_v39 = vadd.f32 %v7914_v4, %v2055_v22  ;;  %v1071_v0 = vmul.f32 %v745_v58, %v745_v58  ;;  %v11897_v4 = vld [vmem:[#allocation36_spill] sm:$0xff]  ;;  %v1134_v62 = vadd.f32 %v1070_v38, %v1006_v51  ;;  %v11904_v58 = vld [vmem:[#allocation11_spill] sm:$0xff] }
 0x1c4   : > { %v1635_v51 = vunpack.c.h.b16 %v1516_v63 }
 0x1c5   : > { %v2036_v40 = vadd.f32 %v7921_v3, %v2035_v25  ;;  %v2057_v2 = vadd.f32 %v7926_v33, %v2056_v39  ;;  %v11899_v33 = vld [vmem:[#allocation38_spill] sm:$0xff]  ;;  %v1135_v47 = vadd.f32 %v1071_v0, %v1007_v37  ;;  %v11905_v39 = vld [vmem:[#allocation12_spill] sm:$0xff] }
 0x1c7   : > { %v2037_v30 = vadd.f32 %v11897_v4, %v2036_v40  ;;  %v2058_v56 = vadd.f32 %v11898_v43, %v2057_v2  ;;  %v812_v42 = vpop.permute.xlu1 %811  ;;  %v1634_v2 = vunpack.c.l.b16 %v1516_v63 }
 0x1c8   : > { %v942_v49 = vsub.f32 %v812_v42, %v7350_v35  ;;  %v943_v10 = vsub.f32 %v812_v42, %v7352_v36  ;;  %v8464_v35 = vld [vmem:[%s11304_s3 + $0x8] sm:$0xff] }
 0x1c9   : > { %v2038_v3 = vadd.f32 %v7716_v1, %v2037_v30  ;;  %v2059_v21 = vadd.f32 %v11899_v33, %v2058_v56 }
 0x1ca   : > { %v1198_v27 = vmul.f32 %v942_v49, %v942_v49  ;;  %v1199_v61 = vmul.f32 %v943_v10, %v943_v10 }
 0x1cb   : > { %v2039_v36 = vadd.f32 %v7798_v44, %v2038_v3  ;;  %v2060_v1 = vadd.f32 %v7803_v34, %v2059_v21  ;;  %v11902_v44 = vld [vmem:[#allocation7_spill] sm:$0xff]  ;;  %v11903_v34 = vld [vmem:[#allocation8_spill] sm:$0xff] }
 0x1cc   : > { %v8468_v7 = vadd.f32 %v1198_v27, %v1134_v62  ;;  %v8470_v23 = vadd.f32 %v1199_v61, %v1135_v47 }
 0x1cd   : > { %v2040_v18 = vadd.f32 %v11900_v29, %v2039_v36  ;;  %v2061_v59 = vadd.f32 %v11901_v16, %v2060_v1  ;;  %v11906_v36 = vld [vmem:[#allocation73_spill] sm:$0xff]  ;;  %v11908_v16 = vld [vmem:[#allocation66_spill] sm:$0xff] }
 0x1ce   : > { %vm11455_vm15 = vcmp.lt.f32.partialorder %v8468_v7, 0.36  ;;  %vm11454_vm3 = vcmp.lt.f32.partialorder %v8470_v23, 0.36  ;;  %1943 = vmatmul.bf16.gmra.mxu2 %v8464_v35  ;;  %1992 = vmatmul.bf16.gmra.mxu3 %v8464_v35  ;;  %v11907_v29 = vld [vmem:[#allocation65_spill] sm:$0xff] }
 0x1cf   : > { %v2041_v19 = vadd.f32 %v11902_v44, %v2040_v18  ;;  %v2062_v52 = vadd.f32 %v11903_v34, %v2061_v59  ;;  %v6433_v5 = vsel %vm11455_vm15, 1.0, %v11832_v28  ;;  %v6434_v22 = vsel %vm11454_vm3, 1.0, %v11832_v28  ;;  %v11909_v59 = vld [vmem:[#allocation59_spill] sm:$0xff]  ;;  %v11910_v44 = vld [vmem:[#allocation60_spill] sm:$0xff] }
 0x1d0   : > { %v1796_v41 = vadd.f32 %v6433_v5, %v6431_v50  ;;  %v1817_v31 = vadd.f32 %v6434_v22, %v6432_v60  ;;  %v1517_v45 = vpack.c.bf16 %v6434_v22, %v6433_v5  ;;  %v11912_v5 = vld [vmem:[#allocation50_spill] sm:$0xff] }
 0x1d1   : > { %v2042_v25 = vadd.f32 %v11904_v58, %v2041_v19  ;;  %v2063_v40 = vadd.f32 %v11905_v39, %v2062_v52  ;;  %v11911_v52 = vld [vmem:[#allocation49_spill] sm:$0xff] }
 0x1d2   : > { %v1797_v37 = vadd.f32 %v8336_v13, %v1796_v41  ;;  %v1818_v38 = vadd.f32 %v8341_v6, %v1817_v31  ;;  %v1636_v0 = vunpack.c.l.b16 %v1517_v45  ;;  %v1637_v4 = vunpack.c.h.b16 %v1517_v45  ;;  %v11913_v41 = vld [vmem:[#allocation45_spill] sm:$0xff]  ;;  %v11914_v45 = vld [vmem:[#allocation46_spill] sm:$0xff] }
 0x1d3   : > { %v2043_v30 = vrot.slane %v2042_v25, 4  ;;  %v2064_v43 = vrot.slane %v2063_v40, 4 }
 0x1d4   : > { %v1798_v56 = vadd.f32 %v8364_v32, %v1797_v37  ;;  %v1819_v42 = vadd.f32 %v8369_v12, %v1818_v38  ;;  %v1666_v49 = vpack.c.b16 %v1636_v0, %v1634_v2  ;;  %v1667_v10 = vpack.c.b16 %v1637_v4, %v1635_v51  ;;  %v11917_v51 = vld [vmem:[#allocation34_spill] sm:$0xff]  ;;  %v11918_v38 = vld [vmem:[#allocation35_spill] sm:$0xff] }
 0x1d5   : > { %v2044_v3 = vadd.f32 %v2043_v30, %v2042_v25  ;;  %v2065_v33 = vadd.f32 %v2064_v43, %v2063_v40  ;;  %v11915_v25 = vld [vmem:[#allocation53_spill] sm:$0xff]  ;;  %v11916_v40 = vld [vmem:[#allocation54_spill] sm:$0xff]  ;;  %v11919_v4 = vld [vmem:[#allocation15_spill] sm:$0xff] }
 0x1d6   : > { %v1799_v21 = vadd.f32 %v8280_v48, %v1798_v56  ;;  %v1820_v50 = vadd.f32 %v8285_v57, %v1819_v42  ;;  %1705 = vmatpush.bf16.msra.mxu0 %v1666_v49  ;;  %1754 = vmatpush.bf16.msra.mxu1 %v1667_v10  ;;  %v7047_v57 = vld [vmem:[%s11304_s3 + $0x10] sm:$0xff]  ;;  %v7048_v42 = vld [vmem:[%s11304_s3 + $0x18] sm:$0xff] }
 0x1d7   : > { %v2045_v13 = vrot.slane %v2044_v3, 2  ;;  %v2066_v6 = vrot.slane %v2065_v33, 2  ;;  %v11920_v43 = vld [vmem:[#allocation16_spill] sm:$0xff] }
 0x1d8   : > { %v1800_v60 = vadd.f32 %v8298_v9, %v1799_v21  ;;  %v1821_v62 = vadd.f32 %v8303_v17, %v1820_v50  ;;  %v11921_v49 = vld [vmem:[#allocation20_spill] sm:$0xff] }
 0x1d9   : > { %v2046_v47 = vadd.f32 %v2045_v13, %v2044_v3  ;;  %v2067_v32 = vadd.f32 %v2066_v6, %v2065_v33  ;;  %1706 = vmatmul.bf16.vlgmr.msra.gmra.mxu0 %v8414_v15  ;;  %1755 = vmatmul.bf16.vlgmr.msra.gmra.mxu1 %v8414_v15  ;;  %v11922_v3 = vld [vmem:[#allocation21_spill] sm:$0xff] }
 0x1da   : > { %v1801_v12 = vadd.f32 %v8132_v26, %v1800_v60  ;;  %v1822_v48 = vadd.f32 %v8139_v55, %v1821_v62 }
 0x1db   : > { %v2047_v27 = vrot.slane %v2046_v47, 1  ;;  %v2068_v61 = vrot.slane %v2067_v32, 1 }
 0x1dc   : > { %v1802_v9 = vadd.f32 %v8154_v46, %v1801_v12  ;;  %v1823_v17 = vadd.f32 %v11906_v36, %v1822_v48  ;;  %v7049_v36 = vld [vmem:[%s11304_s3 + $0x20] sm:$0xff] }
 0x1dd   : > { %v2069_v1 = vadd.f32 %v2068_v61, %v2067_v32  ;;  %v2048_v26 = vadd.f32 %v2047_v27, %v2046_v47  ;;  %v8527_v27 = vld [vmem:[#allocation2] sm:$0x3] }
 0x1de   : > { %v1803_v18 = vadd.f32 %v11907_v29, %v1802_v9  ;;  %v1824_v15 = vadd.f32 %v11908_v16, %v1823_v17  ;;  %1948 = vmatmul.bf16.gmra.mxu2 %v7047_v57  ;;  %1997 = vmatmul.bf16.gmra.mxu3 %v7047_v57 }
 0x1df   : > { %v2072_v55 = vrot.slane %v2069_v1, 7 }
 0x1e0   : > { %v1804_v63 = vadd.f32 %v11909_v59, %v1803_v18  ;;  %v1825_v19 = vadd.f32 %v11910_v44, %v1824_v15  ;;  %v7051_v18 = vld [vmem:[%s11304_s3 + $0x30] sm:$0xff] }
 0x1e1   : > { %v2073_v34 = vsel %vm1841_vm2, %v2048_v26, %v2072_v55 }
 0x1e2   : > { %v1805_v46 = vadd.f32 %v11911_v52, %v1804_v63  ;;  %v1826_v22 = vadd.f32 %v11912_v5, %v1825_v19 }
 0x1e4   : > { %v1806_v31 = vadd.f32 %v11913_v41, %v1805_v46  ;;  %v1827_v58 = vadd.f32 %v11914_v45, %v1826_v22 }
 0x1e6   : > { %v1807_v39 = vadd.f32 %v11915_v25, %v1806_v31  ;;  %v1828_v2 = vadd.f32 %v11916_v40, %v1827_v58 }
 0x1e8   : > { %v1808_v37 = vadd.f32 %v11917_v51, %v1807_v39  ;;  %v1829_v0 = vadd.f32 %v11918_v38, %v1828_v2  ;;  %v8589_v38 = vperm.slane %v8527_v27, 1 }
 0x1e9   : > { %1711 = vmatmul.bf16.gmra.mxu0 %v8464_v35  ;;  %1760 = vmatmul.bf16.gmra.mxu1 %v8464_v35 }
 0x1ea   : > { %v1809_v30 = vadd.f32 %v11919_v4, %v1808_v37  ;;  %v1830_v56 = vadd.f32 %v11920_v43, %v1829_v0  ;;  %v8586_v37 = vperm.slane %v8527_v27, 0 }
 0x1ec   : > { %v1810_v10 = vadd.f32 %v11921_v49, %v1809_v30  ;;  %v1831_v33 = vadd.f32 %v11922_v3, %v1830_v56 }
 0x1ee   : > { %v1811_v21 = vrot.slane %v1810_v10, 4  ;;  %v1832_v50 = vrot.slane %v1831_v33, 4  ;;  %1953 = vmatmul.bf16.gmra.mxu2 %v7048_v42  ;;  %2002 = vmatmul.bf16.gmra.mxu3 %v7048_v42 }
 0x1f0   : > { %v1812_v13 = vadd.f32 %v1811_v21, %v1810_v10  ;;  %v1833_v6 = vadd.f32 %v1832_v50, %v1831_v33 }
 0x1f2   : > { %v1813_v60 = vrot.slane %v1812_v13, 2  ;;  %v1834_v35 = vrot.slane %v1833_v6, 2 }
 0x1f4   : > { %v1814_v62 = vadd.f32 %v1813_v60, %v1812_v13  ;;  %v1835_v47 = vadd.f32 %v1834_v35, %v1833_v6 }
 0x1f6   : > { %v1815_v32 = vrot.slane %v1814_v62, 1  ;;  %v1836_v12 = vrot.slane %v1835_v47, 1 }
 0x1f8   : > { %v1837_v48 = vadd.f32 %v1836_v12, %v1835_v47  ;;  %v1816_v61 = vadd.f32 %v1815_v32, %v1814_v62 }
 0x1f9   : > { %1716 = vmatmul.bf16.gmra.mxu0 %v7047_v57  ;;  %1765 = vmatmul.bf16.gmra.mxu1 %v7047_v57  ;;  %v7050_v57 = vld [vmem:[%s11304_s3 + $0x28] sm:$0xff] }
 0x1fa   : > { %v1840_v9 = vrot.slane %v1837_v48, 7 }
 0x1fc   : > { %v1842_v17 = vsel %vm1841_vm2, %v1816_v61, %v1840_v9 }
 0x1fd   : > { %v1844_v1 = vadd.f32 %v1842_v17, %v8527_v27 }
 0x1fe   : > { %1958 = vmatmul.bf16.gmra.mxu2 %v7049_v36  ;;  %2007 = vmatmul.bf16.gmra.mxu3 %v7049_v36 }
 0x1ff   : > { %v2075_v29 = vadd.f32 %v2073_v34, %v1844_v1  ;;  %v8545_v16 = vperm.slane %v1844_v1, 0  ;;  %v8547_v15 = vperm.slane %v1844_v1, 1 }
 0x201   : > { %2080 = vst.msk [vmem:[#allocation2] sm:$0x3] %vm8438_vm6, %v2075_v29 }
 0x209   : > { %1721 = vmatmul.bf16.gmra.mxu0 %v7048_v42  ;;  %1770 = vmatmul.bf16.gmra.mxu1 %v7048_v42 }
 0x20e   : > { %1963 = vmatmul.bf16.gmra.mxu2 %v7050_v57  ;;  %2012 = vmatmul.bf16.gmra.mxu3 %v7050_v57 }
 0x219   : > { %1726 = vmatmul.bf16.gmra.mxu0 %v7049_v36  ;;  %1775 = vmatmul.bf16.gmra.mxu1 %v7049_v36 }
 0x21e   : > { %1968 = vmatmul.bf16.gmra.mxu2 %v7051_v18  ;;  %2017 = vmatmul.bf16.gmra.mxu3 %v7051_v18 }
 0x229   : > { %1731 = vmatmul.bf16.gmra.mxu0 %v7050_v57  ;;  %1780 = vmatmul.bf16.gmra.mxu1 %v7050_v57 }
 0x22e   : > { %1973 = vmatmul.bf16.gmra.mxu2 %v7052_v20  ;;  %2022 = vmatmul.bf16.gmra.mxu3 %v7052_v20 }
 0x239   : > { %1736 = vmatmul.bf16.gmra.mxu0 %v7051_v18  ;;  %1785 = vmatmul.bf16.gmra.mxu1 %v7051_v18 }
 0x241   : > { %v1939_v26 = vpop.f32.mrf.mxu2  ;;  %v1988_v55 = vpop.f32.mrf.mxu3 }
 0x242   : > { %v1940_v59 = vadd.f32 %v1939_v26, %v8545_v16  ;;  %v1989_v63 = vadd.f32 %v1988_v55, %v8547_v15 }
 0x244   : > { %v8553_v44 = vsel %vm1356_vm11, %v1940_v59, -1.0  ;;  %v8557_v19 = vsel %vm1357_vm10, %v1989_v63, -1.0 }
 0x245   : > { %11923 = vst [vmem:[#allocation36_spill] sm:$0xff] %v8553_v44  ;;  %vm2177_vm2 = vcmp.eq.f32.partialorder %v8553_v44, 0.0  ;;  %vm2178_vm6 = vcmp.eq.f32.partialorder %v8557_v19, 0.0  ;;  %vm2401_vm12 = vcmp.eq.f32.partialorder %v8553_v44, 1.0  ;;  %vm2402_vm11 = vcmp.eq.f32.partialorder %v8557_v19, 1.0  ;;  %v12000_v44 = vld [vmem:[#allocation81_spill] sm:$0xff] }
 0x246   : > { %11924 = vst [vmem:[#allocation37_spill] sm:$0xff] %v8557_v19  ;;  %v6559_v22 = vsel %vm2177_vm2, 1.0, %v11832_v28  ;;  %v6560_v41 = vsel %vm2178_vm6, 1.0, %v11832_v28  ;;  %v6623_v14 = vsel %vm2401_vm12, 1.0, %v11832_v28  ;;  %v6624_v25 = vsel %vm2402_vm11, 1.0, %v11832_v28 }
 0x247   : > { %v2353_v45 = vpack.c.bf16 %v6560_v41, %v6559_v22  ;;  %v2577_v56 = vpack.c.bf16 %v6624_v25, %v6623_v14 }
 0x249   : > { %1741 = vmatmul.bf16.gmra.mxu0 %v7052_v20  ;;  %1790 = vmatmul.bf16.gmra.mxu1 %v7052_v20  ;;  %v1941_v34 = vpop.f32.mrf.mxu2  ;;  %v1990_v52 = vpop.f32.mrf.mxu3  ;;  %v4001_v30 = vunpack.c.l.b16 %v2353_v45  ;;  %v4002_v43 = vunpack.c.h.b16 %v2353_v45  ;;  %v4161_v36 = vunpack.c.l.b16 %v2577_v56  ;;  %v4162_v17 = vunpack.c.h.b16 %v2577_v56 }
 0x24a   : > { %v1942_v46 = vadd.f32 %v1941_v34, %v8545_v16  ;;  %v1991_v5 = vadd.f32 %v1990_v52, %v8547_v15 }
 0x24c   : > { %v8567_v24 = vsel %vm1358_vm1, %v1942_v46, -1.0  ;;  %v8571_v54 = vsel %vm1359_vm0, %v1991_v5, -1.0 }
 0x24d   : > { %11925 = vst [vmem:[#allocation38_spill] sm:$0xff] %v8567_v24  ;;  %vm2179_vm10 = vcmp.eq.f32.partialorder %v8567_v24, 0.0  ;;  %vm2180_vm13 = vcmp.eq.f32.partialorder %v8571_v54, 0.0  ;;  %vm2403_vm3 = vcmp.eq.f32.partialorder %v8567_v24, 1.0  ;;  %vm2404_vm15 = vcmp.eq.f32.partialorder %v8571_v54, 1.0 }
 0x24e   : > { %11926 = vst [vmem:[#allocation32_spill] sm:$0xff] %v8571_v54  ;;  %v6561_v8 = vsel %vm2179_vm10, 1.0, %v11832_v28  ;;  %v6562_v31 = vsel %vm2180_vm13, 1.0, %v11832_v28  ;;  %v6625_v39 = vsel %vm2403_vm3, 1.0, %v11832_v28  ;;  %v6626_v40 = vsel %vm2404_vm15, 1.0, %v11832_v28 }
 0x24f   : > { %v2354_v58 = vpack.c.bf16 %v6562_v31, %v6561_v8  ;;  %v2578_v42 = vpack.c.bf16 %v6626_v40, %v6625_v39 }
 0x251   : > { %v1944_v2 = vpop.f32.mrf.mxu2  ;;  %v1993_v51 = vpop.f32.mrf.mxu3  ;;  %v4003_v21 = vunpack.c.l.b16 %v2354_v58  ;;  %v4004_v50 = vunpack.c.h.b16 %v2354_v58  ;;  %v4163_v48 = vunpack.c.l.b16 %v2578_v42  ;;  %v4164_v27 = vunpack.c.h.b16 %v2578_v42 }
 0x252   : > { %v1945_v0 = vadd.f32 %v1944_v2, %v8545_v16  ;;  %v1994_v4 = vadd.f32 %v1993_v51, %v8547_v15 }
 0x253   : > { %v8611_v9 = vpack.c.b16 %v4003_v21, %v4001_v30  ;;  %v8621_v20 = vpack.c.b16 %v4004_v50, %v4002_v43  ;;  %v8631_v63 = vpack.c.b16 %v4163_v48, %v4161_v36  ;;  %v8633_v34 = vpack.c.b16 %v4164_v27, %v4162_v17 }
 0x254   : > { %v8595_v10 = vsel %vm1360_vm9, %v1945_v0, -1.0  ;;  %v8599_v33 = vsel %vm1361_vm8, %v1994_v4, -1.0 }
 0x255   : > { %11928 = vst [vmem:[#allocation33_spill] sm:$0xff] %v8595_v10  ;;  %vm2181_vm0 = vcmp.eq.f32.partialorder %v8595_v10, 0.0  ;;  %vm2182_vm1 = vcmp.eq.f32.partialorder %v8599_v33, 0.0  ;;  %vm2405_vm3 = vcmp.eq.f32.partialorder %v8595_v10, 1.0  ;;  %vm2406_vm12 = vcmp.eq.f32.partialorder %v8599_v33, 1.0 }
 0x256   : > { %11930 = vst [vmem:[#allocation7_spill] sm:$0xff] %v8599_v33  ;;  %v1707_v13 = vpop.f32.mrf.mxu0  ;;  %v1756_v6 = vpop.f32.mrf.mxu1  ;;  %v6563_v60 = vsel %vm2181_vm0, 1.0, %v11832_v28  ;;  %v6564_v35 = vsel %vm2182_vm1, 1.0, %v11832_v28  ;;  %v6627_v62 = vsel %vm2405_vm3, 1.0, %v11832_v28  ;;  %v6628_v47 = vsel %vm2406_vm12, 1.0, %v11832_v28 }
 0x257   : > { %v1708_v32 = vadd.f32 %v1707_v13, %v8586_v37  ;;  %v1757_v12 = vadd.f32 %v1756_v6, %v8589_v38  ;;  %v2355_v61 = vpack.c.bf16 %v6564_v35, %v6563_v60  ;;  %11931 = vst [vmem:[#allocation8_spill] sm:$0xff] %v8611_v9  ;;  %v8623_v26 = vpack.c.bf16 %v6628_v47, %v6627_v62  ;;  %v11947_v47 = vld [vmem:[#allocation19_spill] sm:$0xff] }
 0x258   : > { %11934 = vst [vmem:[#allocation73_spill] sm:$0xff] %v8621_v20  ;;  %vm11948_vm11 = vcmp.lt.f32.partialorder %v11947_v47, 0.36 }
 0x259   : > { %v8615_v1 = vsel %vm1324_vm7, %v1708_v32, -1.0  ;;  %v8619_v29 = vsel %vm1325_vm14, %v1757_v12, -1.0  ;;  %v1946_v57 = vpop.f32.mrf.mxu2  ;;  %v1995_v18 = vpop.f32.mrf.mxu3  ;;  %11935 = vst [vmem:[#allocation65_spill] sm:$0xff] %v8631_v63  ;;  %v4005_v41 = vunpack.c.l.b16 %v2355_v61  ;;  %v4006_v25 = vunpack.c.h.b16 %v2355_v61  ;;  %v11950_v12 = vld [vmem:[#allocation70_spill] sm:$0xff] }
 0x25a   : > { %11932 = vst [vmem:[#allocation11_spill] sm:$0xff] %v8615_v1  ;;  %v1947_v55 = vadd.f32 %v1946_v57, %v8545_v16  ;;  %v1996_v59 = vadd.f32 %v1995_v18, %v8547_v15  ;;  %vm2145_vm8 = vcmp.eq.f32.partialorder %v8615_v1, 0.0  ;;  %vm2146_vm9 = vcmp.eq.f32.partialorder %v8619_v29, 0.0  ;;  %v12030_v1 = vld [vmem:[#allocation71_spill] sm:$0xff] }
 0x25b   : > { %11933 = vst [vmem:[#allocation12_spill] sm:$0xff] %v8619_v29  ;;  %v6527_v53 = vsel %vm2145_vm8, 1.0, %v11832_v28  ;;  %v6528_v11 = vsel %vm2146_vm9, 1.0, %v11832_v28  ;;  %v4165_v39 = vunpack.c.l.b16 %v8623_v26  ;;  %v4166_v0 = vunpack.c.h.b16 %v8623_v26 }
 0x25c   : > { %11936 = vst [vmem:[#allocation66_spill] sm:$0xff] %v8633_v34  ;;  %v8637_v46 = vsel %vm1362_vm4, %v1947_v55, -1.0  ;;  %v8641_v22 = vsel %vm1363_vm5, %v1996_v59, -1.0  ;;  %v2337_v8 = vpack.c.bf16 %v6528_v11, %v6527_v53  ;;  %vm11941_vm4 = vcmp.lt.f32.partialorder %v8468_v7, 0.36 }
 0x25d   : > { %11938 = vst [vmem:[#allocation59_spill] sm:$0xff] %v8637_v46  ;;  %vm2183_vm7 = vcmp.eq.f32.partialorder %v8637_v46, 0.0  ;;  %vm2184_vm13 = vcmp.eq.f32.partialorder %v8641_v22, 0.0  ;;  %vm2407_vm14 = vcmp.eq.f32.partialorder %v8637_v46, 1.0  ;;  %vm2408_vm15 = vcmp.eq.f32.partialorder %v8641_v22, 1.0 }
 0x25e   : > { %11940 = vst [vmem:[#allocation60_spill] sm:$0xff] %v8641_v22  ;;  %v1709_v31 = vpop.f32.mrf.mxu0  ;;  %v1758_v45 = vpop.f32.mrf.mxu1  ;;  %v6565_v14 = vsel %vm2183_vm7, 1.0, %v11832_v28  ;;  %v6566_v58 = vsel %vm2184_vm13, 1.0, %v11832_v28  ;;  %v3969_v4 = vunpack.c.l.b16 %v2337_v8  ;;  %v3970_v30 = vunpack.c.h.b16 %v2337_v8 }
 0x25f   : > { %v1710_v40 = vadd.f32 %v1709_v31, %v8586_v37  ;;  %v1759_v2 = vadd.f32 %v1758_v45, %v8589_v38  ;;  %v2356_v51 = vpack.c.bf16 %v6566_v58, %v6565_v14  ;;  %v6629_v43 = vsel %vm2407_vm14, 1.0, %v11832_v28  ;;  %v11955_v14 = vld [vmem:[#allocation83_spill] sm:$0xff] }
 0x260   : > { %v6630_v56 = vsel %vm2408_vm15, 1.0, %v11832_v28  ;;  %vm11943_vm5 = vcmp.lt.f32.partialorder %v8470_v23, 0.36  ;;  %vm11951_vm10 = vcmp.lt.f32.partialorder %v11950_v12, 0.36 }
 0x261   : > { %v8657_v42 = vsel %vm11941_vm4, %v1710_v40, -1.0  ;;  %v8661_v49 = vsel %vm11943_vm5, %v1759_v2, -1.0  ;;  %v1949_v3 = vpop.f32.mrf.mxu2  ;;  %v1998_v21 = vpop.f32.mrf.mxu3  ;;  %v4007_v50 = vunpack.c.l.b16 %v2356_v51  ;;  %v4008_v13 = vunpack.c.h.b16 %v2356_v51 }
 0x262   : > { %11942 = vst [vmem:[#allocation49_spill] sm:$0xff] %v8657_v42  ;;  %v1950_v6 = vadd.f32 %v1949_v3, %v8545_v16  ;;  %v1999_v60 = vadd.f32 %v1998_v21, %v8547_v15  ;;  %vm2147_vm2 = vcmp.eq.f32.partialorder %v8657_v42, 0.0  ;;  %vm2148_vm6 = vcmp.eq.f32.partialorder %v8661_v49, 0.0 }
 0x263   : > { %11944 = vst [vmem:[#allocation50_spill] sm:$0xff] %v8661_v49  ;;  %v8667_v35 = vpack.c.b16 %v4007_v50, %v4005_v41  ;;  %v8669_v7 = vpack.c.b16 %v4008_v13, %v4006_v25  ;;  %v6529_v23 = vsel %vm2147_vm2, 1.0, %v11832_v28  ;;  %v6530_v62 = vsel %vm2148_vm6, 1.0, %v11832_v28  ;;  %v11958_v25 = vld [vmem:[#allocation84_spill] sm:$0xff] }
 0x264   : > { %v8675_v32 = vsel %vm11948_vm11, %v1950_v6, -1.0  ;;  %v8679_v48 = vsel %vm11951_vm10, %v1999_v60, -1.0  ;;  %v2338_v27 = vpack.c.bf16 %v6530_v62, %v6529_v23  ;;  %v2580_v61 = vpack.c.bf16 %v6630_v56, %v6629_v43  ;;  %v11962_v6 = vld [vmem:[#allocation74_spill] sm:$0xff]  ;;  %v11965_v23 = vld [vmem:[#allocation75_spill] sm:$0xff] }
 0x265   : > { %11945 = vst [vmem:[#allocation45_spill] sm:$0xff] %v8667_v35  ;;  %vm2185_vm0 = vcmp.eq.f32.partialorder %v8675_v32, 0.0  ;;  %vm2186_vm1 = vcmp.eq.f32.partialorder %v8679_v48, 0.0  ;;  %vm2409_vm3 = vcmp.eq.f32.partialorder %v8675_v32, 1.0  ;;  %vm2410_vm12 = vcmp.eq.f32.partialorder %v8679_v48, 1.0 }
 0x266   : > { %11946 = vst [vmem:[#allocation46_spill] sm:$0xff] %v8669_v7  ;;  %v1712_v36 = vpop.f32.mrf.mxu0  ;;  %v1761_v17 = vpop.f32.mrf.mxu1  ;;  %v6567_v57 = vsel %vm2185_vm0, 1.0, %v11832_v28  ;;  %v6568_v18 = vsel %vm2186_vm1, 1.0, %v11832_v28  ;;  %v3971_v55 = vunpack.c.l.b16 %v2338_v27  ;;  %v3972_v59 = vunpack.c.h.b16 %v2338_v27 }
 0x267   : > { %11949 = vst [vmem:[#allocation53_spill] sm:$0xff] %v8675_v32  ;;  %v1713_v53 = vadd.f32 %v1712_v36, %v8586_v37  ;;  %v1762_v11 = vadd.f32 %v1761_v17, %v8589_v38  ;;  %v2357_v52 = vpack.c.bf16 %v6568_v18, %v6567_v57  ;;  %v6631_v5 = vsel %vm2409_vm3, 1.0, %v11832_v28  ;;  %v12018_v32 = vld [vmem:[#allocation69_spill] sm:$0xff] }
 0x268   : > { %11952 = vst [vmem:[#allocation54_spill] sm:$0xff] %v8679_v48  ;;  %v8690_v41 = vpack.c.b16 %v3971_v55, %v3969_v4  ;;  %v8692_v8 = vpack.c.b16 %v3972_v59, %v3970_v30  ;;  %v6632_v31 = vsel %vm2410_vm12, 1.0, %v11832_v28  ;;  %v4167_v45 = vunpack.c.l.b16 %v2580_v61 }
 0x269   : > { %vm11956_vm8 = vcmp.lt.f32.partialorder %v11955_v14, 0.36  ;;  %vm11959_vm9 = vcmp.lt.f32.partialorder %v11958_v25, 0.36  ;;  %v1951_v2 = vpop.f32.mrf.mxu2  ;;  %v2000_v51 = vpop.f32.mrf.mxu3  ;;  %v4009_v43 = vunpack.c.l.b16 %v2357_v52  ;;  %v4010_v56 = vunpack.c.h.b16 %v2357_v52  ;;  %v11972_v25 = vld [vmem:[#allocation86_spill] sm:$0xff] }
 0x26a   : > { %11953 = vst [vmem:[#allocation34_spill] sm:$0xff] %v8690_v41  ;;  %v8697_v58 = vsel %vm11956_vm8, %v1713_v53, -1.0  ;;  %v8701_v40 = vsel %vm11959_vm9, %v1762_v11, -1.0  ;;  %v1952_v4 = vadd.f32 %v1951_v2, %v8545_v16  ;;  %v2001_v30 = vadd.f32 %v2000_v51, %v8547_v15 }
 0x26b   : > { %11954 = vst [vmem:[#allocation35_spill] sm:$0xff] %v8692_v8  ;;  %vm2149_vm7 = vcmp.eq.f32.partialorder %v8697_v58, 0.0  ;;  %vm2150_vm13 = vcmp.eq.f32.partialorder %v8701_v40, 0.0  ;;  %v8709_v50 = vpack.c.bf16 %v6632_v31, %v6631_v5  ;;  %v8711_v13 = vpack.c.b16 %v4167_v45, %v4165_v39  ;;  %v11969_v45 = vld [vmem:[#allocation85_spill] sm:$0xff] }
 0x26c   : > { %11957 = vst [vmem:[#allocation15_spill] sm:$0xff] %v8697_v58  ;;  %v6531_v3 = vsel %vm2149_vm7, 1.0, %v11832_v28  ;;  %v6532_v21 = vsel %vm2150_vm13, 1.0, %v11832_v28  ;;  %vm11963_vm14 = vcmp.lt.f32.partialorder %v11962_v6, 0.36  ;;  %v4168_v12 = vunpack.c.h.b16 %v2580_v61  ;;  %v12059_v58 = vld [vmem:[#allocation57_spill] sm:$0xff] }
 0x26d   : > { %11960 = vst [vmem:[#allocation16_spill] sm:$0xff] %v8701_v40  ;;  %v8715_v60 = vsel %vm11963_vm14, %v1952_v4, -1.0  ;;  %vm11966_vm15 = vcmp.lt.f32.partialorder %v11965_v23, 0.36  ;;  %v2339_v47 = vpack.c.bf16 %v6532_v21, %v6531_v3  ;;  %v4169_v52 = vunpack.c.l.b16 %v8709_v50 }
 0x26e   : > { %11961 = vst [vmem:[#allocation20_spill] sm:$0xff] %v8711_v13  ;;  %v8719_v62 = vsel %vm11966_vm15, %v2001_v30, -1.0  ;;  %vm2187_vm4 = vcmp.eq.f32.partialorder %v8715_v60, 0.0  ;;  %vm2411_vm2 = vcmp.eq.f32.partialorder %v8715_v60, 1.0  ;;  %v1714_v39 = vpop.f32.mrf.mxu0  ;;  %v1763_v27 = vpop.f32.mrf.mxu1  ;;  %v8735_v31 = vpack.c.b16 %v4168_v12, %v4166_v0  ;;  %v11977_v12 = vld [vmem:[#allocation63_spill] sm:$0xff] }
 0x26f   : > { %11964 = vst [vmem:[#allocation21_spill] sm:$0xff] %v8715_v60  ;;  %vm2188_vm5 = vcmp.eq.f32.partialorder %v8719_v62, 0.0  ;;  %vm2412_vm6 = vcmp.eq.f32.partialorder %v8719_v62, 1.0  ;;  %v6569_v36 = vsel %vm2187_vm4, 1.0, %v11832_v28  ;;  %v3973_v57 = vunpack.c.l.b16 %v2339_v47  ;;  %v12016_v60 = vld [vmem:[#allocation23_spill] sm:$0xff] }
 0x270   : > { %11967 = vst [vmem:[#allocation76_spill] sm:$0xff] %v8719_v62  ;;  %v6570_v17 = vsel %vm2188_vm5, 1.0, %v11832_v28  ;;  %v3974_v18 = vunpack.c.h.b16 %v2339_v47  ;;  %v1715_v55 = vadd.f32 %v1714_v39, %v8586_v37  ;;  %v1764_v61 = vadd.f32 %v1763_v27, %v8589_v38  ;;  %v11980_v27 = vld [vmem:[#allocation64_spill] sm:$0xff] }
 0x271   : > { %v2358_v59 = vpack.c.bf16 %v6570_v17, %v6569_v36  ;;  %v6633_v53 = vsel %vm2411_vm2, 1.0, %v11832_v28  ;;  %v6634_v11 = vsel %vm2412_vm6, 1.0, %v11832_v28  ;;  %11968 = vst [vmem:[#allocation77_spill] sm:$0xff] %v8735_v31  ;;  %vm11970_vm11 = vcmp.lt.f32.partialorder %v11969_v45, 0.36  ;;  %v1954_v51 = vpop.f32.mrf.mxu2  ;;  %v2003_v4 = vpop.f32.mrf.mxu3 }
 0x272   : > { %v8739_v14 = vsel %vm11970_vm11, %v1715_v55, -1.0  ;;  %vm11973_vm10 = vcmp.lt.f32.partialorder %v11972_v25, 0.36  ;;  %v1955_v21 = vadd.f32 %v1954_v51, %v8545_v16  ;;  %v2004_v6 = vadd.f32 %v2003_v4, %v8547_v15 }
 0x273   : > { %11971 = vst [vmem:[#allocation79_spill] sm:$0xff] %v8739_v14  ;;  %v8743_v2 = vsel %vm11973_vm10, %v1764_v61, -1.0  ;;  %v4011_v30 = vunpack.c.l.b16 %v2358_v59  ;;  %v4012_v3 = vunpack.c.h.b16 %v2358_v59  ;;  %vm2151_vm0 = vcmp.eq.f32.partialorder %v8739_v14, 0.0 }
 0x274   : > { %11974 = vst [vmem:[#allocation80_spill] sm:$0xff] %v8743_v2  ;;  %vm2152_vm1 = vcmp.eq.f32.partialorder %v8743_v2, 0.0  ;;  %v6533_v23 = vsel %vm2151_vm0, 1.0, %v11832_v28  ;;  %vm11978_vm3 = vcmp.lt.f32.partialorder %v11977_v12, 0.36  ;;  %v2582_v55 = vpack.c.bf16 %v6634_v11, %v6633_v53  ;;  %v11988_v12 = vld [vmem:[#allocation78_spill] sm:$0xff] }
 0x275   : > { %v8749_v26 = vpack.c.b16 %v4011_v30, %v4009_v43  ;;  %v8751_v0 = vpack.c.b16 %v4012_v3, %v4010_v56  ;;  %v6534_v47 = vsel %vm2152_vm1, 1.0, %v11832_v28  ;;  %v8757_v39 = vsel %vm11978_vm3, %v1955_v21, -1.0 }
 0x276   : > { %11979 = vst [vmem:[#allocation83_spill] sm:$0xff] %v8757_v39  ;;  %vm11981_vm12 = vcmp.lt.f32.partialorder %v11980_v27, 0.36  ;;  %v2340_v17 = vpack.c.bf16 %v6534_v47, %v6533_v23  ;;  %vm2189_vm8 = vcmp.eq.f32.partialorder %v8757_v39, 0.0  ;;  %vm2413_vm7 = vcmp.eq.f32.partialorder %v8757_v39, 1.0  ;;  %v1717_v43 = vpop.f32.mrf.mxu0  ;;  %v1766_v56 = vpop.f32.mrf.mxu1  ;;  %v11985_v23 = vld [vmem:[#allocation22_spill] sm:$0xff] }
 0x277   : > { %11975 = vst [vmem:[#allocation19_spill] sm:$0xff] %v8749_v26  ;;  %v8761_v36 = vsel %vm11981_vm12, %v2004_v6, -1.0  ;;  %v6571_v61 = vsel %vm2189_vm8, 1.0, %v11832_v28  ;;  %v1718_v51 = vadd.f32 %v1717_v43, %v8586_v37  ;;  %v1767_v53 = vadd.f32 %v1766_v56, %v8589_v38  ;;  %v12046_v39 = vld [vmem:[#allocation61_spill] sm:$0xff] }
 0x278   : > { %11976 = vst [vmem:[#allocation70_spill] sm:$0xff] %v8751_v0  ;;  %vm2190_vm9 = vcmp.eq.f32.partialorder %v8761_v36, 0.0  ;;  %vm2414_vm13 = vcmp.eq.f32.partialorder %v8761_v36, 1.0  ;;  %v3975_v45 = vunpack.c.l.b16 %v2340_v17  ;;  %v3976_v25 = vunpack.c.h.b16 %v2340_v17 }
 0x279   : > { %11982 = vst [vmem:[#allocation84_spill] sm:$0xff] %v8761_v36  ;;  %v6572_v59 = vsel %vm2190_vm9, 1.0, %v11832_v28  ;;  %v6635_v4 = vsel %vm2413_vm7, 1.0, %v11832_v28  ;;  %v6636_v21 = vsel %vm2414_vm13, 1.0, %v11832_v28  ;;  %v4171_v6 = vunpack.c.l.b16 %v2582_v55  ;;  %v1956_v17 = vpop.f32.mrf.mxu2  ;;  %v2005_v43 = vpop.f32.mrf.mxu3 }
 0x27a   : > { %v2359_v11 = vpack.c.bf16 %v6572_v59, %v6571_v61  ;;  %v8772_v30 = vpack.c.b16 %v3975_v45, %v3973_v57  ;;  %v8774_v3 = vpack.c.b16 %v3976_v25, %v3974_v18  ;;  %vm11986_vm14 = vcmp.lt.f32.partialorder %v11985_v23, 0.36 }
 0x27b   : > { %v8779_v47 = vsel %vm11986_vm14, %v1718_v51, -1.0  ;;  %vm11989_vm15 = vcmp.lt.f32.partialorder %v11988_v12, 0.36  ;;  %v1957_v57 = vadd.f32 %v1956_v17, %v8545_v16  ;;  %v2006_v18 = vadd.f32 %v2005_v43, %v8547_v15 }
 0x27c   : > { %11983 = vst [vmem:[#allocation74_spill] sm:$0xff] %v8772_v30  ;;  %v8783_v27 = vsel %vm11989_vm15, %v1767_v53, -1.0  ;;  %v4013_v56 = vunpack.c.l.b16 %v2359_v11  ;;  %v4014_v61 = vunpack.c.h.b16 %v2359_v11  ;;  %vm2153_vm4 = vcmp.eq.f32.partialorder %v8779_v47, 0.0  ;;  %v11992_v53 = vld [vmem:[#allocation67_spill] sm:$0xff]  ;;  %v11995_v11 = vld [vmem:[#allocation68_spill] sm:$0xff] }
 0x27d   : > { %11984 = vst [vmem:[#allocation75_spill] sm:$0xff] %v8774_v3  ;;  %vm2154_vm5 = vcmp.eq.f32.partialorder %v8783_v27, 0.0  ;;  %v6535_v59 = vsel %vm2153_vm4, 1.0, %v11832_v28  ;;  %v8791_v25 = vpack.c.bf16 %v6636_v21, %v6635_v4  ;;  %v8793_v51 = vpack.c.b16 %v4171_v6, %v4169_v52 }
 0x27e   : > { %11987 = vst [vmem:[#allocation85_spill] sm:$0xff] %v8779_v47  ;;  %v6536_v45 = vsel %vm2154_vm5, 1.0, %v11832_v28  ;;  %vm11993_vm2 = vcmp.lt.f32.partialorder %v11992_v53, 0.36  ;;  %vm11996_vm6 = vcmp.lt.f32.partialorder %v11995_v11, 0.36  ;;  %v4172_v43 = vunpack.c.h.b16 %v2582_v55  ;;  %v1719_v52 = vpop.f32.mrf.mxu0  ;;  %v1768_v4 = vpop.f32.mrf.mxu1 }
 0x27f   : > { %11990 = vst [vmem:[#allocation86_spill] sm:$0xff] %v8783_v27  ;;  %v8797_v23 = vsel %vm11993_vm2, %v1957_v57, -1.0  ;;  %v8801_v12 = vsel %vm11996_vm6, %v2006_v18, -1.0  ;;  %v2341_v17 = vpack.c.bf16 %v6536_v45, %v6535_v59  ;;  %v1720_v18 = vadd.f32 %v1719_v52, %v8586_v37  ;;  %v12003_v52 = vld [vmem:[#allocation82_spill] sm:$0xff] }
 0x280   : > { %11991 = vst [vmem:[#allocation63_spill] sm:$0xff] %v8793_v51  ;;  %vm2191_vm11 = vcmp.eq.f32.partialorder %v8797_v23, 0.0  ;;  %vm2192_vm10 = vcmp.eq.f32.partialorder %v8801_v12, 0.0  ;;  %vm2415_vm0 = vcmp.eq.f32.partialorder %v8797_v23, 1.0  ;;  %vm2416_vm1 = vcmp.eq.f32.partialorder %v8801_v12, 1.0  ;;  %v12048_v51 = vld [vmem:[#allocation62_spill] sm:$0xff] }
 0x281   : > { %11994 = vst [vmem:[#allocation64_spill] sm:$0xff] %v8797_v23  ;;  %v6573_v21 = vsel %vm2191_vm11, 1.0, %v11832_v28  ;;  %v6574_v6 = vsel %vm2192_vm10, 1.0, %v11832_v28  ;;  %v3977_v57 = vunpack.c.l.b16 %v2341_v17  ;;  %v3978_v53 = vunpack.c.h.b16 %v2341_v17 }
 0x282   : > { %11997 = vst [vmem:[#allocation22_spill] sm:$0xff] %v8801_v12  ;;  %v1769_v55 = vadd.f32 %v1768_v4, %v8589_v38  ;;  %v2360_v59 = vpack.c.bf16 %v6574_v6, %v6573_v21  ;;  %v6637_v45 = vsel %vm2415_vm0, 1.0, %v11832_v28  ;;  %v6638_v11 = vsel %vm2416_vm1, 1.0, %v11832_v28  ;;  %v1959_v21 = vpop.f32.mrf.mxu2  ;;  %v2008_v6 = vpop.f32.mrf.mxu3 }
 0x283   : > { %v4173_v5 = vunpack.c.l.b16 %v8791_v25  ;;  %v11998_v24 = vunpack.c.h.b16 %v8709_v50  ;;  %vm12001_vm3 = vcmp.lt.f32.partialorder %v12000_v44, 0.36  ;;  %vm12004_vm12 = vcmp.lt.f32.partialorder %v12003_v52, 0.36 }
 0x284   : > { %v8821_v17 = vsel %vm12001_vm3, %v1720_v18, -1.0  ;;  %v8825_v4 = vsel %vm12004_vm12, %v1769_v55, -1.0  ;;  %v4015_v22 = vunpack.c.l.b16 %v2360_v59  ;;  %v4016_v46 = vunpack.c.h.b16 %v2360_v59  ;;  %v12008_v18 = vld [vmem:[#allocation51_spill] sm:$0xff]  ;;  %v12011_v59 = vld [vmem:[#allocation52_spill] sm:$0xff] }
 0x285   : > { %v8817_v19 = vpack.c.b16 %v4172_v43, %v11998_v24  ;;  %12002 = vst [vmem:[#allocation67_spill] sm:$0xff] %v8821_v17  ;;  %v1960_v33 = vadd.f32 %v1959_v21, %v8545_v16  ;;  %v2009_v54 = vadd.f32 %v2008_v6, %v8547_v15  ;;  %vm2155_vm8 = vcmp.eq.f32.partialorder %v8821_v17, 0.0  ;;  %v12085_v17 = vld [vmem:[#allocation39_spill] sm:$0xff] }
 0x286   : > { %12005 = vst [vmem:[#allocation68_spill] sm:$0xff] %v8825_v4  ;;  %vm2156_vm9 = vcmp.eq.f32.partialorder %v8825_v4, 0.0  ;;  %v8831_v24 = vpack.c.b16 %v4015_v22, %v4013_v56  ;;  %v8833_v44 = vpack.c.b16 %v4016_v46, %v4014_v61  ;;  %v6537_v50 = vsel %vm2155_vm8, 1.0, %v11832_v28  ;;  %v1722_v46 = vpop.f32.mrf.mxu0  ;;  %v1771_v22 = vpop.f32.mrf.mxu1 }
 0x287   : > { %11999 = vst [vmem:[#allocation78_spill] sm:$0xff] %v8817_v19  ;;  %v6538_v43 = vsel %vm2156_vm9, 1.0, %v11832_v28  ;;  %vm12009_vm7 = vcmp.lt.f32.partialorder %v12008_v18, 0.36  ;;  %vm12012_vm13 = vcmp.lt.f32.partialorder %v12011_v59, 0.36  ;;  %v2584_v6 = vpack.c.bf16 %v6638_v11, %v6637_v45 }
 0x288   : > { %12006 = vst [vmem:[#allocation81_spill] sm:$0xff] %v8831_v24  ;;  %v8839_v55 = vsel %vm12009_vm7, %v1960_v33, -1.0  ;;  %v8843_v52 = vsel %vm12012_vm13, %v2009_v54, -1.0  ;;  %v2342_v21 = vpack.c.bf16 %v6538_v43, %v6537_v50  ;;  %v1723_v54 = vadd.f32 %v1722_v46, %v8586_v37 }
 0x289   : > { %12007 = vst [vmem:[#allocation82_spill] sm:$0xff] %v8833_v44  ;;  %vm2193_vm14 = vcmp.eq.f32.partialorder %v8839_v55, 0.0  ;;  %vm2194_vm15 = vcmp.eq.f32.partialorder %v8843_v52, 0.0  ;;  %vm2417_vm4 = vcmp.eq.f32.partialorder %v8839_v55, 1.0  ;;  %vm2418_vm5 = vcmp.eq.f32.partialorder %v8843_v52, 1.0 }
 0x28a   : > { %12010 = vst [vmem:[#allocation51_spill] sm:$0xff] %v8839_v55  ;;  %v6575_v56 = vsel %vm2193_vm14, 1.0, %v11832_v28  ;;  %v6576_v33 = vsel %vm2194_vm15, 1.0, %v11832_v28  ;;  %v3979_v61 = vunpack.c.l.b16 %v2342_v21  ;;  %v3980_v18 = vunpack.c.h.b16 %v2342_v21  ;;  %v1961_v46 = vpop.f32.mrf.mxu2 }
 0x28b   : > { %12013 = vst [vmem:[#allocation52_spill] sm:$0xff] %v8843_v52  ;;  %v1772_v45 = vadd.f32 %v1771_v22, %v8589_v38  ;;  %v2361_v11 = vpack.c.bf16 %v6576_v33, %v6575_v56  ;;  %v6639_v50 = vsel %vm2417_vm4, 1.0, %v11832_v28  ;;  %v6640_v10 = vsel %vm2418_vm5, 1.0, %v11832_v28  ;;  %v2010_v22 = vpop.f32.mrf.mxu3 }
 0x28c   : > { %v8854_v43 = vpack.c.b16 %v3979_v61, %v3977_v57  ;;  %v8856_v59 = vpack.c.b16 %v3980_v18, %v3978_v53  ;;  %v4175_v62 = vunpack.c.l.b16 %v2584_v6  ;;  %vm12017_vm2 = vcmp.lt.f32.partialorder %v12016_v60, 0.36 }
 0x28d   : > { %v8861_v48 = vsel %vm12017_vm2, %v1723_v54, -1.0  ;;  %vm12019_vm6 = vcmp.lt.f32.partialorder %v12018_v32, 0.36  ;;  %v4017_v56 = vunpack.c.l.b16 %v2361_v11  ;;  %v4018_v33 = vunpack.c.h.b16 %v2361_v11  ;;  %v12022_v54 = vld [vmem:[#allocation55_spill] sm:$0xff]  ;;  %v12025_v11 = vld [vmem:[#allocation56_spill] sm:$0xff] }
 0x28e   : > { %12014 = vst [vmem:[#allocation87_spill] sm:$0xff] %v8854_v43  ;;  %v8865_v21 = vsel %vm12019_vm6, %v1772_v45, -1.0  ;;  %v1962_v57 = vadd.f32 %v1961_v46, %v8545_v16  ;;  %v2011_v53 = vadd.f32 %v2010_v22, %v8547_v15  ;;  %vm2157_vm11 = vcmp.eq.f32.partialorder %v8861_v48, 0.0 }
 0x28f   : > { %12015 = vst [vmem:[#allocation88_spill] sm:$0xff] %v8856_v59  ;;  %vm2158_vm10 = vcmp.eq.f32.partialorder %v8865_v21, 0.0  ;;  %v6539_v60 = vsel %vm2157_vm11, 1.0, %v11832_v28  ;;  %v8873_v18 = vpack.c.bf16 %v6640_v10, %v6639_v50  ;;  %v8875_v32 = vpack.c.b16 %v4175_v62, %v4173_v5  ;;  %v1724_v10 = vpop.f32.mrf.mxu0  ;;  %v1773_v62 = vpop.f32.mrf.mxu1 }
 0x290   : > { %12020 = vst [vmem:[#allocation23_spill] sm:$0xff] %v8865_v21  ;;  %v6540_v61 = vsel %vm2158_vm10, 1.0, %v11832_v28  ;;  %vm12023_vm0 = vcmp.lt.f32.partialorder %v12022_v54, 0.36  ;;  %vm12026_vm1 = vcmp.lt.f32.partialorder %v12025_v11, 0.36  ;;  %v4176_v34 = vunpack.c.h.b16 %v2584_v6 }
 0x291   : > { %12021 = vst [vmem:[#allocation69_spill] sm:$0xff] %v8875_v32  ;;  %v8879_v45 = vsel %vm12023_vm0, %v1962_v57, -1.0  ;;  %v8883_v46 = vsel %vm12026_vm1, %v2011_v53, -1.0  ;;  %v2343_v22 = vpack.c.bf16 %v6540_v61, %v6539_v60  ;;  %v1725_v53 = vadd.f32 %v1724_v10, %v8586_v37  ;;  %v12033_v10 = vld [vmem:[#allocation72_spill] sm:$0xff] }
 0x292   : > { %12024 = vst [vmem:[#allocation55_spill] sm:$0xff] %v8879_v45  ;;  %vm2195_vm3 = vcmp.eq.f32.partialorder %v8879_v45, 0.0  ;;  %vm2196_vm12 = vcmp.eq.f32.partialorder %v8883_v46, 0.0  ;;  %vm2419_vm8 = vcmp.eq.f32.partialorder %v8879_v45, 1.0  ;;  %vm2420_vm9 = vcmp.eq.f32.partialorder %v8883_v46, 1.0  ;;  %v12072_v45 = vld [vmem:[#allocation43_spill] sm:$0xff] }
 0x293   : > { %12027 = vst [vmem:[#allocation56_spill] sm:$0xff] %v8883_v46  ;;  %v6577_v5 = vsel %vm2195_vm3, 1.0, %v11832_v28  ;;  %v6578_v50 = vsel %vm2196_vm12, 1.0, %v11832_v28  ;;  %v3981_v57 = vunpack.c.l.b16 %v2343_v22  ;;  %v3982_v54 = vunpack.c.h.b16 %v2343_v22 }
 0x294   : > { %v1774_v6 = vadd.f32 %v1773_v62, %v8589_v38  ;;  %v2362_v60 = vpack.c.bf16 %v6578_v50, %v6577_v5  ;;  %v6641_v61 = vsel %vm2419_vm8, 1.0, %v11832_v28  ;;  %v6642_v11 = vsel %vm2420_vm9, 1.0, %v11832_v28  ;;  %v1964_v5 = vpop.f32.mrf.mxu2  ;;  %v2013_v50 = vpop.f32.mrf.mxu3 }
 0x295   : > { %v4177_v63 = vunpack.c.l.b16 %v8873_v18  ;;  %v12028_v42 = vunpack.c.h.b16 %v8791_v25  ;;  %vm12031_vm7 = vcmp.lt.f32.partialorder %v12030_v1, 0.36  ;;  %vm12034_vm13 = vcmp.lt.f32.partialorder %v12033_v10, 0.36 }
 0x296   : > { %v8903_v22 = vsel %vm12031_vm7, %v1725_v53, -1.0  ;;  %v8907_v62 = vsel %vm12034_vm13, %v1774_v6, -1.0  ;;  %v4019_v31 = vunpack.c.l.b16 %v2362_v60  ;;  %v4020_v13 = vunpack.c.h.b16 %v2362_v60  ;;  %v12038_v53 = vld [vmem:[#allocation30_spill] sm:$0xff]  ;;  %v12041_v60 = vld [vmem:[#allocation31_spill] sm:$0xff] }
 0x297   : > { %v8899_v29 = vpack.c.b16 %v4176_v34, %v12028_v42  ;;  %12032 = vst [vmem:[#allocation71_spill] sm:$0xff] %v8903_v22  ;;  %v1965_v12 = vadd.f32 %v1964_v5, %v8545_v16  ;;  %v2014_v49 = vadd.f32 %v2013_v50, %v8547_v15  ;;  %vm2159_vm14 = vcmp.eq.f32.partialorder %v8903_v22, 0.0 }
 0x298   : > { %12035 = vst [vmem:[#allocation72_spill] sm:$0xff] %v8907_v62  ;;  %vm2160_vm15 = vcmp.eq.f32.partialorder %v8907_v62, 0.0  ;;  %v8913_v34 = vpack.c.b16 %v4019_v31, %v4017_v56  ;;  %v8915_v1 = vpack.c.b16 %v4020_v13, %v4018_v33  ;;  %v6541_v42 = vsel %vm2159_vm14, 1.0, %v11832_v28  ;;  %v1727_v13 = vpop.f32.mrf.mxu0  ;;  %v1776_v31 = vpop.f32.mrf.mxu1 }
 0x299   : > { %12029 = vst [vmem:[#allocation89_spill] sm:$0xff] %v8899_v29  ;;  %v6542_v25 = vsel %vm2160_vm15, 1.0, %v11832_v28  ;;  %vm12039_vm4 = vcmp.lt.f32.partialorder %v12038_v53, 0.36  ;;  %vm12042_vm5 = vcmp.lt.f32.partialorder %v12041_v60, 0.36  ;;  %v2586_v50 = vpack.c.bf16 %v6642_v11, %v6641_v61 }
 0x29a   : > { %12036 = vst [vmem:[#allocation90_spill] sm:$0xff] %v8913_v34  ;;  %v8921_v6 = vsel %vm12039_vm4, %v1965_v12, -1.0  ;;  %v8925_v10 = vsel %vm12042_vm5, %v2014_v49, -1.0  ;;  %v2344_v5 = vpack.c.bf16 %v6542_v25, %v6541_v42  ;;  %v1728_v49 = vadd.f32 %v1727_v13, %v8586_v37 }
 0x29b   : > { %12037 = vst [vmem:[#allocation91_spill] sm:$0xff] %v8915_v1  ;;  %vm2197_vm2 = vcmp.eq.f32.partialorder %v8921_v6, 0.0  ;;  %vm2198_vm6 = vcmp.eq.f32.partialorder %v8925_v10, 0.0  ;;  %vm2421_vm11 = vcmp.eq.f32.partialorder %v8921_v6, 1.0  ;;  %vm2422_vm10 = vcmp.eq.f32.partialorder %v8925_v10, 1.0 }
 0x29c   : > { %12040 = vst [vmem:[#allocation30_spill] sm:$0xff] %v8921_v6  ;;  %v6579_v56 = vsel %vm2197_vm2, 1.0, %v11832_v28  ;;  %v6580_v12 = vsel %vm2198_vm6, 1.0, %v11832_v28  ;;  %v3983_v33 = vunpack.c.l.b16 %v2344_v5  ;;  %v3984_v53 = vunpack.c.h.b16 %v2344_v5  ;;  %v1966_v13 = vpop.f32.mrf.mxu2 }
 0x29d   : > { %12043 = vst [vmem:[#allocation31_spill] sm:$0xff] %v8925_v10  ;;  %v1777_v61 = vadd.f32 %v1776_v31, %v8589_v38  ;;  %v2363_v11 = vpack.c.bf16 %v6580_v12, %v6579_v56  ;;  %v6643_v42 = vsel %vm2421_vm11, 1.0, %v11832_v28  ;;  %v6644_v23 = vsel %vm2422_vm10, 1.0, %v11832_v28  ;;  %v2015_v31 = vpop.f32.mrf.mxu3 }
 0x29e   : > { %v8936_v25 = vpack.c.b16 %v3983_v33, %v3981_v57  ;;  %v8938_v60 = vpack.c.b16 %v3984_v53, %v3982_v54  ;;  %v4179_v36 = vunpack.c.l.b16 %v2586_v50  ;;  %vm12047_vm0 = vcmp.lt.f32.partialorder %v12046_v39, 0.36 }
 0x29f   : > { %v8943_v19 = vsel %vm12047_vm0, %v1728_v49, -1.0  ;;  %vm12049_vm1 = vcmp.lt.f32.partialorder %v12048_v51, 0.36  ;;  %v4021_v56 = vunpack.c.l.b16 %v2363_v11  ;;  %v4022_v12 = vunpack.c.h.b16 %v2363_v11  ;;  %v12051_v49 = vld [vmem:[#allocation28_spill] sm:$0xff]  ;;  %v12054_v11 = vld [vmem:[#allocation29_spill] sm:$0xff] }
 0x2a0   : > { %12044 = vst [vmem:[#allocation92_spill] sm:$0xff] %v8936_v25  ;;  %v8947_v5 = vsel %vm12049_vm1, %v1777_v61, -1.0  ;;  %v1967_v57 = vadd.f32 %v1966_v13, %v8545_v16  ;;  %v2016_v54 = vadd.f32 %v2015_v31, %v8547_v15  ;;  %vm2161_vm3 = vcmp.eq.f32.partialorder %v8943_v19, 0.0  ;;  %v12097_v25 = vld [vmem:[#allocation47_spill] sm:$0xff] }
 0x2a1   : > { %12045 = vst [vmem:[#allocation93_spill] sm:$0xff] %v8938_v60  ;;  %vm2162_vm12 = vcmp.eq.f32.partialorder %v8947_v5, 0.0  ;;  %v6543_v39 = vsel %vm2161_vm3, 1.0, %v11832_v28  ;;  %v8955_v53 = vpack.c.bf16 %v6644_v23, %v6643_v42  ;;  %v8957_v51 = vpack.c.b16 %v4179_v36, %v4177_v63  ;;  %v1729_v63 = vpop.f32.mrf.mxu0  ;;  %v1778_v36 = vpop.f32.mrf.mxu1 }
 0x2a2   : > { %v6544_v33 = vsel %vm2162_vm12, 1.0, %v11832_v28  ;;  %vm12052_vm8 = vcmp.lt.f32.partialorder %v12051_v49, 0.36  ;;  %vm12055_vm9 = vcmp.lt.f32.partialorder %v12054_v11, 0.36  ;;  %v4180_v8 = vunpack.c.h.b16 %v2586_v50 }
 0x2a3   : > { %12050 = vst [vmem:[#allocation61_spill] sm:$0xff] %v8957_v51  ;;  %v8961_v61 = vsel %vm12052_vm8, %v1967_v57, -1.0  ;;  %v8965_v13 = vsel %vm12055_vm9, %v2016_v54, -1.0  ;;  %v2345_v31 = vpack.c.bf16 %v6544_v33, %v6543_v39  ;;  %v1730_v54 = vadd.f32 %v1729_v63, %v8586_v37  ;;  %v12061_v63 = vld [vmem:[#allocation58_spill] sm:$0xff] }
 0x2a4   : > { %12053 = vst [vmem:[#allocation62_spill] sm:$0xff] %v8961_v61  ;;  %vm2199_vm7 = vcmp.eq.f32.partialorder %v8961_v61, 0.0  ;;  %vm2200_vm13 = vcmp.eq.f32.partialorder %v8965_v13, 0.0  ;;  %vm2423_vm14 = vcmp.eq.f32.partialorder %v8961_v61, 1.0  ;;  %vm2424_vm15 = vcmp.eq.f32.partialorder %v8965_v13, 1.0  ;;  %v12100_v61 = vld [vmem:[#allocation48_spill] sm:$0xff] }
 0x2a5   : > { %12056 = vst [vmem:[#allocation28_spill] sm:$0xff] %v8965_v13  ;;  %v6581_v23 = vsel %vm2199_vm7, 1.0, %v11832_v28  ;;  %v6582_v42 = vsel %vm2200_vm13, 1.0, %v11832_v28  ;;  %v3985_v57 = vunpack.c.l.b16 %v2345_v31  ;;  %v3986_v49 = vunpack.c.h.b16 %v2345_v31 }
 0x2a6   : > { %v1779_v50 = vadd.f32 %v1778_v36, %v8589_v38  ;;  %v2364_v39 = vpack.c.bf16 %v6582_v42, %v6581_v23  ;;  %v6645_v33 = vsel %vm2423_vm14, 1.0, %v11832_v28  ;;  %v6646_v11 = vsel %vm2424_vm15, 1.0, %v11832_v28  ;;  %v1969_v23 = vpop.f32.mrf.mxu2  ;;  %v2018_v42 = vpop.f32.mrf.mxu3 }
 0x2a7   : > { %v4181_v41 = vunpack.c.l.b16 %v8955_v53  ;;  %v12057_v14 = vunpack.c.h.b16 %v8873_v18  ;;  %vm12060_vm4 = vcmp.lt.f32.partialorder %v12059_v58, 0.36  ;;  %vm12062_vm5 = vcmp.lt.f32.partialorder %v12061_v63, 0.36 }
 0x2a8   : > { %v8985_v31 = vsel %vm12060_vm4, %v1730_v54, -1.0  ;;  %v8989_v36 = vsel %vm12062_vm5, %v1779_v50, -1.0  ;;  %v4023_v29 = vunpack.c.l.b16 %v2364_v39  ;;  %v4024_v32 = vunpack.c.h.b16 %v2364_v39  ;;  %v12065_v54 = vld [vmem:[#allocation41_spill] sm:$0xff]  ;;  %v12067_v39 = vld [vmem:[#allocation42_spill] sm:$0xff] }
 0x2a9   : > { %v8981_v40 = vpack.c.b16 %v4180_v8, %v12057_v14  ;;  %v1970_v3 = vadd.f32 %v1969_v23, %v8545_v16  ;;  %v2019_v2 = vadd.f32 %v2018_v42, %v8547_v15  ;;  %vm2163_vm2 = vcmp.eq.f32.partialorder %v8985_v31, 0.0 }
 0x2aa   : > { %vm2164_vm6 = vcmp.eq.f32.partialorder %v8989_v36, 0.0  ;;  %v8995_v8 = vpack.c.b16 %v4023_v29, %v4021_v56  ;;  %v8997_v58 = vpack.c.b16 %v4024_v32, %v4022_v12  ;;  %v6545_v14 = vsel %vm2163_vm2, 1.0, %v11832_v28  ;;  %v1732_v29 = vpop.f32.mrf.mxu0  ;;  %v1781_v32 = vpop.f32.mrf.mxu1 }
 0x2ab   : > { %12058 = vst [vmem:[#allocation29_spill] sm:$0xff] %v8981_v40  ;;  %v6546_v18 = vsel %vm2164_vm6, 1.0, %v11832_v28  ;;  %vm12066_vm11 = vcmp.lt.f32.partialorder %v12065_v54, 0.36  ;;  %vm12068_vm10 = vcmp.lt.f32.partialorder %v12067_v39, 0.36  ;;  %v2588_v42 = vpack.c.bf16 %v6646_v11, %v6645_v33 }
 0x2ac   : > { %12063 = vst [vmem:[#allocation57_spill] sm:$0xff] %v8995_v8  ;;  %v9003_v50 = vsel %vm12066_vm11, %v1970_v3, -1.0  ;;  %v9007_v63 = vsel %vm12068_vm10, %v2019_v2, -1.0  ;;  %v2346_v23 = vpack.c.bf16 %v6546_v18, %v6545_v14  ;;  %v1733_v2 = vadd.f32 %v1732_v29, %v8586_v37  ;;  %v12074_v40 = vld [vmem:[#allocation44_spill] sm:$0xff] }
 0x2ad   : > { %12064 = vst [vmem:[#allocation58_spill] sm:$0xff] %v8997_v58  ;;  %vm2201_vm0 = vcmp.eq.f32.partialorder %v9003_v50, 0.0  ;;  %vm2202_vm1 = vcmp.eq.f32.partialorder %v9007_v63, 0.0  ;;  %vm2425_vm3 = vcmp.eq.f32.partialorder %v9003_v50, 1.0  ;;  %vm2426_vm12 = vcmp.eq.f32.partialorder %v9007_v63, 1.0 }
 0x2ae   : > { %12069 = vst [vmem:[#allocation41_spill] sm:$0xff] %v9007_v63  ;;  %v6583_v56 = vsel %vm2201_vm0, 1.0, %v11832_v28  ;;  %v6584_v3 = vsel %vm2202_vm1, 1.0, %v11832_v28  ;;  %v3987_v12 = vunpack.c.l.b16 %v2346_v23  ;;  %v3988_v54 = vunpack.c.h.b16 %v2346_v23  ;;  %v1971_v29 = vpop.f32.mrf.mxu2 }
 0x2af   : > { %v1782_v33 = vadd.f32 %v1781_v32, %v8589_v38  ;;  %v2365_v11 = vpack.c.bf16 %v6584_v3, %v6583_v56  ;;  %v6647_v14 = vsel %vm2425_vm3, 1.0, %v11832_v28  ;;  %v6648_v30 = vsel %vm2426_vm12, 1.0, %v11832_v28  ;;  %v2020_v32 = vpop.f32.mrf.mxu3 }
 0x2b0   : > { %v9018_v18 = vpack.c.b16 %v3987_v12, %v3985_v57  ;;  %v9020_v39 = vpack.c.b16 %v3988_v54, %v3986_v49  ;;  %v4183_v46 = vunpack.c.l.b16 %v2588_v42  ;;  %vm12073_vm8 = vcmp.lt.f32.partialorder %v12072_v45, 0.36 }
 0x2b1   : > { %v9025_v52 = vsel %vm12073_vm8, %v1733_v2, -1.0  ;;  %vm12075_vm9 = vcmp.lt.f32.partialorder %v12074_v40, 0.36  ;;  %v4025_v56 = vunpack.c.l.b16 %v2365_v11  ;;  %v4026_v3 = vunpack.c.h.b16 %v2365_v11  ;;  %v12077_v2 = vld [vmem:[#allocation24_spill] sm:$0xff]  ;;  %v12080_v11 = vld [vmem:[#allocation25_spill] sm:$0xff] }
 0x2b2   : > { %12070 = vst [vmem:[#allocation42_spill] sm:$0xff] %v9018_v18  ;;  %v9029_v23 = vsel %vm12075_vm9, %v1782_v33, -1.0  ;;  %v1972_v57 = vadd.f32 %v1971_v29, %v8545_v16  ;;  %v2021_v49 = vadd.f32 %v2020_v32, %v8547_v15  ;;  %vm2165_vm7 = vcmp.eq.f32.partialorder %v9025_v52, 0.0 }
 0x2b3   : > { %12071 = vst [vmem:[#allocation94_spill] sm:$0xff] %v9020_v39  ;;  %vm2166_vm13 = vcmp.eq.f32.partialorder %v9029_v23, 0.0  ;;  %v6547_v45 = vsel %vm2165_vm7, 1.0, %v11832_v28  ;;  %v9037_v54 = vpack.c.bf16 %v6648_v30, %v6647_v14  ;;  %v9039_v40 = vpack.c.b16 %v4183_v46, %v4181_v41  ;;  %v1734_v41 = vpop.f32.mrf.mxu0  ;;  %v1783_v30 = vpop.f32.mrf.mxu1  ;;  %v12110_v39 = vld [vmem:[#allocation26_spill] sm:$0xff] }
 0x2b4   : > { %v6548_v12 = vsel %vm2166_vm13, 1.0, %v11832_v28  ;;  %vm12078_vm14 = vcmp.lt.f32.partialorder %v12077_v2, 0.36  ;;  %vm12081_vm15 = vcmp.lt.f32.partialorder %v12080_v11, 0.36  ;;  %v4184_v51 = vunpack.c.h.b16 %v2588_v42 }
 0x2b5   : > { %12076 = vst [vmem:[#allocation43_spill] sm:$0xff] %v9039_v40  ;;  %v9043_v33 = vsel %vm12078_vm14, %v1972_v57, -1.0  ;;  %v9047_v29 = vsel %vm12081_vm15, %v2021_v49, -1.0  ;;  %v2347_v32 = vpack.c.bf16 %v6548_v12, %v6547_v45  ;;  %v1735_v49 = vadd.f32 %v1734_v41, %v8586_v37  ;;  %v12087_v41 = vld [vmem:[#allocation40_spill] sm:$0xff] }
 0x2b6   : > { %12079 = vst [vmem:[#allocation44_spill] sm:$0xff] %v9043_v33  ;;  %vm2203_vm4 = vcmp.eq.f32.partialorder %v9043_v33, 0.0  ;;  %vm2204_vm5 = vcmp.eq.f32.partialorder %v9047_v29, 0.0  ;;  %vm2427_vm2 = vcmp.eq.f32.partialorder %v9043_v33, 1.0  ;;  %vm2428_vm6 = vcmp.eq.f32.partialorder %v9047_v29, 1.0 }
 0x2b7   : > { %12082 = vst [vmem:[#allocation24_spill] sm:$0xff] %v9047_v29  ;;  %v6585_v46 = vsel %vm2203_vm4, 1.0, %v11832_v28  ;;  %v6586_v14 = vsel %vm2204_vm5, 1.0, %v11832_v28  ;;  %v3989_v57 = vunpack.c.l.b16 %v2347_v32  ;;  %v3990_v2 = vunpack.c.h.b16 %v2347_v32 }
 0x2b8   : > { %v1784_v42 = vadd.f32 %v1783_v30, %v8589_v38  ;;  %v2366_v45 = vpack.c.bf16 %v6586_v14, %v6585_v46  ;;  %v6649_v12 = vsel %vm2427_vm2, 1.0, %v11832_v28  ;;  %v6650_v11 = vsel %vm2428_vm6, 1.0, %v11832_v28  ;;  %v1974_v46 = vpop.f32.mrf.mxu2  ;;  %v2023_v14 = vpop.f32.mrf.mxu3 }
 0x2b9   : > { %v4185_v55 = vunpack.c.l.b16 %v9037_v54  ;;  %v12083_v43 = vunpack.c.h.b16 %v8955_v53  ;;  %vm12086_vm11 = vcmp.lt.f32.partialorder %v12085_v17, 0.36  ;;  %vm12088_vm10 = vcmp.lt.f32.partialorder %v12087_v41, 0.36 }
 0x2ba   : > { %v9067_v32 = vsel %vm12086_vm11, %v1735_v49, -1.0  ;;  %v9071_v30 = vsel %vm12088_vm10, %v1784_v42, -1.0  ;;  %v4027_v27 = vunpack.c.l.b16 %v2366_v45  ;;  %v4028_v40 = vunpack.c.h.b16 %v2366_v45  ;;  %v12091_v49 = vld [vmem:[#allocation5_spill] sm:$0xff]  ;;  %v12093_v45 = vld [vmem:[#allocation6_spill] sm:$0xff] }
 0x2bb   : > { %v9063_v4 = vpack.c.b16 %v4184_v51, %v12083_v43  ;;  %v1975_v47 = vadd.f32 %v1974_v46, %v8545_v16  ;;  %v2024_v59 = vadd.f32 %v2023_v14, %v8547_v15  ;;  %vm2167_vm0 = vcmp.eq.f32.partialorder %v9067_v32, 0.0 }
 0x2bc   : > { %vm2168_vm1 = vcmp.eq.f32.partialorder %v9071_v30, 0.0  ;;  %v9077_v43 = vpack.c.b16 %v4027_v27, %v4025_v56  ;;  %v9079_v17 = vpack.c.b16 %v4028_v40, %v4026_v3  ;;  %v6549_v53 = vsel %vm2167_vm0, 1.0, %v11832_v28  ;;  %v1737_v27 = vpop.f32.mrf.mxu0  ;;  %v1786_v56 = vpop.f32.mrf.mxu1 }
 0x2bd   : > { %12084 = vst [vmem:[#allocation25_spill] sm:$0xff] %v9063_v4  ;;  %v6550_v51 = vsel %vm2168_vm1, 1.0, %v11832_v28  ;;  %vm12092_vm3 = vcmp.lt.f32.partialorder %v12091_v49, 0.36  ;;  %vm12094_vm12 = vcmp.lt.f32.partialorder %v12093_v45, 0.36  ;;  %v2590_v14 = vpack.c.bf16 %v6650_v11, %v6649_v12 }
 0x2be   : > { %12089 = vst [vmem:[#allocation39_spill] sm:$0xff] %v9077_v43  ;;  %v9085_v42 = vsel %vm12092_vm3, %v1975_v47, -1.0  ;;  %v9089_v41 = vsel %vm12094_vm12, %v2024_v59, -1.0  ;;  %v2348_v46 = vpack.c.bf16 %v6550_v51, %v6549_v53  ;;  %v1738_v59 = vadd.f32 %v1737_v27, %v8586_v37 }
 0x2bf   : > { %12090 = vst [vmem:[#allocation40_spill] sm:$0xff] %v9079_v17  ;;  %vm2205_vm8 = vcmp.eq.f32.partialorder %v9085_v42, 0.0  ;;  %vm2206_vm9 = vcmp.eq.f32.partialorder %v9089_v41, 0.0  ;;  %vm2429_vm7 = vcmp.eq.f32.partialorder %v9085_v42, 1.0  ;;  %vm2430_vm13 = vcmp.eq.f32.partialorder %v9089_v41, 1.0 }
 0x2c0   : > { %v6587_v3 = vsel %vm2205_vm8, 1.0, %v11832_v28  ;;  %v6588_v47 = vsel %vm2206_vm9, 1.0, %v11832_v28  ;;  %v3991_v40 = vunpack.c.l.b16 %v2348_v46  ;;  %v3992_v49 = vunpack.c.h.b16 %v2348_v46  ;;  %v1976_v27 = vpop.f32.mrf.mxu2 }
 0x2c1   : > { %v1787_v12 = vadd.f32 %v1786_v56, %v8589_v38  ;;  %v2367_v11 = vpack.c.bf16 %v6588_v47, %v6587_v3  ;;  %v6651_v53 = vsel %vm2429_vm7, 1.0, %v11832_v28  ;;  %v6652_v4 = vsel %vm2430_vm13, 1.0, %v11832_v28  ;;  %v2025_v56 = vpop.f32.mrf.mxu3 }
 0x2c2   : > { %v9100_v51 = vpack.c.b16 %v3991_v40, %v3989_v57  ;;  %v9102_v45 = vpack.c.b16 %v3992_v49, %v3990_v2  ;;  %v4187_v60 = vunpack.c.l.b16 %v2590_v14  ;;  %vm12098_vm14 = vcmp.lt.f32.partialorder %v12097_v25, 0.36 }
 0x2c3   : > { %v9107_v13 = vsel %vm12098_vm14, %v1738_v59, -1.0  ;;  %vm12101_vm15 = vcmp.lt.f32.partialorder %v12100_v61, 0.36  ;;  %v4029_v3 = vunpack.c.l.b16 %v2367_v11  ;;  %v4030_v47 = vunpack.c.h.b16 %v2367_v11  ;;  %v12104_v59 = vld [vmem:[#allocation9_spill] sm:$0xff]  ;;  %v12106_v11 = vld [vmem:[#allocation10_spill] sm:$0xff] }
 0x2c4   : > { %12095 = vst [vmem:[#allocation5_spill] sm:$0xff] %v9100_v51  ;;  %v9111_v46 = vsel %vm12101_vm15, %v1787_v12, -1.0  ;;  %v1977_v57 = vadd.f32 %v1976_v27, %v8545_v16  ;;  %v2026_v2 = vadd.f32 %v2025_v56, %v8547_v15  ;;  %vm2169_vm4 = vcmp.eq.f32.partialorder %v9107_v13, 0.0 }
 0x2c5   : > { %12096 = vst [vmem:[#allocation6_spill] sm:$0xff] %v9102_v45  ;;  %vm2170_vm5 = vcmp.eq.f32.partialorder %v9111_v46, 0.0  ;;  %v6551_v25 = vsel %vm2169_vm4, 1.0, %v11832_v28  ;;  %v2591_v49 = vpack.c.bf16 %v6652_v4, %v6651_v53  ;;  %v9119_v61 = vpack.c.b16 %v4187_v60, %v4185_v55  ;;  %v1739_v4 = vpop.f32.mrf.mxu0  ;;  %v1788_v55 = vpop.f32.mrf.mxu1 }
 0x2c6   : > { %12099 = vst [vmem:[#allocation47_spill] sm:$0xff] %v9107_v13  ;;  %v6552_v40 = vsel %vm2170_vm5, 1.0, %v11832_v28  ;;  %vm12105_vm2 = vcmp.lt.f32.partialorder %v12104_v59, 0.36  ;;  %vm12107_vm6 = vcmp.lt.f32.partialorder %v12106_v11, 0.36  ;;  %v4188_v27 = vunpack.c.h.b16 %v2590_v14 }
 0x2c7   : > { %12102 = vst [vmem:[#allocation48_spill] sm:$0xff] %v9111_v46  ;;  %v9123_v12 = vsel %vm12105_vm2, %v1977_v57, -1.0  ;;  %v9127_v16 = vsel %vm12107_vm6, %v2026_v2, -1.0  ;;  %v2349_v15 = vpack.c.bf16 %v6552_v40, %v6551_v25  ;;  %v1740_v2 = vadd.f32 %v1739_v4, %v8586_v37 }
 0x2c8   : > { %12103 = vst [vmem:[#allocation95_spill] sm:$0xff] %v9119_v61  ;;  %vm2207_vm11 = vcmp.eq.f32.partialorder %v9123_v12, 0.0  ;;  %vm2208_vm10 = vcmp.eq.f32.partialorder %v9127_v16, 0.0  ;;  %vm2431_vm0 = vcmp.eq.f32.partialorder %v9123_v12, 1.0  ;;  %vm2432_vm1 = vcmp.eq.f32.partialorder %v9127_v16, 1.0 }
 0x2c9   : > { %v6589_v60 = vsel %vm2207_vm11, 1.0, %v11832_v28  ;;  %v6590_v53 = vsel %vm2208_vm10, 1.0, %v11832_v28  ;;  %v3993_v56 = vunpack.c.l.b16 %v2349_v15  ;;  %v3994_v57 = vunpack.c.h.b16 %v2349_v15  ;;  %v12113_v15 = vld [vmem:[#allocation27_spill] sm:$0xff] }
 0x2ca   : > { %v1789_v14 = vadd.f32 %v1788_v55, %v8589_v38  ;;  %v2368_v25 = vpack.c.bf16 %v6590_v53, %v6589_v60  ;;  %v6653_v40 = vsel %vm2431_vm0, 1.0, %v11832_v28  ;;  %v6654_v59 = vsel %vm2432_vm1, 1.0, %v11832_v28 }
 0x2cb   : > { %v4189_v11 = vunpack.c.l.b16 %v2591_v49  ;;  %v4190_v10 = vunpack.c.h.b16 %v2591_v49  ;;  %v12108_v61 = vunpack.c.h.b16 %v9037_v54  ;;  %vm12111_vm3 = vcmp.lt.f32.partialorder %v12110_v39, 0.36 }
 0x2cc   : > { %v9145_v18 = vsel %vm12111_vm3, %v1740_v2, -1.0  ;;  %vm12114_vm12 = vcmp.lt.f32.partialorder %v12113_v15, 0.36  ;;  %v4031_v55 = vunpack.c.l.b16 %v2368_v25  ;;  %v4032_v60 = vunpack.c.h.b16 %v2368_v25 }
 0x2cd   : > { %v9141_v6 = vpack.c.b16 %v4188_v27, %v12108_v61  ;;  %12112 = vst [vmem:[#allocation10_spill] sm:$0xff] %v9145_v18  ;;  %v9149_v4 = vsel %vm12114_vm12, %v1789_v14, -1.0  ;;  %vm2171_vm8 = vcmp.eq.f32.partialorder %v9145_v18, 0.0  ;;  %v2592_v53 = vpack.c.bf16 %v6654_v59, %v6653_v40  ;;  %v1742_v25 = vpop.f32.mrf.mxu0  ;;  %v1791_v40 = vpop.f32.mrf.mxu1 }
 0x2ce   : > { %12115 = vst [vmem:[#allocation26_spill] sm:$0xff] %v9149_v4  ;;  %vm2172_vm9 = vcmp.eq.f32.partialorder %v9149_v4, 0.0  ;;  %vm2393_vm7 = vcmp.eq.f32.partialorder %v9107_v13, 1.0  ;;  %v9154_v54 = vpack.c.b16 %v4031_v55, %v4029_v3  ;;  %v9156_v49 = vpack.c.b16 %v4032_v60, %v4030_v47  ;;  %v12122_v13 = vld [vmem:[#allocation13_spill] sm:$0xff] }
 0x2cf   : > { %12109 = vst [vmem:[#allocation9_spill] sm:$0xff] %v9141_v6  ;;  %v6553_v39 = vsel %vm2171_vm8, 1.0, %v11832_v28  ;;  %v6554_v61 = vsel %vm2172_vm9, 1.0, %v11832_v28  ;;  %v4191_v2 = vunpack.c.l.b16 %v2592_v53  ;;  %v4192_v14 = vunpack.c.h.b16 %v2592_v53 }
 0x2d0   : > { %12116 = vst [vmem:[#allocation27_spill] sm:$0xff] %v9154_v54  ;;  %v2350_v27 = vpack.c.bf16 %v6554_v61, %v6553_v39  ;;  %vm2394_vm13 = vcmp.eq.f32.partialorder %v9111_v46, 1.0  ;;  %5239 = vmatpush.bf16.msrb.mxu1 %v9154_v54  ;;  %5265 = vmatpush.bf16.msrb.mxu3 %v9156_v49  ;;  %vm2395_vm14 = vcmp.eq.f32.partialorder %v9145_v18, 1.0  ;;  %vm2396_vm15 = vcmp.eq.f32.partialorder %v9149_v4, 1.0 }
 0x2d1   : > { %12117 = vst [vmem:[#allocation96_spill] sm:$0xff] %v9156_v49  ;;  %v6615_v3 = vsel %vm2393_vm7, 1.0, %v11832_v28  ;;  %v6616_v47 = vsel %vm2394_vm13, 1.0, %v11832_v28  ;;  %v9167_v55 = vpack.c.b16 %v4191_v2, %v4189_v11  ;;  %v9169_v60 = vpack.c.b16 %v4192_v14, %v4190_v10  ;;  %v12124_v10 = vld [vmem:[#allocation14_spill] sm:$0xff] }
 0x2d2   : > { %v3995_v59 = vunpack.c.l.b16 %v2350_v27  ;;  %v3996_v15 = vunpack.c.h.b16 %v2350_v27  ;;  %v1743_v53 = vadd.f32 %v1742_v25, %v8586_v37  ;;  %v1792_v39 = vadd.f32 %v1791_v40, %v8589_v38 }
 0x2d3   : > { %12118 = vst [vmem:[#allocation97_spill] sm:$0xff] %v9167_v55  ;;  %v6617_v61 = vsel %vm2395_vm14, 1.0, %v11832_v28  ;;  %v6618_v49 = vsel %vm2396_vm15, 1.0, %v11832_v28  ;;  %v2573_v18 = vpack.c.bf16 %v6616_v47, %v6615_v3  ;;  %vm12123_vm4 = vcmp.lt.f32.partialorder %v12122_v13, 0.36 }
 0x2d4   : > { %12119 = vst [vmem:[#allocation98_spill] sm:$0xff] %v9169_v60  ;;  %v9175_v54 = vpack.c.b16 %v3995_v59, %v3993_v56  ;;  %v9177_v4 = vpack.c.b16 %v3996_v15, %v3994_v57  ;;  %v2574_v46 = vpack.c.bf16 %v6618_v49, %v6617_v61  ;;  %v9181_v11 = vsel %vm12123_vm4, %v1743_v53, -1.0  ;;  %5240 = vmatpush.bf16.msrb.mxu1 %v9077_v43  ;;  %v12163_v43 = vld [vmem:[#allocation68_spill] sm:$0xff] }
 0x2d5   : > { %vm12125_vm5 = vcmp.lt.f32.partialorder %v12124_v10, 0.36  ;;  %5266 = vmatpush.bf16.msrb.mxu3 %v9079_v17  ;;  %vm2389_vm2 = vcmp.eq.f32.partialorder %v9025_v52, 1.0  ;;  %vm2390_vm6 = vcmp.eq.f32.partialorder %v9029_v23, 1.0  ;;  %vm2173_vm11 = vcmp.eq.f32.partialorder %v9181_v11, 0.0  ;;  %v1744_v59 = vpop.f32.mrf.mxu0  ;;  %v1793_v15 = vpop.f32.mrf.mxu1 }
 0x2d6   : > { %12120 = vst [vmem:[#allocation99_spill] sm:$0xff] %v9175_v54  ;;  %v9185_v27 = vsel %vm12125_vm5, %v1792_v39, -1.0  ;;  %vm2397_vm0 = vcmp.eq.f32.partialorder %v9181_v11, 1.0  ;;  %v6555_v13 = vsel %vm2173_vm11, 1.0, %v11832_v28  ;;  %v4153_v3 = vunpack.c.l.b16 %v2573_v18 }
 0x2d7   : > { %12121 = vst [vmem:[#allocation100_spill] sm:$0xff] %v9177_v4  ;;  %vm2174_vm10 = vcmp.eq.f32.partialorder %v9185_v27, 0.0  ;;  %vm2398_vm1 = vcmp.eq.f32.partialorder %v9185_v27, 1.0  ;;  %v6619_v57 = vsel %vm2397_vm0, 1.0, %v11832_v28  ;;  %v4155_v47 = vunpack.c.l.b16 %v2574_v46 }
 0x2d8   : > { %v6556_v56 = vsel %vm2174_vm10, 1.0, %v11832_v28  ;;  %v6620_v49 = vsel %vm2398_vm1, 1.0, %v11832_v28  ;;  %5241 = vmatpush.bf16.msrb.mxu1 %v8995_v8  ;;  %v4154_v25 = vunpack.c.h.b16 %v2573_v18  ;;  %v4156_v40 = vunpack.c.h.b16 %v2574_v46 }
 0x2d9   : > { %v2351_v2 = vpack.c.bf16 %v6556_v56, %v6555_v13  ;;  %v2575_v14 = vpack.c.bf16 %v6620_v49, %v6619_v57  ;;  %5267 = vmatpush.bf16.msrb.mxu3 %v8997_v58  ;;  %vm2391_vm3 = vcmp.eq.f32.partialorder %v9067_v32, 1.0  ;;  %vm2392_vm12 = vcmp.eq.f32.partialorder %v9071_v30, 1.0  ;;  %v12128_v58 = vld [vmem:[#allocation17_spill] sm:$0xff] }
 0x2da   : > { %v1745_v13 = vadd.f32 %v1744_v59, %v8586_v37  ;;  %v1794_v56 = vadd.f32 %v1793_v15, %v8589_v38  ;;  %v9205_v57 = vpack.c.b16 %v4155_v47, %v4153_v3  ;;  %v9207_v49 = vpack.c.b16 %v4156_v40, %v4154_v25  ;;  %v12131_v38 = vld [vmem:[#allocation18_spill] sm:$0xff] }
 0x2db   : > { %v3997_v53 = vunpack.c.l.b16 %v2351_v2  ;;  %v3998_v39 = vunpack.c.h.b16 %v2351_v2  ;;  %v4157_v61 = vunpack.c.l.b16 %v2575_v14  ;;  %v4158_v10 = vunpack.c.h.b16 %v2575_v14 }
 0x2dc   : > { %12126 = vst [vmem:[#allocation13_spill] sm:$0xff] %v9205_v57  ;;  %v6611_v18 = vsel %vm2389_vm2, 1.0, %v11832_v28  ;;  %v6612_v46 = vsel %vm2390_vm6, 1.0, %v11832_v28  ;;  %v6613_v2 = vsel %vm2391_vm3, 1.0, %v11832_v28  ;;  %v6614_v14 = vsel %vm2392_vm12, 1.0, %v11832_v28  ;;  %5242 = vmatpush.bf16.msrb.mxu1 %v8913_v34 }
 0x2dd   : > { %12127 = vst [vmem:[#allocation14_spill] sm:$0xff] %v9207_v49  ;;  %vm12129_vm8 = vcmp.lt.f32.partialorder %v12128_v58, 0.36  ;;  %vm12132_vm9 = vcmp.lt.f32.partialorder %v12131_v38, 0.36  ;;  %5268 = vmatpush.bf16.msrb.mxu3 %v8915_v1  ;;  %v2571_v47 = vpack.c.bf16 %v6612_v46, %v6611_v18  ;;  %v2572_v25 = vpack.c.bf16 %v6614_v14, %v6613_v2 }
 0x2de   : > { %v9219_v37 = vsel %vm12129_vm8, %v1745_v13, -1.0  ;;  %v9223_v3 = vsel %vm12132_vm9, %v1794_v56, -1.0  ;;  %vm2653_vm4 = vcmp.eq.f32.partialorder %v9085_v42, 2.0  ;;  %vm2654_vm5 = vcmp.eq.f32.partialorder %v9089_v41, 2.0 }
 0x2df   : > { %12130 = vst [vmem:[#allocation17_spill] sm:$0xff] %v9219_v37  ;;  %vm2175_vm7 = vcmp.eq.f32.partialorder %v9219_v37, 0.0  ;;  %vm2176_vm13 = vcmp.eq.f32.partialorder %v9223_v3, 0.0  ;;  %vm2399_vm14 = vcmp.eq.f32.partialorder %v9219_v37, 1.0  ;;  %vm2400_vm15 = vcmp.eq.f32.partialorder %v9223_v3, 1.0 }
 0x2e0   : > { %12133 = vst [vmem:[#allocation18_spill] sm:$0xff] %v9223_v3  ;;  %v6557_v58 = vsel %vm2175_vm7, 1.0, %v11832_v28  ;;  %v6558_v40 = vsel %vm2176_vm13, 1.0, %v11832_v28  ;;  %v6621_v59 = vsel %vm2399_vm14, 1.0, %v11832_v28  ;;  %v6622_v15 = vsel %vm2400_vm15, 1.0, %v11832_v28  ;;  %5243 = vmatpush.bf16.msrb.mxu1 %v8831_v24  ;;  %v12162_v24 = vld [vmem:[#allocation67_spill] sm:$0xff] }
 0x2e1   : > { %v2352_v13 = vpack.c.bf16 %v6558_v40, %v6557_v58  ;;  %v2576_v56 = vpack.c.bf16 %v6622_v15, %v6621_v59  ;;  %v4149_v18 = vunpack.c.l.b16 %v2571_v47  ;;  %v4151_v46 = vunpack.c.l.b16 %v2572_v25  ;;  %5269 = vmatpush.bf16.msrb.mxu3 %v8833_v44  ;;  %v12161_v44 = vld [vmem:[#allocation86_spill] sm:$0xff] }
 0x2e2   : > { %v4150_v2 = vunpack.c.h.b16 %v2571_v47  ;;  %v4152_v14 = vunpack.c.h.b16 %v2572_v25  ;;  %vm2655_vm2 = vcmp.eq.f32.partialorder %v9123_v12, 2.0  ;;  %vm2656_vm6 = vcmp.eq.f32.partialorder %v9127_v16, 2.0 }
 0x2e3   : > { %v3999_v38 = vunpack.c.l.b16 %v2352_v13  ;;  %v4000_v1 = vunpack.c.h.b16 %v2352_v13  ;;  %v4159_v34 = vunpack.c.l.b16 %v2576_v56  ;;  %v4160_v8 = vunpack.c.h.b16 %v2576_v56 }
 0x2e4   : > { %v9239_v17 = vpack.c.b16 %v4151_v46, %v4149_v18  ;;  %v9241_v58 = vpack.c.b16 %v4152_v14, %v4150_v2  ;;  %5244 = vmatpush.bf16.msrb.mxu1 %v8749_v26  ;;  %v6715_v15 = vsel %vm2653_vm4, 1.0, %v11832_v28  ;;  %vm2385_vm11 = vcmp.eq.f32.partialorder %v8943_v19, 1.0 }
 0x2e5   : > { %v9245_v40 = vpack.c.b16 %v3999_v38, %v3997_v53  ;;  %v9247_v47 = vpack.c.b16 %v4000_v1, %v3998_v39  ;;  %v9249_v25 = vpack.c.b16 %v4159_v34, %v4157_v61  ;;  %v9251_v59 = vpack.c.b16 %v4160_v8, %v4158_v10  ;;  %5270 = vmatpush.bf16.msrb.mxu3 %v8751_v0 }
 0x2e6   : > { %12134 = vst [vmem:[#allocation101_spill] sm:$0xff] %v9239_v17  ;;  %v6716_v53 = vsel %vm2654_vm5, 1.0, %v11832_v28  ;;  %v6717_v1 = vsel %vm2655_vm2, 1.0, %v11832_v28  ;;  %v6718_v34 = vsel %vm2656_vm6, 1.0, %v11832_v28  ;;  %vm2386_vm10 = vcmp.eq.f32.partialorder %v8947_v5, 1.0 }
 0x2e7   : > { %12135 = vst [vmem:[#allocation102_spill] sm:$0xff] %v9241_v58  ;;  %5226 = vmatpush.bf16.msrb.mxu0 %v9245_v40  ;;  %5252 = vmatpush.bf16.msrb.mxu2 %v9247_v47  ;;  %v2815_v8 = vpack.c.bf16 %v6716_v53, %v6715_v15  ;;  %v2816_v39 = vpack.c.bf16 %v6718_v34, %v6717_v1  ;;  %vm2387_vm0 = vcmp.eq.f32.partialorder %v8985_v31, 1.0  ;;  %vm2388_vm1 = vcmp.eq.f32.partialorder %v8989_v36, 1.0  ;;  %v9290_v34 = vld [vmem:[%s9275_s27] sm:$0x7f] }
 0x2e8   : > { %12136 = vst [vmem:[#allocation103_spill] sm:$0xff] %v9245_v40  ;;  %v6607_v61 = vsel %vm2385_vm11, 1.0, %v11832_v28  ;;  %v6608_v10 = vsel %vm2386_vm10, 1.0, %v11832_v28  ;;  %5245 = vmatpush.bf16.msrb.mxu1 %v8667_v35  ;;  %v6609_v2 = vsel %vm2387_vm0, 1.0, %v11832_v28  ;;  %v6610_v14 = vsel %vm2388_vm1, 1.0, %v11832_v28  ;;  %v12151_v35 = vld [vmem:[#allocation31_spill] sm:$0xff] }
 0x2e9   : > { %12137 = vst [vmem:[#allocation104_spill] sm:$0xff] %v9247_v47  ;;  %v4349_v13 = vunpack.c.l.b16 %v2815_v8  ;;  %v4351_v56 = vunpack.c.l.b16 %v2816_v39  ;;  %v4350_v18 = vunpack.c.h.b16 %v2815_v8  ;;  %v4352_v46 = vunpack.c.h.b16 %v2816_v39  ;;  %5271 = vmatpush.bf16.msrb.mxu3 %v8669_v7  ;;  %v5218_v8 = vld [vmem:[%s9275_s27 + $0x8] sm:$0x7f]  ;;  %v12158_v40 = vld [vmem:[#allocation25_spill] sm:$0xff] }
 0x2ea   : > { %12138 = vst [vmem:[#allocation105_spill] sm:$0xff] %v9249_v25  ;;  %v2569_v38 = vpack.c.bf16 %v6608_v10, %v6607_v61  ;;  %vm2649_vm3 = vcmp.eq.f32.partialorder %v9003_v50, 2.0  ;;  %v2570_v1 = vpack.c.bf16 %v6610_v14, %v6609_v2  ;;  %vm2650_vm12 = vcmp.eq.f32.partialorder %v9007_v63, 2.0  ;;  %v12157_v47 = vld [vmem:[#allocation43_spill] sm:$0xff] }
 0x2eb   : > { %12139 = vst [vmem:[#allocation106_spill] sm:$0xff] %v9251_v59  ;;  %5227 = vmatpush.bf16.msrb.mxu0 %v9175_v54  ;;  %5253 = vmatpush.bf16.msrb.mxu2 %v9177_v4  ;;  %v9284_v15 = vpack.c.b16 %v4351_v56, %v4349_v13  ;;  %v9286_v53 = vpack.c.b16 %v4352_v46, %v4350_v18  ;;  %vm2651_vm8 = vcmp.eq.f32.partialorder %v9043_v33, 2.0  ;;  %vm2652_vm9 = vcmp.eq.f32.partialorder %v9047_v29, 2.0 }
 0x2ec   : > { %v4145_v39 = vunpack.c.l.b16 %v2569_v38  ;;  %v4146_v7 = vunpack.c.h.b16 %v2569_v38  ;;  %v9296_v61 = vpack.c.bf16 %v5218_v8, %v9290_v34  ;;  %v4147_v10 = vunpack.c.l.b16 %v2570_v1  ;;  %5246 = vmatpush.bf16.msrb.mxu1 %v8611_v9 }
 0x2ed   : > { %12140 = vst [vmem:[#allocation107_spill] sm:$0xff] %v9284_v15  ;;  %v4148_v13 = vunpack.c.h.b16 %v2570_v1  ;;  %v6711_v56 = vsel %vm2649_vm3, 1.0, %v11832_v28  ;;  %5272 = vmatpush.bf16.msrb.mxu3 %v8621_v20  ;;  %v6712_v18 = vsel %vm2650_vm12, 1.0, %v11832_v28  ;;  %v6713_v46 = vsel %vm2651_vm8, 1.0, %v11832_v28 }
 0x2ee   : > { %12141 = vst [vmem:[#allocation108_spill] sm:$0xff] %v9286_v53  ;;  %v6714_v2 = vsel %vm2652_vm9, 1.0, %v11832_v28  ;;  %vm2381_vm7 = vcmp.eq.f32.partialorder %v8861_v48, 1.0  ;;  %v5221_v14 = vunpack.c.h.bf16 %v9296_v61  ;;  %v9310_v38 = vpack.c.b16 %v4147_v10, %v4145_v39 }
 0x2ef   : > { %12142 = vst [vmem:[#allocation109_spill] sm:$0xff] %v9296_v61  ;;  %5228 = vmatpush.bf16.msrb.mxu0 %v9100_v51  ;;  %5254 = vmatpush.bf16.msrb.mxu2 %v9102_v45  ;;  %v9312_v1 = vpack.c.b16 %v4148_v13, %v4146_v7  ;;  %v2813_v9 = vpack.c.bf16 %v6712_v18, %v6711_v56  ;;  %vm2382_vm13 = vcmp.eq.f32.partialorder %v8865_v21, 1.0  ;;  %vm2383_vm14 = vcmp.eq.f32.partialorder %v8903_v22, 1.0  ;;  %v12145_v18 = vld [vmem:[#allocation42_spill] sm:$0xff] }
 0x2f0   : > { %12143 = vst [vmem:[#allocation110_spill] sm:$0xff] %v9310_v38  ;;  %5291 = vmatpush.bf16.msra.mxu1 %v9167_v55  ;;  %v2814_v20 = vpack.c.bf16 %v6714_v2, %v6713_v46  ;;  %vm2384_vm15 = vcmp.eq.f32.partialorder %v8907_v62, 1.0  ;;  %v5223_v51 = vsub.f32 %v5218_v8, %v5221_v14  ;;  %v6603_v7 = vsel %vm2381_vm7, 1.0, %v11832_v28  ;;  %v12146_v46 = vld [vmem:[#allocation94_spill] sm:$0xff] }
 0x2f1   : > { %12144 = vst [vmem:[#allocation111_spill] sm:$0xff] %v9312_v1  ;;  %5317 = vmatpush.bf16.msra.mxu3 %v9169_v60  ;;  %v4345_v45 = vunpack.c.l.b16 %v2813_v9  ;;  %v4346_v4 = vunpack.c.h.b16 %v2813_v9  ;;  %v6604_v13 = vsel %vm2382_vm13, 1.0, %v11832_v28  ;;  %v6605_v56 = vsel %vm2383_vm14, 1.0, %v11832_v28  ;;  %v12147_v9 = vld [vmem:[#allocation30_spill] sm:$0xff]  ;;  %v12148_v60 = vld [vmem:[#allocation95_spill] sm:$0xff] }
 0x2f2   : > { %v4347_v39 = vunpack.c.l.b16 %v2814_v20  ;;  %v4348_v10 = vunpack.c.h.b16 %v2814_v20  ;;  %v9326_v2 = vpack.c.bf16 %v5223_v51, %v5223_v51  ;;  %v6606_v8 = vsel %vm2384_vm15, 1.0, %v11832_v28 }
 0x2f3   : > { %5229 = vmatpush.bf16.msrb.mxu0 %v12145_v18  ;;  %5255 = vmatpush.bf16.msrb.mxu2 %v12146_v46  ;;  %v2567_v14 = vpack.c.bf16 %v6604_v13, %v6603_v7  ;;  %vm2645_vm4 = vcmp.eq.f32.partialorder %v12147_v9, 2.0  ;;  %v2568_v54 = vpack.c.bf16 %v6606_v8, %v6605_v56  ;;  %vm2646_vm5 = vcmp.eq.f32.partialorder %v12151_v35, 2.0  ;;  %v12152_v7 = vld [vmem:[#allocation62_spill] sm:$0xff]  ;;  %v12153_v13 = vld [vmem:[#allocation28_spill] sm:$0xff] }
 0x2f4   : > { %5292 = vmatpush.bf16.msra.mxu1 %v12148_v60  ;;  %v9332_v20 = vpack.c.b16 %v4347_v39, %v4345_v45  ;;  %v9334_v55 = vpack.c.b16 %v4348_v10, %v4346_v4  ;;  %5273 = vmatmul.bf16.vlgmr.msrb.gmra.mxu3 %v9326_v2  ;;  %vm2647_vm2 = vcmp.eq.f32.partialorder %v12152_v7, 2.0  ;;  %vm2648_vm6 = vcmp.eq.f32.partialorder %v12153_v13, 2.0  ;;  %v12154_v39 = vld [vmem:[#allocation92_spill] sm:$0xff]  ;;  %v12155_v10 = vld [vmem:[#allocation93_spill] sm:$0xff]  ;;  %v12172_v13 = vld [vmem:[#allocation55_spill] sm:$0xff] }
 0x2f5   : > { %5318 = vmatpush.bf16.msra.mxu3 %v9141_v6  ;;  %5247 = vmatmul.bf16.vlgmr.msrb.gmra.mxu1 %v9326_v2  ;;  %v4141_v51 = vunpack.c.l.b16 %v2567_v14  ;;  %v4142_v46 = vunpack.c.h.b16 %v2567_v14  ;;  %v4143_v18 = vunpack.c.l.b16 %v2568_v54  ;;  %v4144_v60 = vunpack.c.h.b16 %v2568_v54  ;;  %v12156_v14 = vld [vmem:[#allocation85_spill] sm:$0xff]  ;;  %v12173_v7 = vld [vmem:[#allocation56_spill] sm:$0xff] }
 0x2f6   : > { %12149 = vst [vmem:[#allocation112_spill] sm:$0xff] %v9332_v20  ;;  %v6707_v45 = vsel %vm2645_vm4, 1.0, %v11832_v28  ;;  %v6708_v4 = vsel %vm2646_vm5, 1.0, %v11832_v28  ;;  %v6709_v56 = vsel %vm2647_vm2, 1.0, %v11832_v28  ;;  %v6710_v8 = vsel %vm2648_vm6, 1.0, %v11832_v28  ;;  %v12181_v9 = vld [vmem:[#allocation16_spill] sm:$0xff] }
 0x2f7   : > { %12150 = vst [vmem:[#allocation113_spill] sm:$0xff] %v9334_v55  ;;  %5230 = vmatpush.bf16.msrb.mxu0 %v12154_v39  ;;  %5256 = vmatpush.bf16.msrb.mxu2 %v12155_v10  ;;  %v2811_v6 = vpack.c.bf16 %v6708_v4, %v6707_v45  ;;  %vm2377_vm11 = vcmp.eq.f32.partialorder %v12156_v14, 1.0  ;;  %v9350_v54 = vpack.c.b16 %v4143_v18, %v4141_v51  ;;  %vm2378_vm10 = vcmp.eq.f32.partialorder %v12161_v44, 1.0  ;;  %v12165_v18 = vld [vmem:[#allocation88_spill] sm:$0xff] }
 0x2f8   : > { %5293 = vmatpush.bf16.msra.mxu1 %v12157_v47  ;;  %v9352_v0 = vpack.c.b16 %v4144_v60, %v4142_v46  ;;  %v2812_v26 = vpack.c.bf16 %v6710_v8, %v6709_v56  ;;  %vm2379_vm0 = vcmp.eq.f32.partialorder %v12162_v24, 1.0  ;;  %vm2380_vm1 = vcmp.eq.f32.partialorder %v12163_v43, 1.0  ;;  %v12167_v56 = vld [vmem:[#allocation61_spill] sm:$0xff]  ;;  %v12171_v44 = vld [vmem:[#allocation52_spill] sm:$0xff] }
 0x2f9   : > { %5319 = vmatpush.bf16.msra.mxu3 %v12158_v40  ;;  %12159 = vst [vmem:[#allocation114_spill] sm:$0xff] %v9350_v54  ;;  %v4341_v39 = vunpack.c.l.b16 %v2811_v6  ;;  %v4342_v10 = vunpack.c.h.b16 %v2811_v6  ;;  %v6599_v14 = vsel %vm2377_vm11, 1.0, %v11832_v28  ;;  %v6600_v47 = vsel %vm2378_vm10, 1.0, %v11832_v28  ;;  %v12164_v40 = vld [vmem:[#allocation87_spill] sm:$0xff]  ;;  %v12168_v8 = vld [vmem:[#allocation29_spill] sm:$0xff] }
 0x2fa   : > { %12160 = vst [vmem:[#allocation115_spill] sm:$0xff] %v9352_v0  ;;  %v4343_v45 = vunpack.c.l.b16 %v2812_v26  ;;  %v4344_v4 = vunpack.c.h.b16 %v2812_v26  ;;  %v6601_v60 = vsel %vm2379_vm0, 1.0, %v11832_v28  ;;  %v6602_v46 = vsel %vm2380_vm1, 1.0, %v11832_v28  ;;  %v12166_v6 = vld [vmem:[#allocation51_spill] sm:$0xff] }
 0x2fb   : > { %5231 = vmatpush.bf16.msrb.mxu0 %v12164_v40  ;;  %5257 = vmatpush.bf16.msrb.mxu2 %v12165_v18  ;;  %v2565_v51 = vpack.c.bf16 %v6600_v47, %v6599_v14  ;;  %vm2641_vm3 = vcmp.eq.f32.partialorder %v12166_v6, 2.0  ;;  %v2566_v24 = vpack.c.bf16 %v6602_v46, %v6601_v60  ;;  %vm2642_vm12 = vcmp.eq.f32.partialorder %v12171_v44, 2.0  ;;  %v12176_v46 = vld [vmem:[#allocation69_spill] sm:$0xff]  ;;  %v12180_v44 = vld [vmem:[#allocation15_spill] sm:$0xff] }
 0x2fc   : > { %5294 = vmatpush.bf16.msra.mxu1 %v12167_v56  ;;  %v9366_v26 = vpack.c.b16 %v4343_v45, %v4341_v39  ;;  %v9368_v43 = vpack.c.b16 %v4344_v4, %v4342_v10  ;;  %vm2643_vm8 = vcmp.eq.f32.partialorder %v12172_v13, 2.0  ;;  %vm2644_vm9 = vcmp.eq.f32.partialorder %v12173_v7, 2.0  ;;  %v12175_v39 = vld [vmem:[#allocation75_spill] sm:$0xff] }
 0x2fd   : > { %5320 = vmatpush.bf16.msra.mxu3 %v12168_v8  ;;  %v4137_v40 = vunpack.c.l.b16 %v2565_v51  ;;  %v4138_v18 = vunpack.c.h.b16 %v2565_v51  ;;  %v4139_v47 = vunpack.c.l.b16 %v2566_v24  ;;  %v4140_v14 = vunpack.c.h.b16 %v2566_v24  ;;  %v12174_v8 = vld [vmem:[#allocation74_spill] sm:$0xff]  ;;  %v12177_v51 = vld [vmem:[#allocation89_spill] sm:$0xff] }
 0x2fe   : > { %12169 = vst [vmem:[#allocation116_spill] sm:$0xff] %v9366_v26  ;;  %v6703_v6 = vsel %vm2641_vm3, 1.0, %v11832_v28  ;;  %v6704_v56 = vsel %vm2642_vm12, 1.0, %v11832_v28  ;;  %v6705_v10 = vsel %vm2643_vm8, 1.0, %v11832_v28  ;;  %v6706_v45 = vsel %vm2644_vm9, 1.0, %v11832_v28 }
 0x2ff   : > { %12170 = vst [vmem:[#allocation117_spill] sm:$0xff] %v9368_v43  ;;  %5232 = vmatpush.bf16.msrb.mxu0 %v12174_v8  ;;  %5258 = vmatpush.bf16.msrb.mxu2 %v12175_v39  ;;  %v2809_v4 = vpack.c.bf16 %v6704_v56, %v6703_v6  ;;  %v5220_v60 = vunpack.c.l.bf16 %v9296_v61  ;;  %v9382_v24 = vpack.c.b16 %v4139_v47, %v4137_v40  ;;  %vm2373_vm7 = vcmp.eq.f32.partialorder %v12180_v44, 1.0  ;;  %v12182_v61 = vld [vmem:[#allocation79_spill] sm:$0xff] }
 0x300   : > { %5295 = vmatpush.bf16.msra.mxu1 %v12176_v46  ;;  %v9384_v7 = vpack.c.b16 %v4140_v14, %v4138_v18  ;;  %v2810_v13 = vpack.c.bf16 %v6706_v45, %v6705_v10  ;;  %vm2374_vm13 = vcmp.eq.f32.partialorder %v12181_v9, 1.0  ;;  %vm2375_vm14 = vcmp.eq.f32.partialorder %v12182_v61, 1.0  ;;  %v12183_v46 = vld [vmem:[#allocation80_spill] sm:$0xff]  ;;  %v12185_v40 = vld [vmem:[#allocation35_spill] sm:$0xff]  ;;  %v12188_v45 = vld [vmem:[#allocation78_spill] sm:$0xff] }
 0x301   : > { %5321 = vmatpush.bf16.msra.mxu3 %v12177_v51  ;;  %12178 = vst [vmem:[#allocation118_spill] sm:$0xff] %v9382_v24  ;;  %v4337_v8 = vunpack.c.l.b16 %v2809_v4  ;;  %v4338_v39 = vunpack.c.h.b16 %v2809_v4  ;;  %v5222_v35 = vsub.f32 %v9290_v34, %v5220_v60  ;;  %vm2376_vm15 = vcmp.eq.f32.partialorder %v12183_v46, 1.0  ;;  %v12184_v51 = vld [vmem:[#allocation34_spill] sm:$0xff]  ;;  %v12187_v10 = vld [vmem:[#allocation63_spill] sm:$0xff]  ;;  %v12192_v46 = vld [vmem:[#allocation84_spill] sm:$0xff] }
 0x302   : > { %12179 = vst [vmem:[#allocation119_spill] sm:$0xff] %v9384_v7  ;;  %v4339_v6 = vunpack.c.l.b16 %v2810_v13  ;;  %v4340_v56 = vunpack.c.h.b16 %v2810_v13  ;;  %v6595_v47 = vsel %vm2373_vm7, 1.0, %v11832_v28  ;;  %v6596_v14 = vsel %vm2374_vm13, 1.0, %v11832_v28  ;;  %v12193_v61 = vld [vmem:[#allocation64_spill] sm:$0xff]  ;;  %v12202_v9 = vld [vmem:[#allocation50_spill] sm:$0xff] }
 0x303   : > { %5233 = vmatpush.bf16.msrb.mxu0 %v12184_v51  ;;  %5259 = vmatpush.bf16.msrb.mxu2 %v12185_v40  ;;  %v9393_v18 = vpack.c.bf16 %v5222_v35, %v5222_v35  ;;  %v6597_v34 = vsel %vm2375_vm14, 1.0, %v11832_v28  ;;  %v6598_v60 = vsel %vm2376_vm15, 1.0, %v11832_v28  ;;  %v2563_v51 = vpack.c.bf16 %v6596_v14, %v6595_v47  ;;  %v12191_v40 = vld [vmem:[#allocation83_spill] sm:$0xff] }
 0x304   : > { %5296 = vmatpush.bf16.msra.mxu1 %v12187_v10  ;;  %v9400_v13 = vpack.c.b16 %v4339_v6, %v4337_v8  ;;  %v9402_v4 = vpack.c.b16 %v4340_v56, %v4338_v39  ;;  %v2564_v35 = vpack.c.bf16 %v6598_v60, %v6597_v34  ;;  %vm2637_vm4 = vcmp.eq.f32.partialorder %v12191_v40, 2.0  ;;  %v12194_v39 = vld [vmem:[#allocation22_spill] sm:$0xff]  ;;  %v12201_v40 = vld [vmem:[#allocation49_spill] sm:$0xff] }
 0x305   : > { %12186 = vst [vmem:[#allocation120_spill] sm:$0xff] %v9393_v18  ;;  %5322 = vmatpush.bf16.msra.mxu3 %v12188_v45  ;;  %vm2638_vm5 = vcmp.eq.f32.partialorder %v12192_v46, 2.0  ;;  %vm2639_vm2 = vcmp.eq.f32.partialorder %v12193_v61, 2.0  ;;  %v4133_v8 = vunpack.c.l.b16 %v2563_v51  ;;  %v4134_v6 = vunpack.c.h.b16 %v2563_v51  ;;  %v12197_v51 = vld [vmem:[#allocation11_spill] sm:$0xff] }
 0x306   : > { %12189 = vst [vmem:[#allocation121_spill] sm:$0xff] %v9400_v13  ;;  %5260 = vmatmul.bf16.vlgmr.msrb.gmra.mxu2 %v9393_v18  ;;  %vm2640_vm6 = vcmp.eq.f32.partialorder %v12194_v39, 2.0  ;;  %v6699_v56 = vsel %vm2637_vm4, 1.0, %v11832_v28  ;;  %5234 = vmatmul.bf16.vlgmr.msrb.gmra.mxu0 %v9393_v18  ;;  %v4135_v47 = vunpack.c.l.b16 %v2564_v35  ;;  %v4136_v14 = vunpack.c.h.b16 %v2564_v35  ;;  %v12198_v39 = vld [vmem:[#allocation12_spill] sm:$0xff] }
 0x307   : > { %12190 = vst [vmem:[#allocation122_spill] sm:$0xff] %v9402_v4  ;;  %5278 = vmatpush.bf16.msra.mxu0 %v9249_v25  ;;  %5304 = vmatpush.bf16.msra.mxu2 %v9251_v59  ;;  %v6700_v34 = vsel %vm2638_vm5, 1.0, %v11832_v28  ;;  %v6701_v60 = vsel %vm2639_vm2, 1.0, %v11832_v28  ;;  %v12195_v59 = vld [vmem:[#allocation20_spill] sm:$0xff]  ;;  %v12196_v25 = vld [vmem:[#allocation77_spill] sm:$0xff]  ;;  %v6702_v45 = vsel %vm2640_vm6, 1.0, %v11832_v28 }
 0x308   : > { %5297 = vmatpush.bf16.msra.mxu1 %v12195_v59  ;;  %v2807_v10 = vpack.c.bf16 %v6700_v34, %v6699_v56  ;;  %vm2369_vm11 = vcmp.eq.f32.partialorder %v12197_v51, 1.0  ;;  %vm2370_vm10 = vcmp.eq.f32.partialorder %v12198_v39, 1.0  ;;  %v9423_v35 = vpack.c.b16 %v4135_v47, %v4133_v8  ;;  %v12204_v8 = vld [vmem:[#allocation66_spill] sm:$0xff]  ;;  %v12205_v47 = vld [vmem:[#allocation53_spill] sm:$0xff] }
 0x309   : > { %5323 = vmatpush.bf16.msra.mxu3 %v12196_v25  ;;  %v9425_v61 = vpack.c.b16 %v4136_v14, %v4134_v6  ;;  %v2808_v46 = vpack.c.bf16 %v6702_v45, %v6701_v60  ;;  %vm2371_vm0 = vcmp.eq.f32.partialorder %v12201_v40, 1.0  ;;  %vm2372_vm1 = vcmp.eq.f32.partialorder %v12202_v9, 1.0  ;;  %v12209_v9 = vld [vmem:[#allocation21_spill] sm:$0xff] }
 0x30a   : > { %12199 = vst [vmem:[#allocation123_spill] sm:$0xff] %v9423_v35  ;;  %v4333_v59 = vunpack.c.l.b16 %v2807_v10  ;;  %v4334_v25 = vunpack.c.h.b16 %v2807_v10  ;;  %v6591_v56 = vsel %vm2369_vm11, 1.0, %v11832_v28  ;;  %v6592_v39 = vsel %vm2370_vm10, 1.0, %v11832_v28  ;;  %v12206_v10 = vld [vmem:[#allocation54_spill] sm:$0xff] }
 0x30b   : > { %5279 = vmatpush.bf16.msra.mxu0 %v9205_v57  ;;  %5305 = vmatpush.bf16.msra.mxu2 %v9207_v49  ;;  %12200 = vst [vmem:[#allocation124_spill] sm:$0xff] %v9425_v61  ;;  %v4335_v34 = vunpack.c.l.b16 %v2808_v46  ;;  %v4336_v51 = vunpack.c.h.b16 %v2808_v46  ;;  %v6593_v57 = vsel %vm2371_vm0, 1.0, %v11832_v28  ;;  %v12203_v49 = vld [vmem:[#allocation65_spill] sm:$0xff]  ;;  %v6594_v45 = vsel %vm2372_vm1, 1.0, %v11832_v28 }
 0x30c   : > { %5298 = vmatpush.bf16.msra.mxu1 %v12203_v49  ;;  %v2561_v6 = vpack.c.bf16 %v6592_v39, %v6591_v56  ;;  %vm2633_vm3 = vcmp.eq.f32.partialorder %v12205_v47, 2.0  ;;  %vm2634_vm12 = vcmp.eq.f32.partialorder %v12206_v10, 2.0  ;;  %v2562_v60 = vpack.c.bf16 %v6594_v45, %v6593_v57 }
 0x30d   : > { %5324 = vmatpush.bf16.msra.mxu3 %v12204_v8  ;;  %v9439_v46 = vpack.c.b16 %v4335_v34, %v4333_v59  ;;  %v9441_v14 = vpack.c.b16 %v4336_v51, %v4334_v25  ;;  %vm2635_vm8 = vcmp.eq.f32.partialorder %v12209_v9, 2.0  ;;  %v12210_v8 = vld [vmem:[#allocation76_spill] sm:$0xff]  ;;  %v6695_v49 = vsel %vm2633_vm3, 1.0, %v11832_v28 }
 0x30e   : > { %v4129_v39 = vunpack.c.l.b16 %v2561_v6  ;;  %v4130_v56 = vunpack.c.h.b16 %v2561_v6  ;;  %vm2636_vm9 = vcmp.eq.f32.partialorder %v12210_v8, 2.0  ;;  %v4132_v10 = vunpack.c.h.b16 %v2562_v60 }
 0x30f   : > { %5280 = vmatpush.bf16.msra.mxu0 %v9239_v17  ;;  %5306 = vmatpush.bf16.msra.mxu2 %v9241_v58  ;;  %12207 = vst [vmem:[#allocation53_spill] sm:$0xff] %v9439_v46  ;;  %v4131_v17 = vunpack.c.l.b16 %v2562_v60  ;;  %v6696_v59 = vsel %vm2634_vm12, 1.0, %v11832_v28  ;;  %v6697_v25 = vsel %vm2635_vm8, 1.0, %v11832_v28  ;;  %v6698_v57 = vsel %vm2636_vm9, 1.0, %v11832_v28 }
 0x310   : > { %12208 = vst [vmem:[#allocation125_spill] sm:$0xff] %v9441_v14  ;;  %5343 = vmatpush.bf16.msrb.mxu1 %v9284_v15  ;;  %5325 = vmatmul.bf16.vlgmr.msra.gmra.mxu3 %v9326_v2  ;;  %v2805_v51 = vpack.c.bf16 %v6696_v59, %v6695_v49  ;;  %vm2621_vm7 = vcmp.eq.f32.partialorder %v9181_v11, 2.0  ;;  %vm2622_vm13 = vcmp.eq.f32.partialorder %v9185_v27, 2.0  ;;  %v9459_v45 = vpack.c.b16 %v4132_v10, %v4130_v56 }
 0x311   : > { %5369 = vmatpush.bf16.msrb.mxu3 %v9286_v53  ;;  %5299 = vmatmul.bf16.vlgmr.msra.gmra.mxu1 %v9326_v2  ;;  %v9457_v34 = vpack.c.b16 %v4131_v17, %v4129_v39  ;;  %v2806_v6 = vpack.c.bf16 %v6698_v57, %v6697_v25  ;;  %vm2623_vm14 = vcmp.eq.f32.partialorder %v9219_v37, 2.0  ;;  %vm2624_vm15 = vcmp.eq.f32.partialorder %v9223_v3, 2.0  ;;  %v12213_v25 = vld [vmem:[#allocation33_spill] sm:$0xff]  ;;  %v12214_v57 = vld [vmem:[#allocation7_spill] sm:$0xff] }
 0x312   : > { %12212 = vst [vmem:[#allocation127_spill] sm:$0xff] %v9459_v45  ;;  %v4329_v49 = vunpack.c.l.b16 %v2805_v51  ;;  %v4330_v60 = vunpack.c.h.b16 %v2805_v51  ;;  %v6683_v59 = vsel %vm2621_vm7, 1.0, %v11832_v28  ;;  %v6684_v17 = vsel %vm2622_vm13, 1.0, %v11832_v28 }
 0x313   : > { %5281 = vmatpush.bf16.msra.mxu0 %v9310_v38  ;;  %5307 = vmatpush.bf16.msra.mxu2 %v9312_v1  ;;  %12211 = vst [vmem:[#allocation126_spill] sm:$0xff] %v9457_v34  ;;  %v4331_v38 = vunpack.c.l.b16 %v2806_v6  ;;  %v4332_v58 = vunpack.c.h.b16 %v2806_v6  ;;  %v6685_v10 = vsel %vm2623_vm14, 1.0, %v11832_v28  ;;  %v6686_v39 = vsel %vm2624_vm15, 1.0, %v11832_v28 }
 0x314   : > { %5344 = vmatpush.bf16.msrb.mxu1 %v9332_v20  ;;  %v2799_v56 = vpack.c.bf16 %v6684_v17, %v6683_v59  ;;  %vm2629_vm4 = vcmp.eq.f32.partialorder %v12213_v25, 2.0  ;;  %vm2630_vm5 = vcmp.eq.f32.partialorder %v12214_v57, 2.0  ;;  %v2800_v6 = vpack.c.bf16 %v6686_v39, %v6685_v10  ;;  %v12218_v20 = vld [vmem:[#allocation60_spill] sm:$0xff]  ;;  %v12219_v10 = vld [vmem:[#allocation47_spill] sm:$0xff] }
 0x315   : > { %5370 = vmatpush.bf16.msrb.mxu3 %v9334_v55  ;;  %v9473_v51 = vpack.c.b16 %v4331_v38, %v4329_v49  ;;  %v9475_v1 = vpack.c.b16 %v4332_v58, %v4330_v60  ;;  %v12217_v55 = vld [vmem:[#allocation59_spill] sm:$0xff]  ;;  %vm2632_vm6 = vcmp.eq.f32.partialorder %v12218_v20, 2.0  ;;  %v6691_v53 = vsel %vm2629_vm4, 1.0, %v11832_v28  ;;  %v12220_v39 = vld [vmem:[#allocation48_spill] sm:$0xff] }
 0x316   : > { %vm2631_vm2 = vcmp.eq.f32.partialorder %v12217_v55, 2.0  ;;  %v4317_v59 = vunpack.c.l.b16 %v2799_v56  ;;  %v4318_v17 = vunpack.c.h.b16 %v2799_v56  ;;  %v4320_v15 = vunpack.c.h.b16 %v2800_v6 }
 0x317   : > { %5282 = vmatpush.bf16.msra.mxu0 %v9350_v54  ;;  %5308 = vmatpush.bf16.msra.mxu2 %v9352_v0  ;;  %12215 = vst [vmem:[#allocation33_spill] sm:$0xff] %v9473_v51  ;;  %v4319_v54 = vunpack.c.l.b16 %v2800_v6  ;;  %v6692_v38 = vsel %vm2630_vm5, 1.0, %v11832_v28  ;;  %v6693_v58 = vsel %vm2631_vm2, 1.0, %v11832_v28  ;;  %v6694_v49 = vsel %vm2632_vm6, 1.0, %v11832_v28 }
 0x318   : > { %12216 = vst [vmem:[#allocation7_spill] sm:$0xff] %v9475_v1  ;;  %5345 = vmatpush.bf16.msrb.mxu1 %v9366_v26  ;;  %v2803_v60 = vpack.c.bf16 %v6692_v38, %v6691_v53  ;;  %vm2617_vm11 = vcmp.eq.f32.partialorder %v12219_v10, 2.0  ;;  %vm2618_vm10 = vcmp.eq.f32.partialorder %v12220_v39, 2.0  ;;  %v9491_v0 = vpack.c.b16 %v4320_v15, %v4318_v17  ;;  %v12224_v26 = vld [vmem:[#allocation26_spill] sm:$0xff] }
 0x319   : > { %5371 = vmatpush.bf16.msrb.mxu3 %v9368_v43  ;;  %v9489_v56 = vpack.c.b16 %v4319_v54, %v4317_v59  ;;  %v2804_v6 = vpack.c.bf16 %v6694_v49, %v6693_v58  ;;  %v12223_v43 = vld [vmem:[#allocation10_spill] sm:$0xff]  ;;  %vm2620_vm1 = vcmp.eq.f32.partialorder %v12224_v26, 2.0  ;;  %v6679_v39 = vsel %vm2617_vm11, 1.0, %v11832_v28  ;;  %v12225_v58 = vld [vmem:[#allocation36_spill] sm:$0xff]  ;;  %v12226_v49 = vld [vmem:[#allocation37_spill] sm:$0xff] }
 0x31a   : > { %12222 = vst [vmem:[#allocation128_spill] sm:$0xff] %v9491_v0  ;;  %vm2619_vm0 = vcmp.eq.f32.partialorder %v12223_v43, 2.0  ;;  %v4325_v53 = vunpack.c.l.b16 %v2803_v60  ;;  %v4326_v38 = vunpack.c.h.b16 %v2803_v60  ;;  %v6680_v54 = vsel %vm2618_vm10, 1.0, %v11832_v28 }
 0x31b   : > { %5283 = vmatpush.bf16.msra.mxu0 %v9382_v24  ;;  %5309 = vmatpush.bf16.msra.mxu2 %v9384_v7  ;;  %12221 = vst [vmem:[#allocation59_spill] sm:$0xff] %v9489_v56  ;;  %v4327_v24 = vunpack.c.l.b16 %v2804_v6  ;;  %v4328_v10 = vunpack.c.h.b16 %v2804_v6  ;;  %v6681_v15 = vsel %vm2619_vm0, 1.0, %v11832_v28  ;;  %v6682_v59 = vsel %vm2620_vm1, 1.0, %v11832_v28 }
 0x31c   : > { %5346 = vmatpush.bf16.msrb.mxu1 %v9400_v13  ;;  %v2797_v17 = vpack.c.bf16 %v6680_v54, %v6679_v39  ;;  %vm2625_vm3 = vcmp.eq.f32.partialorder %v12225_v58, 2.0  ;;  %vm2626_vm12 = vcmp.eq.f32.partialorder %v12226_v49, 2.0  ;;  %v2798_v6 = vpack.c.bf16 %v6682_v59, %v6681_v15  ;;  %v12230_v13 = vld [vmem:[#allocation32_spill] sm:$0xff] }
 0x31d   : > { %5372 = vmatpush.bf16.msrb.mxu3 %v9402_v4  ;;  %v9505_v60 = vpack.c.b16 %v4327_v24, %v4325_v53  ;;  %v9507_v7 = vpack.c.b16 %v4328_v10, %v4326_v38  ;;  %v12229_v4 = vld [vmem:[#allocation38_spill] sm:$0xff]  ;;  %vm2628_vm9 = vcmp.eq.f32.partialorder %v12230_v13, 2.0  ;;  %v6687_v49 = vsel %vm2625_vm3, 1.0, %v11832_v28 }
 0x31e   : > { %vm2627_vm8 = vcmp.eq.f32.partialorder %v12229_v4, 2.0  ;;  %v4313_v39 = vunpack.c.l.b16 %v2797_v17  ;;  %v4314_v54 = vunpack.c.h.b16 %v2797_v17  ;;  %v4316_v58 = vunpack.c.h.b16 %v2798_v6 }
 0x31f   : > { %5284 = vmatpush.bf16.msra.mxu0 %v9423_v35  ;;  %5310 = vmatpush.bf16.msra.mxu2 %v9425_v61  ;;  %12227 = vst [vmem:[#allocation129_spill] sm:$0xff] %v9505_v60  ;;  %v4315_v35 = vunpack.c.l.b16 %v2798_v6  ;;  %v6688_v24 = vsel %vm2626_vm12, 1.0, %v11832_v28  ;;  %v6689_v10 = vsel %vm2627_vm8, 1.0, %v11832_v28  ;;  %v6690_v53 = vsel %vm2628_vm9, 1.0, %v11832_v28  ;;  %v12252_v61 = vld [vmem:[#allocation68_spill] sm:$0xff] }
 0x320   : > { %12228 = vst [vmem:[#allocation130_spill] sm:$0xff] %v9507_v7  ;;  %5347 = vmatpush.bf16.msrb.mxu1 %v9439_v46  ;;  %v2801_v38 = vpack.c.bf16 %v6688_v24, %v6687_v49  ;;  %vm2613_vm7 = vcmp.eq.f32.partialorder %v9025_v52, 2.0  ;;  %vm2614_vm13 = vcmp.eq.f32.partialorder %v9029_v23, 2.0  ;;  %v9523_v59 = vpack.c.b16 %v4316_v58, %v4314_v54 }
 0x321   : > { %5373 = vmatpush.bf16.msrb.mxu3 %v9441_v14  ;;  %v9521_v15 = vpack.c.b16 %v4315_v35, %v4313_v39  ;;  %v2802_v17 = vpack.c.bf16 %v6690_v53, %v6689_v10  ;;  %vm2615_vm14 = vcmp.eq.f32.partialorder %v9067_v32, 2.0  ;;  %vm2616_vm15 = vcmp.eq.f32.partialorder %v9071_v30, 2.0 }
 0x322   : > { %12232 = vst [vmem:[#allocation32_spill] sm:$0xff] %v9523_v59  ;;  %v4321_v49 = vunpack.c.l.b16 %v2801_v38  ;;  %v4322_v6 = vunpack.c.h.b16 %v2801_v38  ;;  %v6675_v24 = vsel %vm2613_vm7, 1.0, %v11832_v28  ;;  %v6676_v39 = vsel %vm2614_vm13, 1.0, %v11832_v28 }
 0x323   : > { %5285 = vmatpush.bf16.msra.mxu0 %v9457_v34  ;;  %5311 = vmatpush.bf16.msra.mxu2 %v9459_v45  ;;  %12231 = vst [vmem:[#allocation38_spill] sm:$0xff] %v9521_v15  ;;  %v4323_v35 = vunpack.c.l.b16 %v2802_v17  ;;  %v4324_v58 = vunpack.c.h.b16 %v2802_v17  ;;  %v6677_v54 = vsel %vm2615_vm14, 1.0, %v11832_v28  ;;  %v6678_v10 = vsel %vm2616_vm15, 1.0, %v11832_v28  ;;  %v12246_v45 = vld [vmem:[#allocation28_spill] sm:$0xff] }
 0x324   : > { %5348 = vmatpush.bf16.msrb.mxu1 %v9473_v51  ;;  %v2795_v53 = vpack.c.bf16 %v6676_v39, %v6675_v24  ;;  %vm2877_vm4 = vcmp.eq.f32.partialorder %v9085_v42, 3.0  ;;  %vm2878_vm5 = vcmp.eq.f32.partialorder %v9089_v41, 3.0  ;;  %vm2879_vm2 = vcmp.eq.f32.partialorder %v9123_v12, 3.0  ;;  %v12251_v51 = vld [vmem:[#allocation67_spill] sm:$0xff] }
 0x325   : > { %5374 = vmatpush.bf16.msrb.mxu3 %v9475_v1  ;;  %v9541_v38 = vpack.c.b16 %v4323_v35, %v4321_v49  ;;  %v9543_v17 = vpack.c.b16 %v4324_v58, %v4322_v6  ;;  %vm2880_vm6 = vcmp.eq.f32.partialorder %v9127_v16, 3.0  ;;  %v6780_v35 = vsel %vm2878_vm5, 1.0, %v11832_v28 }
 0x326   : > { %5312 = vmatmul.bf16.vlgmr.msra.gmra.mxu2 %v9393_v18  ;;  %5286 = vmatmul.bf16.vlgmr.msra.gmra.mxu0 %v9393_v18  ;;  %v4309_v24 = vunpack.c.l.b16 %v2795_v53  ;;  %v4310_v39 = vunpack.c.h.b16 %v2795_v53  ;;  %v6781_v58 = vsel %vm2879_vm2, 1.0, %v11832_v28  ;;  %vm2609_vm11 = vcmp.eq.f32.partialorder %v8943_v19, 2.0 }
 0x327   : > { %5330 = vmatpush.bf16.msrb.mxu0 %v9489_v56  ;;  %5356 = vmatpush.bf16.msrb.mxu2 %v9491_v0  ;;  %12233 = vst [vmem:[#allocation131_spill] sm:$0xff] %v9541_v38  ;;  %v2796_v0 = vpack.c.bf16 %v6678_v10, %v6677_v54  ;;  %v6779_v56 = vsel %vm2877_vm4, 1.0, %v11832_v28  ;;  %v6782_v54 = vsel %vm2880_vm6, 1.0, %v11832_v28  ;;  %vm2610_vm10 = vcmp.eq.f32.partialorder %v8947_v5, 2.0 }
 0x328   : > { %12234 = vst [vmem:[#allocation132_spill] sm:$0xff] %v9543_v17  ;;  %5349 = vmatpush.bf16.msrb.mxu1 %v9505_v60  ;;  %v3039_v10 = vpack.c.bf16 %v6780_v35, %v6779_v56  ;;  %vm2611_vm0 = vcmp.eq.f32.partialorder %v8985_v31, 2.0  ;;  %vm2612_vm1 = vcmp.eq.f32.partialorder %v8989_v36, 2.0  ;;  %v6671_v56 = vsel %vm2609_vm11, 1.0, %v11832_v28  ;;  %v12245_v60 = vld [vmem:[#allocation62_spill] sm:$0xff] }
 0x329   : > { %5375 = vmatpush.bf16.msrb.mxu3 %v9507_v7  ;;  %v4311_v49 = vunpack.c.l.b16 %v2796_v0  ;;  %v4312_v6 = vunpack.c.h.b16 %v2796_v0  ;;  %v6674_v35 = vsel %vm2612_vm1, 1.0, %v11832_v28  ;;  %vm2873_vm3 = vcmp.eq.f32.partialorder %v9003_v50, 3.0 }
 0x32a   : > { %v4509_v0 = vunpack.c.l.b16 %v3039_v10  ;;  %v4510_v7 = vunpack.c.h.b16 %v3039_v10  ;;  %vm2874_vm12 = vcmp.eq.f32.partialorder %v9007_v63, 3.0  ;;  %vm2875_vm8 = vcmp.eq.f32.partialorder %v9043_v33, 3.0 }
 0x32b   : > { %5331 = vmatpush.bf16.msrb.mxu0 %v9521_v15  ;;  %5357 = vmatpush.bf16.msrb.mxu2 %v9523_v59  ;;  %v9559_v53 = vpack.c.b16 %v4311_v49, %v4309_v24  ;;  %v9561_v15 = vpack.c.b16 %v4312_v6, %v4310_v39  ;;  %v3040_v59 = vpack.c.bf16 %v6782_v54, %v6781_v58  ;;  %v6672_v49 = vsel %vm2610_vm10, 1.0, %v11832_v28 }
 0x32c   : > { %5350 = vmatpush.bf16.msrb.mxu1 %v9541_v38  ;;  %v6673_v6 = vsel %vm2611_vm0, 1.0, %v11832_v28  ;;  %v2793_v58 = vpack.c.bf16 %v6672_v49, %v6671_v56  ;;  %vm2876_vm9 = vcmp.eq.f32.partialorder %v9047_v29, 3.0  ;;  %v6775_v56 = vsel %vm2873_vm3, 1.0, %v11832_v28 }
 0x32d   : > { %12235 = vst [vmem:[#allocation133_spill] sm:$0xff] %v9559_v53  ;;  %5376 = vmatpush.bf16.msrb.mxu3 %v9543_v17  ;;  %v4511_v24 = vunpack.c.l.b16 %v3040_v59  ;;  %v4512_v39 = vunpack.c.h.b16 %v3040_v59  ;;  %v6778_v49 = vsel %vm2876_vm9, 1.0, %v11832_v28  ;;  %vm2605_vm7 = vcmp.eq.f32.partialorder %v8861_v48, 2.0 }
 0x32e   : > { %12236 = vst [vmem:[#allocation134_spill] sm:$0xff] %v9561_v15  ;;  %v4305_v59 = vunpack.c.l.b16 %v2793_v58  ;;  %vm2606_vm13 = vcmp.eq.f32.partialorder %v8865_v21, 2.0  ;;  %vm2607_vm14 = vcmp.eq.f32.partialorder %v8903_v22, 2.0  ;;  %vm2608_vm15 = vcmp.eq.f32.partialorder %v8907_v62, 2.0 }
 0x32f   : > { %5332 = vmatpush.bf16.msrb.mxu0 %v9559_v53  ;;  %5358 = vmatpush.bf16.msrb.mxu2 %v9561_v15  ;;  %v9575_v54 = vpack.c.b16 %v4511_v24, %v4509_v0  ;;  %v9577_v10 = vpack.c.b16 %v4512_v39, %v4510_v7  ;;  %v2794_v53 = vpack.c.bf16 %v6674_v35, %v6673_v6  ;;  %v4306_v15 = vunpack.c.h.b16 %v2793_v58 }
 0x330   : > { %5351 = vmatmul.bf16.vlgmr.msrb.gmra.mxu1 %v9326_v2  ;;  %5377 = vmatmul.bf16.vlgmr.msrb.gmra.mxu3 %v9326_v2  ;;  %v6776_v24 = vsel %vm2874_vm12, 1.0, %v11832_v28  ;;  %v6777_v39 = vsel %vm2875_vm8, 1.0, %v11832_v28  ;;  %v6667_v17 = vsel %vm2605_vm7, 1.0, %v11832_v28  ;;  %vm2871_vm2 = vcmp.eq.f32.partialorder %v12245_v60, 3.0 }
 0x331   : > { %12237 = vst [vmem:[#allocation135_spill] sm:$0xff] %v9575_v54  ;;  %5395 = vmatpush.bf16.msra.mxu1 %v9575_v54  ;;  %5421 = vmatpush.bf16.msra.mxu3 %v9577_v10  ;;  %v4307_v0 = vunpack.c.l.b16 %v2794_v53  ;;  %v4308_v7 = vunpack.c.h.b16 %v2794_v53  ;;  %v3037_v6 = vpack.c.bf16 %v6776_v24, %v6775_v56  ;;  %v3038_v54 = vpack.c.bf16 %v6778_v49, %v6777_v39  ;;  %v12241_v39 = vld [vmem:[#allocation30_spill] sm:$0xff]  ;;  %v12242_v49 = vld [vmem:[#allocation31_spill] sm:$0xff] }
 0x332   : > { %12238 = vst [vmem:[#allocation136_spill] sm:$0xff] %v9577_v10  ;;  %vm2869_vm4 = vcmp.eq.f32.partialorder %v12241_v39, 3.0  ;;  %vm2870_vm5 = vcmp.eq.f32.partialorder %v12242_v49, 3.0  ;;  %vm2872_vm6 = vcmp.eq.f32.partialorder %v12246_v45, 3.0  ;;  %vm2603_vm0 = vcmp.eq.f32.partialorder %v12251_v51, 2.0  ;;  %v12258_v51 = vld [vmem:[#allocation56_spill] sm:$0xff] }
 0x333   : > { %v9591_v35 = vpack.c.b16 %v4307_v0, %v4305_v59  ;;  %v9593_v58 = vpack.c.b16 %v4308_v7, %v4306_v15  ;;  %v4505_v10 = vunpack.c.l.b16 %v3037_v6  ;;  %v4506_v53 = vunpack.c.h.b16 %v3037_v6 }
 0x334   : > { %v4507_v56 = vunpack.c.l.b16 %v3038_v54  ;;  %v4508_v24 = vunpack.c.h.b16 %v3038_v54  ;;  %v6668_v59 = vsel %vm2606_vm13, 1.0, %v11832_v28  ;;  %v6669_v15 = vsel %vm2607_vm14, 1.0, %v11832_v28 }
 0x335   : > { %12239 = vst [vmem:[#allocation137_spill] sm:$0xff] %v9591_v35  ;;  %5333 = vmatpush.bf16.msrb.mxu0 %v9591_v35  ;;  %5359 = vmatpush.bf16.msrb.mxu2 %v9593_v58  ;;  %v6670_v0 = vsel %vm2608_vm15, 1.0, %v11832_v28  ;;  %v2791_v7 = vpack.c.bf16 %v6668_v59, %v6667_v17  ;;  %v6771_v34 = vsel %vm2869_vm4, 1.0, %v11832_v28  ;;  %vm2604_vm1 = vcmp.eq.f32.partialorder %v12252_v61, 2.0  ;;  %v12257_v61 = vld [vmem:[#allocation55_spill] sm:$0xff] }
 0x336   : > { %12240 = vst [vmem:[#allocation138_spill] sm:$0xff] %v9593_v58  ;;  %v9605_v6 = vpack.c.b16 %v4507_v56, %v4505_v10  ;;  %v9607_v38 = vpack.c.b16 %v4508_v24, %v4506_v53  ;;  %v2792_v35 = vpack.c.bf16 %v6670_v0, %v6669_v15  ;;  %v6772_v10 = vsel %vm2870_vm5, 1.0, %v11832_v28  ;;  %v12247_v15 = vld [vmem:[#allocation85_spill] sm:$0xff]  ;;  %v12248_v0 = vld [vmem:[#allocation86_spill] sm:$0xff] }
 0x337   : > { %v4301_v58 = vunpack.c.l.b16 %v2791_v7  ;;  %v4302_v54 = vunpack.c.h.b16 %v2791_v7  ;;  %v6773_v53 = vsel %vm2871_vm2, 1.0, %v11832_v28  ;;  %v6774_v56 = vsel %vm2872_vm6, 1.0, %v11832_v28 }
 0x338   : > { %12243 = vst [vmem:[#allocation139_spill] sm:$0xff] %v9605_v6  ;;  %5396 = vmatpush.bf16.msra.mxu1 %v9605_v6  ;;  %5422 = vmatpush.bf16.msra.mxu3 %v9607_v38  ;;  %v4303_v17 = vunpack.c.l.b16 %v2792_v35  ;;  %v4304_v59 = vunpack.c.h.b16 %v2792_v35  ;;  %v3035_v24 = vpack.c.bf16 %v6772_v10, %v6771_v34  ;;  %vm2601_vm11 = vcmp.eq.f32.partialorder %v12247_v15, 2.0 }
 0x339   : > { %12244 = vst [vmem:[#allocation140_spill] sm:$0xff] %v9607_v38  ;;  %vm2602_vm10 = vcmp.eq.f32.partialorder %v12248_v0, 2.0  ;;  %v3036_v6 = vpack.c.bf16 %v6774_v56, %v6773_v53  ;;  %v6663_v14 = vsel %vm2601_vm11, 1.0, %v11832_v28  ;;  %v12253_v53 = vld [vmem:[#allocation51_spill] sm:$0xff]  ;;  %v12254_v56 = vld [vmem:[#allocation52_spill] sm:$0xff]  ;;  %vm2867_vm8 = vcmp.eq.f32.partialorder %v12257_v61, 3.0 }
 0x33a   : > { %v9619_v7 = vpack.c.b16 %v4303_v17, %v4301_v58  ;;  %v9621_v1 = vpack.c.b16 %v4304_v59, %v4302_v54  ;;  %v4501_v38 = vunpack.c.l.b16 %v3035_v24  ;;  %v4502_v35 = vunpack.c.h.b16 %v3035_v24  ;;  %v12263_v61 = vld [vmem:[#allocation80_spill] sm:$0xff] }
 0x33b   : > { %v4503_v34 = vunpack.c.l.b16 %v3036_v6  ;;  %v4504_v10 = vunpack.c.h.b16 %v3036_v6  ;;  %v6664_v58 = vsel %vm2602_vm10, 1.0, %v11832_v28  ;;  %v6665_v54 = vsel %vm2603_vm0, 1.0, %v11832_v28 }
 0x33c   : > { %12249 = vst [vmem:[#allocation141_spill] sm:$0xff] %v9619_v7  ;;  %5334 = vmatpush.bf16.msrb.mxu0 %v9619_v7  ;;  %5360 = vmatpush.bf16.msrb.mxu2 %v9621_v1  ;;  %v6666_v17 = vsel %vm2604_vm1, 1.0, %v11832_v28  ;;  %v2789_v59 = vpack.c.bf16 %v6664_v58, %v6663_v14  ;;  %vm2865_vm3 = vcmp.eq.f32.partialorder %v12253_v53, 3.0  ;;  %vm2866_vm12 = vcmp.eq.f32.partialorder %v12254_v56, 3.0 }
 0x33d   : > { %12250 = vst [vmem:[#allocation142_spill] sm:$0xff] %v9621_v1  ;;  %v9633_v24 = vpack.c.b16 %v4503_v34, %v4501_v38  ;;  %v9635_v46 = vpack.c.b16 %v4504_v10, %v4502_v35  ;;  %v2790_v7 = vpack.c.bf16 %v6666_v17, %v6665_v54  ;;  %vm2868_vm9 = vcmp.eq.f32.partialorder %v12258_v51, 3.0  ;;  %v12259_v54 = vld [vmem:[#allocation16_spill] sm:$0xff]  ;;  %v12262_v51 = vld [vmem:[#allocation79_spill] sm:$0xff] }
 0x33e   : > { %v4297_v1 = vunpack.c.l.b16 %v2789_v59  ;;  %v4298_v6 = vunpack.c.h.b16 %v2789_v59  ;;  %v6767_v0 = vsel %vm2865_vm3, 1.0, %v11832_v28  ;;  %v6768_v38 = vsel %vm2866_vm12, 1.0, %v11832_v28 }
 0x33f   : > { %12255 = vst [vmem:[#allocation143_spill] sm:$0xff] %v9633_v24  ;;  %5397 = vmatpush.bf16.msra.mxu1 %v9633_v24  ;;  %5423 = vmatpush.bf16.msra.mxu3 %v9635_v46  ;;  %v4299_v14 = vunpack.c.l.b16 %v2790_v7  ;;  %v4300_v58 = vunpack.c.h.b16 %v2790_v7  ;;  %v6769_v35 = vsel %vm2867_vm8, 1.0, %v11832_v28  ;;  %v6770_v34 = vsel %vm2868_vm9, 1.0, %v11832_v28 }
 0x340   : > { %12256 = vst [vmem:[#allocation144_spill] sm:$0xff] %v9635_v46  ;;  %v3033_v10 = vpack.c.bf16 %v6768_v38, %v6767_v0  ;;  %vm2597_vm7 = vcmp.eq.f32.partialorder %v12180_v44, 2.0  ;;  %vm2598_vm13 = vcmp.eq.f32.partialorder %v12259_v54, 2.0  ;;  %v3034_v24 = vpack.c.bf16 %v6770_v34, %v6769_v35  ;;  %v12264_v35 = vld [vmem:[#allocation83_spill] sm:$0xff]  ;;  %v12265_v34 = vld [vmem:[#allocation84_spill] sm:$0xff]  ;;  %v12269_v54 = vld [vmem:[#allocation22_spill] sm:$0xff] }
 0x341   : > { %v9647_v17 = vpack.c.b16 %v4299_v14, %v4297_v1  ;;  %v9649_v59 = vpack.c.b16 %v4300_v58, %v4298_v6  ;;  %vm2599_vm14 = vcmp.eq.f32.partialorder %v12262_v51, 2.0  ;;  %vm2600_vm15 = vcmp.eq.f32.partialorder %v12263_v61, 2.0  ;;  %v12268_v51 = vld [vmem:[#allocation64_spill] sm:$0xff] }
 0x342   : > { %v4497_v46 = vunpack.c.l.b16 %v3033_v10  ;;  %v4498_v7 = vunpack.c.h.b16 %v3033_v10  ;;  %v6659_v56 = vsel %vm2597_vm7, 1.0, %v11832_v28  ;;  %v4499_v0 = vunpack.c.l.b16 %v3034_v24 }
 0x343   : > { %12260 = vst [vmem:[#allocation145_spill] sm:$0xff] %v9647_v17  ;;  %5335 = vmatpush.bf16.msrb.mxu0 %v9647_v17  ;;  %5361 = vmatpush.bf16.msrb.mxu2 %v9649_v59  ;;  %v4500_v38 = vunpack.c.h.b16 %v3034_v24  ;;  %v6660_v1 = vsel %vm2598_vm13, 1.0, %v11832_v28  ;;  %v6661_v6 = vsel %vm2599_vm14, 1.0, %v11832_v28  ;;  %v6662_v14 = vsel %vm2600_vm15, 1.0, %v11832_v28 }
 0x344   : > { %12261 = vst [vmem:[#allocation146_spill] sm:$0xff] %v9649_v59  ;;  %v2787_v58 = vpack.c.bf16 %v6660_v1, %v6659_v56  ;;  %vm2861_vm4 = vcmp.eq.f32.partialorder %v12264_v35, 3.0  ;;  %vm2862_vm5 = vcmp.eq.f32.partialorder %v12265_v34, 3.0  ;;  %v9661_v10 = vpack.c.b16 %v4499_v0, %v4497_v46 }
 0x345   : > { %v9663_v61 = vpack.c.b16 %v4500_v38, %v4498_v7  ;;  %v2788_v17 = vpack.c.bf16 %v6662_v14, %v6661_v6  ;;  %vm2863_vm2 = vcmp.eq.f32.partialorder %v12268_v51, 3.0  ;;  %vm2864_vm6 = vcmp.eq.f32.partialorder %v12269_v54, 3.0  ;;  %v12270_v6 = vld [vmem:[#allocation11_spill] sm:$0xff]  ;;  %v12271_v14 = vld [vmem:[#allocation12_spill] sm:$0xff]  ;;  %v12274_v51 = vld [vmem:[#allocation50_spill] sm:$0xff] }
 0x346   : > { %12266 = vst [vmem:[#allocation83_spill] sm:$0xff] %v9661_v10  ;;  %v4293_v59 = vunpack.c.l.b16 %v2787_v58  ;;  %v4294_v24 = vunpack.c.h.b16 %v2787_v58  ;;  %v6763_v44 = vsel %vm2861_vm4, 1.0, %v11832_v28  ;;  %5398 = vmatpush.bf16.msra.mxu1 %v9661_v10  ;;  %v6764_v46 = vsel %vm2862_vm5, 1.0, %v11832_v28 }
 0x347   : > { %12267 = vst [vmem:[#allocation147_spill] sm:$0xff] %v9663_v61  ;;  %5424 = vmatpush.bf16.msra.mxu3 %v9663_v61  ;;  %v4295_v56 = vunpack.c.l.b16 %v2788_v17  ;;  %v4296_v1 = vunpack.c.h.b16 %v2788_v17  ;;  %v6765_v7 = vsel %vm2863_vm2, 1.0, %v11832_v28  ;;  %v6766_v0 = vsel %vm2864_vm6, 1.0, %v11832_v28 }
 0x348   : > { %v3031_v38 = vpack.c.bf16 %v6764_v46, %v6763_v44  ;;  %vm2593_vm11 = vcmp.eq.f32.partialorder %v12270_v6, 2.0  ;;  %vm2594_vm10 = vcmp.eq.f32.partialorder %v12271_v14, 2.0  ;;  %v3032_v10 = vpack.c.bf16 %v6766_v0, %v6765_v7  ;;  %v12275_v7 = vld [vmem:[#allocation54_spill] sm:$0xff] }
 0x349   : > { %v9675_v58 = vpack.c.b16 %v4295_v56, %v4293_v59  ;;  %v9677_v54 = vpack.c.b16 %v4296_v1, %v4294_v24  ;;  %vm2595_vm0 = vcmp.eq.f32.partialorder %v12201_v40, 2.0  ;;  %vm2596_vm1 = vcmp.eq.f32.partialorder %v12274_v51, 2.0 }
 0x34a   : > { %v4493_v61 = vunpack.c.l.b16 %v3031_v38  ;;  %v4494_v17 = vunpack.c.h.b16 %v3031_v38  ;;  %v6655_v34 = vsel %vm2593_vm11, 1.0, %v11832_v28  ;;  %v4495_v44 = vunpack.c.l.b16 %v3032_v10 }
 0x34b   : > { %12272 = vst [vmem:[#allocation11_spill] sm:$0xff] %v9675_v58  ;;  %5336 = vmatpush.bf16.msrb.mxu0 %v9675_v58  ;;  %5362 = vmatpush.bf16.msrb.mxu2 %v9677_v54  ;;  %v4496_v46 = vunpack.c.h.b16 %v3032_v10  ;;  %v6656_v59 = vsel %vm2594_vm10, 1.0, %v11832_v28  ;;  %v6657_v24 = vsel %vm2595_vm0, 1.0, %v11832_v28  ;;  %v6658_v56 = vsel %vm2596_vm1, 1.0, %v11832_v28 }
 0x34c   : > { %12273 = vst [vmem:[#allocation148_spill] sm:$0xff] %v9677_v54  ;;  %v2785_v1 = vpack.c.bf16 %v6656_v59, %v6655_v34  ;;  %vm2857_vm3 = vcmp.eq.f32.partialorder %v12205_v47, 3.0  ;;  %vm2858_vm12 = vcmp.eq.f32.partialorder %v12275_v7, 3.0  ;;  %v9689_v0 = vpack.c.b16 %v4495_v44, %v4493_v61 }
 0x34d   : > { %v9691_v38 = vpack.c.b16 %v4496_v46, %v4494_v17  ;;  %v2786_v58 = vpack.c.bf16 %v6658_v56, %v6657_v24  ;;  %vm2859_vm8 = vcmp.eq.f32.partialorder %v12209_v9, 3.0  ;;  %vm2860_vm9 = vcmp.eq.f32.partialorder %v12210_v8, 3.0 }
 0x34e   : > { %12276 = vst [vmem:[#allocation149_spill] sm:$0xff] %v9689_v0  ;;  %v4289_v54 = vunpack.c.l.b16 %v2785_v1  ;;  %v4290_v10 = vunpack.c.h.b16 %v2785_v1  ;;  %v6759_v51 = vsel %vm2857_vm3, 1.0, %v11832_v28  ;;  %5399 = vmatpush.bf16.msra.mxu1 %v9689_v0  ;;  %v6760_v61 = vsel %vm2858_vm12, 1.0, %v11832_v28 }
 0x34f   : > { %12277 = vst [vmem:[#allocation150_spill] sm:$0xff] %v9691_v38  ;;  %5425 = vmatpush.bf16.msra.mxu3 %v9691_v38  ;;  %v4291_v34 = vunpack.c.l.b16 %v2786_v58  ;;  %v4292_v59 = vunpack.c.h.b16 %v2786_v58  ;;  %v6761_v17 = vsel %vm2859_vm8, 1.0, %v11832_v28  ;;  %v6762_v44 = vsel %vm2860_vm9, 1.0, %v11832_v28 }
 0x350   : > { %v3029_v46 = vpack.c.bf16 %v6760_v61, %v6759_v51  ;;  %vm2845_vm7 = vcmp.eq.f32.partialorder %v9181_v11, 3.0  ;;  %vm2846_vm13 = vcmp.eq.f32.partialorder %v9185_v27, 3.0  ;;  %v3030_v1 = vpack.c.bf16 %v6762_v44, %v6761_v17 }
 0x351   : > { %v9703_v24 = vpack.c.b16 %v4291_v34, %v4289_v54  ;;  %v9705_v56 = vpack.c.b16 %v4292_v59, %v4290_v10  ;;  %vm2847_vm14 = vcmp.eq.f32.partialorder %v9219_v37, 3.0  ;;  %vm2848_vm15 = vcmp.eq.f32.partialorder %v9223_v3, 3.0 }
 0x352   : > { %v4489_v38 = vunpack.c.l.b16 %v3029_v46  ;;  %v4490_v58 = vunpack.c.h.b16 %v3029_v46  ;;  %v6747_v0 = vsel %vm2845_vm7, 1.0, %v11832_v28  ;;  %v4491_v51 = vunpack.c.l.b16 %v3030_v1 }
 0x353   : > { %12278 = vst [vmem:[#allocation151_spill] sm:$0xff] %v9703_v24  ;;  %5337 = vmatpush.bf16.msrb.mxu0 %v9703_v24  ;;  %5363 = vmatpush.bf16.msrb.mxu2 %v9705_v56  ;;  %v4492_v61 = vunpack.c.h.b16 %v3030_v1  ;;  %v6748_v54 = vsel %vm2846_vm13, 1.0, %v11832_v28  ;;  %v6749_v10 = vsel %vm2847_vm14, 1.0, %v11832_v28  ;;  %v6750_v34 = vsel %vm2848_vm15, 1.0, %v11832_v28 }
 0x354   : > { %12279 = vst [vmem:[#allocation152_spill] sm:$0xff] %v9705_v56  ;;  %v3023_v59 = vpack.c.bf16 %v6748_v54, %v6747_v0  ;;  %vm2853_vm4 = vcmp.eq.f32.partialorder %v12213_v25, 3.0  ;;  %vm2854_vm5 = vcmp.eq.f32.partialorder %v12214_v57, 3.0  ;;  %v9717_v17 = vpack.c.b16 %v4491_v51, %v4489_v38 }
 0x355   : > { %v9719_v44 = vpack.c.b16 %v4492_v61, %v4490_v58  ;;  %v3024_v46 = vpack.c.bf16 %v6750_v34, %v6749_v10  ;;  %vm2855_vm2 = vcmp.eq.f32.partialorder %v12217_v55, 3.0  ;;  %vm2856_vm6 = vcmp.eq.f32.partialorder %v12218_v20, 3.0  ;;  %v12282_v10 = vld [vmem:[#allocation47_spill] sm:$0xff]  ;;  %v12283_v34 = vld [vmem:[#allocation48_spill] sm:$0xff] }
 0x356   : > { %12280 = vst [vmem:[#allocation153_spill] sm:$0xff] %v9717_v17  ;;  %v4477_v56 = vunpack.c.l.b16 %v3023_v59  ;;  %v4478_v1 = vunpack.c.h.b16 %v3023_v59  ;;  %v6755_v24 = vsel %vm2853_vm4, 1.0, %v11832_v28  ;;  %5364 = vmatmul.bf16.vlgmr.msrb.gmra.mxu2 %v9393_v18  ;;  %5338 = vmatmul.bf16.vlgmr.msrb.gmra.mxu0 %v9393_v18  ;;  %v6756_v58 = vsel %vm2854_vm5, 1.0, %v11832_v28 }
 0x357   : > { %12281 = vst [vmem:[#allocation154_spill] sm:$0xff] %v9719_v44  ;;  %5400 = vmatpush.bf16.msra.mxu1 %v9717_v17  ;;  %5426 = vmatpush.bf16.msra.mxu3 %v9719_v44  ;;  %v4479_v0 = vunpack.c.l.b16 %v3024_v46  ;;  %v4480_v38 = vunpack.c.h.b16 %v3024_v46  ;;  %v6757_v51 = vsel %vm2855_vm2, 1.0, %v11832_v28  ;;  %v6758_v61 = vsel %vm2856_vm6, 1.0, %v11832_v28 }
 0x358   : > { %v3027_v54 = vpack.c.bf16 %v6756_v58, %v6755_v24  ;;  %vm2841_vm11 = vcmp.eq.f32.partialorder %v12282_v10, 3.0  ;;  %vm2842_vm10 = vcmp.eq.f32.partialorder %v12283_v34, 3.0  ;;  %v3028_v17 = vpack.c.bf16 %v6758_v61, %v6757_v51  ;;  %v12286_v51 = vld [vmem:[#allocation36_spill] sm:$0xff]  ;;  %v12287_v61 = vld [vmem:[#allocation37_spill] sm:$0xff] }
 0x359   : > { %v9733_v59 = vpack.c.b16 %v4479_v0, %v4477_v56  ;;  %v9735_v18 = vpack.c.b16 %v4480_v38, %v4478_v1  ;;  %vm2843_vm0 = vcmp.eq.f32.partialorder %v12223_v43, 3.0  ;;  %vm2844_vm1 = vcmp.eq.f32.partialorder %v12224_v26, 3.0 }
 0x35a   : > { %v4485_v44 = vunpack.c.l.b16 %v3027_v54  ;;  %v4486_v46 = vunpack.c.h.b16 %v3027_v54  ;;  %v6743_v20 = vsel %vm2841_vm11, 1.0, %v11832_v28  ;;  %v4487_v24 = vunpack.c.l.b16 %v3028_v17 }
 0x35b   : > { %12284 = vst [vmem:[#allocation47_spill] sm:$0xff] %v9733_v59  ;;  %5382 = vmatpush.bf16.msra.mxu0 %v9733_v59  ;;  %5408 = vmatpush.bf16.msra.mxu2 %v9735_v18  ;;  %v4488_v58 = vunpack.c.h.b16 %v3028_v17  ;;  %v6744_v56 = vsel %vm2842_vm10, 1.0, %v11832_v28  ;;  %v6745_v1 = vsel %vm2843_vm0, 1.0, %v11832_v28  ;;  %v6746_v0 = vsel %vm2844_vm1, 1.0, %v11832_v28 }
 0x35c   : > { %12285 = vst [vmem:[#allocation48_spill] sm:$0xff] %v9735_v18  ;;  %v3021_v38 = vpack.c.bf16 %v6744_v56, %v6743_v20  ;;  %vm2849_vm3 = vcmp.eq.f32.partialorder %v12286_v51, 3.0  ;;  %vm2850_vm12 = vcmp.eq.f32.partialorder %v12287_v61, 3.0  ;;  %v9747_v54 = vpack.c.b16 %v4487_v24, %v4485_v44 }
 0x35d   : > { %v9749_v26 = vpack.c.b16 %v4488_v58, %v4486_v46  ;;  %v3022_v59 = vpack.c.bf16 %v6746_v0, %v6745_v1  ;;  %vm2851_vm8 = vcmp.eq.f32.partialorder %v12229_v4, 3.0  ;;  %vm2852_vm9 = vcmp.eq.f32.partialorder %v12230_v13, 3.0 }
 0x35e   : > { %12288 = vst [vmem:[#allocation36_spill] sm:$0xff] %v9747_v54  ;;  %v4473_v18 = vunpack.c.l.b16 %v3021_v38  ;;  %v4474_v17 = vunpack.c.h.b16 %v3021_v38  ;;  %v6751_v43 = vsel %vm2849_vm3, 1.0, %v11832_v28  ;;  %5401 = vmatpush.bf16.msra.mxu1 %v9747_v54  ;;  %v6752_v44 = vsel %vm2850_vm12, 1.0, %v11832_v28 }
 0x35f   : > { %12289 = vst [vmem:[#allocation37_spill] sm:$0xff] %v9749_v26  ;;  %5427 = vmatpush.bf16.msra.mxu3 %v9749_v26  ;;  %v4475_v20 = vunpack.c.l.b16 %v3022_v59  ;;  %v4476_v56 = vunpack.c.h.b16 %v3022_v59  ;;  %v6753_v46 = vsel %vm2851_vm8, 1.0, %v11832_v28  ;;  %v6754_v24 = vsel %vm2852_vm9, 1.0, %v11832_v28 }
 0x360   : > { %v3025_v58 = vpack.c.bf16 %v6752_v44, %v6751_v43  ;;  %vm2837_vm7 = vcmp.eq.f32.partialorder %v9025_v52, 3.0  ;;  %vm2838_vm13 = vcmp.eq.f32.partialorder %v9029_v23, 3.0  ;;  %v3026_v38 = vpack.c.bf16 %v6754_v24, %v6753_v46 }
 0x361   : > { %v9761_v1 = vpack.c.b16 %v4475_v20, %v4473_v18  ;;  %v9763_v0 = vpack.c.b16 %v4476_v56, %v4474_v17  ;;  %vm2839_vm14 = vcmp.eq.f32.partialorder %v9067_v32, 3.0  ;;  %vm2840_vm15 = vcmp.eq.f32.partialorder %v9071_v30, 3.0 }
 0x362   : > { %v4481_v26 = vunpack.c.l.b16 %v3025_v58  ;;  %v4482_v59 = vunpack.c.h.b16 %v3025_v58  ;;  %v6739_v54 = vsel %vm2837_vm7, 1.0, %v11832_v28  ;;  %v4483_v43 = vunpack.c.l.b16 %v3026_v38 }
 0x363   : > { %12290 = vst [vmem:[#allocation155_spill] sm:$0xff] %v9761_v1  ;;  %5383 = vmatpush.bf16.msra.mxu0 %v9761_v1  ;;  %5409 = vmatpush.bf16.msra.mxu2 %v9763_v0  ;;  %v4484_v44 = vunpack.c.h.b16 %v3026_v38  ;;  %v6740_v18 = vsel %vm2838_vm13, 1.0, %v11832_v28  ;;  %v6741_v17 = vsel %vm2839_vm14, 1.0, %v11832_v28  ;;  %v6742_v20 = vsel %vm2840_vm15, 1.0, %v11832_v28 }
 0x364   : > { %12291 = vst [vmem:[#allocation156_spill] sm:$0xff] %v9763_v0  ;;  %v3019_v56 = vpack.c.bf16 %v6740_v18, %v6739_v54  ;;  %vm3101_vm4 = vcmp.eq.f32.partialorder %v9085_v42, 4.0  ;;  %vm3102_vm5 = vcmp.eq.f32.partialorder %v9089_v41, 4.0  ;;  %v9775_v46 = vpack.c.b16 %v4483_v43, %v4481_v26 }
 0x365   : > { %v9777_v24 = vpack.c.b16 %v4484_v44, %v4482_v59  ;;  %v3020_v58 = vpack.c.bf16 %v6742_v20, %v6741_v17  ;;  %vm3103_vm2 = vcmp.eq.f32.partialorder %v9123_v12, 4.0  ;;  %vm3104_vm6 = vcmp.eq.f32.partialorder %v9127_v16, 4.0 }
 0x366   : > { %12292 = vst [vmem:[#allocation157_spill] sm:$0xff] %v9775_v46  ;;  %v4469_v0 = vunpack.c.l.b16 %v3019_v56  ;;  %v4470_v38 = vunpack.c.h.b16 %v3019_v56  ;;  %v6843_v1 = vsel %vm3101_vm4, 1.0, %v11832_v28  ;;  %5402 = vmatpush.bf16.msra.mxu1 %v9775_v46  ;;  %v6844_v26 = vsel %vm3102_vm5, 1.0, %v11832_v28 }
 0x367   : > { %12293 = vst [vmem:[#allocation158_spill] sm:$0xff] %v9777_v24  ;;  %5428 = vmatpush.bf16.msra.mxu3 %v9777_v24  ;;  %v4471_v54 = vunpack.c.l.b16 %v3020_v58  ;;  %v4472_v18 = vunpack.c.h.b16 %v3020_v58  ;;  %v6845_v59 = vsel %vm3103_vm2, 1.0, %v11832_v28  ;;  %v6846_v43 = vsel %vm3104_vm6, 1.0, %v11832_v28 }
 0x368   : > { %v3263_v44 = vpack.c.bf16 %v6844_v26, %v6843_v1  ;;  %vm2833_vm11 = vcmp.eq.f32.partialorder %v8943_v19, 3.0  ;;  %vm2834_vm10 = vcmp.eq.f32.partialorder %v8947_v5, 3.0  ;;  %v3264_v56 = vpack.c.bf16 %v6846_v43, %v6845_v59 }
 0x369   : > { %v9789_v17 = vpack.c.b16 %v4471_v54, %v4469_v0  ;;  %v9791_v20 = vpack.c.b16 %v4472_v18, %v4470_v38  ;;  %vm2835_vm0 = vcmp.eq.f32.partialorder %v8985_v31, 3.0  ;;  %vm2836_vm1 = vcmp.eq.f32.partialorder %v8989_v36, 3.0  ;;  %5403 = vmatmul.bf16.vlgmr.msra.gmra.mxu1 %v9326_v2 }
 0x36a   : > { %v4669_v24 = vunpack.c.l.b16 %v3263_v44  ;;  %v4670_v58 = vunpack.c.h.b16 %v3263_v44  ;;  %v6735_v46 = vsel %vm2833_vm11, 1.0, %v11832_v28  ;;  %5429 = vmatmul.bf16.vlgmr.msra.gmra.mxu3 %v9326_v2  ;;  %v4671_v1 = vunpack.c.l.b16 %v3264_v56 }
 0x36b   : > { %12294 = vst [vmem:[#allocation159_spill] sm:$0xff] %v9789_v17  ;;  %5384 = vmatpush.bf16.msra.mxu0 %v9789_v17  ;;  %5410 = vmatpush.bf16.msra.mxu2 %v9791_v20  ;;  %v4672_v0 = vunpack.c.h.b16 %v3264_v56  ;;  %v6736_v38 = vsel %vm2834_vm10, 1.0, %v11832_v28  ;;  %v6737_v54 = vsel %vm2835_vm0, 1.0, %v11832_v28  ;;  %v6738_v18 = vsel %vm2836_vm1, 1.0, %v11832_v28 }
 0x36c   : > { %12295 = vst [vmem:[#allocation160_spill] sm:$0xff] %v9791_v20  ;;  %v3017_v26 = vpack.c.bf16 %v6736_v38, %v6735_v46  ;;  %vm3097_vm3 = vcmp.eq.f32.partialorder %v9003_v50, 4.0  ;;  %vm3098_vm12 = vcmp.eq.f32.partialorder %v9007_v63, 4.0  ;;  %v9805_v59 = vpack.c.b16 %v4671_v1, %v4669_v24 }
 0x36d   : > { %v9807_v43 = vpack.c.b16 %v4672_v0, %v4670_v58  ;;  %v3018_v44 = vpack.c.bf16 %v6738_v18, %v6737_v54  ;;  %vm3099_vm8 = vcmp.eq.f32.partialorder %v9043_v33, 4.0  ;;  %vm3100_vm9 = vcmp.eq.f32.partialorder %v9047_v29, 4.0 }
 0x36e   : > { %12296 = vst [vmem:[#allocation161_spill] sm:$0xff] %v9805_v59  ;;  %v4465_v20 = vunpack.c.l.b16 %v3017_v26  ;;  %v4466_v56 = vunpack.c.h.b16 %v3017_v26  ;;  %v6839_v17 = vsel %vm3097_vm3, 1.0, %v11832_v28  ;;  %5447 = vmatpush.bf16.msrb.mxu1 %v9805_v59  ;;  %v6840_v24 = vsel %vm3098_vm12, 1.0, %v11832_v28 }
 0x36f   : > { %12297 = vst [vmem:[#allocation162_spill] sm:$0xff] %v9807_v43  ;;  %5473 = vmatpush.bf16.msrb.mxu3 %v9807_v43  ;;  %v4467_v46 = vunpack.c.l.b16 %v3018_v44  ;;  %v4468_v38 = vunpack.c.h.b16 %v3018_v44  ;;  %v6841_v58 = vsel %vm3099_vm8, 1.0, %v11832_v28  ;;  %v6842_v1 = vsel %vm3100_vm9, 1.0, %v11832_v28 }
 0x370   : > { %v3261_v0 = vpack.c.bf16 %v6840_v24, %v6839_v17  ;;  %vm2829_vm7 = vcmp.eq.f32.partialorder %v8861_v48, 3.0  ;;  %vm2830_vm13 = vcmp.eq.f32.partialorder %v8865_v21, 3.0  ;;  %v3262_v26 = vpack.c.bf16 %v6842_v1, %v6841_v58 }
 0x371   : > { %v9819_v54 = vpack.c.b16 %v4467_v46, %v4465_v20  ;;  %v9821_v18 = vpack.c.b16 %v4468_v38, %v4466_v56  ;;  %vm2831_vm14 = vcmp.eq.f32.partialorder %v8903_v22, 3.0  ;;  %vm2832_vm15 = vcmp.eq.f32.partialorder %v8907_v62, 3.0 }
 0x372   : > { %v4665_v43 = vunpack.c.l.b16 %v3261_v0  ;;  %v4666_v44 = vunpack.c.h.b16 %v3261_v0  ;;  %v6731_v59 = vsel %vm2829_vm7, 1.0, %v11832_v28  ;;  %v4667_v17 = vunpack.c.l.b16 %v3262_v26 }
 0x373   : > { %12298 = vst [vmem:[#allocation163_spill] sm:$0xff] %v9819_v54  ;;  %5385 = vmatpush.bf16.msra.mxu0 %v9819_v54  ;;  %5411 = vmatpush.bf16.msra.mxu2 %v9821_v18  ;;  %v4668_v24 = vunpack.c.h.b16 %v3262_v26  ;;  %v6732_v20 = vsel %vm2830_vm13, 1.0, %v11832_v28  ;;  %v6733_v56 = vsel %vm2831_vm14, 1.0, %v11832_v28  ;;  %v6734_v46 = vsel %vm2832_vm15, 1.0, %v11832_v28 }
 0x374   : > { %12299 = vst [vmem:[#allocation164_spill] sm:$0xff] %v9821_v18  ;;  %v3015_v38 = vpack.c.bf16 %v6732_v20, %v6731_v59  ;;  %vm3093_vm4 = vcmp.eq.f32.partialorder %v12241_v39, 4.0  ;;  %vm3094_vm5 = vcmp.eq.f32.partialorder %v12242_v49, 4.0  ;;  %v9833_v58 = vpack.c.b16 %v4667_v17, %v4665_v43 }
 0x375   : > { %v9835_v1 = vpack.c.b16 %v4668_v24, %v4666_v44  ;;  %v3016_v0 = vpack.c.bf16 %v6734_v46, %v6733_v56  ;;  %vm3095_vm2 = vcmp.eq.f32.partialorder %v12245_v60, 4.0  ;;  %vm3096_vm6 = vcmp.eq.f32.partialorder %v12246_v45, 4.0  ;;  %v12302_v56 = vld [vmem:[#allocation86_spill] sm:$0xff]  ;;  %v12305_v45 = vld [vmem:[#allocation67_spill] sm:$0xff]  ;;  %v12306_v60 = vld [vmem:[#allocation68_spill] sm:$0xff] }
 0x376   : > { %12300 = vst [vmem:[#allocation165_spill] sm:$0xff] %v9833_v58  ;;  %v4461_v18 = vunpack.c.l.b16 %v3015_v38  ;;  %v4462_v26 = vunpack.c.h.b16 %v3015_v38  ;;  %v6835_v54 = vsel %vm3093_vm4, 1.0, %v11832_v28  ;;  %5448 = vmatpush.bf16.msrb.mxu1 %v9833_v58  ;;  %v6836_v43 = vsel %vm3094_vm5, 1.0, %v11832_v28 }
 0x377   : > { %12301 = vst [vmem:[#allocation166_spill] sm:$0xff] %v9835_v1  ;;  %5474 = vmatpush.bf16.msrb.mxu3 %v9835_v1  ;;  %v4463_v59 = vunpack.c.l.b16 %v3016_v0  ;;  %v4464_v20 = vunpack.c.h.b16 %v3016_v0  ;;  %v6837_v44 = vsel %vm3095_vm2, 1.0, %v11832_v28  ;;  %v6838_v17 = vsel %vm3096_vm6, 1.0, %v11832_v28 }
 0x378   : > { %v3259_v24 = vpack.c.bf16 %v6836_v43, %v6835_v54  ;;  %vm2825_vm11 = vcmp.eq.f32.partialorder %v12247_v15, 3.0  ;;  %vm2826_vm10 = vcmp.eq.f32.partialorder %v12302_v56, 3.0  ;;  %v3260_v58 = vpack.c.bf16 %v6838_v17, %v6837_v44  ;;  %v12307_v44 = vld [vmem:[#allocation52_spill] sm:$0xff] }
 0x379   : > { %v9847_v46 = vpack.c.b16 %v4463_v59, %v4461_v18  ;;  %v9849_v38 = vpack.c.b16 %v4464_v20, %v4462_v26  ;;  %vm2827_vm0 = vcmp.eq.f32.partialorder %v12305_v45, 3.0  ;;  %vm2828_vm1 = vcmp.eq.f32.partialorder %v12306_v60, 3.0  ;;  %v12310_v60 = vld [vmem:[#allocation55_spill] sm:$0xff]  ;;  %v12311_v45 = vld [vmem:[#allocation56_spill] sm:$0xff] }
 0x37a   : > { %v4661_v1 = vunpack.c.l.b16 %v3259_v24  ;;  %v4662_v0 = vunpack.c.h.b16 %v3259_v24  ;;  %v6727_v49 = vsel %vm2825_vm11, 1.0, %v11832_v28  ;;  %v4663_v54 = vunpack.c.l.b16 %v3260_v58 }
 0x37b   : > { %12303 = vst [vmem:[#allocation167_spill] sm:$0xff] %v9847_v46  ;;  %5386 = vmatpush.bf16.msra.mxu0 %v9847_v46  ;;  %5412 = vmatpush.bf16.msra.mxu2 %v9849_v38  ;;  %v4664_v43 = vunpack.c.h.b16 %v3260_v58  ;;  %v6728_v18 = vsel %vm2826_vm10, 1.0, %v11832_v28  ;;  %v6729_v26 = vsel %vm2827_vm0, 1.0, %v11832_v28  ;;  %v6730_v59 = vsel %vm2828_vm1, 1.0, %v11832_v28 }
 0x37c   : > { %12304 = vst [vmem:[#allocation168_spill] sm:$0xff] %v9849_v38  ;;  %v3013_v20 = vpack.c.bf16 %v6728_v18, %v6727_v49  ;;  %vm3089_vm3 = vcmp.eq.f32.partialorder %v12253_v53, 4.0  ;;  %vm3090_vm12 = vcmp.eq.f32.partialorder %v12307_v44, 4.0  ;;  %v9861_v17 = vpack.c.b16 %v4663_v54, %v4661_v1  ;;  %v12317_v44 = vld [vmem:[#allocation80_spill] sm:$0xff] }
 0x37d   : > { %v9863_v24 = vpack.c.b16 %v4664_v43, %v4662_v0  ;;  %v3014_v46 = vpack.c.bf16 %v6730_v59, %v6729_v26  ;;  %vm3091_vm8 = vcmp.eq.f32.partialorder %v12310_v60, 4.0  ;;  %vm3092_vm9 = vcmp.eq.f32.partialorder %v12311_v45, 4.0  ;;  %v12312_v26 = vld [vmem:[#allocation15_spill] sm:$0xff]  ;;  %v12313_v59 = vld [vmem:[#allocation16_spill] sm:$0xff] }
 0x37e   : > { %12308 = vst [vmem:[#allocation169_spill] sm:$0xff] %v9861_v17  ;;  %v4457_v38 = vunpack.c.l.b16 %v3013_v20  ;;  %v4458_v58 = vunpack.c.h.b16 %v3013_v20  ;;  %v6831_v56 = vsel %vm3089_vm3, 1.0, %v11832_v28  ;;  %5449 = vmatpush.bf16.msrb.mxu1 %v9861_v17  ;;  %v6832_v1 = vsel %vm3090_vm12, 1.0, %v11832_v28  ;;  %v12316_v60 = vld [vmem:[#allocation79_spill] sm:$0xff] }
 0x37f   : > { %12309 = vst [vmem:[#allocation170_spill] sm:$0xff] %v9863_v24  ;;  %5475 = vmatpush.bf16.msrb.mxu3 %v9863_v24  ;;  %v4459_v49 = vunpack.c.l.b16 %v3014_v46  ;;  %v4460_v18 = vunpack.c.h.b16 %v3014_v46  ;;  %v6833_v0 = vsel %vm3091_vm8, 1.0, %v11832_v28  ;;  %v6834_v54 = vsel %vm3092_vm9, 1.0, %v11832_v28 }
 0x380   : > { %v3257_v43 = vpack.c.bf16 %v6832_v1, %v6831_v56  ;;  %vm2821_vm7 = vcmp.eq.f32.partialorder %v12312_v26, 3.0  ;;  %vm2822_vm13 = vcmp.eq.f32.partialorder %v12313_v59, 3.0  ;;  %v3258_v17 = vpack.c.bf16 %v6834_v54, %v6833_v0  ;;  %v12318_v0 = vld [vmem:[#allocation84_spill] sm:$0xff] }
 0x381   : > { %v9875_v20 = vpack.c.b16 %v4459_v49, %v4457_v38  ;;  %v9877_v45 = vpack.c.b16 %v4460_v18, %v4458_v58  ;;  %vm2823_vm14 = vcmp.eq.f32.partialorder %v12316_v60, 3.0  ;;  %vm2824_vm15 = vcmp.eq.f32.partialorder %v12317_v44, 3.0  ;;  %v12321_v44 = vld [vmem:[#allocation64_spill] sm:$0xff]  ;;  %v12322_v60 = vld [vmem:[#allocation22_spill] sm:$0xff] }
 0x382   : > { %v4657_v24 = vunpack.c.l.b16 %v3257_v43  ;;  %v4658_v46 = vunpack.c.h.b16 %v3257_v43  ;;  %v6723_v53 = vsel %vm2821_vm7, 1.0, %v11832_v28  ;;  %v4659_v56 = vunpack.c.l.b16 %v3258_v17 }
 0x383   : > { %12314 = vst [vmem:[#allocation15_spill] sm:$0xff] %v9875_v20  ;;  %5387 = vmatpush.bf16.msra.mxu0 %v9875_v20  ;;  %5413 = vmatpush.bf16.msra.mxu2 %v9877_v45  ;;  %v4660_v1 = vunpack.c.h.b16 %v3258_v17  ;;  %v6724_v38 = vsel %vm2822_vm13, 1.0, %v11832_v28  ;;  %v6725_v58 = vsel %vm2823_vm14, 1.0, %v11832_v28  ;;  %v6726_v49 = vsel %vm2824_vm15, 1.0, %v11832_v28 }
 0x384   : > { %12315 = vst [vmem:[#allocation171_spill] sm:$0xff] %v9877_v45  ;;  %v3011_v18 = vpack.c.bf16 %v6724_v38, %v6723_v53  ;;  %vm3085_vm4 = vcmp.eq.f32.partialorder %v12264_v35, 4.0  ;;  %vm3086_vm5 = vcmp.eq.f32.partialorder %v12318_v0, 4.0  ;;  %v9889_v54 = vpack.c.b16 %v4659_v56, %v4657_v24 }
 0x385   : > { %v9891_v43 = vpack.c.b16 %v4660_v1, %v4658_v46  ;;  %v3012_v20 = vpack.c.bf16 %v6726_v49, %v6725_v58  ;;  %vm3087_vm2 = vcmp.eq.f32.partialorder %v12321_v44, 4.0  ;;  %vm3088_vm6 = vcmp.eq.f32.partialorder %v12322_v60, 4.0 }
 0x386   : > { %12319 = vst [vmem:[#allocation84_spill] sm:$0xff] %v9889_v54  ;;  %v4453_v45 = vunpack.c.l.b16 %v3011_v18  ;;  %v4454_v17 = vunpack.c.h.b16 %v3011_v18  ;;  %v6827_v59 = vsel %vm3085_vm4, 1.0, %v11832_v28  ;;  %5450 = vmatpush.bf16.msrb.mxu1 %v9889_v54  ;;  %v6828_v24 = vsel %vm3086_vm5, 1.0, %v11832_v28  ;;  %v12325_v54 = vld [vmem:[#allocation50_spill] sm:$0xff] }
 0x387   : > { %12320 = vst [vmem:[#allocation172_spill] sm:$0xff] %v9891_v43  ;;  %5476 = vmatpush.bf16.msrb.mxu3 %v9891_v43  ;;  %v4455_v53 = vunpack.c.l.b16 %v3012_v20  ;;  %v4456_v38 = vunpack.c.h.b16 %v3012_v20  ;;  %v6829_v46 = vsel %vm3087_vm2, 1.0, %v11832_v28  ;;  %v6830_v56 = vsel %vm3088_vm6, 1.0, %v11832_v28 }
 0x388   : > { %v3255_v1 = vpack.c.bf16 %v6828_v24, %v6827_v59  ;;  %vm2817_vm11 = vcmp.eq.f32.partialorder %v12270_v6, 3.0  ;;  %vm2818_vm10 = vcmp.eq.f32.partialorder %v12271_v14, 3.0  ;;  %v3256_v18 = vpack.c.bf16 %v6830_v56, %v6829_v46 }
 0x389   : > { %v9903_v58 = vpack.c.b16 %v4455_v53, %v4453_v45  ;;  %v9905_v49 = vpack.c.b16 %v4456_v38, %v4454_v17  ;;  %vm2819_vm0 = vcmp.eq.f32.partialorder %v12201_v40, 3.0  ;;  %vm2820_vm1 = vcmp.eq.f32.partialorder %v12325_v54, 3.0 }
 0x38a   : > { %v4653_v43 = vunpack.c.l.b16 %v3255_v1  ;;  %v4654_v20 = vunpack.c.h.b16 %v3255_v1  ;;  %v6719_v60 = vsel %vm2817_vm11, 1.0, %v11832_v28  ;;  %v4655_v59 = vunpack.c.l.b16 %v3256_v18 }
 0x38b   : > { %12323 = vst [vmem:[#allocation64_spill] sm:$0xff] %v9903_v58  ;;  %5388 = vmatpush.bf16.msra.mxu0 %v9903_v58  ;;  %5414 = vmatpush.bf16.msra.mxu2 %v9905_v49  ;;  %v4656_v24 = vunpack.c.h.b16 %v3256_v18  ;;  %v6720_v45 = vsel %vm2818_vm10, 1.0, %v11832_v28  ;;  %v6721_v17 = vsel %vm2819_vm0, 1.0, %v11832_v28  ;;  %v6722_v53 = vsel %vm2820_vm1, 1.0, %v11832_v28 }
 0x38c   : > { %12324 = vst [vmem:[#allocation173_spill] sm:$0xff] %v9905_v49  ;;  %v3009_v38 = vpack.c.bf16 %v6720_v45, %v6719_v60  ;;  %vm3081_vm3 = vcmp.eq.f32.partialorder %v12205_v47, 4.0  ;;  %vm3082_vm12 = vcmp.eq.f32.partialorder %v12275_v7, 4.0  ;;  %v9917_v46 = vpack.c.b16 %v4655_v59, %v4653_v43 }
 0x38d   : > { %v9919_v56 = vpack.c.b16 %v4656_v24, %v4654_v20  ;;  %v3010_v1 = vpack.c.bf16 %v6722_v53, %v6721_v17  ;;  %vm3083_vm8 = vcmp.eq.f32.partialorder %v12209_v9, 4.0  ;;  %vm3084_vm9 = vcmp.eq.f32.partialorder %v12210_v8, 4.0 }
 0x38e   : > { %12326 = vst [vmem:[#allocation174_spill] sm:$0xff] %v9917_v46  ;;  %v4449_v49 = vunpack.c.l.b16 %v3009_v38  ;;  %v4450_v18 = vunpack.c.h.b16 %v3009_v38  ;;  %v6823_v58 = vsel %vm3081_vm3, 1.0, %v11832_v28  ;;  %5451 = vmatpush.bf16.msrb.mxu1 %v9917_v46  ;;  %v6824_v43 = vsel %vm3082_vm12, 1.0, %v11832_v28 }
 0x38f   : > { %12327 = vst [vmem:[#allocation175_spill] sm:$0xff] %v9919_v56  ;;  %5477 = vmatpush.bf16.msrb.mxu3 %v9919_v56  ;;  %v4451_v60 = vunpack.c.l.b16 %v3010_v1  ;;  %v4452_v45 = vunpack.c.h.b16 %v3010_v1  ;;  %v6825_v20 = vsel %vm3083_vm8, 1.0, %v11832_v28  ;;  %v6826_v59 = vsel %vm3084_vm9, 1.0, %v11832_v28 }
 0x390   : > { %v3253_v24 = vpack.c.bf16 %v6824_v43, %v6823_v58  ;;  %vm3069_vm7 = vcmp.eq.f32.partialorder %v9181_v11, 4.0  ;;  %vm3070_vm13 = vcmp.eq.f32.partialorder %v9185_v27, 4.0  ;;  %v3254_v38 = vpack.c.bf16 %v6826_v59, %v6825_v20 }
 0x391   : > { %v9931_v17 = vpack.c.b16 %v4451_v60, %v4449_v49  ;;  %v9933_v53 = vpack.c.b16 %v4452_v45, %v4450_v18  ;;  %vm3071_vm14 = vcmp.eq.f32.partialorder %v9219_v37, 4.0  ;;  %vm3072_vm15 = vcmp.eq.f32.partialorder %v9223_v3, 4.0  ;;  %v12333_v37 = vld [vmem:[#allocation120_spill] sm:$0xff] }
 0x392   : > { %v4649_v56 = vunpack.c.l.b16 %v3253_v24  ;;  %v4650_v1 = vunpack.c.h.b16 %v3253_v24  ;;  %v6811_v46 = vsel %vm3069_vm7, 1.0, %v11832_v28  ;;  %v4651_v58 = vunpack.c.l.b16 %v3254_v38 }
 0x393   : > { %12328 = vst [vmem:[#allocation176_spill] sm:$0xff] %v9931_v17  ;;  %5389 = vmatpush.bf16.msra.mxu0 %v9931_v17  ;;  %5415 = vmatpush.bf16.msra.mxu2 %v9933_v53  ;;  %v4652_v43 = vunpack.c.h.b16 %v3254_v38  ;;  %v6812_v49 = vsel %vm3070_vm13, 1.0, %v11832_v28  ;;  %v6813_v18 = vsel %vm3071_vm14, 1.0, %v11832_v28  ;;  %v6814_v60 = vsel %vm3072_vm15, 1.0, %v11832_v28  ;;  %v12332_v17 = vld [vmem:[#allocation60_spill] sm:$0xff] }
 0x394   : > { %12329 = vst [vmem:[#allocation177_spill] sm:$0xff] %v9933_v53  ;;  %v3247_v45 = vpack.c.bf16 %v6812_v49, %v6811_v46  ;;  %vm3077_vm4 = vcmp.eq.f32.partialorder %v12213_v25, 4.0  ;;  %vm3078_vm5 = vcmp.eq.f32.partialorder %v12214_v57, 4.0  ;;  %v9945_v20 = vpack.c.b16 %v4651_v58, %v4649_v56 }
 0x395   : > { %v9947_v59 = vpack.c.b16 %v4652_v43, %v4650_v1  ;;  %v3248_v24 = vpack.c.bf16 %v6814_v60, %v6813_v18  ;;  %vm3079_vm2 = vcmp.eq.f32.partialorder %v12217_v55, 4.0  ;;  %vm3080_vm6 = vcmp.eq.f32.partialorder %v12332_v17, 4.0 }
 0x396   : > { %12330 = vst [vmem:[#allocation178_spill] sm:$0xff] %v9945_v20  ;;  %v4637_v53 = vunpack.c.l.b16 %v3247_v45  ;;  %v4638_v38 = vunpack.c.h.b16 %v3247_v45  ;;  %v6819_v3 = vsel %vm3077_vm4, 1.0, %v11832_v28  ;;  %5416 = vmatmul.bf16.vlgmr.msra.gmra.mxu2 %v12333_v37  ;;  %5390 = vmatmul.bf16.vlgmr.msra.gmra.mxu0 %v12333_v37  ;;  %v6820_v1 = vsel %vm3078_vm5, 1.0, %v11832_v28  ;;  %v12337_v37 = vld [vmem:[#allocation26_spill] sm:$0xff] }
 0x397   : > { %12331 = vst [vmem:[#allocation179_spill] sm:$0xff] %v9947_v59  ;;  %5452 = vmatpush.bf16.msrb.mxu1 %v9945_v20  ;;  %5478 = vmatpush.bf16.msrb.mxu3 %v9947_v59  ;;  %v4639_v46 = vunpack.c.l.b16 %v3248_v24  ;;  %v4640_v56 = vunpack.c.h.b16 %v3248_v24  ;;  %v6821_v58 = vsel %vm3079_vm2, 1.0, %v11832_v28  ;;  %v6822_v43 = vsel %vm3080_vm6, 1.0, %v11832_v28  ;;  %v12336_v20 = vld [vmem:[#allocation10_spill] sm:$0xff] }
 0x398   : > { %v3251_v49 = vpack.c.bf16 %v6820_v1, %v6819_v3  ;;  %vm3065_vm11 = vcmp.eq.f32.partialorder %v12282_v10, 4.0  ;;  %vm3066_vm10 = vcmp.eq.f32.partialorder %v12283_v34, 4.0  ;;  %v3252_v45 = vpack.c.bf16 %v6822_v43, %v6821_v58 }
 0x399   : > { %v9961_v18 = vpack.c.b16 %v4639_v46, %v4637_v53  ;;  %v9963_v60 = vpack.c.b16 %v4640_v56, %v4638_v38  ;;  %vm3067_vm0 = vcmp.eq.f32.partialorder %v12336_v20, 4.0  ;;  %vm3068_vm1 = vcmp.eq.f32.partialorder %v12337_v37, 4.0 }
 0x39a   : > { %v4645_v59 = vunpack.c.l.b16 %v3251_v49  ;;  %v4646_v24 = vunpack.c.h.b16 %v3251_v49  ;;  %v6807_v17 = vsel %vm3065_vm11, 1.0, %v11832_v28  ;;  %v4647_v3 = vunpack.c.l.b16 %v3252_v45 }
 0x39b   : > { %12334 = vst [vmem:[#allocation180_spill] sm:$0xff] %v9961_v18  ;;  %5434 = vmatpush.bf16.msrb.mxu0 %v9961_v18  ;;  %5460 = vmatpush.bf16.msrb.mxu2 %v9963_v60  ;;  %v4648_v1 = vunpack.c.h.b16 %v3252_v45  ;;  %v6808_v53 = vsel %vm3066_vm10, 1.0, %v11832_v28  ;;  %v6809_v38 = vsel %vm3067_vm0, 1.0, %v11832_v28  ;;  %v6810_v46 = vsel %vm3068_vm1, 1.0, %v11832_v28 }
 0x39c   : > { %12335 = vst [vmem:[#allocation181_spill] sm:$0xff] %v9963_v60  ;;  %v3245_v56 = vpack.c.bf16 %v6808_v53, %v6807_v17  ;;  %vm3073_vm3 = vcmp.eq.f32.partialorder %v12286_v51, 4.0  ;;  %vm3074_vm12 = vcmp.eq.f32.partialorder %v12287_v61, 4.0  ;;  %v9975_v58 = vpack.c.b16 %v4647_v3, %v4645_v59 }
 0x39d   : > { %v9977_v43 = vpack.c.b16 %v4648_v1, %v4646_v24  ;;  %v3246_v49 = vpack.c.bf16 %v6810_v46, %v6809_v38  ;;  %vm3075_vm8 = vcmp.eq.f32.partialorder %v12229_v4, 4.0  ;;  %vm3076_vm9 = vcmp.eq.f32.partialorder %v12230_v13, 4.0 }
 0x39e   : > { %12338 = vst [vmem:[#allocation10_spill] sm:$0xff] %v9975_v58  ;;  %v4633_v60 = vunpack.c.l.b16 %v3245_v56  ;;  %v4634_v45 = vunpack.c.h.b16 %v3245_v56  ;;  %v6815_v18 = vsel %vm3073_vm3, 1.0, %v11832_v28  ;;  %5453 = vmatpush.bf16.msrb.mxu1 %v9975_v58  ;;  %v6816_v59 = vsel %vm3074_vm12, 1.0, %v11832_v28 }
 0x39f   : > { %12339 = vst [vmem:[#allocation26_spill] sm:$0xff] %v9977_v43  ;;  %5479 = vmatpush.bf16.msrb.mxu3 %v9977_v43  ;;  %v4635_v17 = vunpack.c.l.b16 %v3246_v49  ;;  %v4636_v53 = vunpack.c.h.b16 %v3246_v49  ;;  %v6817_v24 = vsel %vm3075_vm8, 1.0, %v11832_v28  ;;  %v6818_v3 = vsel %vm3076_vm9, 1.0, %v11832_v28 }
 0x3a0   : > { %v3249_v1 = vpack.c.bf16 %v6816_v59, %v6815_v18  ;;  %vm3061_vm7 = vcmp.eq.f32.partialorder %v9025_v52, 4.0  ;;  %vm3062_vm13 = vcmp.eq.f32.partialorder %v9029_v23, 4.0  ;;  %v3250_v56 = vpack.c.bf16 %v6818_v3, %v6817_v24 }
 0x3a1   : > { %v9989_v38 = vpack.c.b16 %v4635_v17, %v4633_v60  ;;  %v9991_v46 = vpack.c.b16 %v4636_v53, %v4634_v45  ;;  %vm3063_vm14 = vcmp.eq.f32.partialorder %v9067_v32, 4.0  ;;  %vm3064_vm15 = vcmp.eq.f32.partialorder %v9071_v30, 4.0 }
 0x3a2   : > { %v4641_v43 = vunpack.c.l.b16 %v3249_v1  ;;  %v4642_v49 = vunpack.c.h.b16 %v3249_v1  ;;  %v6803_v58 = vsel %vm3061_vm7, 1.0, %v11832_v28  ;;  %v4643_v18 = vunpack.c.l.b16 %v3250_v56 }
 0x3a3   : > { %12340 = vst [vmem:[#allocation182_spill] sm:$0xff] %v9989_v38  ;;  %5435 = vmatpush.bf16.msrb.mxu0 %v9989_v38  ;;  %5461 = vmatpush.bf16.msrb.mxu2 %v9991_v46  ;;  %v4644_v59 = vunpack.c.h.b16 %v3250_v56  ;;  %v6804_v60 = vsel %vm3062_vm13, 1.0, %v11832_v28  ;;  %v6805_v45 = vsel %vm3063_vm14, 1.0, %v11832_v28  ;;  %v6806_v17 = vsel %vm3064_vm15, 1.0, %v11832_v28 }
 0x3a4   : > { %12341 = vst [vmem:[#allocation183_spill] sm:$0xff] %v9991_v46  ;;  %v3243_v53 = vpack.c.bf16 %v6804_v60, %v6803_v58  ;;  %vm3325_vm4 = vcmp.eq.f32.partialorder %v9085_v42, 5.0  ;;  %vm3326_vm5 = vcmp.eq.f32.partialorder %v9089_v41, 5.0  ;;  %v10003_v24 = vpack.c.b16 %v4643_v18, %v4641_v43 }
 0x3a5   : > { %v10005_v3 = vpack.c.b16 %v4644_v59, %v4642_v49  ;;  %v3244_v1 = vpack.c.bf16 %v6806_v17, %v6805_v45  ;;  %vm3327_vm2 = vcmp.eq.f32.partialorder %v9123_v12, 5.0  ;;  %vm3328_vm6 = vcmp.eq.f32.partialorder %v9127_v16, 5.0 }
 0x3a6   : > { %12342 = vst [vmem:[#allocation184_spill] sm:$0xff] %v10003_v24  ;;  %v4629_v46 = vunpack.c.l.b16 %v3243_v53  ;;  %v4630_v56 = vunpack.c.h.b16 %v3243_v53  ;;  %v6907_v38 = vsel %vm3325_vm4, 1.0, %v11832_v28  ;;  %5454 = vmatpush.bf16.msrb.mxu1 %v10003_v24  ;;  %v6908_v43 = vsel %vm3326_vm5, 1.0, %v11832_v28 }
 0x3a7   : > { %12343 = vst [vmem:[#allocation185_spill] sm:$0xff] %v10005_v3  ;;  %5480 = vmatpush.bf16.msrb.mxu3 %v10005_v3  ;;  %v4631_v58 = vunpack.c.l.b16 %v3244_v1  ;;  %v4632_v60 = vunpack.c.h.b16 %v3244_v1  ;;  %v6909_v49 = vsel %vm3327_vm2, 1.0, %v11832_v28  ;;  %v6910_v18 = vsel %vm3328_vm6, 1.0, %v11832_v28 }
 0x3a8   : > { %v3487_v59 = vpack.c.bf16 %v6908_v43, %v6907_v38  ;;  %vm3057_vm11 = vcmp.eq.f32.partialorder %v8943_v19, 4.0  ;;  %vm3058_vm10 = vcmp.eq.f32.partialorder %v8947_v5, 4.0  ;;  %v3488_v53 = vpack.c.bf16 %v6910_v18, %v6909_v49 }
 0x3a9   : > { %v10017_v45 = vpack.c.b16 %v4631_v58, %v4629_v46  ;;  %v10019_v17 = vpack.c.b16 %v4632_v60, %v4630_v56  ;;  %vm3059_vm0 = vcmp.eq.f32.partialorder %v8985_v31, 4.0  ;;  %vm3060_vm1 = vcmp.eq.f32.partialorder %v8989_v36, 4.0  ;;  %5455 = vmatmul.bf16.vlgmr.msrb.gmra.mxu1 %v9326_v2 }
 0x3aa   : > { %v4829_v3 = vunpack.c.l.b16 %v3487_v59  ;;  %v4830_v1 = vunpack.c.h.b16 %v3487_v59  ;;  %v6799_v24 = vsel %vm3057_vm11, 1.0, %v11832_v28  ;;  %5481 = vmatmul.bf16.vlgmr.msrb.gmra.mxu3 %v9326_v2  ;;  %v4831_v38 = vunpack.c.l.b16 %v3488_v53 }
 0x3ab   : > { %12344 = vst [vmem:[#allocation186_spill] sm:$0xff] %v10017_v45  ;;  %5436 = vmatpush.bf16.msrb.mxu0 %v10017_v45  ;;  %5462 = vmatpush.bf16.msrb.mxu2 %v10019_v17  ;;  %v4832_v46 = vunpack.c.h.b16 %v3488_v53  ;;  %v6800_v56 = vsel %vm3058_vm10, 1.0, %v11832_v28  ;;  %v6801_v58 = vsel %vm3059_vm0, 1.0, %v11832_v28  ;;  %v6802_v60 = vsel %vm3060_vm1, 1.0, %v11832_v28 }
 0x3ac   : > { %12345 = vst [vmem:[#allocation187_spill] sm:$0xff] %v10019_v17  ;;  %v3241_v43 = vpack.c.bf16 %v6800_v56, %v6799_v24  ;;  %vm3321_vm3 = vcmp.eq.f32.partialorder %v9003_v50, 5.0  ;;  %vm3322_vm12 = vcmp.eq.f32.partialorder %v9007_v63, 5.0  ;;  %v10033_v49 = vpack.c.b16 %v4831_v38, %v4829_v3 }
 0x3ad   : > { %v10035_v18 = vpack.c.b16 %v4832_v46, %v4830_v1  ;;  %v3242_v59 = vpack.c.bf16 %v6802_v60, %v6801_v58  ;;  %vm3323_vm8 = vcmp.eq.f32.partialorder %v9043_v33, 5.0  ;;  %vm3324_vm9 = vcmp.eq.f32.partialorder %v9047_v29, 5.0 }
 0x3ae   : > { %12346 = vst [vmem:[#allocation188_spill] sm:$0xff] %v10033_v49  ;;  %v4625_v17 = vunpack.c.l.b16 %v3241_v43  ;;  %v4626_v53 = vunpack.c.h.b16 %v3241_v43  ;;  %v6903_v45 = vsel %vm3321_vm3, 1.0, %v11832_v28  ;;  %5499 = vmatpush.bf16.msra.mxu1 %v10033_v49  ;;  %v6904_v3 = vsel %vm3322_vm12, 1.0, %v11832_v28 }
 0x3af   : > { %12347 = vst [vmem:[#allocation189_spill] sm:$0xff] %v10035_v18  ;;  %5525 = vmatpush.bf16.msra.mxu3 %v10035_v18  ;;  %v4627_v24 = vunpack.c.l.b16 %v3242_v59  ;;  %v4628_v56 = vunpack.c.h.b16 %v3242_v59  ;;  %v6905_v1 = vsel %vm3323_vm8, 1.0, %v11832_v28  ;;  %v6906_v38 = vsel %vm3324_vm9, 1.0, %v11832_v28 }
 0x3b0   : > { %v3485_v46 = vpack.c.bf16 %v6904_v3, %v6903_v45  ;;  %vm3053_vm7 = vcmp.eq.f32.partialorder %v8861_v48, 4.0  ;;  %vm3054_vm13 = vcmp.eq.f32.partialorder %v8865_v21, 4.0  ;;  %v3486_v43 = vpack.c.bf16 %v6906_v38, %v6905_v1  ;;  %v12350_v1 = vld [vmem:[#allocation31_spill] sm:$0xff] }
 0x3b1   : > { %v10047_v58 = vpack.c.b16 %v4627_v24, %v4625_v17  ;;  %v10049_v60 = vpack.c.b16 %v4628_v56, %v4626_v53  ;;  %vm3055_vm14 = vcmp.eq.f32.partialorder %v8903_v22, 4.0  ;;  %vm3056_vm15 = vcmp.eq.f32.partialorder %v8907_v62, 4.0  ;;  %v12353_v62 = vld [vmem:[#allocation62_spill] sm:$0xff]  ;;  %v12354_v22 = vld [vmem:[#allocation28_spill] sm:$0xff] }
 0x3b2   : > { %v4825_v18 = vunpack.c.l.b16 %v3485_v46  ;;  %v4826_v59 = vunpack.c.h.b16 %v3485_v46  ;;  %v6795_v49 = vsel %vm3053_vm7, 1.0, %v11832_v28  ;;  %v4827_v45 = vunpack.c.l.b16 %v3486_v43 }
 0x3b3   : > { %12348 = vst [vmem:[#allocation190_spill] sm:$0xff] %v10047_v58  ;;  %5437 = vmatpush.bf16.msrb.mxu0 %v10047_v58  ;;  %5463 = vmatpush.bf16.msrb.mxu2 %v10049_v60  ;;  %v4828_v3 = vunpack.c.h.b16 %v3486_v43  ;;  %v6796_v17 = vsel %vm3054_vm13, 1.0, %v11832_v28  ;;  %v6797_v53 = vsel %vm3055_vm14, 1.0, %v11832_v28  ;;  %v6798_v24 = vsel %vm3056_vm15, 1.0, %v11832_v28 }
 0x3b4   : > { %12349 = vst [vmem:[#allocation191_spill] sm:$0xff] %v10049_v60  ;;  %v3239_v56 = vpack.c.bf16 %v6796_v17, %v6795_v49  ;;  %vm3317_vm4 = vcmp.eq.f32.partialorder %v12241_v39, 5.0  ;;  %vm3318_vm5 = vcmp.eq.f32.partialorder %v12350_v1, 5.0  ;;  %v10061_v38 = vpack.c.b16 %v4827_v45, %v4825_v18 }
 0x3b5   : > { %v10063_v46 = vpack.c.b16 %v4828_v3, %v4826_v59  ;;  %v3240_v58 = vpack.c.bf16 %v6798_v24, %v6797_v53  ;;  %vm3319_vm2 = vcmp.eq.f32.partialorder %v12353_v62, 5.0  ;;  %vm3320_vm6 = vcmp.eq.f32.partialorder %v12354_v22, 5.0  ;;  %v12355_v53 = vld [vmem:[#allocation86_spill] sm:$0xff]  ;;  %v12358_v22 = vld [vmem:[#allocation67_spill] sm:$0xff]  ;;  %v12359_v62 = vld [vmem:[#allocation68_spill] sm:$0xff] }
 0x3b6   : > { %12351 = vst [vmem:[#allocation192_spill] sm:$0xff] %v10061_v38  ;;  %v4621_v60 = vunpack.c.l.b16 %v3239_v56  ;;  %v4622_v43 = vunpack.c.h.b16 %v3239_v56  ;;  %v6899_v21 = vsel %vm3317_vm4, 1.0, %v11832_v28  ;;  %5500 = vmatpush.bf16.msra.mxu1 %v10061_v38  ;;  %v6900_v18 = vsel %vm3318_vm5, 1.0, %v11832_v28 }
 0x3b7   : > { %12352 = vst [vmem:[#allocation193_spill] sm:$0xff] %v10063_v46  ;;  %5526 = vmatpush.bf16.msra.mxu3 %v10063_v46  ;;  %v4623_v49 = vunpack.c.l.b16 %v3240_v58  ;;  %v4624_v17 = vunpack.c.h.b16 %v3240_v58  ;;  %v6901_v59 = vsel %vm3319_vm2, 1.0, %v11832_v28  ;;  %v6902_v45 = vsel %vm3320_vm6, 1.0, %v11832_v28 }
 0x3b8   : > { %v3483_v3 = vpack.c.bf16 %v6900_v18, %v6899_v21  ;;  %vm3049_vm11 = vcmp.eq.f32.partialorder %v12247_v15, 4.0  ;;  %vm3050_vm10 = vcmp.eq.f32.partialorder %v12355_v53, 4.0  ;;  %v3484_v38 = vpack.c.bf16 %v6902_v45, %v6901_v59  ;;  %v12360_v59 = vld [vmem:[#allocation51_spill] sm:$0xff]  ;;  %v12361_v45 = vld [vmem:[#allocation52_spill] sm:$0xff] }
 0x3b9   : > { %v10075_v24 = vpack.c.b16 %v4623_v49, %v4621_v60  ;;  %v10077_v56 = vpack.c.b16 %v4624_v17, %v4622_v43  ;;  %vm3051_vm0 = vcmp.eq.f32.partialorder %v12358_v22, 4.0  ;;  %vm3052_vm1 = vcmp.eq.f32.partialorder %v12359_v62, 4.0  ;;  %v12364_v22 = vld [vmem:[#allocation55_spill] sm:$0xff]  ;;  %v12365_v53 = vld [vmem:[#allocation56_spill] sm:$0xff] }
 0x3ba   : > { %v4821_v46 = vunpack.c.l.b16 %v3483_v3  ;;  %v4822_v58 = vunpack.c.h.b16 %v3483_v3  ;;  %v6791_v1 = vsel %vm3049_vm11, 1.0, %v11832_v28  ;;  %v4823_v21 = vunpack.c.l.b16 %v3484_v38 }
 0x3bb   : > { %12356 = vst [vmem:[#allocation194_spill] sm:$0xff] %v10075_v24  ;;  %5438 = vmatpush.bf16.msrb.mxu0 %v10075_v24  ;;  %5464 = vmatpush.bf16.msrb.mxu2 %v10077_v56  ;;  %v4824_v18 = vunpack.c.h.b16 %v3484_v38  ;;  %v6792_v60 = vsel %vm3050_vm10, 1.0, %v11832_v28  ;;  %v6793_v43 = vsel %vm3051_vm0, 1.0, %v11832_v28  ;;  %v6794_v49 = vsel %vm3052_vm1, 1.0, %v11832_v28 }
 0x3bc   : > { %12357 = vst [vmem:[#allocation195_spill] sm:$0xff] %v10077_v56  ;;  %v3237_v17 = vpack.c.bf16 %v6792_v60, %v6791_v1  ;;  %vm3313_vm3 = vcmp.eq.f32.partialorder %v12360_v59, 5.0  ;;  %vm3314_vm12 = vcmp.eq.f32.partialorder %v12361_v45, 5.0  ;;  %v10089_v3 = vpack.c.b16 %v4823_v21, %v4821_v46 }
 0x3bd   : > { %v10091_v62 = vpack.c.b16 %v4824_v18, %v4822_v58  ;;  %v3238_v24 = vpack.c.bf16 %v6794_v49, %v6793_v43  ;;  %vm3315_vm8 = vcmp.eq.f32.partialorder %v12364_v22, 5.0  ;;  %vm3316_vm9 = vcmp.eq.f32.partialorder %v12365_v53, 5.0  ;;  %v12366_v43 = vld [vmem:[#allocation16_spill] sm:$0xff]  ;;  %v12369_v53 = vld [vmem:[#allocation79_spill] sm:$0xff] }
 0x3be   : > { %12362 = vst [vmem:[#allocation51_spill] sm:$0xff] %v10089_v3  ;;  %v4617_v56 = vunpack.c.l.b16 %v3237_v17  ;;  %v4618_v38 = vunpack.c.h.b16 %v3237_v17  ;;  %v6895_v15 = vsel %vm3313_vm3, 1.0, %v11832_v28  ;;  %5501 = vmatpush.bf16.msra.mxu1 %v10089_v3  ;;  %v6896_v46 = vsel %vm3314_vm12, 1.0, %v11832_v28  ;;  %v12370_v22 = vld [vmem:[#allocation80_spill] sm:$0xff] }
 0x3bf   : > { %12363 = vst [vmem:[#allocation196_spill] sm:$0xff] %v10091_v62  ;;  %5527 = vmatpush.bf16.msra.mxu3 %v10091_v62  ;;  %v4619_v1 = vunpack.c.l.b16 %v3238_v24  ;;  %v4620_v60 = vunpack.c.h.b16 %v3238_v24  ;;  %v6897_v58 = vsel %vm3315_vm8, 1.0, %v11832_v28  ;;  %v6898_v21 = vsel %vm3316_vm9, 1.0, %v11832_v28 }
 0x3c0   : > { %v3481_v18 = vpack.c.bf16 %v6896_v46, %v6895_v15  ;;  %vm3045_vm7 = vcmp.eq.f32.partialorder %v12312_v26, 4.0  ;;  %vm3046_vm13 = vcmp.eq.f32.partialorder %v12366_v43, 4.0  ;;  %v3482_v3 = vpack.c.bf16 %v6898_v21, %v6897_v58 }
 0x3c1   : > { %v10103_v49 = vpack.c.b16 %v4619_v1, %v4617_v56  ;;  %v10105_v17 = vpack.c.b16 %v4620_v60, %v4618_v38  ;;  %vm3047_vm14 = vcmp.eq.f32.partialorder %v12369_v53, 4.0  ;;  %vm3048_vm15 = vcmp.eq.f32.partialorder %v12370_v22, 4.0 }
 0x3c2   : > { %v4817_v62 = vunpack.c.l.b16 %v3481_v18  ;;  %v4818_v24 = vunpack.c.h.b16 %v3481_v18  ;;  %v6787_v45 = vsel %vm3045_vm7, 1.0, %v11832_v28  ;;  %v4819_v15 = vunpack.c.l.b16 %v3482_v3 }
 0x3c3   : > { %12367 = vst [vmem:[#allocation16_spill] sm:$0xff] %v10103_v49  ;;  %5439 = vmatpush.bf16.msrb.mxu0 %v10103_v49  ;;  %5465 = vmatpush.bf16.msrb.mxu2 %v10105_v17  ;;  %v4820_v46 = vunpack.c.h.b16 %v3482_v3  ;;  %v6788_v56 = vsel %vm3046_vm13, 1.0, %v11832_v28  ;;  %v6789_v38 = vsel %vm3047_vm14, 1.0, %v11832_v28  ;;  %v6790_v1 = vsel %vm3048_vm15, 1.0, %v11832_v28  ;;  %v12373_v49 = vld [vmem:[#allocation22_spill] sm:$0xff] }
 0x3c4   : > { %12368 = vst [vmem:[#allocation197_spill] sm:$0xff] %v10105_v17  ;;  %v3235_v60 = vpack.c.bf16 %v6788_v56, %v6787_v45  ;;  %vm3309_vm4 = vcmp.eq.f32.partialorder %v12264_v35, 5.0  ;;  %vm3310_vm5 = vcmp.eq.f32.partialorder %v12318_v0, 5.0  ;;  %v10117_v58 = vpack.c.b16 %v4819_v15, %v4817_v62 }
 0x3c5   : > { %v10119_v21 = vpack.c.b16 %v4820_v46, %v4818_v24  ;;  %v3236_v18 = vpack.c.bf16 %v6790_v1, %v6789_v38  ;;  %vm3311_vm2 = vcmp.eq.f32.partialorder %v12321_v44, 5.0  ;;  %vm3312_vm6 = vcmp.eq.f32.partialorder %v12373_v49, 5.0 }
 0x3c6   : > { %12371 = vst [vmem:[#allocation198_spill] sm:$0xff] %v10117_v58  ;;  %v4613_v17 = vunpack.c.l.b16 %v3235_v60  ;;  %v4614_v3 = vunpack.c.h.b16 %v3235_v60  ;;  %v6891_v22 = vsel %vm3309_vm4, 1.0, %v11832_v28  ;;  %5502 = vmatpush.bf16.msra.mxu1 %v10117_v58  ;;  %v6892_v62 = vsel %vm3310_vm5, 1.0, %v11832_v28 }
 0x3c7   : > { %12372 = vst [vmem:[#allocation199_spill] sm:$0xff] %v10119_v21  ;;  %5528 = vmatpush.bf16.msra.mxu3 %v10119_v21  ;;  %v4615_v45 = vunpack.c.l.b16 %v3236_v18  ;;  %v4616_v56 = vunpack.c.h.b16 %v3236_v18  ;;  %v6893_v24 = vsel %vm3311_vm2, 1.0, %v11832_v28  ;;  %v6894_v15 = vsel %vm3312_vm6, 1.0, %v11832_v28 }
 0x3c8   : > { %v3479_v46 = vpack.c.bf16 %v6892_v62, %v6891_v22  ;;  %vm3041_vm11 = vcmp.eq.f32.partialorder %v12270_v6, 4.0  ;;  %vm3042_vm10 = vcmp.eq.f32.partialorder %v12271_v14, 4.0  ;;  %v3480_v60 = vpack.c.bf16 %v6894_v15, %v6893_v24 }
 0x3c9   : > { %v10131_v38 = vpack.c.b16 %v4615_v45, %v4613_v17  ;;  %v10133_v1 = vpack.c.b16 %v4616_v56, %v4614_v3  ;;  %vm3043_vm0 = vcmp.eq.f32.partialorder %v12201_v40, 4.0  ;;  %vm3044_vm1 = vcmp.eq.f32.partialorder %v12325_v54, 4.0 }
 0x3ca   : > { %v4813_v21 = vunpack.c.l.b16 %v3479_v46  ;;  %v4814_v18 = vunpack.c.h.b16 %v3479_v46  ;;  %v6783_v58 = vsel %vm3041_vm11, 1.0, %v11832_v28  ;;  %v4815_v22 = vunpack.c.l.b16 %v3480_v60 }
 0x3cb   : > { %12374 = vst [vmem:[#allocation22_spill] sm:$0xff] %v10131_v38  ;;  %5440 = vmatpush.bf16.msrb.mxu0 %v10131_v38  ;;  %5466 = vmatpush.bf16.msrb.mxu2 %v10133_v1  ;;  %v4816_v62 = vunpack.c.h.b16 %v3480_v60  ;;  %v6784_v17 = vsel %vm3042_vm10, 1.0, %v11832_v28  ;;  %v6785_v3 = vsel %vm3043_vm0, 1.0, %v11832_v28  ;;  %v6786_v45 = vsel %vm3044_vm1, 1.0, %v11832_v28 }
 0x3cc   : > { %12375 = vst [vmem:[#allocation200_spill] sm:$0xff] %v10133_v1  ;;  %v3233_v56 = vpack.c.bf16 %v6784_v17, %v6783_v58  ;;  %vm3305_vm3 = vcmp.eq.f32.partialorder %v12205_v47, 5.0  ;;  %vm3306_vm12 = vcmp.eq.f32.partialorder %v12275_v7, 5.0  ;;  %v10145_v24 = vpack.c.b16 %v4815_v22, %v4813_v21 }
 0x3cd   : > { %v10147_v15 = vpack.c.b16 %v4816_v62, %v4814_v18  ;;  %v3234_v46 = vpack.c.bf16 %v6786_v45, %v6785_v3  ;;  %vm3307_vm8 = vcmp.eq.f32.partialorder %v12209_v9, 5.0  ;;  %vm3308_vm9 = vcmp.eq.f32.partialorder %v12210_v8, 5.0  ;;  %v12381_v8 = vld [vmem:[#allocation18_spill] sm:$0xff] }
 0x3ce   : > { %12376 = vst [vmem:[#allocation201_spill] sm:$0xff] %v10145_v24  ;;  %v4609_v1 = vunpack.c.l.b16 %v3233_v56  ;;  %v4610_v60 = vunpack.c.h.b16 %v3233_v56  ;;  %v6887_v38 = vsel %vm3305_vm3, 1.0, %v11832_v28  ;;  %5503 = vmatpush.bf16.msra.mxu1 %v10145_v24  ;;  %v6888_v21 = vsel %vm3306_vm12, 1.0, %v11832_v28  ;;  %v12380_v24 = vld [vmem:[#allocation17_spill] sm:$0xff] }
 0x3cf   : > { %12377 = vst [vmem:[#allocation202_spill] sm:$0xff] %v10147_v15  ;;  %5529 = vmatpush.bf16.msra.mxu3 %v10147_v15  ;;  %v4611_v58 = vunpack.c.l.b16 %v3234_v46  ;;  %v4612_v17 = vunpack.c.h.b16 %v3234_v46  ;;  %v6889_v18 = vsel %vm3307_vm8, 1.0, %v11832_v28  ;;  %v6890_v22 = vsel %vm3308_vm9, 1.0, %v11832_v28 }
 0x3d0   : > { %v3477_v62 = vpack.c.bf16 %v6888_v21, %v6887_v38  ;;  %vm3293_vm7 = vcmp.eq.f32.partialorder %v9181_v11, 5.0  ;;  %vm3294_vm13 = vcmp.eq.f32.partialorder %v9185_v27, 5.0  ;;  %v3478_v56 = vpack.c.bf16 %v6890_v22, %v6889_v18 }
 0x3d1   : > { %v10159_v3 = vpack.c.b16 %v4611_v58, %v4609_v1  ;;  %v10161_v45 = vpack.c.b16 %v4612_v17, %v4610_v60  ;;  %vm3295_vm14 = vcmp.eq.f32.partialorder %v12380_v24, 5.0  ;;  %vm3296_vm15 = vcmp.eq.f32.partialorder %v12381_v8, 5.0  ;;  %v12385_v24 = vld [vmem:[#allocation120_spill] sm:$0xff] }
 0x3d2   : > { %v4809_v15 = vunpack.c.l.b16 %v3477_v62  ;;  %v4810_v46 = vunpack.c.h.b16 %v3477_v62  ;;  %v6875_v9 = vsel %vm3293_vm7, 1.0, %v11832_v28  ;;  %v4811_v38 = vunpack.c.l.b16 %v3478_v56 }
 0x3d3   : > { %12378 = vst [vmem:[#allocation203_spill] sm:$0xff] %v10159_v3  ;;  %5441 = vmatpush.bf16.msrb.mxu0 %v10159_v3  ;;  %5467 = vmatpush.bf16.msrb.mxu2 %v10161_v45  ;;  %v4812_v21 = vunpack.c.h.b16 %v3478_v56  ;;  %v6876_v1 = vsel %vm3294_vm13, 1.0, %v11832_v28  ;;  %v6877_v60 = vsel %vm3295_vm14, 1.0, %v11832_v28  ;;  %v6878_v58 = vsel %vm3296_vm15, 1.0, %v11832_v28  ;;  %v12384_v3 = vld [vmem:[#allocation60_spill] sm:$0xff] }
 0x3d4   : > { %12379 = vst [vmem:[#allocation204_spill] sm:$0xff] %v10161_v45  ;;  %v3471_v17 = vpack.c.bf16 %v6876_v1, %v6875_v9  ;;  %vm3301_vm4 = vcmp.eq.f32.partialorder %v12213_v25, 5.0  ;;  %vm3302_vm5 = vcmp.eq.f32.partialorder %v12214_v57, 5.0  ;;  %v10173_v18 = vpack.c.b16 %v4811_v38, %v4809_v15 }
 0x3d5   : > { %v10175_v22 = vpack.c.b16 %v4812_v21, %v4810_v46  ;;  %v3472_v62 = vpack.c.bf16 %v6878_v58, %v6877_v60  ;;  %vm3303_vm2 = vcmp.eq.f32.partialorder %v12217_v55, 5.0  ;;  %vm3304_vm6 = vcmp.eq.f32.partialorder %v12384_v3, 5.0 }
 0x3d6   : > { %12382 = vst [vmem:[#allocation205_spill] sm:$0xff] %v10173_v18  ;;  %v4797_v45 = vunpack.c.l.b16 %v3471_v17  ;;  %v4798_v56 = vunpack.c.h.b16 %v3471_v17  ;;  %v6883_v8 = vsel %vm3301_vm4, 1.0, %v11832_v28  ;;  %5468 = vmatmul.bf16.vlgmr.msrb.gmra.mxu2 %v12385_v24  ;;  %5442 = vmatmul.bf16.vlgmr.msrb.gmra.mxu0 %v12385_v24  ;;  %v6884_v46 = vsel %vm3302_vm5, 1.0, %v11832_v28 }
 0x3d7   : > { %12383 = vst [vmem:[#allocation206_spill] sm:$0xff] %v10175_v22  ;;  %5504 = vmatpush.bf16.msra.mxu1 %v10173_v18  ;;  %5530 = vmatpush.bf16.msra.mxu3 %v10175_v22  ;;  %v4799_v9 = vunpack.c.l.b16 %v3472_v62  ;;  %v4800_v15 = vunpack.c.h.b16 %v3472_v62  ;;  %v6885_v38 = vsel %vm3303_vm2, 1.0, %v11832_v28  ;;  %v6886_v21 = vsel %vm3304_vm6, 1.0, %v11832_v28 }
 0x3d8   : > { %v3475_v1 = vpack.c.bf16 %v6884_v46, %v6883_v8  ;;  %vm3289_vm11 = vcmp.eq.f32.partialorder %v12282_v10, 5.0  ;;  %vm3290_vm10 = vcmp.eq.f32.partialorder %v12283_v34, 5.0  ;;  %v3476_v17 = vpack.c.bf16 %v6886_v21, %v6885_v38 }
 0x3d9   : > { %v10189_v60 = vpack.c.b16 %v4799_v9, %v4797_v45  ;;  %v10191_v58 = vpack.c.b16 %v4800_v15, %v4798_v56  ;;  %vm3291_vm0 = vcmp.eq.f32.partialorder %v12336_v20, 5.0  ;;  %vm3292_vm1 = vcmp.eq.f32.partialorder %v12337_v37, 5.0 }
 0x3da   : > { %v4805_v22 = vunpack.c.l.b16 %v3475_v1  ;;  %v4806_v62 = vunpack.c.h.b16 %v3475_v1  ;;  %v6871_v18 = vsel %vm3289_vm11, 1.0, %v11832_v28  ;;  %v4807_v8 = vunpack.c.l.b16 %v3476_v17 }
 0x3db   : > { %12386 = vst [vmem:[#allocation60_spill] sm:$0xff] %v10189_v60  ;;  %5486 = vmatpush.bf16.msra.mxu0 %v10189_v60  ;;  %5512 = vmatpush.bf16.msra.mxu2 %v10191_v58  ;;  %v4808_v46 = vunpack.c.h.b16 %v3476_v17  ;;  %v6872_v45 = vsel %vm3290_vm10, 1.0, %v11832_v28  ;;  %v6873_v56 = vsel %vm3291_vm0, 1.0, %v11832_v28  ;;  %v6874_v9 = vsel %vm3292_vm1, 1.0, %v11832_v28 }
 0x3dc   : > { %12387 = vst [vmem:[#allocation207_spill] sm:$0xff] %v10191_v58  ;;  %v3469_v15 = vpack.c.bf16 %v6872_v45, %v6871_v18  ;;  %vm3297_vm3 = vcmp.eq.f32.partialorder %v12286_v51, 5.0  ;;  %vm3298_vm12 = vcmp.eq.f32.partialorder %v12287_v61, 5.0  ;;  %v10203_v38 = vpack.c.b16 %v4807_v8, %v4805_v22 }
 0x3dd   : > { %v10205_v21 = vpack.c.b16 %v4808_v46, %v4806_v62  ;;  %v3470_v1 = vpack.c.bf16 %v6874_v9, %v6873_v56  ;;  %vm3299_vm8 = vcmp.eq.f32.partialorder %v12229_v4, 5.0  ;;  %vm3300_vm9 = vcmp.eq.f32.partialorder %v12230_v13, 5.0 }
 0x3de   : > { %12388 = vst [vmem:[#allocation208_spill] sm:$0xff] %v10203_v38  ;;  %v4793_v58 = vunpack.c.l.b16 %v3469_v15  ;;  %v4794_v17 = vunpack.c.h.b16 %v3469_v15  ;;  %v6879_v60 = vsel %vm3297_vm3, 1.0, %v11832_v28  ;;  %5505 = vmatpush.bf16.msra.mxu1 %v10203_v38  ;;  %v6880_v22 = vsel %vm3298_vm12, 1.0, %v11832_v28 }
 0x3df   : > { %12389 = vst [vmem:[#allocation209_spill] sm:$0xff] %v10205_v21  ;;  %5531 = vmatpush.bf16.msra.mxu3 %v10205_v21  ;;  %v4795_v18 = vunpack.c.l.b16 %v3470_v1  ;;  %v4796_v45 = vunpack.c.h.b16 %v3470_v1  ;;  %v6881_v62 = vsel %vm3299_vm8, 1.0, %v11832_v28  ;;  %v6882_v8 = vsel %vm3300_vm9, 1.0, %v11832_v28 }
 0x3e0   : > { %v3473_v46 = vpack.c.bf16 %v6880_v22, %v6879_v60  ;;  %vm3285_vm7 = vcmp.eq.f32.partialorder %v9025_v52, 5.0  ;;  %vm3286_vm13 = vcmp.eq.f32.partialorder %v9029_v23, 5.0  ;;  %v3474_v15 = vpack.c.bf16 %v6882_v8, %v6881_v62 }
 0x3e1   : > { %v10217_v56 = vpack.c.b16 %v4795_v18, %v4793_v58  ;;  %v10219_v9 = vpack.c.b16 %v4796_v45, %v4794_v17  ;;  %vm3287_vm14 = vcmp.eq.f32.partialorder %v9067_v32, 5.0  ;;  %vm3288_vm15 = vcmp.eq.f32.partialorder %v9071_v30, 5.0 }
 0x3e2   : > { %v4801_v21 = vunpack.c.l.b16 %v3473_v46  ;;  %v4802_v1 = vunpack.c.h.b16 %v3473_v46  ;;  %v6867_v38 = vsel %vm3285_vm7, 1.0, %v11832_v28  ;;  %v4803_v60 = vunpack.c.l.b16 %v3474_v15 }
 0x3e3   : > { %12390 = vst [vmem:[#allocation210_spill] sm:$0xff] %v10217_v56  ;;  %5487 = vmatpush.bf16.msra.mxu0 %v10217_v56  ;;  %5513 = vmatpush.bf16.msra.mxu2 %v10219_v9  ;;  %v4804_v22 = vunpack.c.h.b16 %v3474_v15  ;;  %v6868_v58 = vsel %vm3286_vm13, 1.0, %v11832_v28  ;;  %v6869_v17 = vsel %vm3287_vm14, 1.0, %v11832_v28  ;;  %v6870_v18 = vsel %vm3288_vm15, 1.0, %v11832_v28 }
 0x3e4   : > { %12391 = vst [vmem:[#allocation211_spill] sm:$0xff] %v10219_v9  ;;  %v3467_v45 = vpack.c.bf16 %v6868_v58, %v6867_v38  ;;  %vm3549_vm4 = vcmp.eq.f32.partialorder %v9085_v42, 6.0  ;;  %vm3550_vm5 = vcmp.eq.f32.partialorder %v9089_v41, 6.0  ;;  %v10231_v62 = vpack.c.b16 %v4803_v60, %v4801_v21 }
 0x3e5   : > { %v10233_v8 = vpack.c.b16 %v4804_v22, %v4802_v1  ;;  %v3468_v46 = vpack.c.bf16 %v6870_v18, %v6869_v17  ;;  %vm3551_vm2 = vcmp.eq.f32.partialorder %v9123_v12, 6.0  ;;  %vm3552_vm6 = vcmp.eq.f32.partialorder %v9127_v16, 6.0 }
 0x3e6   : > { %12392 = vst [vmem:[#allocation212_spill] sm:$0xff] %v10231_v62  ;;  %v4789_v9 = vunpack.c.l.b16 %v3467_v45  ;;  %v4790_v15 = vunpack.c.h.b16 %v3467_v45  ;;  %v6971_v56 = vsel %vm3549_vm4, 1.0, %v11832_v28  ;;  %5506 = vmatpush.bf16.msra.mxu1 %v10231_v62  ;;  %v6972_v21 = vsel %vm3550_vm5, 1.0, %v11832_v28 }
 0x3e7   : > { %12393 = vst [vmem:[#allocation213_spill] sm:$0xff] %v10233_v8  ;;  %5532 = vmatpush.bf16.msra.mxu3 %v10233_v8  ;;  %v4791_v38 = vunpack.c.l.b16 %v3468_v46  ;;  %v4792_v58 = vunpack.c.h.b16 %v3468_v46  ;;  %v6973_v1 = vsel %vm3551_vm2, 1.0, %v11832_v28  ;;  %v6974_v60 = vsel %vm3552_vm6, 1.0, %v11832_v28 }
 0x3e8   : > { %v3711_v22 = vpack.c.bf16 %v6972_v21, %v6971_v56  ;;  %vm3281_vm11 = vcmp.eq.f32.partialorder %v8943_v19, 5.0  ;;  %vm3282_vm10 = vcmp.eq.f32.partialorder %v8947_v5, 5.0  ;;  %v3712_v45 = vpack.c.bf16 %v6974_v60, %v6973_v1 }
 0x3e9   : > { %v10245_v17 = vpack.c.b16 %v4791_v38, %v4789_v9  ;;  %v10247_v18 = vpack.c.b16 %v4792_v58, %v4790_v15  ;;  %vm3283_vm0 = vcmp.eq.f32.partialorder %v8985_v31, 5.0  ;;  %vm3284_vm1 = vcmp.eq.f32.partialorder %v8989_v36, 5.0  ;;  %5507 = vmatmul.bf16.vlgmr.msra.gmra.mxu1 %v9326_v2 }
 0x3ea   : > { %v4989_v8 = vunpack.c.l.b16 %v3711_v22  ;;  %v4990_v46 = vunpack.c.h.b16 %v3711_v22  ;;  %v6863_v62 = vsel %vm3281_vm11, 1.0, %v11832_v28  ;;  %5533 = vmatmul.bf16.vlgmr.msra.gmra.mxu3 %v9326_v2  ;;  %v4991_v56 = vunpack.c.l.b16 %v3712_v45 }
 0x3eb   : > { %12394 = vst [vmem:[#allocation214_spill] sm:$0xff] %v10245_v17  ;;  %5488 = vmatpush.bf16.msra.mxu0 %v10245_v17  ;;  %5514 = vmatpush.bf16.msra.mxu2 %v10247_v18  ;;  %v4992_v9 = vunpack.c.h.b16 %v3712_v45  ;;  %v6864_v15 = vsel %vm3282_vm10, 1.0, %v11832_v28  ;;  %v6865_v38 = vsel %vm3283_vm0, 1.0, %v11832_v28  ;;  %v6866_v58 = vsel %vm3284_vm1, 1.0, %v11832_v28 }
 0x3ec   : > { %12395 = vst [vmem:[#allocation215_spill] sm:$0xff] %v10247_v18  ;;  %v3465_v21 = vpack.c.bf16 %v6864_v15, %v6863_v62  ;;  %vm3545_vm3 = vcmp.eq.f32.partialorder %v9003_v50, 6.0  ;;  %vm3546_vm12 = vcmp.eq.f32.partialorder %v9007_v63, 6.0  ;;  %v10261_v1 = vpack.c.b16 %v4991_v56, %v4989_v8 }
 0x3ed   : > { %v10263_v60 = vpack.c.b16 %v4992_v9, %v4990_v46  ;;  %v3466_v22 = vpack.c.bf16 %v6866_v58, %v6865_v38  ;;  %vm3547_vm8 = vcmp.eq.f32.partialorder %v9043_v33, 6.0  ;;  %vm3548_vm9 = vcmp.eq.f32.partialorder %v9047_v29, 6.0  ;;  %v12398_v38 = vld [vmem:[#allocation23_spill] sm:$0xff]  ;;  %v12402_v33 = vld [vmem:[#allocation72_spill] sm:$0xff] }
 0x3ee   : > { %12396 = vst [vmem:[#allocation216_spill] sm:$0xff] %v10261_v1  ;;  %v4785_v18 = vunpack.c.l.b16 %v3465_v21  ;;  %v4786_v45 = vunpack.c.h.b16 %v3465_v21  ;;  %v6967_v17 = vsel %vm3545_vm3, 1.0, %v11832_v28  ;;  %5551 = vmatpush.bf16.msrb.mxu1 %v10261_v1  ;;  %v6968_v8 = vsel %vm3546_vm12, 1.0, %v11832_v28  ;;  %v12401_v29 = vld [vmem:[#allocation71_spill] sm:$0xff] }
 0x3ef   : > { %12397 = vst [vmem:[#allocation217_spill] sm:$0xff] %v10263_v60  ;;  %5577 = vmatpush.bf16.msrb.mxu3 %v10263_v60  ;;  %v4787_v62 = vunpack.c.l.b16 %v3466_v22  ;;  %v4788_v15 = vunpack.c.h.b16 %v3466_v22  ;;  %v6969_v46 = vsel %vm3547_vm8, 1.0, %v11832_v28  ;;  %v6970_v56 = vsel %vm3548_vm9, 1.0, %v11832_v28 }
 0x3f0   : > { %v3709_v9 = vpack.c.bf16 %v6968_v8, %v6967_v17  ;;  %vm3277_vm7 = vcmp.eq.f32.partialorder %v8861_v48, 5.0  ;;  %vm3278_vm13 = vcmp.eq.f32.partialorder %v12398_v38, 5.0  ;;  %v3710_v1 = vpack.c.bf16 %v6970_v56, %v6969_v46  ;;  %v12403_v46 = vld [vmem:[#allocation31_spill] sm:$0xff] }
 0x3f1   : > { %v10275_v58 = vpack.c.b16 %v4787_v62, %v4785_v18  ;;  %v10277_v21 = vpack.c.b16 %v4788_v15, %v4786_v45  ;;  %vm3279_vm14 = vcmp.eq.f32.partialorder %v12401_v29, 5.0  ;;  %vm3280_vm15 = vcmp.eq.f32.partialorder %v12402_v33, 5.0  ;;  %v12406_v33 = vld [vmem:[#allocation62_spill] sm:$0xff]  ;;  %v12407_v29 = vld [vmem:[#allocation28_spill] sm:$0xff] }
 0x3f2   : > { %v4985_v60 = vunpack.c.l.b16 %v3709_v9  ;;  %v4986_v22 = vunpack.c.h.b16 %v3709_v9  ;;  %v6859_v63 = vsel %vm3277_vm7, 1.0, %v11832_v28  ;;  %v4987_v17 = vunpack.c.l.b16 %v3710_v1 }
 0x3f3   : > { %12399 = vst [vmem:[#allocation218_spill] sm:$0xff] %v10275_v58  ;;  %5489 = vmatpush.bf16.msra.mxu0 %v10275_v58  ;;  %5515 = vmatpush.bf16.msra.mxu2 %v10277_v21  ;;  %v4988_v8 = vunpack.c.h.b16 %v3710_v1  ;;  %v6860_v18 = vsel %vm3278_vm13, 1.0, %v11832_v28  ;;  %v6861_v45 = vsel %vm3279_vm14, 1.0, %v11832_v28  ;;  %v6862_v62 = vsel %vm3280_vm15, 1.0, %v11832_v28 }
 0x3f4   : > { %12400 = vst [vmem:[#allocation219_spill] sm:$0xff] %v10277_v21  ;;  %v3463_v15 = vpack.c.bf16 %v6860_v18, %v6859_v63  ;;  %vm3541_vm4 = vcmp.eq.f32.partialorder %v12241_v39, 6.0  ;;  %vm3542_vm5 = vcmp.eq.f32.partialorder %v12403_v46, 6.0  ;;  %v10289_v56 = vpack.c.b16 %v4987_v17, %v4985_v60  ;;  %v12413_v46 = vld [vmem:[#allocation68_spill] sm:$0xff] }
 0x3f5   : > { %v10291_v9 = vpack.c.b16 %v4988_v8, %v4986_v22  ;;  %v3464_v58 = vpack.c.bf16 %v6862_v62, %v6861_v45  ;;  %vm3543_vm2 = vcmp.eq.f32.partialorder %v12406_v33, 6.0  ;;  %vm3544_vm6 = vcmp.eq.f32.partialorder %v12407_v29, 6.0  ;;  %v12408_v45 = vld [vmem:[#allocation85_spill] sm:$0xff]  ;;  %v12409_v62 = vld [vmem:[#allocation86_spill] sm:$0xff]  ;;  %v12412_v33 = vld [vmem:[#allocation67_spill] sm:$0xff] }
 0x3f6   : > { %12404 = vst [vmem:[#allocation220_spill] sm:$0xff] %v10289_v56  ;;  %v4781_v21 = vunpack.c.l.b16 %v3463_v15  ;;  %v4782_v1 = vunpack.c.h.b16 %v3463_v15  ;;  %v6963_v38 = vsel %vm3541_vm4, 1.0, %v11832_v28  ;;  %5552 = vmatpush.bf16.msrb.mxu1 %v10289_v56  ;;  %v6964_v60 = vsel %vm3542_vm5, 1.0, %v11832_v28 }
 0x3f7   : > { %12405 = vst [vmem:[#allocation221_spill] sm:$0xff] %v10291_v9  ;;  %5578 = vmatpush.bf16.msrb.mxu3 %v10291_v9  ;;  %v4783_v63 = vunpack.c.l.b16 %v3464_v58  ;;  %v4784_v18 = vunpack.c.h.b16 %v3464_v58  ;;  %v6965_v22 = vsel %vm3543_vm2, 1.0, %v11832_v28  ;;  %v6966_v17 = vsel %vm3544_vm6, 1.0, %v11832_v28 }
 0x3f8   : > { %v3707_v8 = vpack.c.bf16 %v6964_v60, %v6963_v38  ;;  %vm3273_vm11 = vcmp.eq.f32.partialorder %v12408_v45, 5.0  ;;  %vm3274_vm10 = vcmp.eq.f32.partialorder %v12409_v62, 5.0  ;;  %v3708_v56 = vpack.c.bf16 %v6966_v17, %v6965_v22  ;;  %v12414_v22 = vld [vmem:[#allocation52_spill] sm:$0xff] }
 0x3f9   : > { %v10303_v15 = vpack.c.b16 %v4783_v63, %v4781_v21  ;;  %v10305_v29 = vpack.c.b16 %v4784_v18, %v4782_v1  ;;  %vm3275_vm0 = vcmp.eq.f32.partialorder %v12412_v33, 5.0  ;;  %vm3276_vm1 = vcmp.eq.f32.partialorder %v12413_v46, 5.0  ;;  %v12417_v46 = vld [vmem:[#allocation55_spill] sm:$0xff]  ;;  %v12418_v33 = vld [vmem:[#allocation56_spill] sm:$0xff] }
 0x3fa   : > { %v4981_v9 = vunpack.c.l.b16 %v3707_v8  ;;  %v4982_v58 = vunpack.c.h.b16 %v3707_v8  ;;  %v6855_v39 = vsel %vm3273_vm11, 1.0, %v11832_v28  ;;  %v4983_v38 = vunpack.c.l.b16 %v3708_v56 }
 0x3fb   : > { %12410 = vst [vmem:[#allocation85_spill] sm:$0xff] %v10303_v15  ;;  %5490 = vmatpush.bf16.msra.mxu0 %v10303_v15  ;;  %5516 = vmatpush.bf16.msra.mxu2 %v10305_v29  ;;  %v4984_v60 = vunpack.c.h.b16 %v3708_v56  ;;  %v6856_v21 = vsel %vm3274_vm10, 1.0, %v11832_v28  ;;  %v6857_v1 = vsel %vm3275_vm0, 1.0, %v11832_v28  ;;  %v6858_v63 = vsel %vm3276_vm1, 1.0, %v11832_v28 }
 0x3fc   : > { %12411 = vst [vmem:[#allocation222_spill] sm:$0xff] %v10305_v29  ;;  %v3461_v18 = vpack.c.bf16 %v6856_v21, %v6855_v39  ;;  %vm3537_vm3 = vcmp.eq.f32.partialorder %v12360_v59, 6.0  ;;  %vm3538_vm12 = vcmp.eq.f32.partialorder %v12414_v22, 6.0  ;;  %v10317_v17 = vpack.c.b16 %v4983_v38, %v4981_v9 }
 0x3fd   : > { %v10319_v8 = vpack.c.b16 %v4984_v60, %v4982_v58  ;;  %v3462_v15 = vpack.c.bf16 %v6858_v63, %v6857_v1  ;;  %vm3539_vm8 = vcmp.eq.f32.partialorder %v12417_v46, 6.0  ;;  %vm3540_vm9 = vcmp.eq.f32.partialorder %v12418_v33, 6.0 }
 0x3fe   : > { %12415 = vst [vmem:[#allocation52_spill] sm:$0xff] %v10317_v17  ;;  %v4777_v29 = vunpack.c.l.b16 %v3461_v18  ;;  %v4778_v56 = vunpack.c.h.b16 %v3461_v18  ;;  %v6959_v62 = vsel %vm3537_vm3, 1.0, %v11832_v28  ;;  %5553 = vmatpush.bf16.msrb.mxu1 %v10317_v17  ;;  %v6960_v9 = vsel %vm3538_vm12, 1.0, %v11832_v28  ;;  %v12421_v17 = vld [vmem:[#allocation80_spill] sm:$0xff] }
 0x3ff   : > { %12416 = vst [vmem:[#allocation223_spill] sm:$0xff] %v10319_v8  ;;  %5579 = vmatpush.bf16.msrb.mxu3 %v10319_v8  ;;  %v4779_v39 = vunpack.c.l.b16 %v3462_v15  ;;  %v4780_v21 = vunpack.c.h.b16 %v3462_v15  ;;  %v6961_v58 = vsel %vm3539_vm8, 1.0, %v11832_v28  ;;  %v6962_v38 = vsel %vm3540_vm9, 1.0, %v11832_v28 }
 0x400   : > { %v3705_v60 = vpack.c.bf16 %v6960_v9, %v6959_v62  ;;  %vm3269_vm7 = vcmp.eq.f32.partialorder %v12312_v26, 5.0  ;;  %vm3270_vm13 = vcmp.eq.f32.partialorder %v12366_v43, 5.0  ;;  %v3706_v18 = vpack.c.bf16 %v6962_v38, %v6961_v58 }
 0x401   : > { %v10331_v1 = vpack.c.b16 %v4779_v39, %v4777_v29  ;;  %v10333_v63 = vpack.c.b16 %v4780_v21, %v4778_v56  ;;  %vm3271_vm14 = vcmp.eq.f32.partialorder %v12369_v53, 5.0  ;;  %vm3272_vm15 = vcmp.eq.f32.partialorder %v12421_v17, 5.0  ;;  %v10342_v39 = vpop.f32.mrf.mxu0  ;;  %v10344_v21 = vpop.f32.mrf.mxu2 }
 0x402   : > { %v4977_v8 = vunpack.c.l.b16 %v3705_v60  ;;  %v4978_v15 = vunpack.c.h.b16 %v3705_v60  ;;  %v6851_v33 = vsel %vm3269_vm7, 1.0, %v11832_v28  ;;  %v4979_v62 = vunpack.c.l.b16 %v3706_v18 }
 0x403   : > { %12419 = vst [vmem:[#allocation55_spill] sm:$0xff] %v10331_v1  ;;  %5491 = vmatpush.bf16.msra.mxu0 %v10331_v1  ;;  %5517 = vmatpush.bf16.msra.mxu2 %v10333_v63  ;;  %v4980_v9 = vunpack.c.h.b16 %v3706_v18  ;;  %v6852_v29 = vsel %vm3270_vm13, 1.0, %v11832_v28  ;;  %v6853_v56 = vsel %vm3271_vm14, 1.0, %v11832_v28  ;;  %v6854_v58 = vsel %vm3272_vm15, 1.0, %v11832_v28 }
 0x404   : > { %12420 = vst [vmem:[#allocation224_spill] sm:$0xff] %v10333_v63  ;;  %v3459_v38 = vpack.c.bf16 %v6852_v29, %v6851_v33  ;;  %vm3533_vm4 = vcmp.eq.f32.partialorder %v12264_v35, 6.0  ;;  %vm3534_vm5 = vcmp.eq.f32.partialorder %v12318_v0, 6.0  ;;  %v10349_v60 = vpack.c.b16 %v4979_v62, %v4977_v8 }
 0x405   : > { %v10351_v63 = vpack.c.b16 %v4980_v9, %v4978_v15  ;;  %v3460_v18 = vpack.c.bf16 %v6854_v58, %v6853_v56  ;;  %vm3535_vm2 = vcmp.eq.f32.partialorder %v12321_v44, 6.0  ;;  %vm3536_vm6 = vcmp.eq.f32.partialorder %v12373_v49, 6.0 }
 0x406   : > { %12422 = vst [vmem:[#allocation225_spill] sm:$0xff] %v10349_v60  ;;  %v4773_v1 = vunpack.c.l.b16 %v3459_v38  ;;  %v4774_v17 = vunpack.c.h.b16 %v3459_v38  ;;  %v6955_v53 = vsel %vm3533_vm4, 1.0, %v11832_v28  ;;  %5554 = vmatpush.bf16.msrb.mxu1 %v10349_v60  ;;  %v6956_v8 = vsel %vm3534_vm5, 1.0, %v11832_v28 }
 0x407   : > { %12423 = vst [vmem:[#allocation226_spill] sm:$0xff] %v10351_v63  ;;  %5580 = vmatpush.bf16.msrb.mxu3 %v10351_v63  ;;  %v4775_v33 = vunpack.c.l.b16 %v3460_v18  ;;  %v4776_v29 = vunpack.c.h.b16 %v3460_v18  ;;  %v6957_v15 = vsel %vm3535_vm2, 1.0, %v11832_v28  ;;  %v6958_v62 = vsel %vm3536_vm6, 1.0, %v11832_v28 }
 0x408   : > { %v3703_v9 = vpack.c.bf16 %v6956_v8, %v6955_v53  ;;  %vm3265_vm11 = vcmp.eq.f32.partialorder %v12270_v6, 5.0  ;;  %vm3266_vm10 = vcmp.eq.f32.partialorder %v12271_v14, 5.0  ;;  %v3704_v38 = vpack.c.bf16 %v6958_v62, %v6957_v15  ;;  %v12429_v14 = vld [vmem:[#allocation76_spill] sm:$0xff] }
 0x409   : > { %v10363_v56 = vpack.c.b16 %v4775_v33, %v4773_v1  ;;  %v10365_v58 = vpack.c.b16 %v4776_v29, %v4774_v17  ;;  %vm3267_vm0 = vcmp.eq.f32.partialorder %v12201_v40, 5.0  ;;  %vm3268_vm1 = vcmp.eq.f32.partialorder %v12325_v54, 5.0  ;;  %v5237_v33 = vpop.f32.mrf.mxu0  ;;  %v5263_v29 = vpop.f32.mrf.mxu2  ;;  %v12428_v54 = vld [vmem:[#allocation21_spill] sm:$0xff] }
 0x40a   : > { %v4973_v63 = vunpack.c.l.b16 %v3703_v9  ;;  %v4974_v18 = vunpack.c.h.b16 %v3703_v9  ;;  %v6847_v60 = vsel %vm3265_vm11, 1.0, %v11832_v28  ;;  %v4975_v53 = vunpack.c.l.b16 %v3704_v38 }
 0x40b   : > { %12424 = vst [vmem:[#allocation227_spill] sm:$0xff] %v10363_v56  ;;  %5492 = vmatpush.bf16.msra.mxu0 %v10363_v56  ;;  %5518 = vmatpush.bf16.msra.mxu2 %v10365_v58  ;;  %v4976_v8 = vunpack.c.h.b16 %v3704_v38  ;;  %v6848_v1 = vsel %vm3266_vm10, 1.0, %v11832_v28  ;;  %v6849_v17 = vsel %vm3267_vm0, 1.0, %v11832_v28  ;;  %v6850_v15 = vsel %vm3268_vm1, 1.0, %v11832_v28 }
 0x40c   : > { %12425 = vst [vmem:[#allocation228_spill] sm:$0xff] %v10365_v58  ;;  %v3457_v62 = vpack.c.bf16 %v6848_v1, %v6847_v60  ;;  %vm3529_vm3 = vcmp.eq.f32.partialorder %v12205_v47, 6.0  ;;  %vm3530_vm12 = vcmp.eq.f32.partialorder %v12275_v7, 6.0  ;;  %v10377_v9 = vpack.c.b16 %v4975_v53, %v4973_v63  ;;  %v10388_v53 = vpop.f32.mrf.mxu1 }
 0x40d   : > { %v10379_v56 = vpack.c.b16 %v4976_v8, %v4974_v18  ;;  %v3458_v58 = vpack.c.bf16 %v6850_v15, %v6849_v17  ;;  %vm3531_vm8 = vcmp.eq.f32.partialorder %v12428_v54, 6.0  ;;  %vm3532_vm9 = vcmp.eq.f32.partialorder %v12429_v14, 6.0  ;;  %v10390_v8 = vpop.f32.mrf.mxu3  ;;  %v12433_v54 = vld [vmem:[#allocation18_spill] sm:$0xff] }
 0x40e   : > { %12426 = vst [vmem:[#allocation229_spill] sm:$0xff] %v10377_v9  ;;  %v4769_v38 = vunpack.c.l.b16 %v3457_v62  ;;  %v4770_v40 = vunpack.c.h.b16 %v3457_v62  ;;  %v6951_v33 = vsel %vm3529_vm3, 1.0, %v11832_v28  ;;  %5555 = vmatpush.bf16.msrb.mxu1 %v10377_v9  ;;  %v6952_v63 = vsel %vm3530_vm12, 1.0, %v11832_v28 }
 0x40f   : > { %12427 = vst [vmem:[#allocation230_spill] sm:$0xff] %v10379_v56  ;;  %5581 = vmatpush.bf16.msrb.mxu3 %v10379_v56  ;;  %v4771_v60 = vunpack.c.l.b16 %v3458_v58  ;;  %v4772_v1 = vunpack.c.h.b16 %v3458_v58  ;;  %v6953_v18 = vsel %vm3531_vm8, 1.0, %v11832_v28  ;;  %v6954_v17 = vsel %vm3532_vm9, 1.0, %v11832_v28  ;;  %v12432_v56 = vld [vmem:[#allocation17_spill] sm:$0xff] }
 0x410   : > { %v3701_v29 = vpack.c.bf16 %v6952_v63, %v6951_v33  ;;  %vm3517_vm7 = vcmp.eq.f32.partialorder %v9181_v11, 6.0  ;;  %vm3518_vm13 = vcmp.eq.f32.partialorder %v9185_v27, 6.0  ;;  %v3702_v58 = vpack.c.bf16 %v6954_v17, %v6953_v18 }
 0x411   : > { %v10395_v15 = vpack.c.b16 %v4771_v60, %v4769_v38  ;;  %v10397_v62 = vpack.c.b16 %v4772_v1, %v4770_v40  ;;  %vm3519_vm14 = vcmp.eq.f32.partialorder %v12432_v56, 6.0  ;;  %vm3520_vm15 = vcmp.eq.f32.partialorder %v12433_v54, 6.0 }
 0x412   : > { %v4969_v9 = vunpack.c.l.b16 %v3701_v29  ;;  %v4970_v14 = vunpack.c.h.b16 %v3701_v29  ;;  %v6939_v7 = vsel %vm3517_vm7, 1.0, %v11832_v28  ;;  %v4971_v33 = vunpack.c.l.b16 %v3702_v58 }
 0x413   : > { %12430 = vst [vmem:[#allocation231_spill] sm:$0xff] %v10395_v15  ;;  %5493 = vmatpush.bf16.msra.mxu0 %v10395_v15  ;;  %5519 = vmatpush.bf16.msra.mxu2 %v10397_v62  ;;  %v4972_v63 = vunpack.c.h.b16 %v3702_v58  ;;  %v6940_v38 = vsel %vm3518_vm13, 1.0, %v11832_v28  ;;  %v6941_v40 = vsel %vm3519_vm14, 1.0, %v11832_v28  ;;  %v6942_v60 = vsel %vm3520_vm15, 1.0, %v11832_v28 }
 0x414   : > { %12431 = vst [vmem:[#allocation232_spill] sm:$0xff] %v10397_v62  ;;  %v3695_v1 = vpack.c.bf16 %v6940_v38, %v6939_v7  ;;  %vm3525_vm4 = vcmp.eq.f32.partialorder %v12213_v25, 6.0  ;;  %vm3526_vm5 = vcmp.eq.f32.partialorder %v12214_v57, 6.0  ;;  %v10409_v18 = vpack.c.b16 %v4971_v33, %v4969_v9 }
 0x415   : > { %v10411_v17 = vpack.c.b16 %v4972_v63, %v4970_v14  ;;  %v3696_v29 = vpack.c.bf16 %v6942_v60, %v6941_v40  ;;  %vm3527_vm2 = vcmp.eq.f32.partialorder %v12217_v55, 6.0  ;;  %vm3528_vm6 = vcmp.eq.f32.partialorder %v12384_v3, 6.0  ;;  %v5250_v63 = vpop.f32.mrf.mxu1  ;;  %v5276_v38 = vpop.f32.mrf.mxu3 }
 0x416   : > { %12434 = vst [vmem:[#allocation17_spill] sm:$0xff] %v10409_v18  ;;  %v4957_v62 = vunpack.c.l.b16 %v3695_v1  ;;  %v4958_v58 = vunpack.c.h.b16 %v3695_v1  ;;  %v6947_v15 = vsel %vm3525_vm4, 1.0, %v11832_v28  ;;  %5520 = vmatmul.bf16.vlgmr.msra.gmra.mxu2 %v12385_v24  ;;  %5494 = vmatmul.bf16.vlgmr.msra.gmra.mxu0 %v12385_v24  ;;  %v6948_v9 = vsel %vm3526_vm5, 1.0, %v11832_v28 }
 0x417   : > { %12435 = vst [vmem:[#allocation18_spill] sm:$0xff] %v10411_v17  ;;  %5556 = vmatpush.bf16.msrb.mxu1 %v10409_v18  ;;  %5582 = vmatpush.bf16.msrb.mxu3 %v10411_v17  ;;  %v4959_v7 = vunpack.c.l.b16 %v3696_v29  ;;  %v4960_v14 = vunpack.c.h.b16 %v3696_v29  ;;  %v6949_v33 = vsel %vm3527_vm2, 1.0, %v11832_v28  ;;  %v6950_v40 = vsel %vm3528_vm6, 1.0, %v11832_v28 }
 0x418   : > { %v3699_v60 = vpack.c.bf16 %v6948_v9, %v6947_v15  ;;  %vm3513_vm11 = vcmp.eq.f32.partialorder %v12282_v10, 6.0  ;;  %vm3514_vm10 = vcmp.eq.f32.partialorder %v12283_v34, 6.0  ;;  %v3700_v17 = vpack.c.bf16 %v6950_v40, %v6949_v33 }
 0x419   : > { %v10425_v1 = vpack.c.b16 %v4959_v7, %v4957_v62  ;;  %v10427_v18 = vpack.c.b16 %v4960_v14, %v4958_v58  ;;  %vm3515_vm0 = vcmp.eq.f32.partialorder %v12336_v20, 6.0  ;;  %vm3516_vm1 = vcmp.eq.f32.partialorder %v12337_v37, 6.0 }
 0x41a   : > { %v4965_v29 = vunpack.c.l.b16 %v3699_v60  ;;  %v4966_v24 = vunpack.c.h.b16 %v3699_v60  ;;  %v6935_v63 = vsel %vm3513_vm11, 1.0, %v11832_v28  ;;  %v4967_v15 = vunpack.c.l.b16 %v3700_v17 }
 0x41b   : > { %12436 = vst [vmem:[#allocation233_spill] sm:$0xff] %v10425_v1  ;;  %5538 = vmatpush.bf16.msrb.mxu0 %v10425_v1  ;;  %5564 = vmatpush.bf16.msrb.mxu2 %v10427_v18  ;;  %v4968_v9 = vunpack.c.h.b16 %v3700_v17  ;;  %v6936_v62 = vsel %vm3514_vm10, 1.0, %v11832_v28  ;;  %v6937_v58 = vsel %vm3515_vm0, 1.0, %v11832_v28  ;;  %v6938_v7 = vsel %vm3516_vm1, 1.0, %v11832_v28  ;;  %v12483_v1 = vld [vmem:[#allocation54_spill] sm:$0xff] }
 0x41c   : > { %12437 = vst [vmem:[#allocation234_spill] sm:$0xff] %v10427_v18  ;;  %v3693_v14 = vpack.c.bf16 %v6936_v62, %v6935_v63  ;;  %vm3521_vm3 = vcmp.eq.f32.partialorder %v12286_v51, 6.0  ;;  %vm3522_vm12 = vcmp.eq.f32.partialorder %v12287_v61, 6.0  ;;  %v10439_v33 = vpack.c.b16 %v4967_v15, %v4965_v29 }
 0x41d   : > { %v10441_v38 = vpack.c.b16 %v4968_v9, %v4966_v24  ;;  %v3694_v40 = vpack.c.bf16 %v6938_v7, %v6937_v58  ;;  %vm3523_vm8 = vcmp.eq.f32.partialorder %v12229_v4, 6.0  ;;  %vm3524_vm9 = vcmp.eq.f32.partialorder %v12230_v13, 6.0 }
 0x41e   : > { %12438 = vst [vmem:[#allocation235_spill] sm:$0xff] %v10439_v33  ;;  %v4953_v60 = vunpack.c.l.b16 %v3693_v14  ;;  %v4954_v17 = vunpack.c.h.b16 %v3693_v14  ;;  %v6943_v18 = vsel %vm3521_vm3, 1.0, %v11832_v28  ;;  %5557 = vmatpush.bf16.msrb.mxu1 %v10439_v33  ;;  %v6944_v29 = vsel %vm3522_vm12, 1.0, %v11832_v28 }
 0x41f   : > { %12439 = vst [vmem:[#allocation236_spill] sm:$0xff] %v10441_v38  ;;  %5583 = vmatpush.bf16.msrb.mxu3 %v10441_v38  ;;  %v4955_v63 = vunpack.c.l.b16 %v3694_v40  ;;  %v4956_v62 = vunpack.c.h.b16 %v3694_v40  ;;  %v6945_v24 = vsel %vm3523_vm8, 1.0, %v11832_v28  ;;  %v6946_v15 = vsel %vm3524_vm9, 1.0, %v11832_v28 }
 0x420   : > { %v3697_v9 = vpack.c.bf16 %v6944_v29, %v6943_v18  ;;  %vm3509_vm7 = vcmp.eq.f32.partialorder %v9025_v52, 6.0  ;;  %vm3510_vm13 = vcmp.eq.f32.partialorder %v9029_v23, 6.0  ;;  %v3698_v14 = vpack.c.bf16 %v6946_v15, %v6945_v24 }
 0x421   : > { %v10453_v58 = vpack.c.b16 %v4955_v63, %v4953_v60  ;;  %v10455_v7 = vpack.c.b16 %v4956_v62, %v4954_v17  ;;  %vm3511_vm14 = vcmp.eq.f32.partialorder %v9067_v32, 6.0  ;;  %vm3512_vm15 = vcmp.eq.f32.partialorder %v9071_v30, 6.0 }
 0x422   : > { %v4961_v38 = vunpack.c.l.b16 %v3697_v9  ;;  %v4962_v40 = vunpack.c.h.b16 %v3697_v9  ;;  %v6931_v33 = vsel %vm3509_vm7, 1.0, %v11832_v28  ;;  %v4963_v18 = vunpack.c.l.b16 %v3698_v14 }
 0x423   : > { %12440 = vst [vmem:[#allocation237_spill] sm:$0xff] %v10453_v58  ;;  %5539 = vmatpush.bf16.msrb.mxu0 %v10453_v58  ;;  %5565 = vmatpush.bf16.msrb.mxu2 %v10455_v7  ;;  %v4964_v29 = vunpack.c.h.b16 %v3698_v14  ;;  %v6932_v60 = vsel %vm3510_vm13, 1.0, %v11832_v28  ;;  %v6933_v17 = vsel %vm3511_vm14, 1.0, %v11832_v28  ;;  %v6934_v63 = vsel %vm3512_vm15, 1.0, %v11832_v28 }
 0x424   : > { %12441 = vst [vmem:[#allocation238_spill] sm:$0xff] %v10455_v7  ;;  %v3691_v62 = vpack.c.bf16 %v6932_v60, %v6931_v33  ;;  %vm3773_vm4 = vcmp.eq.f32.partialorder %v9085_v42, 7.0  ;;  %vm3774_vm5 = vcmp.eq.f32.partialorder %v9089_v41, 7.0  ;;  %v10467_v24 = vpack.c.b16 %v4963_v18, %v4961_v38 }
 0x425   : > { %v10469_v15 = vpack.c.b16 %v4964_v29, %v4962_v40  ;;  %v3692_v9 = vpack.c.bf16 %v6934_v63, %v6933_v17  ;;  %vm3775_vm2 = vcmp.eq.f32.partialorder %v9123_v12, 7.0  ;;  %vm3776_vm6 = vcmp.eq.f32.partialorder %v9127_v16, 7.0 }
 0x426   : > { %12442 = vst [vmem:[#allocation239_spill] sm:$0xff] %v10467_v24  ;;  %v4949_v7 = vunpack.c.l.b16 %v3691_v62  ;;  %v4950_v14 = vunpack.c.h.b16 %v3691_v62  ;;  %v7035_v58 = vsel %vm3773_vm4, 1.0, %v11832_v28  ;;  %5558 = vmatpush.bf16.msrb.mxu1 %v10467_v24  ;;  %v7036_v41 = vsel %vm3774_vm5, 1.0, %v11832_v28 }
 0x427   : > { %12443 = vst [vmem:[#allocation240_spill] sm:$0xff] %v10469_v15  ;;  %5584 = vmatpush.bf16.msrb.mxu3 %v10469_v15  ;;  %v4951_v42 = vunpack.c.l.b16 %v3692_v9  ;;  %v4952_v33 = vunpack.c.h.b16 %v3692_v9  ;;  %v7037_v38 = vsel %vm3775_vm2, 1.0, %v11832_v28  ;;  %v7038_v40 = vsel %vm3776_vm6, 1.0, %v11832_v28 }
 0x428   : > { %v3935_v18 = vpack.c.bf16 %v7036_v41, %v7035_v58  ;;  %v10481_v12 = vadd.f32 %v10388_v53, %v10342_v39  ;;  %v10485_v16 = vadd.f32 %v10390_v8, %v10344_v21  ;;  %v3936_v17 = vpack.c.bf16 %v7038_v40, %v7037_v38  ;;  %v12450_v41 = vld [vmem:[#allocation41_spill] sm:$0xff]  ;;  %v12451_v38 = vld [vmem:[#allocation44_spill] sm:$0xff] }
 0x429   : > { %v10487_v29 = vpack.c.b16 %v4951_v42, %v4949_v7  ;;  %v10489_v60 = vpack.c.b16 %v4952_v33, %v4950_v14  ;;  %vm3505_vm11 = vcmp.eq.f32.partialorder %v8943_v19, 6.0  ;;  %vm3506_vm10 = vcmp.eq.f32.partialorder %v8947_v5, 6.0  ;;  %5559 = vmatmul.bf16.vlgmr.msrb.gmra.mxu1 %v9326_v2  ;;  %v12452_v40 = vld [vmem:[#allocation24_spill] sm:$0xff] }
 0x42a   : > { %12444 = vst [vmem:[#allocation241_spill] sm:$0xff] %v10481_v12  ;;  %v5149_v63 = vunpack.c.l.b16 %v3935_v18  ;;  %v5150_v62 = vunpack.c.h.b16 %v3935_v18  ;;  %vm3507_vm0 = vcmp.eq.f32.partialorder %v8985_v31, 6.0  ;;  %5585 = vmatmul.bf16.vlgmr.msrb.gmra.mxu3 %v9326_v2  ;;  %v5151_v39 = vunpack.c.l.b16 %v3936_v17  ;;  %v12485_v12 = vld [vmem:[#allocation76_spill] sm:$0xff] }
 0x42b   : > { %12445 = vst [vmem:[#allocation242_spill] sm:$0xff] %v10485_v16  ;;  %5540 = vmatpush.bf16.msrb.mxu0 %v10487_v29  ;;  %5566 = vmatpush.bf16.msrb.mxu2 %v10489_v60  ;;  %v5152_v21 = vunpack.c.h.b16 %v3936_v17  ;;  %vm3508_vm1 = vcmp.eq.f32.partialorder %v8989_v36, 6.0  ;;  %v6927_v53 = vsel %vm3505_vm11, 1.0, %v11832_v28  ;;  %v6928_v8 = vsel %vm3506_vm10, 1.0, %v11832_v28  ;;  %v12484_v16 = vld [vmem:[#allocation21_spill] sm:$0xff] }
 0x42c   : > { %12446 = vst [vmem:[#allocation243_spill] sm:$0xff] %v10487_v29  ;;  %v6929_v58 = vsel %vm3507_vm0, 1.0, %v11832_v28  ;;  %v6930_v7 = vsel %vm3508_vm1, 1.0, %v11832_v28  ;;  %vm3769_vm3 = vcmp.eq.f32.partialorder %v9003_v50, 7.0  ;;  %v10504_v9 = vpack.c.b16 %v5151_v39, %v5149_v63 }
 0x42d   : > { %12447 = vst [vmem:[#allocation244_spill] sm:$0xff] %v10489_v60  ;;  %v10506_v14 = vpack.c.b16 %v5152_v21, %v5150_v62  ;;  %v3689_v42 = vpack.c.bf16 %v6928_v8, %v6927_v53  ;;  %v3690_v33 = vpack.c.bf16 %v6930_v7, %v6929_v58  ;;  %vm3770_vm12 = vcmp.eq.f32.partialorder %v12450_v41, 7.0 }
 0x42e   : > { %12448 = vst [vmem:[#allocation245_spill] sm:$0xff] %v10504_v9  ;;  %vm3771_vm8 = vcmp.eq.f32.partialorder %v12451_v38, 7.0  ;;  %vm3772_vm9 = vcmp.eq.f32.partialorder %v12452_v40, 7.0  ;;  %v7031_v18 = vsel %vm3769_vm3, 1.0, %v11832_v28  ;;  %5603 = vmatpush.bf16.msra.mxu1 %v10504_v9  ;;  %v7032_v62 = vsel %vm3770_vm12, 1.0, %v11832_v28  ;;  %v12455_v38 = vld [vmem:[#allocation23_spill] sm:$0xff] }
 0x42f   : > { %12449 = vst [vmem:[#allocation246_spill] sm:$0xff] %v10506_v14  ;;  %5629 = vmatpush.bf16.msra.mxu3 %v10506_v14  ;;  %v4945_v17 = vunpack.c.l.b16 %v3689_v42  ;;  %v4947_v50 = vunpack.c.l.b16 %v3690_v33  ;;  %v4946_v63 = vunpack.c.h.b16 %v3689_v42  ;;  %v4948_v39 = vunpack.c.h.b16 %v3690_v33  ;;  %v12456_v40 = vld [vmem:[#allocation71_spill] sm:$0xff]  ;;  %v12457_v42 = vld [vmem:[#allocation72_spill] sm:$0xff] }
 0x430   : > { %v7033_v21 = vsel %vm3771_vm8, 1.0, %v11832_v28  ;;  %v7034_v53 = vsel %vm3772_vm9, 1.0, %v11832_v28  ;;  %vm3501_vm7 = vcmp.eq.f32.partialorder %v8861_v48, 6.0  ;;  %v3933_v7 = vpack.c.bf16 %v7032_v62, %v7031_v18  ;;  %v12458_v62 = vld [vmem:[#allocation30_spill] sm:$0xff]  ;;  %v12461_v9 = vld [vmem:[#allocation31_spill] sm:$0xff] }
 0x431   : > { %v10518_v8 = vpack.c.b16 %v4947_v50, %v4945_v17  ;;  %v10520_v58 = vpack.c.b16 %v4948_v39, %v4946_v63  ;;  %v3934_v41 = vpack.c.bf16 %v7034_v53, %v7033_v21  ;;  %vm3502_vm13 = vcmp.eq.f32.partialorder %v12455_v38, 6.0 }
 0x432   : > { %vm3503_vm14 = vcmp.eq.f32.partialorder %v12456_v40, 6.0  ;;  %vm3504_vm15 = vcmp.eq.f32.partialorder %v12457_v42, 6.0  ;;  %v6923_v33 = vsel %vm3501_vm7, 1.0, %v11832_v28  ;;  %v5145_v60 = vunpack.c.l.b16 %v3933_v7 }
 0x433   : > { %12453 = vst [vmem:[#allocation41_spill] sm:$0xff] %v10518_v8  ;;  %5541 = vmatpush.bf16.msrb.mxu0 %v10518_v8  ;;  %5567 = vmatpush.bf16.msrb.mxu2 %v10520_v58  ;;  %v5147_v29 = vunpack.c.l.b16 %v3934_v41  ;;  %v5146_v17 = vunpack.c.h.b16 %v3933_v7  ;;  %v5148_v50 = vunpack.c.h.b16 %v3934_v41  ;;  %v6924_v63 = vsel %vm3502_vm13, 1.0, %v11832_v28  ;;  %v12463_v7 = vld [vmem:[#allocation28_spill] sm:$0xff] }
 0x434   : > { %12454 = vst [vmem:[#allocation44_spill] sm:$0xff] %v10520_v58  ;;  %v6925_v18 = vsel %vm3503_vm14, 1.0, %v11832_v28  ;;  %v6926_v39 = vsel %vm3504_vm15, 1.0, %v11832_v28  ;;  %vm3765_vm4 = vcmp.eq.f32.partialorder %v12458_v62, 7.0  ;;  %v3687_v14 = vpack.c.bf16 %v6924_v63, %v6923_v33  ;;  %v12462_v58 = vld [vmem:[#allocation62_spill] sm:$0xff] }
 0x435   : > { %v10532_v21 = vpack.c.b16 %v5147_v29, %v5145_v60  ;;  %v10534_v53 = vpack.c.b16 %v5148_v50, %v5146_v17  ;;  %v3688_v8 = vpack.c.bf16 %v6926_v39, %v6925_v18  ;;  %vm3766_vm5 = vcmp.eq.f32.partialorder %v12461_v9, 7.0  ;;  %v12466_v39 = vld [vmem:[#allocation86_spill] sm:$0xff] }
 0x436   : > { %vm3767_vm2 = vcmp.eq.f32.partialorder %v12462_v58, 7.0  ;;  %vm3768_vm6 = vcmp.eq.f32.partialorder %v12463_v7, 7.0  ;;  %v7027_v41 = vsel %vm3765_vm4, 1.0, %v11832_v28  ;;  %v4941_v15 = vunpack.c.l.b16 %v3687_v14  ;;  %v12467_v7 = vld [vmem:[#allocation67_spill] sm:$0xff] }
 0x437   : > { %12459 = vst [vmem:[#allocation24_spill] sm:$0xff] %v10532_v21  ;;  %5604 = vmatpush.bf16.msra.mxu1 %v10532_v21  ;;  %5630 = vmatpush.bf16.msra.mxu3 %v10534_v53  ;;  %v4943_v62 = vunpack.c.l.b16 %v3688_v8  ;;  %v4942_v29 = vunpack.c.h.b16 %v3687_v14  ;;  %v4944_v60 = vunpack.c.h.b16 %v3688_v8  ;;  %v7028_v17 = vsel %vm3766_vm5, 1.0, %v11832_v28  ;;  %v12468_v14 = vld [vmem:[#allocation68_spill] sm:$0xff] }
 0x438   : > { %12460 = vst [vmem:[#allocation23_spill] sm:$0xff] %v10534_v53  ;;  %v7029_v33 = vsel %vm3767_vm2, 1.0, %v11832_v28  ;;  %v7030_v9 = vsel %vm3768_vm6, 1.0, %v11832_v28  ;;  %vm3497_vm11 = vcmp.eq.f32.partialorder %v12408_v45, 6.0  ;;  %v3931_v63 = vpack.c.bf16 %v7028_v17, %v7027_v41 }
 0x439   : > { %v10546_v58 = vpack.c.b16 %v4943_v62, %v4941_v15  ;;  %v10548_v50 = vpack.c.b16 %v4944_v60, %v4942_v29  ;;  %v3932_v18 = vpack.c.bf16 %v7030_v9, %v7029_v33  ;;  %vm3498_vm10 = vcmp.eq.f32.partialorder %v12466_v39, 6.0 }
 0x43a   : > { %vm3499_vm0 = vcmp.eq.f32.partialorder %v12467_v7, 6.0  ;;  %vm3500_vm1 = vcmp.eq.f32.partialorder %v12468_v14, 6.0  ;;  %v6919_v8 = vsel %vm3497_vm11, 1.0, %v11832_v28  ;;  %v5141_v53 = vunpack.c.l.b16 %v3931_v63 }
 0x43b   : > { %12464 = vst [vmem:[#allocation71_spill] sm:$0xff] %v10546_v58  ;;  %5542 = vmatpush.bf16.msrb.mxu0 %v10546_v58  ;;  %5568 = vmatpush.bf16.msrb.mxu2 %v10548_v50  ;;  %v5143_v21 = vunpack.c.l.b16 %v3932_v18  ;;  %v5142_v15 = vunpack.c.h.b16 %v3931_v63  ;;  %v5144_v62 = vunpack.c.h.b16 %v3932_v18  ;;  %v6920_v29 = vsel %vm3498_vm10, 1.0, %v11832_v28  ;;  %v12471_v63 = vld [vmem:[#allocation56_spill] sm:$0xff] }
 0x43c   : > { %12465 = vst [vmem:[#allocation72_spill] sm:$0xff] %v10548_v50  ;;  %v6921_v41 = vsel %vm3499_vm0, 1.0, %v11832_v28  ;;  %v6922_v60 = vsel %vm3500_vm1, 1.0, %v11832_v28  ;;  %vm3761_vm3 = vcmp.eq.f32.partialorder %v12360_v59, 7.0  ;;  %v3685_v9 = vpack.c.bf16 %v6920_v29, %v6919_v8 }
 0x43d   : > { %v10560_v17 = vpack.c.b16 %v5143_v21, %v5141_v53  ;;  %v10562_v33 = vpack.c.b16 %v5144_v62, %v5142_v15  ;;  %v3686_v58 = vpack.c.bf16 %v6922_v60, %v6921_v41  ;;  %vm3762_vm12 = vcmp.eq.f32.partialorder %v12414_v22, 7.0  ;;  %v12474_v60 = vld [vmem:[#allocation79_spill] sm:$0xff] }
 0x43e   : > { %vm3763_vm8 = vcmp.eq.f32.partialorder %v12417_v46, 7.0  ;;  %vm3764_vm9 = vcmp.eq.f32.partialorder %v12471_v63, 7.0  ;;  %v7023_v18 = vsel %vm3761_vm3, 1.0, %v11832_v28  ;;  %v4937_v50 = vunpack.c.l.b16 %v3685_v9 }
 0x43f   : > { %12469 = vst [vmem:[#allocation30_spill] sm:$0xff] %v10560_v17  ;;  %5605 = vmatpush.bf16.msra.mxu1 %v10560_v17  ;;  %5631 = vmatpush.bf16.msra.mxu3 %v10562_v33  ;;  %v4939_v59 = vunpack.c.l.b16 %v3686_v58  ;;  %v4938_v21 = vunpack.c.h.b16 %v3685_v9  ;;  %v4940_v53 = vunpack.c.h.b16 %v3686_v58  ;;  %v7024_v15 = vsel %vm3762_vm12, 1.0, %v11832_v28  ;;  %v12475_v9 = vld [vmem:[#allocation80_spill] sm:$0xff] }
 0x440   : > { %12470 = vst [vmem:[#allocation31_spill] sm:$0xff] %v10562_v33  ;;  %v7025_v8 = vsel %vm3763_vm8, 1.0, %v11832_v28  ;;  %v7026_v22 = vsel %vm3764_vm9, 1.0, %v11832_v28  ;;  %vm3493_vm7 = vcmp.eq.f32.partialorder %v12312_v26, 6.0  ;;  %v3929_v29 = vpack.c.bf16 %v7024_v15, %v7023_v18  ;;  %v10586_v18 = vpop.f32.mrf.mxu2 }
 0x441   : > { %v10574_v46 = vpack.c.b16 %v4939_v59, %v4937_v50  ;;  %v10576_v62 = vpack.c.b16 %v4940_v53, %v4938_v21  ;;  %v3930_v41 = vpack.c.bf16 %v7026_v22, %v7025_v8  ;;  %vm3494_vm13 = vcmp.eq.f32.partialorder %v12366_v43, 6.0  ;;  %v10584_v21 = vpop.f32.mrf.mxu0 }
 0x442   : > { %vm3495_vm14 = vcmp.eq.f32.partialorder %v12474_v60, 6.0  ;;  %vm3496_vm15 = vcmp.eq.f32.partialorder %v12475_v9, 6.0  ;;  %v6915_v58 = vsel %vm3493_vm7, 1.0, %v11832_v28  ;;  %v5137_v63 = vunpack.c.l.b16 %v3929_v29 }
 0x443   : > { %12472 = vst [vmem:[#allocation62_spill] sm:$0xff] %v10574_v46  ;;  %5543 = vmatpush.bf16.msrb.mxu0 %v10574_v46  ;;  %5569 = vmatpush.bf16.msrb.mxu2 %v10576_v62  ;;  %v5139_v33 = vunpack.c.l.b16 %v3930_v41  ;;  %v5138_v50 = vunpack.c.h.b16 %v3929_v29  ;;  %v5140_v59 = vunpack.c.h.b16 %v3930_v41  ;;  %v6916_v53 = vsel %vm3494_vm13, 1.0, %v11832_v28 }
 0x444   : > { %12473 = vst [vmem:[#allocation28_spill] sm:$0xff] %v10576_v62  ;;  %v6917_v15 = vsel %vm3495_vm14, 1.0, %v11832_v28  ;;  %v6918_v8 = vsel %vm3496_vm15, 1.0, %v11832_v28  ;;  %vm3757_vm4 = vcmp.eq.f32.partialorder %v12264_v35, 7.0  ;;  %v3683_v62 = vpack.c.bf16 %v6916_v53, %v6915_v58 }
 0x445   : > { %v10592_v22 = vpack.c.b16 %v5139_v33, %v5137_v63  ;;  %v10594_v46 = vpack.c.b16 %v5140_v59, %v5138_v50  ;;  %v3684_v17 = vpack.c.bf16 %v6918_v8, %v6917_v15  ;;  %vm3758_vm5 = vcmp.eq.f32.partialorder %v12318_v0, 7.0  ;;  %v12480_v15 = vld [vmem:[#allocation12_spill] sm:$0xff]  ;;  %v12481_v8 = vld [vmem:[#allocation49_spill] sm:$0xff] }
 0x446   : > { %vm3759_vm2 = vcmp.eq.f32.partialorder %v12321_v44, 7.0  ;;  %vm3760_vm6 = vcmp.eq.f32.partialorder %v12373_v49, 7.0  ;;  %v7019_v29 = vsel %vm3757_vm4, 1.0, %v11832_v28  ;;  %v4933_v41 = vunpack.c.l.b16 %v3683_v62 }
 0x447   : > { %12476 = vst [vmem:[#allocation86_spill] sm:$0xff] %v10592_v22  ;;  %5606 = vmatpush.bf16.msra.mxu1 %v10592_v22  ;;  %5632 = vmatpush.bf16.msra.mxu3 %v10594_v46  ;;  %v4935_v35 = vunpack.c.l.b16 %v3684_v17  ;;  %v4934_v33 = vunpack.c.h.b16 %v3683_v62  ;;  %v4936_v63 = vunpack.c.h.b16 %v3684_v17  ;;  %v7020_v50 = vsel %vm3758_vm5, 1.0, %v11832_v28  ;;  %v12482_v62 = vld [vmem:[#allocation50_spill] sm:$0xff] }
 0x448   : > { %12477 = vst [vmem:[#allocation67_spill] sm:$0xff] %v10594_v46  ;;  %v7021_v58 = vsel %vm3759_vm2, 1.0, %v11832_v28  ;;  %v7022_v0 = vsel %vm3760_vm6, 1.0, %v11832_v28  ;;  %vm3489_vm11 = vcmp.eq.f32.partialorder %v12270_v6, 6.0  ;;  %v3927_v59 = vpack.c.bf16 %v7020_v50, %v7019_v29  ;;  %v10618_v29 = vpop.f32.mrf.mxu3 }
 0x449   : > { %v10606_v44 = vpack.c.b16 %v4935_v35, %v4933_v41  ;;  %v10608_v49 = vpack.c.b16 %v4936_v63, %v4934_v33  ;;  %v3928_v53 = vpack.c.bf16 %v7022_v0, %v7021_v58  ;;  %vm3490_vm10 = vcmp.eq.f32.partialorder %v12480_v15, 6.0  ;;  %v10616_v33 = vpop.f32.mrf.mxu1  ;;  %v5289_v0 = vpop.f32.mrf.mxu0 }
 0x44a   : > { %vm3491_vm0 = vcmp.eq.f32.partialorder %v12481_v8, 6.0  ;;  %vm3492_vm1 = vcmp.eq.f32.partialorder %v12482_v62, 6.0  ;;  %v6911_v17 = vsel %vm3489_vm11, 1.0, %v11832_v28  ;;  %v5133_v46 = vunpack.c.l.b16 %v3927_v59 }
 0x44b   : > { %12478 = vst [vmem:[#allocation68_spill] sm:$0xff] %v10606_v44  ;;  %5544 = vmatpush.bf16.msrb.mxu0 %v10606_v44  ;;  %5570 = vmatpush.bf16.msrb.mxu2 %v10608_v49  ;;  %v5135_v22 = vunpack.c.l.b16 %v3928_v53  ;;  %v5134_v41 = vunpack.c.h.b16 %v3927_v59  ;;  %v5136_v35 = vunpack.c.h.b16 %v3928_v53  ;;  %v6912_v63 = vsel %vm3490_vm10, 1.0, %v11832_v28  ;;  %v5315_v44 = vpop.f32.mrf.mxu2 }
 0x44c   : > { %12479 = vst [vmem:[#allocation56_spill] sm:$0xff] %v10608_v49  ;;  %v6913_v50 = vsel %vm3491_vm0, 1.0, %v11832_v28  ;;  %v6914_v58 = vsel %vm3492_vm1, 1.0, %v11832_v28  ;;  %vm3753_vm3 = vcmp.eq.f32.partialorder %v12205_v47, 7.0  ;;  %v3681_v59 = vpack.c.bf16 %v6912_v63, %v6911_v17 }
 0x44d   : > { %v10624_v24 = vpack.c.b16 %v5135_v22, %v5133_v46  ;;  %v10626_v49 = vpack.c.b16 %v5136_v35, %v5134_v41  ;;  %v3682_v53 = vpack.c.bf16 %v6914_v58, %v6913_v50  ;;  %vm3754_vm12 = vcmp.eq.f32.partialorder %v12483_v1, 7.0 }
 0x44e   : > { %vm3755_vm8 = vcmp.eq.f32.partialorder %v12484_v16, 7.0  ;;  %vm3756_vm9 = vcmp.eq.f32.partialorder %v12485_v12, 7.0  ;;  %v7015_v62 = vsel %vm3753_vm3, 1.0, %v11832_v28  ;;  %v4929_v47 = vunpack.c.l.b16 %v3681_v59 }
 0x44f   : > { %5607 = vmatpush.bf16.msra.mxu1 %v10624_v24  ;;  %5633 = vmatpush.bf16.msra.mxu3 %v10626_v49  ;;  %v4931_v44 = vunpack.c.l.b16 %v3682_v53  ;;  %v4930_v46 = vunpack.c.h.b16 %v3681_v59  ;;  %v4932_v22 = vunpack.c.h.b16 %v3682_v53  ;;  %v7016_v41 = vsel %vm3754_vm12, 1.0, %v11832_v28 }
 0x450   : > { %v7017_v17 = vsel %vm3755_vm8, 1.0, %v11832_v28  ;;  %v7018_v1 = vsel %vm3756_vm9, 1.0, %v11832_v28  ;;  %vm3741_vm7 = vcmp.eq.f32.partialorder %v9181_v11, 7.0  ;;  %v3925_v35 = vpack.c.bf16 %v7016_v41, %v7015_v62 }
 0x451   : > { %v10638_v16 = vpack.c.b16 %v4931_v44, %v4929_v47  ;;  %v10640_v12 = vpack.c.b16 %v4932_v22, %v4930_v46  ;;  %v3926_v63 = vpack.c.bf16 %v7018_v1, %v7017_v17  ;;  %vm3742_vm13 = vcmp.eq.f32.partialorder %v9185_v27, 7.0  ;;  %v5302_v53 = vpop.f32.mrf.mxu1  ;;  %v5328_v47 = vpop.f32.mrf.mxu3  ;;  %v12486_v17 = vld [vmem:[#allocation120_spill] sm:$0xff] }
 0x452   : > { %vm3743_vm14 = vcmp.eq.f32.partialorder %v12432_v56, 7.0  ;;  %vm3744_vm15 = vcmp.eq.f32.partialorder %v12433_v54, 7.0  ;;  %v7003_v50 = vsel %vm3741_vm7, 1.0, %v11832_v28  ;;  %v5129_v58 = vunpack.c.l.b16 %v3925_v35 }
 0x453   : > { %5545 = vmatpush.bf16.msrb.mxu0 %v10638_v16  ;;  %5571 = vmatpush.bf16.msrb.mxu2 %v10640_v12  ;;  %v5131_v11 = vunpack.c.l.b16 %v3926_v63  ;;  %v5130_v0 = vunpack.c.h.b16 %v3925_v35  ;;  %v5132_v59 = vunpack.c.h.b16 %v3926_v63  ;;  %v7004_v62 = vsel %vm3742_vm13, 1.0, %v11832_v28 }
 0x454   : > { %v7005_v27 = vsel %vm3743_vm14, 1.0, %v11832_v28  ;;  %v7006_v56 = vsel %vm3744_vm15, 1.0, %v11832_v28  ;;  %vm3749_vm4 = vcmp.eq.f32.partialorder %v12213_v25, 7.0  ;;  %v3919_v46 = vpack.c.bf16 %v7004_v62, %v7003_v50 }
 0x455   : > { %v10652_v54 = vpack.c.b16 %v5131_v11, %v5129_v58  ;;  %v10654_v44 = vpack.c.b16 %v5132_v59, %v5130_v0  ;;  %v3920_v22 = vpack.c.bf16 %v7006_v56, %v7005_v27  ;;  %vm3750_vm5 = vcmp.eq.f32.partialorder %v12214_v57, 7.0 }
 0x456   : > { %vm3751_vm2 = vcmp.eq.f32.partialorder %v12217_v55, 7.0  ;;  %vm3752_vm6 = vcmp.eq.f32.partialorder %v12384_v3, 7.0  ;;  %v7011_v41 = vsel %vm3749_vm4, 1.0, %v11832_v28  ;;  %5572 = vmatmul.bf16.vlgmr.msrb.gmra.mxu2 %v12486_v17  ;;  %5546 = vmatmul.bf16.vlgmr.msrb.gmra.mxu0 %v12486_v17  ;;  %v5117_v25 = vunpack.c.l.b16 %v3919_v46 }
 0x457   : > { %5608 = vmatpush.bf16.msra.mxu1 %v10652_v54  ;;  %5634 = vmatpush.bf16.msra.mxu3 %v10654_v44  ;;  %v5119_v1 = vunpack.c.l.b16 %v3920_v22  ;;  %v5118_v35 = vunpack.c.h.b16 %v3919_v46  ;;  %v5120_v63 = vunpack.c.h.b16 %v3920_v22  ;;  %v7012_v57 = vsel %vm3750_vm5, 1.0, %v11832_v28 }
 0x458   : > { %v7013_v55 = vsel %vm3751_vm2, 1.0, %v11832_v28  ;;  %v7014_v3 = vsel %vm3752_vm6, 1.0, %v11832_v28  ;;  %vm3737_vm11 = vcmp.eq.f32.partialorder %v12282_v10, 7.0  ;;  %v3923_v11 = vpack.c.bf16 %v7012_v57, %v7011_v41 }
 0x459   : > { %v10668_v50 = vpack.c.b16 %v5119_v1, %v5117_v25  ;;  %v10670_v58 = vpack.c.b16 %v5120_v63, %v5118_v35  ;;  %v3924_v0 = vpack.c.bf16 %v7014_v3, %v7013_v55  ;;  %vm3738_vm10 = vcmp.eq.f32.partialorder %v12283_v34, 7.0 }
 0x45a   : > { %vm3739_vm0 = vcmp.eq.f32.partialorder %v12336_v20, 7.0  ;;  %vm3740_vm1 = vcmp.eq.f32.partialorder %v12337_v37, 7.0  ;;  %v6999_v59 = vsel %vm3737_vm11, 1.0, %v11832_v28  ;;  %v5125_v53 = vunpack.c.l.b16 %v3923_v11 }
 0x45b   : > { %5590 = vmatpush.bf16.msra.mxu0 %v10668_v50  ;;  %5616 = vmatpush.bf16.msra.mxu2 %v10670_v58  ;;  %v5127_v10 = vunpack.c.l.b16 %v3924_v0  ;;  %v5126_v47 = vunpack.c.h.b16 %v3923_v11  ;;  %v5128_v62 = vunpack.c.h.b16 %v3924_v0  ;;  %v7000_v27 = vsel %vm3738_vm10, 1.0, %v11832_v28 }
 0x45c   : > { %v7001_v56 = vsel %vm3739_vm0, 1.0, %v11832_v28  ;;  %v7002_v34 = vsel %vm3740_vm1, 1.0, %v11832_v28  ;;  %vm3745_vm3 = vcmp.eq.f32.partialorder %v12286_v51, 7.0  ;;  %v3917_v46 = vpack.c.bf16 %v7000_v27, %v6999_v59 }
 0x45d   : > { %v10682_v20 = vpack.c.b16 %v5127_v10, %v5125_v53  ;;  %v10684_v37 = vpack.c.b16 %v5128_v62, %v5126_v47  ;;  %v3918_v22 = vpack.c.bf16 %v7002_v34, %v7001_v56  ;;  %vm3746_vm12 = vcmp.eq.f32.partialorder %v12287_v61, 7.0  ;;  %v10717_v34 = vpop.f32.mrf.mxu0 }
 0x45e   : > { %vm3747_vm8 = vcmp.eq.f32.partialorder %v12229_v4, 7.0  ;;  %vm3748_vm9 = vcmp.eq.f32.partialorder %v12230_v13, 7.0  ;;  %v7007_v41 = vsel %vm3745_vm3, 1.0, %v11832_v28  ;;  %v5113_v25 = vunpack.c.l.b16 %v3917_v46 }
 0x45f   : > { %5609 = vmatpush.bf16.msra.mxu1 %v10682_v20  ;;  %5635 = vmatpush.bf16.msra.mxu3 %v10684_v37  ;;  %v5115_v51 = vunpack.c.l.b16 %v3918_v22  ;;  %v5114_v1 = vunpack.c.h.b16 %v3917_v46  ;;  %v5116_v35 = vunpack.c.h.b16 %v3918_v22  ;;  %v7008_v63 = vsel %vm3746_vm12, 1.0, %v11832_v28  ;;  %v10719_v46 = vpop.f32.mrf.mxu2 }
 0x460   : > { %v7009_v57 = vsel %vm3747_vm8, 1.0, %v11832_v28  ;;  %v7010_v61 = vsel %vm3748_vm9, 1.0, %v11832_v28  ;;  %vm3733_vm7 = vcmp.eq.f32.partialorder %v9025_v52, 7.0  ;;  %v3921_v55 = vpack.c.bf16 %v7008_v63, %v7007_v41 }
 0x461   : > { %v10696_v4 = vpack.c.b16 %v5115_v51, %v5113_v25  ;;  %v10698_v13 = vpack.c.b16 %v5116_v35, %v5114_v1  ;;  %v3922_v3 = vpack.c.bf16 %v7010_v61, %v7009_v57  ;;  %vm3734_vm13 = vcmp.eq.f32.partialorder %v9029_v23, 7.0  ;;  %v12487_v51 = vld [vmem:[#allocation27_spill] sm:$0xff]  ;;  %v12488_v1 = vld [vmem:[#allocation96_spill] sm:$0xff]  ;;  %v10741_v57 = vpop.f32.mrf.mxu1  ;;  %v10743_v61 = vpop.f32.mrf.mxu3 }
 0x462   : > { %vm3735_vm14 = vcmp.eq.f32.partialorder %v9067_v32, 7.0  ;;  %vm3736_vm15 = vcmp.eq.f32.partialorder %v9071_v30, 7.0  ;;  %v6995_v11 = vsel %vm3733_vm7, 1.0, %v11832_v28  ;;  %v5121_v0 = vunpack.c.l.b16 %v3921_v55 }
 0x463   : > { %5591 = vmatpush.bf16.msra.mxu0 %v10696_v4  ;;  %5617 = vmatpush.bf16.msra.mxu2 %v10698_v13  ;;  %v5123_v52 = vunpack.c.l.b16 %v3922_v3  ;;  %v5122_v59 = vunpack.c.h.b16 %v3921_v55  ;;  %v5124_v53 = vunpack.c.h.b16 %v3922_v3  ;;  %v6996_v10 = vsel %vm3734_vm13, 1.0, %v11832_v28 }
 0x464   : > { %v6997_v47 = vsel %vm3735_vm14, 1.0, %v11832_v28  ;;  %v6998_v23 = vsel %vm3736_vm15, 1.0, %v11832_v28  ;;  %v10711_v32 = vadd.f32 %v10616_v33, %v10584_v21  ;;  %v3915_v27 = vpack.c.bf16 %v6996_v10, %v6995_v11 }
 0x465   : > { %v10713_v30 = vpack.c.b16 %v5123_v52, %v5121_v0  ;;  %v10715_v62 = vpack.c.b16 %v5124_v53, %v5122_v59  ;;  %v3916_v56 = vpack.c.bf16 %v6998_v23, %v6997_v47  ;;  %v10723_v22 = vadd.f32 %v10618_v29, %v10586_v18  ;;  %v12489_v52 = vld [vmem:[#allocation39_spill] sm:$0xff] }
 0x466   : > { %vm3729_vm4 = vcmp.eq.f32.partialorder %v8943_v19, 7.0  ;;  %vm3730_vm5 = vcmp.eq.f32.partialorder %v8947_v5, 7.0  ;;  %vm3731_vm2 = vcmp.eq.f32.partialorder %v8985_v31, 7.0  ;;  %v5109_v21 = vunpack.c.l.b16 %v3915_v27 }
 0x467   : > { %5610 = vmatpush.bf16.msra.mxu1 %v10713_v30  ;;  %5636 = vmatpush.bf16.msra.mxu3 %v10715_v62  ;;  %v5111_v33 = vunpack.c.l.b16 %v3916_v56  ;;  %v5110_v41 = vunpack.c.h.b16 %v3915_v27  ;;  %v5112_v25 = vunpack.c.h.b16 %v3916_v56  ;;  %vm3732_vm6 = vcmp.eq.f32.partialorder %v8989_v36, 7.0  ;;  %v5367_v10 = vpop.f32.mrf.mxu2 }
 0x468   : > { %v6991_v19 = vsel %vm3729_vm4, 1.0, %v11832_v28  ;;  %v6992_v5 = vsel %vm3730_vm5, 1.0, %v11832_v28  ;;  %v6993_v31 = vsel %vm3731_vm2, 1.0, %v11832_v28  ;;  %v6994_v35 = vsel %vm3732_vm6, 1.0, %v11832_v28 }
 0x469   : > { %v10736_v18 = vpack.c.b16 %v5111_v33, %v5109_v21  ;;  %v10738_v29 = vpack.c.b16 %v5112_v25, %v5110_v41  ;;  %v3913_v63 = vpack.c.bf16 %v6992_v5, %v6991_v19  ;;  %v3914_v55 = vpack.c.bf16 %v6994_v35, %v6993_v31  ;;  %v5380_v5 = vpop.f32.mrf.mxu3 }
 0x46a   : > { %vm3725_vm11 = vcmp.eq.f32.partialorder %v8861_v48, 7.0  ;;  %vm3726_vm10 = vcmp.eq.f32.partialorder %v12455_v38, 7.0  ;;  %vm3727_vm0 = vcmp.eq.f32.partialorder %v12456_v40, 7.0  ;;  %5611 = vmatmul.bf16.vlgmr.msra.gmra.mxu1 %v9326_v2  ;;  %5637 = vmatmul.bf16.vlgmr.msra.gmra.mxu3 %v9326_v2  ;;  %vm3728_vm1 = vcmp.eq.f32.partialorder %v12457_v42, 7.0  ;;  %v12490_v38 = vld [vmem:[#allocation40_spill] sm:$0xff]  ;;  %v5341_v42 = vpop.f32.mrf.mxu0  ;;  %v12498_v5 = vld [vmem:[#allocation19_spill] sm:$0xff] }
 0x46b   : > { %5662 = vmatpush.bf16.msrb.mxu1 %v12487_v51  ;;  %5688 = vmatpush.bf16.msrb.mxu3 %v12488_v1  ;;  %v5105_v36 = vunpack.c.l.b16 %v3913_v63  ;;  %v5106_v3 = vunpack.c.h.b16 %v3913_v63  ;;  %v6987_v11 = vsel %vm3725_vm11, 1.0, %v11832_v28  ;;  %v5107_v0 = vunpack.c.l.b16 %v3914_v55  ;;  %v12491_v51 = vld [vmem:[#allocation57_spill] sm:$0xff]  ;;  %v12492_v1 = vld [vmem:[#allocation58_spill] sm:$0xff] }
 0x46c   : > { %5592 = vmatpush.bf16.msra.mxu0 %v10736_v18  ;;  %5618 = vmatpush.bf16.msra.mxu2 %v10738_v29  ;;  %v5108_v48 = vunpack.c.h.b16 %v3914_v55  ;;  %v6988_v40 = vsel %vm3726_vm10, 1.0, %v11832_v28  ;;  %v6989_v2 = vsel %vm3727_vm0, 1.0, %v11832_v28  ;;  %v6990_v59 = vsel %vm3728_vm1, 1.0, %v11832_v28  ;;  %v12495_v42 = vld [vmem:[#allocation50_spill] sm:$0xff] }
 0x46d   : > { %v3911_v53 = vpack.c.bf16 %v6988_v40, %v6987_v11  ;;  %vm3721_vm3 = vcmp.eq.f32.partialorder %v12408_v45, 7.0  ;;  %vm3722_vm12 = vcmp.eq.f32.partialorder %v12466_v39, 7.0  ;;  %v10761_v47 = vpack.c.b16 %v5107_v0, %v5105_v36 }
 0x46e   : > { %v10763_v23 = vpack.c.b16 %v5108_v48, %v5106_v3  ;;  %v3912_v27 = vpack.c.bf16 %v6990_v59, %v6989_v2  ;;  %vm3723_vm8 = vcmp.eq.f32.partialorder %v12467_v7, 7.0  ;;  %vm3724_vm9 = vcmp.eq.f32.partialorder %v12468_v14, 7.0  ;;  %v5354_v14 = vpop.f32.mrf.mxu1  ;;  %v12493_v48 = vld [vmem:[#allocation90_spill] sm:$0xff] }
 0x46f   : > { %5663 = vmatpush.bf16.msrb.mxu1 %v12489_v52  ;;  %5689 = vmatpush.bf16.msrb.mxu3 %v12490_v38  ;;  %v5101_v56 = vunpack.c.l.b16 %v3911_v53  ;;  %v5102_v21 = vunpack.c.h.b16 %v3911_v53  ;;  %v6983_v33 = vsel %vm3721_vm3, 1.0, %v11832_v28  ;;  %v6984_v41 = vsel %vm3722_vm12, 1.0, %v11832_v28  ;;  %v12494_v52 = vld [vmem:[#allocation91_spill] sm:$0xff] }
 0x470   : > { %5593 = vmatpush.bf16.msra.mxu0 %v10761_v47  ;;  %5619 = vmatpush.bf16.msra.mxu2 %v10763_v23  ;;  %v5103_v45 = vunpack.c.l.b16 %v3912_v27  ;;  %v5104_v39 = vunpack.c.h.b16 %v3912_v27  ;;  %v6985_v25 = vsel %vm3723_vm8, 1.0, %v11832_v28  ;;  %v6986_v7 = vsel %vm3724_vm9, 1.0, %v11832_v28 }
 0x471   : > { %v3909_v19 = vpack.c.bf16 %v6984_v41, %v6983_v33  ;;  %vm3717_vm7 = vcmp.eq.f32.partialorder %v12312_v26, 7.0  ;;  %vm3718_vm13 = vcmp.eq.f32.partialorder %v12366_v43, 7.0  ;;  %v3910_v63 = vpack.c.bf16 %v6986_v7, %v6985_v25  ;;  %v12497_v33 = vld [vmem:[#allocation82_spill] sm:$0xff] }
 0x472   : > { %v10777_v31 = vpack.c.b16 %v5103_v45, %v5101_v56  ;;  %v10779_v35 = vpack.c.b16 %v5104_v39, %v5102_v21  ;;  %vm3719_vm14 = vcmp.eq.f32.partialorder %v12474_v60, 7.0  ;;  %vm3720_vm15 = vcmp.eq.f32.partialorder %v12475_v9, 7.0  ;;  %v12496_v21 = vld [vmem:[#allocation81_spill] sm:$0xff] }
 0x473   : > { %5664 = vmatpush.bf16.msrb.mxu1 %v12491_v51  ;;  %5690 = vmatpush.bf16.msrb.mxu3 %v12492_v1  ;;  %v5097_v55 = vunpack.c.l.b16 %v3909_v19  ;;  %v5098_v36 = vunpack.c.h.b16 %v3909_v19  ;;  %v6979_v3 = vsel %vm3717_vm7, 1.0, %v11832_v28  ;;  %v5099_v26 = vunpack.c.l.b16 %v3910_v63 }
 0x474   : > { %5594 = vmatpush.bf16.msra.mxu0 %v10777_v31  ;;  %5620 = vmatpush.bf16.msra.mxu2 %v10779_v35  ;;  %v5100_v43 = vunpack.c.h.b16 %v3910_v63  ;;  %v6980_v11 = vsel %vm3718_vm13, 1.0, %v11832_v28  ;;  %v6981_v0 = vsel %vm3719_vm14, 1.0, %v11832_v28  ;;  %v6982_v60 = vsel %vm3720_vm15, 1.0, %v11832_v28  ;;  %v12501_v63 = vld [vmem:[#allocation104_spill] sm:$0xff] }
 0x475   : > { %v3907_v38 = vpack.c.bf16 %v6980_v11, %v6979_v3  ;;  %vm3713_vm4 = vcmp.eq.f32.partialorder %v12270_v6, 7.0  ;;  %vm3714_vm5 = vcmp.eq.f32.partialorder %v12480_v15, 7.0  ;;  %v10793_v9 = vpack.c.b16 %v5099_v26, %v5097_v55  ;;  %v12502_v55 = vld [vmem:[#allocation45_spill] sm:$0xff]  ;;  %v5417_v11 = vpop.f32.mrf.mxu2 }
 0x476   : > { %v10795_v40 = vpack.c.b16 %v5100_v43, %v5098_v36  ;;  %v3908_v2 = vpack.c.bf16 %v6982_v60, %v6981_v0  ;;  %vm3715_vm2 = vcmp.eq.f32.partialorder %v12481_v8, 7.0  ;;  %vm3716_vm6 = vcmp.eq.f32.partialorder %v12495_v42, 7.0  ;;  %v12503_v36 = vld [vmem:[#allocation46_spill] sm:$0xff]  ;;  %v12504_v3 = vld [vmem:[#allocation109_spill] sm:$0xff]  ;;  %v5391_v43 = vpop.f32.mrf.mxu0  ;;  %v12505_v0 = vld [vmem:[#allocation99_spill] sm:$0xff] }
 0x477   : > { %5665 = vmatpush.bf16.msrb.mxu1 %v12493_v48  ;;  %5691 = vmatpush.bf16.msrb.mxu3 %v12494_v52  ;;  %v5093_v59 = vunpack.c.l.b16 %v3907_v38  ;;  %v5094_v53 = vunpack.c.h.b16 %v3907_v38  ;;  %v6975_v10 = vsel %vm3713_vm4, 1.0, %v11832_v28  ;;  %v6976_v15 = vsel %vm3714_vm5, 1.0, %v11832_v28  ;;  %v12506_v48 = vld [vmem:[#allocation100_spill] sm:$0xff]  ;;  %v12508_v60 = vld [vmem:[#allocation73_spill] sm:$0xff]  ;;  %v12510_v42 = vld [vmem:[#allocation98_spill] sm:$0xff] }
 0x478   : > { %5595 = vmatpush.bf16.msra.mxu0 %v10793_v9  ;;  %5621 = vmatpush.bf16.msra.mxu2 %v10795_v40  ;;  %v5095_v6 = vunpack.c.l.b16 %v3908_v2  ;;  %v5096_v27 = vunpack.c.h.b16 %v3908_v2  ;;  %v6977_v56 = vsel %vm3715_vm2, 1.0, %v11832_v28  ;;  %v6978_v8 = vsel %vm3716_vm6, 1.0, %v11832_v28  ;;  %v12507_v52 = vld [vmem:[#allocation8_spill] sm:$0xff]  ;;  %v5404_v2 = vpop.f32.mrf.mxu1 }
 0x479   : > { %v3905_v45 = vpack.c.bf16 %v6976_v15, %v6975_v10  ;;  %v10809_v39 = vadd.f32 %v10741_v57, %v10717_v34  ;;  %v10813_v41 = vadd.f32 %v10743_v61, %v10719_v46  ;;  %v3906_v1 = vpack.c.bf16 %v6978_v8, %v6977_v56  ;;  %v12499_v34 = vld [vmem:[#allocation70_spill] sm:$0xff]  ;;  %v12500_v61 = vld [vmem:[#allocation103_spill] sm:$0xff] }
 0x47a   : > { %v10815_v25 = vpack.c.b16 %v5095_v6, %v5093_v59  ;;  %v10817_v51 = vpack.c.b16 %v5096_v27, %v5094_v53  ;;  %v5644_v26 = vunpack.c.h.b16 %v12504_v3  ;;  %v5430_v59 = vpop.f32.mrf.mxu3  ;;  %v12509_v53 = vld [vmem:[#allocation97_spill] sm:$0xff]  ;;  %v10844_v10 = vadd.f32 %v5404_v2, %v5391_v43  ;;  %v12512_v27 = vld [vmem:[#allocation6_spill] sm:$0xff] }
 0x47b   : > { %5666 = vmatpush.bf16.msrb.mxu1 %v12496_v21  ;;  %5692 = vmatpush.bf16.msrb.mxu3 %v12497_v33  ;;  %v5089_v7 = vunpack.c.l.b16 %v3905_v45  ;;  %v5091_v28 = vunpack.c.l.b16 %v3906_v1  ;;  %v5090_v19 = vunpack.c.h.b16 %v3905_v45  ;;  %v5092_v14 = vunpack.c.h.b16 %v3906_v1  ;;  %v12513_v21 = vld [vmem:[#allocation95_spill] sm:$0xff]  ;;  %v12514_v33 = vld [vmem:[#allocation9_spill] sm:$0xff]  ;;  %v12515_v8 = vld [vmem:[#allocation42_spill] sm:$0xff] }
 0x47c   : > { %5596 = vmatpush.bf16.msra.mxu0 %v10815_v25  ;;  %5622 = vmatpush.bf16.msra.mxu2 %v10817_v51  ;;  %v10840_v38 = vpack.c.b16 %v5644_v26, %v5644_v26  ;;  %v10846_v6 = vadd.f32 %v5430_v59, %v5417_v11  ;;  %v12516_v45 = vld [vmem:[#allocation94_spill] sm:$0xff]  ;;  %v12526_v26 = vld [vmem:[#allocation89_spill] sm:$0xff]  ;;  %v5643_v43 = vunpack.c.l.b16 %v12504_v3  ;;  %v12532_v59 = vld [vmem:[#allocation35_spill] sm:$0xff]  ;;  %vm342_vm11 = vcmask 6144  }
 0x47d   : > { %v10823_v57 = vpack.c.b16 %v5091_v28, %v5089_v7  ;;  %v10825_v46 = vpack.c.b16 %v5092_v14, %v5090_v19  ;;  %v5419_v56 = vpop.f32.mrf.mxu2  ;;  %v12517_v28 = vld [vmem:[#allocation43_spill] sm:$0xff]  ;;  %v12518_v19 = vld [vmem:[#allocation25_spill] sm:$0xff]  ;;  %v12519_v14 = vld [vmem:[#allocation92_spill] sm:$0xff]  ;;  %vm6259_vm1 = vcmask 1042432  }
 0x47e   : > { %v5393_v15 = vpop.f32.mrf.mxu0  ;;  %v12527_v11 = vld [vmem:[#allocation74_spill] sm:$0xff]  ;;  %v12536_v3 = vld [vmem:[#allocation77_spill] sm:$0xff] }
 0x47f   : > { %5667 = vmatpush.bf16.msrb.mxu1 %v12498_v5  ;;  %5693 = vmatpush.bf16.msrb.mxu3 %v12499_v34  ;;  %v12520_v5 = vld [vmem:[#allocation93_spill] sm:$0xff]  ;;  %v12531_v2 = vld [vmem:[#allocation34_spill] sm:$0xff] }
 0x480   : > { %5597 = vmatpush.bf16.msra.mxu0 %v10823_v57  ;;  %5623 = vmatpush.bf16.msra.mxu2 %v10825_v46  ;;  %v5406_v1 = vpop.f32.mrf.mxu1  ;;  %v12521_v34 = vld [vmem:[#allocation61_spill] sm:$0xff] }
 0x481   : > { %v12537_v56 = vld [vmem:[#allocation13_spill] sm:$0xff] }
 0x482   : > { %v5432_v7 = vpop.f32.mrf.mxu3 }
 0x483   : > { %5668 = vmatpush.bf16.msrb.mxu1 %v12502_v55  ;;  %5694 = vmatpush.bf16.msrb.mxu3 %v12503_v36  ;;  %v12524_v55 = vld [vmem:[#allocation88_spill] sm:$0xff]  ;;  %v12525_v36 = vld [vmem:[#allocation69_spill] sm:$0xff]  ;;  %v12541_v7 = vld [vmem:[#allocation107_spill] sm:$0xff] }
 0x484   : > { %5649 = vmatpush.bf16.msrb.mxu0 %v12500_v61  ;;  %5675 = vmatpush.bf16.msrb.mxu2 %v12501_v63  ;;  %v12522_v61 = vld [vmem:[#allocation29_spill] sm:$0xff]  ;;  %v12523_v63 = vld [vmem:[#allocation87_spill] sm:$0xff] }
 0x485   : > { %5598 = vmatmul.bf16.vlgmr.msra.gmra.mxu0 %v12486_v17  ;;  %5624 = vmatmul.bf16.vlgmr.msra.gmra.mxu2 %v12486_v17  ;;  %v12511_v17 = vld [vmem:[#allocation5_spill] sm:$0xff]  ;;  %v5469_v15 = vpop.f32.mrf.mxu2 }
 0x487   : > { %5669 = vmatpush.bf16.msrb.mxu1 %v12507_v52  ;;  %5695 = vmatpush.bf16.msrb.mxu3 %v12508_v60  ;;  %v12530_v52 = vld [vmem:[#allocation78_spill] sm:$0xff]  ;;  %v10871_v60 = vpack.c.b16 %v5643_v43, %v5643_v43  ;;  %v12548_v43 = vld [vmem:[#allocation111_spill] sm:$0xff] }
 0x488   : > { %5650 = vmatpush.bf16.msrb.mxu0 %v12505_v0  ;;  %5676 = vmatpush.bf16.msrb.mxu2 %v12506_v48  ;;  %v12528_v0 = vld [vmem:[#allocation75_spill] sm:$0xff] }
 0x489   : > { %v12529_v48 = vld [vmem:[#allocation63_spill] sm:$0xff] }
 0x48a   : > { %5670 = vmatmul.bf16.vlgmr.msrb.gmra.mxu1 %v10840_v38  ;;  %5696 = vmatmul.bf16.vlgmr.msrb.gmra.mxu3 %v10840_v38  ;;  %v5482_v1 = vpop.f32.mrf.mxu3 }
 0x48b   : > { %5714 = vmatpush.bf16.msra.mxu1 %v12509_v53  ;;  %5740 = vmatpush.bf16.msra.mxu3 %v12510_v42  ;;  %v12533_v53 = vld [vmem:[#allocation105_spill] sm:$0xff]  ;;  %v12534_v42 = vld [vmem:[#allocation106_spill] sm:$0xff] }
 0x48c   : > { %5651 = vmatpush.bf16.msrb.mxu0 %v12511_v17  ;;  %5677 = vmatpush.bf16.msrb.mxu2 %v12512_v27  ;;  %v12535_v17 = vld [vmem:[#allocation20_spill] sm:$0xff]  ;;  %v5443_v27 = vpop.f32.mrf.mxu0 }
 0x48f   : > { %5715 = vmatpush.bf16.msra.mxu1 %v12513_v21  ;;  %5741 = vmatpush.bf16.msra.mxu3 %v12514_v33  ;;  %v12538_v21 = vld [vmem:[#allocation14_spill] sm:$0xff]  ;;  %v12539_v33 = vld [vmem:[#allocation65_spill] sm:$0xff] }
 0x490   : > { %5652 = vmatpush.bf16.msrb.mxu0 %v12515_v8  ;;  %5678 = vmatpush.bf16.msrb.mxu2 %v12516_v45  ;;  %v12540_v8 = vld [vmem:[#allocation66_spill] sm:$0xff]  ;;  %v5456_v45 = vpop.f32.mrf.mxu1 }
 0x493   : > { %5716 = vmatpush.bf16.msra.mxu1 %v12517_v28  ;;  %5742 = vmatpush.bf16.msra.mxu3 %v12518_v19  ;;  %v12542_v28 = vld [vmem:[#allocation108_spill] sm:$0xff]  ;;  %v10887_v19 = vadd.f32 %v5456_v45, %v5443_v27  ;;  %v12556_v27 = vld [vmem:[#allocation119_spill] sm:$0xff]  ;;  %v12561_v45 = vld [vmem:[#allocation33_spill] sm:$0xff] }
 0x494   : > { %5653 = vmatpush.bf16.msrb.mxu0 %v12519_v14  ;;  %5679 = vmatpush.bf16.msrb.mxu2 %v12520_v5  ;;  %v10889_v14 = vadd.f32 %v5482_v1, %v5469_v15  ;;  %v12543_v5 = vld [vmem:[#allocation101_spill] sm:$0xff]  ;;  %v12562_v1 = vld [vmem:[#allocation7_spill] sm:$0xff] }
 0x495   : > { %v12557_v15 = vld [vmem:[#allocation53_spill] sm:$0xff] }
 0x497   : > { %5717 = vmatpush.bf16.msra.mxu1 %v12521_v34  ;;  %5743 = vmatpush.bf16.msra.mxu3 %v12522_v61  ;;  %v12544_v34 = vld [vmem:[#allocation102_spill] sm:$0xff]  ;;  %v5445_v61 = vpop.f32.mrf.mxu0 }
 0x498   : > { %5654 = vmatpush.bf16.msrb.mxu0 %v12523_v63  ;;  %5680 = vmatpush.bf16.msrb.mxu2 %v12524_v55  ;;  %v5471_v63 = vpop.f32.mrf.mxu2  ;;  %v12545_v55 = vld [vmem:[#allocation112_spill] sm:$0xff]  ;;  %v12567_v61 = vld [vmem:[#allocation129_spill] sm:$0xff] }
 0x499   : > { %v12568_v63 = vld [vmem:[#allocation130_spill] sm:$0xff] }
 0x49b   : > { %5718 = vmatpush.bf16.msra.mxu1 %v12525_v36  ;;  %5744 = vmatpush.bf16.msra.mxu3 %v12526_v26  ;;  %v12546_v36 = vld [vmem:[#allocation113_spill] sm:$0xff]  ;;  %v12547_v26 = vld [vmem:[#allocation110_spill] sm:$0xff] }
 0x49c   : > { %5655 = vmatpush.bf16.msrb.mxu0 %v12527_v11  ;;  %5681 = vmatpush.bf16.msrb.mxu2 %v12528_v0  ;;  %v5458_v11 = vpop.f32.mrf.mxu1  ;;  %v5484_v0 = vpop.f32.mrf.mxu3 }
 0x49d   : > { %v12571_v11 = vld [vmem:[#allocation131_spill] sm:$0xff]  ;;  %v12572_v0 = vld [vmem:[#allocation132_spill] sm:$0xff] }
 0x49f   : > { %5719 = vmatpush.bf16.msra.mxu1 %v12529_v48  ;;  %5745 = vmatpush.bf16.msra.mxu3 %v12530_v52  ;;  %v12549_v48 = vld [vmem:[#allocation116_spill] sm:$0xff]  ;;  %v12550_v52 = vld [vmem:[#allocation117_spill] sm:$0xff] }
 0x4a0   : > { %5656 = vmatpush.bf16.msrb.mxu0 %v12531_v2  ;;  %5682 = vmatpush.bf16.msrb.mxu2 %v12532_v59  ;;  %v12551_v2 = vld [vmem:[#allocation114_spill] sm:$0xff]  ;;  %v12552_v59 = vld [vmem:[#allocation115_spill] sm:$0xff] }
 0x4a3   : > { %5720 = vmatpush.bf16.msra.mxu1 %v12535_v17  ;;  %5746 = vmatpush.bf16.msra.mxu3 %v12536_v3  ;;  %v12554_v17 = vld [vmem:[#allocation122_spill] sm:$0xff] }
 0x4a4   : > { %5701 = vmatpush.bf16.msra.mxu0 %v12533_v53  ;;  %5727 = vmatpush.bf16.msra.mxu2 %v12534_v42  ;;  %v341_v53 = vld [vmem:[%s9275_s27] sm:$0x7f] }
 0x4a5   : > { %5657 = vmatmul.bf16.vlgmr.msrb.gmra.mxu0 %v10871_v60  ;;  %5683 = vmatmul.bf16.vlgmr.msrb.gmra.mxu2 %v10871_v60  ;;  %v12553_v42 = vld [vmem:[#allocation121_spill] sm:$0xff]  ;;  %343 = vst.msk [vmem:[#allocation3] sm:$0x7f] %vm342_vm11, %v341_v53  ;;  %v12555_v3 = vld [vmem:[#allocation118_spill] sm:$0xff] }
 0x4a7   : > { %5721 = vmatpush.bf16.msra.mxu1 %v12539_v33  ;;  %5747 = vmatpush.bf16.msra.mxu3 %v12540_v8  ;;  %v12560_v33 = vld [vmem:[#allocation124_spill] sm:$0xff] }
 0x4a8   : > { %5702 = vmatpush.bf16.msra.mxu0 %v12537_v56  ;;  %5728 = vmatpush.bf16.msra.mxu2 %v12538_v21  ;;  %v12558_v56 = vld [vmem:[#allocation125_spill] sm:$0xff]  ;;  %v12559_v21 = vld [vmem:[#allocation123_spill] sm:$0xff] }
 0x4aa   : > { %5722 = vmatmul.bf16.vlgmr.msra.gmra.mxu1 %v10840_v38  ;;  %5748 = vmatmul.bf16.vlgmr.msra.gmra.mxu3 %v10840_v38 }
 0x4ab   : > { %5766 = vmatpush.bf16.msrb.mxu1 %v12541_v7  ;;  %5792 = vmatpush.bf16.msrb.mxu3 %v12542_v28  ;;  %v12563_v7 = vld [vmem:[#allocation126_spill] sm:$0xff]  ;;  %v12564_v28 = vld [vmem:[#allocation127_spill] sm:$0xff] }
 0x4ac   : > { %5703 = vmatpush.bf16.msra.mxu0 %v12543_v5  ;;  %5729 = vmatpush.bf16.msra.mxu2 %v12544_v34  ;;  %v6133_v8 = vld [vmem:[#allocation3] sm:$0x7f]  ;;  %v12566_v34 = vld [vmem:[#allocation128_spill] sm:$0xff] }
 0x4ad   : > { %6142 = vperm.xlu2 %7133, %v6133_v8   ;;  %v12565_v5 = vld [vmem:[#allocation59_spill] sm:$0xff]  ;;  %v12580_v8 = vld [vmem:[#allocation138_spill] sm:$0xff] }
 0x4af   : > { %5767 = vmatpush.bf16.msrb.mxu1 %v12545_v55  ;;  %5793 = vmatpush.bf16.msrb.mxu3 %v12546_v36  ;;  %v5495_v55 = vpop.f32.mrf.mxu0  ;;  %v5521_v36 = vpop.f32.mrf.mxu2 }
 0x4b0   : > { %5704 = vmatpush.bf16.msra.mxu0 %v12547_v26  ;;  %5730 = vmatpush.bf16.msra.mxu2 %v12548_v43  ;;  %v12569_v26 = vld [vmem:[#allocation38_spill] sm:$0xff]  ;;  %v12570_v43 = vld [vmem:[#allocation32_spill] sm:$0xff] }
 0x4b3   : > { %5768 = vmatpush.bf16.msrb.mxu1 %v12549_v48  ;;  %5794 = vmatpush.bf16.msrb.mxu3 %v12550_v52  ;;  %v5508_v48 = vpop.f32.mrf.mxu1  ;;  %v5534_v52 = vpop.f32.mrf.mxu3 }
 0x4b4   : > { %5705 = vmatpush.bf16.msra.mxu0 %v12551_v2  ;;  %5731 = vmatpush.bf16.msra.mxu2 %v12552_v59  ;;  %v12573_v2 = vld [vmem:[#allocation135_spill] sm:$0xff]  ;;  %v12574_v59 = vld [vmem:[#allocation136_spill] sm:$0xff]  ;;  %v10928_v53 = vadd.f32 %v5508_v48, %v5495_v55  ;;  %v12587_v55 = vld [vmem:[#allocation145_spill] sm:$0xff] }
 0x4b5   : > { %v12593_v48 = vld [vmem:[#allocation153_spill] sm:$0xff] }
 0x4b7   : > { %5769 = vmatpush.bf16.msrb.mxu1 %v12553_v42  ;;  %5795 = vmatpush.bf16.msrb.mxu3 %v12554_v17  ;;  %v10930_v42 = vadd.f32 %v5534_v52, %v5521_v36  ;;  %v12575_v17 = vld [vmem:[#allocation133_spill] sm:$0xff]  ;;  %v12588_v36 = vld [vmem:[#allocation146_spill] sm:$0xff] }
 0x4b8   : > { %5706 = vmatpush.bf16.msra.mxu0 %v12555_v3  ;;  %5732 = vmatpush.bf16.msra.mxu2 %v12556_v27  ;;  %v12576_v3 = vld [vmem:[#allocation134_spill] sm:$0xff]  ;;  %v5497_v27 = vpop.f32.mrf.mxu0 }
 0x4b9   : > { %v12594_v52 = vld [vmem:[#allocation154_spill] sm:$0xff]  ;;  %v12599_v27 = vld [vmem:[#allocation36_spill] sm:$0xff] }
 0x4bb   : > { %5770 = vmatpush.bf16.msrb.mxu1 %v12557_v15  ;;  %5796 = vmatpush.bf16.msrb.mxu3 %v12558_v56  ;;  %v5523_v15 = vpop.f32.mrf.mxu2  ;;  %v12577_v56 = vld [vmem:[#allocation139_spill] sm:$0xff] }
 0x4bc   : > { %5707 = vmatpush.bf16.msra.mxu0 %v12559_v21  ;;  %5733 = vmatpush.bf16.msra.mxu2 %v12560_v33  ;;  %v12578_v21 = vld [vmem:[#allocation140_spill] sm:$0xff]  ;;  %v12579_v33 = vld [vmem:[#allocation137_spill] sm:$0xff] }
 0x4bd   : > { %v12600_v15 = vld [vmem:[#allocation37_spill] sm:$0xff] }
 0x4bf   : > { %5771 = vmatpush.bf16.msrb.mxu1 %v12561_v45  ;;  %5797 = vmatpush.bf16.msrb.mxu3 %v12562_v1  ;;  %v5510_v45 = vpop.f32.mrf.mxu1  ;;  %v5536_v1 = vpop.f32.mrf.mxu3 }
 0x4c0   : > { %5708 = vmatpush.bf16.msra.mxu0 %v12563_v7  ;;  %5734 = vmatpush.bf16.msra.mxu2 %v12564_v28  ;;  %v12581_v7 = vld [vmem:[#allocation143_spill] sm:$0xff]  ;;  %v12582_v28 = vld [vmem:[#allocation144_spill] sm:$0xff]  ;;  %v12603_v45 = vld [vmem:[#allocation157_spill] sm:$0xff] }
 0x4c1   : > { %v12604_v1 = vld [vmem:[#allocation158_spill] sm:$0xff] }
 0x4c3   : > { %5772 = vmatpush.bf16.msrb.mxu1 %v12567_v61  ;;  %5798 = vmatpush.bf16.msrb.mxu3 %v12568_v63  ;;  %v12585_v61 = vld [vmem:[#allocation83_spill] sm:$0xff] }
 0x4c4   : > { %5753 = vmatpush.bf16.msrb.mxu0 %v12565_v5  ;;  %5779 = vmatpush.bf16.msrb.mxu2 %v12566_v34  ;;  %v12583_v5 = vld [vmem:[#allocation141_spill] sm:$0xff]  ;;  %v12584_v34 = vld [vmem:[#allocation142_spill] sm:$0xff]  ;;  %v12586_v63 = vld [vmem:[#allocation147_spill] sm:$0xff] }
 0x4c5   : > { %5709 = vmatmul.bf16.vlgmr.msra.gmra.mxu0 %v10871_v60  ;;  %5735 = vmatmul.bf16.vlgmr.msra.gmra.mxu2 %v10871_v60 }
 0x4c7   : > { %5773 = vmatpush.bf16.msrb.mxu1 %v12571_v11  ;;  %5799 = vmatpush.bf16.msrb.mxu3 %v12572_v0  ;;  %v12591_v11 = vld [vmem:[#allocation11_spill] sm:$0xff]  ;;  %v12592_v0 = vld [vmem:[#allocation148_spill] sm:$0xff] }
 0x4c8   : > { %5754 = vmatpush.bf16.msrb.mxu0 %v12569_v26  ;;  %5780 = vmatpush.bf16.msrb.mxu2 %v12570_v43  ;;  %v12589_v26 = vld [vmem:[#allocation149_spill] sm:$0xff]  ;;  %v12590_v43 = vld [vmem:[#allocation150_spill] sm:$0xff] }
 0x4ca   : > { %5774 = vmatmul.bf16.vlgmr.msrb.gmra.mxu1 %v10840_v38  ;;  %5800 = vmatmul.bf16.vlgmr.msrb.gmra.mxu3 %v10840_v38 }
 0x4cb   : > { %5818 = vmatpush.bf16.msra.mxu1 %v12573_v2  ;;  %5844 = vmatpush.bf16.msra.mxu3 %v12574_v59  ;;  %v12595_v2 = vld [vmem:[#allocation151_spill] sm:$0xff]  ;;  %v12596_v59 = vld [vmem:[#allocation152_spill] sm:$0xff] }
 0x4cc   : > { %5755 = vmatpush.bf16.msrb.mxu0 %v12575_v17  ;;  %5781 = vmatpush.bf16.msrb.mxu2 %v12576_v3  ;;  %v12597_v17 = vld [vmem:[#allocation47_spill] sm:$0xff]  ;;  %v12598_v3 = vld [vmem:[#allocation48_spill] sm:$0xff] }
 0x4cf   : > { %5819 = vmatpush.bf16.msra.mxu1 %v12577_v56  ;;  %5845 = vmatpush.bf16.msra.mxu3 %v12578_v21 }
 0x4d0   : > { %5756 = vmatpush.bf16.msrb.mxu0 %v12579_v33  ;;  %5782 = vmatpush.bf16.msrb.mxu2 %v12580_v8  ;;  %v12601_v33 = vld [vmem:[#allocation155_spill] sm:$0xff]  ;;  %v12602_v8 = vld [vmem:[#allocation156_spill] sm:$0xff] }
 0x4d3   : > { %5820 = vmatpush.bf16.msra.mxu1 %v12581_v7  ;;  %5846 = vmatpush.bf16.msra.mxu3 %v12582_v28  ;;  %v5547_v56 = vpop.f32.mrf.mxu0  ;;  %v5560_v7 = vpop.f32.mrf.mxu1 }
 0x4d4   : > { %5757 = vmatpush.bf16.msrb.mxu0 %v12583_v5  ;;  %5783 = vmatpush.bf16.msrb.mxu2 %v12584_v34  ;;  %v5586_v28 = vpop.f32.mrf.mxu3  ;;  %v12605_v5 = vld [vmem:[#allocation161_spill] sm:$0xff]  ;;  %v12606_v34 = vld [vmem:[#allocation162_spill] sm:$0xff] }
 0x4d7   : > { %5821 = vmatpush.bf16.msra.mxu1 %v12585_v61  ;;  %5847 = vmatpush.bf16.msra.mxu3 %v12586_v63  ;;  %v10968_v61 = vadd.f32 %v5560_v7, %v5547_v56  ;;  %v12617_v56 = vld [vmem:[#allocation84_spill] sm:$0xff]  ;;  %v12622_v7 = vld [vmem:[#allocation175_spill] sm:$0xff] }
 0x4d8   : > { %5758 = vmatpush.bf16.msrb.mxu0 %v12587_v55  ;;  %5784 = vmatpush.bf16.msrb.mxu2 %v12588_v36  ;;  %v12607_v55 = vld [vmem:[#allocation159_spill] sm:$0xff]  ;;  %v12608_v36 = vld [vmem:[#allocation160_spill] sm:$0xff] }
 0x4d9   : > { %v5573_v21 = vpop.f32.mrf.mxu2 }
 0x4da   : > { %v10970_v63 = vadd.f32 %v5586_v28, %v5573_v21  ;;  %v12618_v21 = vld [vmem:[#allocation172_spill] sm:$0xff] }
 0x4db   : > { %5822 = vmatpush.bf16.msra.mxu1 %v12589_v26  ;;  %5848 = vmatpush.bf16.msra.mxu3 %v12590_v43  ;;  %v5549_v26 = vpop.f32.mrf.mxu0  ;;  %v12623_v28 = vld [vmem:[#allocation64_spill] sm:$0xff] }
 0x4dc   : > { %5759 = vmatpush.bf16.msrb.mxu0 %v12591_v11  ;;  %5785 = vmatpush.bf16.msrb.mxu2 %v12592_v0  ;;  %v12609_v11 = vld [vmem:[#allocation165_spill] sm:$0xff]  ;;  %v12610_v0 = vld [vmem:[#allocation166_spill] sm:$0xff] }
 0x4dd   : > { %v12628_v26 = vld [vmem:[#allocation177_spill] sm:$0xff] }
 0x4df   : > { %5823 = vmatpush.bf16.msra.mxu1 %v12593_v48  ;;  %5849 = vmatpush.bf16.msra.mxu3 %v12594_v52  ;;  %v12611_v48 = vld [vmem:[#allocation163_spill] sm:$0xff]  ;;  %v12612_v52 = vld [vmem:[#allocation164_spill] sm:$0xff] }
 0x4e0   : > { %5760 = vmatpush.bf16.msrb.mxu0 %v12595_v2  ;;  %5786 = vmatpush.bf16.msrb.mxu2 %v12596_v59  ;;  %v5562_v2 = vpop.f32.mrf.mxu1  ;;  %v5588_v59 = vpop.f32.mrf.mxu3 }
 0x4e1   : > { %v5575_v43 = vpop.f32.mrf.mxu2  ;;  %v12632_v2 = vld [vmem:[#allocation26_spill] sm:$0xff] }
 0x4e2   : > { %v12633_v59 = vld [vmem:[#allocation182_spill] sm:$0xff] }
 0x4e3   : > { %5824 = vmatpush.bf16.msra.mxu1 %v12599_v27  ;;  %5850 = vmatpush.bf16.msra.mxu3 %v12600_v15  ;;  %v12615_v27 = vld [vmem:[#allocation167_spill] sm:$0xff]  ;;  %v12616_v15 = vld [vmem:[#allocation168_spill] sm:$0xff] }
 0x4e4   : > { %5805 = vmatpush.bf16.msra.mxu0 %v12597_v17  ;;  %5831 = vmatpush.bf16.msra.mxu2 %v12598_v3  ;;  %v12613_v17 = vld [vmem:[#allocation169_spill] sm:$0xff]  ;;  %v12614_v3 = vld [vmem:[#allocation170_spill] sm:$0xff] }
 0x4e5   : > { %5761 = vmatmul.bf16.vlgmr.msrb.gmra.mxu0 %v10871_v60  ;;  %5787 = vmatmul.bf16.vlgmr.msrb.gmra.mxu2 %v10871_v60 }
 0x4e7   : > { %5825 = vmatpush.bf16.msra.mxu1 %v12603_v45  ;;  %5851 = vmatpush.bf16.msra.mxu3 %v12604_v1  ;;  %v12621_v1 = vld [vmem:[#allocation174_spill] sm:$0xff] }
 0x4e8   : > { %5806 = vmatpush.bf16.msra.mxu0 %v12601_v33  ;;  %5832 = vmatpush.bf16.msra.mxu2 %v12602_v8  ;;  %v12619_v33 = vld [vmem:[#allocation15_spill] sm:$0xff]  ;;  %v5612_v45 = vpop.f32.mrf.mxu1 }
 0x4e9   : > { %v12620_v8 = vld [vmem:[#allocation171_spill] sm:$0xff] }
 0x4ea   : > { %5826 = vmatmul.bf16.vlgmr.msra.gmra.mxu1 %v10840_v38  ;;  %5852 = vmatmul.bf16.vlgmr.msra.gmra.mxu3 %v10840_v38 }
 0x4eb   : > { %5870 = vmatpush.bf16.msrb.mxu1 %v12605_v5  ;;  %5896 = vmatpush.bf16.msrb.mxu3 %v12606_v34  ;;  %v12624_v5 = vld [vmem:[#allocation173_spill] sm:$0xff]  ;;  %v12625_v34 = vld [vmem:[#allocation178_spill] sm:$0xff] }
 0x4ec   : > { %5807 = vmatpush.bf16.msra.mxu0 %v12607_v55  ;;  %5833 = vmatpush.bf16.msra.mxu2 %v12608_v36  ;;  %v12626_v55 = vld [vmem:[#allocation179_spill] sm:$0xff]  ;;  %v12627_v36 = vld [vmem:[#allocation176_spill] sm:$0xff] }
 0x4ed   : > { %v5638_v43 = vpop.f32.mrf.mxu3 }
 0x4ef   : > { %5871 = vmatpush.bf16.msrb.mxu1 %v12609_v11  ;;  %5897 = vmatpush.bf16.msrb.mxu3 %v12610_v0  ;;  %v12629_v11 = vld [vmem:[#allocation180_spill] sm:$0xff]  ;;  %v12630_v0 = vld [vmem:[#allocation181_spill] sm:$0xff] }
 0x4f0   : > { %5808 = vmatpush.bf16.msra.mxu0 %v12611_v48  ;;  %5834 = vmatpush.bf16.msra.mxu2 %v12612_v52  ;;  %v5614_v48 = vpop.f32.mrf.mxu1  ;;  %v12631_v52 = vld [vmem:[#allocation10_spill] sm:$0xff] }
 0x4f3   : > { %5872 = vmatpush.bf16.msrb.mxu1 %v12613_v17  ;;  %5898 = vmatpush.bf16.msrb.mxu3 %v12614_v3  ;;  %v12634_v17 = vld [vmem:[#allocation183_spill] sm:$0xff]  ;;  %v12635_v3 = vld [vmem:[#allocation184_spill] sm:$0xff] }
 0x4f4   : > { %5809 = vmatpush.bf16.msra.mxu0 %v12615_v27  ;;  %5835 = vmatpush.bf16.msra.mxu2 %v12616_v15  ;;  %v12636_v27 = vld [vmem:[#allocation185_spill] sm:$0xff]  ;;  %v12637_v15 = vld [vmem:[#allocation188_spill] sm:$0xff] }
 0x4f7   : > { %5873 = vmatpush.bf16.msrb.mxu1 %v12617_v56  ;;  %5899 = vmatpush.bf16.msrb.mxu3 %v12618_v21  ;;  %v12638_v56 = vld [vmem:[#allocation189_spill] sm:$0xff]  ;;  %v5640_v21 = vpop.f32.mrf.mxu3 }
 0x4f8   : > { %5810 = vmatpush.bf16.msra.mxu0 %v12619_v33  ;;  %5836 = vmatpush.bf16.msra.mxu2 %v12620_v8  ;;  %v12639_v33 = vld [vmem:[#allocation186_spill] sm:$0xff]  ;;  %v12640_v8 = vld [vmem:[#allocation187_spill] sm:$0xff]  ;;  %v12653_v21 = vld [vmem:[#allocation201_spill] sm:$0xff] }
 0x4fb   : > { %5874 = vmatpush.bf16.msrb.mxu1 %v12621_v1  ;;  %5900 = vmatpush.bf16.msrb.mxu3 %v12622_v7  ;;  %v12641_v1 = vld [vmem:[#allocation192_spill] sm:$0xff]  ;;  %v12642_v7 = vld [vmem:[#allocation193_spill] sm:$0xff] }
 0x4fc   : > { %5811 = vmatpush.bf16.msra.mxu0 %v12623_v28  ;;  %5837 = vmatpush.bf16.msra.mxu2 %v12624_v5  ;;  %v12643_v5 = vld [vmem:[#allocation190_spill] sm:$0xff] }
 0x4ff   : > { %5875 = vmatpush.bf16.msrb.mxu1 %v12625_v34  ;;  %5901 = vmatpush.bf16.msrb.mxu3 %v12626_v55  ;;  %v12644_v34 = vld [vmem:[#allocation191_spill] sm:$0xff] }
 0x500   : > { %5812 = vmatpush.bf16.msra.mxu0 %v12627_v36  ;;  %5838 = vmatpush.bf16.msra.mxu2 %v12628_v26  ;;  %v12645_v36 = vld [vmem:[#allocation51_spill] sm:$0xff]  ;;  %v12646_v26 = vld [vmem:[#allocation196_spill] sm:$0xff] }
 0x502   : > { %v5599_v28 = vpop.f32.mrf.mxu0 }
 0x503   : > { %5876 = vmatpush.bf16.msrb.mxu1 %v12631_v52  ;;  %5902 = vmatpush.bf16.msrb.mxu3 %v12632_v2  ;;  %v11016_v55 = vadd.f32 %v5612_v45, %v5599_v28  ;;  %v12649_v52 = vld [vmem:[#allocation198_spill] sm:$0xff]  ;;  %v12650_v2 = vld [vmem:[#allocation199_spill] sm:$0xff]  ;;  %v12652_v45 = vld [vmem:[#allocation197_spill] sm:$0xff] }
 0x504   : > { %5857 = vmatpush.bf16.msrb.mxu0 %v12629_v11  ;;  %5883 = vmatpush.bf16.msrb.mxu2 %v12630_v0  ;;  %v12647_v11 = vld [vmem:[#allocation194_spill] sm:$0xff]  ;;  %v12648_v0 = vld [vmem:[#allocation195_spill] sm:$0xff] }
 0x505   : > { %5813 = vmatmul.bf16.vlgmr.msra.gmra.mxu0 %v10871_v60  ;;  %5839 = vmatmul.bf16.vlgmr.msra.gmra.mxu2 %v10871_v60 }
 0x507   : > { %5877 = vmatpush.bf16.msrb.mxu1 %v12635_v3  ;;  %5903 = vmatpush.bf16.msrb.mxu3 %v12636_v27  ;;  %v12651_v27 = vld [vmem:[#allocation16_spill] sm:$0xff] }
 0x508   : > { %5858 = vmatpush.bf16.msrb.mxu0 %v12633_v59  ;;  %5884 = vmatpush.bf16.msrb.mxu2 %v12634_v17  ;;  %v5625_v48 = vpop.f32.mrf.mxu2  ;;  %v5671_v17 = vpop.f32.mrf.mxu1 }
 0x509   : > { %v11024_v59 = vadd.f32 %v5638_v43, %v5625_v48  ;;  %v12657_v43 = vld [vmem:[#allocation200_spill] sm:$0xff]  ;;  %v12663_v48 = vld [vmem:[#allocation207_spill] sm:$0xff] }
 0x50a   : > { %5878 = vmatmul.bf16.vlgmr.msrb.gmra.mxu1 %v10840_v38  ;;  %5904 = vmatmul.bf16.vlgmr.msrb.gmra.mxu3 %v10840_v38  ;;  %v5601_v3 = vpop.f32.mrf.mxu0 }
 0x50b   : > { %5922 = vmatpush.bf16.msra.mxu1 %v12637_v15  ;;  %5948 = vmatpush.bf16.msra.mxu3 %v12638_v56  ;;  %v11028_v15 = vld.sshfl [vmem:[#allocation1] sm:$0xff pattern:$0x75316420]  ;;  %v11030_v56 = vld.sshfl [vmem:[#allocation1 + $0x8] sm:$0xff pattern:$0x75316420] }
 0x50c   : > { %5859 = vmatpush.bf16.msrb.mxu0 %v12639_v33  ;;  %5885 = vmatpush.bf16.msrb.mxu2 %v12640_v8  ;;  %v12654_v33 = vld [vmem:[#allocation202_spill] sm:$0xff]  ;;  %v12655_v8 = vld [vmem:[#allocation4_spill] sm:$0xff] }
 0x50d   : > { %6208 = vst [vmem:[#allocation1] ss:$2 sm:$0xff] %v12655_v8 }
 0x50f   : > { %5923 = vmatpush.bf16.msra.mxu1 %v12641_v1  ;;  %5949 = vmatpush.bf16.msra.mxu3 %v12642_v7  ;;  %v12656_v1 = vld [vmem:[#allocation22_spill] sm:$0xff]  ;;  %v5697_v7 = vpop.f32.mrf.mxu3 }
 0x510   : > { %5860 = vmatpush.bf16.msrb.mxu0 %v12643_v5  ;;  %5886 = vmatpush.bf16.msrb.mxu2 %v12644_v34  ;;  %v5627_v28 = vpop.f32.mrf.mxu2  ;;  %v12658_v5 = vld [vmem:[#allocation205_spill] sm:$0xff]  ;;  %v12659_v34 = vld [vmem:[#allocation206_spill] sm:$0xff] }
 0x511   : > { %v12672_v28 = vld [vmem:[#allocation214_spill] sm:$0xff] }
 0x513   : > { %5924 = vmatpush.bf16.msra.mxu1 %v12645_v36  ;;  %5950 = vmatpush.bf16.msra.mxu3 %v12646_v26  ;;  %v5673_v36 = vpop.f32.mrf.mxu1  ;;  %v12660_v26 = vld [vmem:[#allocation203_spill] sm:$0xff] }
 0x514   : > { %5861 = vmatpush.bf16.msrb.mxu0 %v12647_v11  ;;  %5887 = vmatpush.bf16.msrb.mxu2 %v12648_v0  ;;  %v12661_v11 = vld [vmem:[#allocation204_spill] sm:$0xff]  ;;  %v12675_v36 = vld [vmem:[#allocation221_spill] sm:$0xff] }
 0x515   : > { %v12662_v0 = vld [vmem:[#allocation60_spill] sm:$0xff] }
 0x517   : > { %5925 = vmatpush.bf16.msra.mxu1 %v12649_v52  ;;  %5951 = vmatpush.bf16.msra.mxu3 %v12650_v2  ;;  %v12664_v52 = vld [vmem:[#allocation208_spill] sm:$0xff]  ;;  %v12665_v2 = vld [vmem:[#allocation209_spill] sm:$0xff]  ;;  %v5699_v3 = vpop.f32.mrf.mxu3 }
 0x518   : > { %5862 = vmatpush.bf16.msrb.mxu0 %v12651_v27  ;;  %5888 = vmatpush.bf16.msrb.mxu2 %v12652_v45  ;;  %v12666_v27 = vld [vmem:[#allocation210_spill] sm:$0xff]  ;;  %v12667_v45 = vld [vmem:[#allocation211_spill] sm:$0xff] }
 0x519   : > { %v6065_v3 = vld [vmem:[%s7283_s30] sm:$0x7f] }
 0x51b   : > { %5926 = vmatpush.bf16.msra.mxu1 %v12653_v21  ;;  %5952 = vmatpush.bf16.msra.mxu3 %v12654_v33  ;;  %v12668_v21 = vld [vmem:[#allocation212_spill] sm:$0xff]  ;;  %v12669_v33 = vld [vmem:[#allocation213_spill] sm:$0xff] }
 0x51c   : > { %5863 = vmatpush.bf16.msrb.mxu0 %v12656_v1  ;;  %5889 = vmatpush.bf16.msrb.mxu2 %v12657_v43  ;;  %v12670_v1 = vld [vmem:[#allocation216_spill] sm:$0xff]  ;;  %v12671_v43 = vld [vmem:[#allocation217_spill] sm:$0xff] }
 0x51f   : > { %5927 = vmatpush.bf16.msra.mxu1 %v12658_v5  ;;  %5953 = vmatpush.bf16.msra.mxu3 %v12659_v34  ;;  %v12673_v5 = vld [vmem:[#allocation215_spill] sm:$0xff]  ;;  %v12674_v34 = vld [vmem:[#allocation220_spill] sm:$0xff] }
 0x520   : > { %5864 = vmatpush.bf16.msrb.mxu0 %v12660_v26  ;;  %5890 = vmatpush.bf16.msrb.mxu2 %v12661_v11  ;;  %v12676_v11 = vld [vmem:[#allocation241_spill] sm:$0xff] }
 0x522   : > { %v5658_v26 = vpop.f32.mrf.mxu0 }
 0x523   : > { %5928 = vmatpush.bf16.msra.mxu1 %v12664_v52  ;;  %5954 = vmatpush.bf16.msra.mxu3 %v12665_v2  ;;  %v12678_v52 = vld [vmem:[#allocation219_spill] sm:$0xff]  ;;  %v11062_v2 = vld [vmem:[#allocation2] sm:$0x3] }
 0x524   : > { %5909 = vmatpush.bf16.msra.mxu0 %v12662_v0  ;;  %5935 = vmatpush.bf16.msra.mxu2 %v12663_v48  ;;  %v5659_v0 = vadd.f32 %v5658_v26, %v12676_v11  ;;  %v12677_v48 = vld [vmem:[#allocation218_spill] sm:$0xff]  ;;  %vm6134_vm10 = vcmp.gt.f32.partialorder %v11062_v2, 0.0  ;;  %vm6147_vm12 = vcmp.gt.f32.partialorder %v11062_v2, 1.0  ;;  %vm6155_vm7 = vcmp.gt.f32.partialorder %v11062_v2, 2.0 }
 0x525   : > { %5865 = vmatmul.bf16.vlgmr.msrb.gmra.mxu0 %v10871_v60  ;;  %5891 = vmatmul.bf16.vlgmr.msrb.gmra.mxu2 %v10871_v60  ;;  %v12685_v26 = vld [vmem:[#allocation226_spill] sm:$0xff]  ;;  %vm6163_vm15 = vcmp.gt.f32.partialorder %v11062_v2, 3.0  ;;  %vm6171_vm2 = vcmp.gt.f32.partialorder %v11062_v2, 4.0 }
 0x527   : > { %5929 = vmatpush.bf16.msra.mxu1 %v12668_v21  ;;  %5955 = vmatpush.bf16.msra.mxu3 %v12669_v33  ;;  %v12680_v21 = vld [vmem:[#allocation223_spill] sm:$0xff] }
 0x528   : > { %5910 = vmatpush.bf16.msra.mxu0 %v12666_v27  ;;  %5936 = vmatpush.bf16.msra.mxu2 %v12667_v45  ;;  %v5672_v27 = vadd.f32 %v5671_v17, %v5659_v0  ;;  %v12679_v45 = vld [vmem:[#allocation52_spill] sm:$0xff]  ;;  %v12686_v17 = vmov 0   ;;  %v5723_v0 = vpop.f32.mrf.mxu1 }
 0x529   : > { %v6135_v11 = vsel %vm6134_vm10, 1, %v12686_v17  ;;  %vm6179_vm10 = vcmp.gt.f32.partialorder %v11062_v2, 5.0 }
 0x52a   : > { %5930 = vmatmul.bf16.vlgmr.msra.gmra.mxu1 %v10840_v38  ;;  %5956 = vmatmul.bf16.vlgmr.msra.gmra.mxu3 %v10840_v38  ;;  %v6081_v33 = vadd.f32 %v6065_v3, %v5672_v27  ;;  %v12687_v27 = vld [vmem:[#allocation55_spill] sm:$0xff] }
 0x52b   : > { %5974 = vmatpush.bf16.msrb.mxu1 %v12670_v1  ;;  %6000 = vmatpush.bf16.msrb.mxu3 %v12671_v43  ;;  %v12681_v1 = vld [vmem:[#allocation85_spill] sm:$0xff]  ;;  %v12682_v43 = vld [vmem:[#allocation222_spill] sm:$0xff] }
 0x52c   : > { %5911 = vmatpush.bf16.msra.mxu0 %v12672_v28  ;;  %5937 = vmatpush.bf16.msra.mxu2 %v12673_v5  ;;  %v5684_v28 = vpop.f32.mrf.mxu2  ;;  %6097 = vst [vmem:[%s7283_s30] sm:$0x7f] %v6081_v33  ;;  %v12683_v5 = vld [vmem:[#allocation242_spill] sm:$0xff] }
 0x52f   : > { %5975 = vmatpush.bf16.msrb.mxu1 %v12674_v34  ;;  %6001 = vmatpush.bf16.msrb.mxu3 %v12675_v36  ;;  %v5685_v34 = vadd.f32 %v5684_v28, %v12683_v5  ;;  %v12684_v36 = vld [vmem:[#allocation225_spill] sm:$0xff]  ;;  %v6143_v28 = vpop.permute.xlu2 %6142  ;;  %v12691_v5 = vld [vmem:[#allocation227_spill] sm:$0xff] }
 0x530   : > { %5912 = vmatpush.bf16.msra.mxu0 %v12677_v48  ;;  %5938 = vmatpush.bf16.msra.mxu2 %v12678_v52  ;;  %v6066_v48 = vld [vmem:[%s7283_s30 + $0x8] sm:$0x7f]  ;;  %v5660_v52 = vpop.f32.mrf.mxu0 }
 0x531   : > { %v5698_v3 = vadd.f32 %v5697_v7, %v5685_v34  ;;  %v12693_v52 = vld [vmem:[#allocation17_spill] sm:$0xff] }
 0x533   : > { %5976 = vmatpush.bf16.msrb.mxu1 %v12679_v45  ;;  %6002 = vmatpush.bf16.msrb.mxu3 %v12680_v21  ;;  %v12688_v45 = vld [vmem:[#allocation224_spill] sm:$0xff]  ;;  %v6136_v21 = vperm.slane %v6135_v11, 0  ;;  %v6082_v33 = vadd.f32 %v6066_v48, %v5698_v3  ;;  %v12694_v48 = vld [vmem:[#allocation18_spill] sm:$0xff]  ;;  %v5725_v3 = vpop.f32.mrf.mxu1 }
 0x534   : > { %5913 = vmatpush.bf16.msra.mxu0 %v12681_v1  ;;  %5939 = vmatpush.bf16.msra.mxu2 %v12682_v43  ;;  %v12689_v1 = vld [vmem:[#allocation229_spill] sm:$0xff]  ;;  %v12690_v43 = vld [vmem:[#allocation230_spill] sm:$0xff]  ;;  %v5686_v7 = vpop.f32.mrf.mxu2 }
 0x535   : > { %6098 = vst [vmem:[%s7283_s30 + $0x8] sm:$0x7f] %v6082_v33  ;;  %vm6138_vm0 = vcmp.eq.s32.totalorder %v6136_v21, 1  ;;  %v5749_v33 = vpop.f32.mrf.mxu3  ;;  %v12699_v7 = vld [vmem:[#allocation235_spill] sm:$0xff] }
 0x537   : > { %5977 = vmatpush.bf16.msrb.mxu1 %v12684_v36  ;;  %6003 = vmatpush.bf16.msrb.mxu3 %v12685_v26  ;;  %v12692_v36 = vld [vmem:[#allocation228_spill] sm:$0xff]  ;;  %v6116_v26 = vld [vmem:[%s7283_s30] sm:$0x7f] }
 0x538   : > { %5914 = vmatpush.bf16.msra.mxu0 %v12687_v27  ;;  %5940 = vmatpush.bf16.msra.mxu2 %v12688_v45  ;;  %v11084_v34 = vsel %vm6138_vm0, %v6116_v26, %v6143_v28  ;;  %v6137_v27 = vperm.slane %v6135_v11, 1  ;;  %v11096_v26 = vld.sshfl [vmem:[#allocation1] sm:$0xff pattern:$0x75316420]  ;;  %v12700_v11 = vld [vmem:[#allocation236_spill] sm:$0xff] }
 0x539   : > { %v6243_v45 = vsub.f32 %v11084_v34, %v11028_v15  ;;  %v11101_v15 = vld.sshfl [vmem:[#allocation1 + $0x8] sm:$0xff pattern:$0x75316420] }
 0x53a   : > { %vm6139_vm3 = vcmp.eq.s32.totalorder %v6137_v27, 1  ;;  %6213 = vst [vmem:[#allocation1] ss:$2 sm:$0xff] %v12655_v8 }
 0x53b   : > { %5978 = vmatpush.bf16.msrb.mxu1 %v12689_v1  ;;  %6004 = vmatpush.bf16.msrb.mxu3 %v12690_v43  ;;  %v12695_v1 = vld [vmem:[#allocation231_spill] sm:$0xff]  ;;  %v12696_v43 = vld [vmem:[#allocation232_spill] sm:$0xff]  ;;  %v6260_v21 = vsel %vm6259_vm1, %v6243_v45, %v11084_v34  ;;  %v12701_v45 = vld [vmem:[#allocation237_spill] sm:$0xff] }
 0x53c   : > { %5915 = vmatpush.bf16.msra.mxu0 %v12691_v5  ;;  %5941 = vmatpush.bf16.msra.mxu2 %v12692_v36  ;;  %v12697_v5 = vld [vmem:[#allocation233_spill] sm:$0xff]  ;;  %v12698_v36 = vld [vmem:[#allocation234_spill] sm:$0xff]  ;;  %6276 = vst [vmem:[%s7283_s30] sm:$0x7f] %v6260_v21  ;;  %v12704_v21 = vld [vmem:[#allocation240_spill] sm:$0xff] }
 0x53f   : > { %5979 = vmatpush.bf16.msrb.mxu1 %v12693_v52  ;;  %6005 = vmatpush.bf16.msrb.mxu3 %v12694_v48  ;;  %v6117_v52 = vld [vmem:[%s7283_s30 + $0x8] sm:$0x7f] }
 0x540   : > { %5916 = vmatpush.bf16.msra.mxu0 %v12695_v1  ;;  %5942 = vmatpush.bf16.msra.mxu2 %v12696_v43  ;;  %v11107_v48 = vsel %vm6139_vm3, %v6117_v52, %v6143_v28  ;;  %v12702_v1 = vld [vmem:[#allocation238_spill] sm:$0xff]  ;;  %v12703_v43 = vld [vmem:[#allocation239_spill] sm:$0xff]  ;;  %v5751_v28 = vpop.f32.mrf.mxu3 }
 0x541   : > { %v6244_v3 = vsub.f32 %v11107_v48, %v11030_v56  ;;  %v12708_v56 = vld [vmem:[#allocation244_spill] sm:$0xff]  ;;  %v12710_v52 = vld [vmem:[#allocation23_spill] sm:$0xff] }
 0x543   : > { %5980 = vmatpush.bf16.msrb.mxu1 %v12699_v7  ;;  %6006 = vmatpush.bf16.msrb.mxu3 %v12700_v11  ;;  %v6261_v27 = vsel %vm6259_vm1, %v6244_v3, %v11107_v48  ;;  %v12707_v7 = vld [vmem:[#allocation243_spill] sm:$0xff]  ;;  %v12709_v11 = vld [vmem:[#allocation24_spill] sm:$0xff]  ;;  %v5710_v3 = vpop.f32.mrf.mxu0 }
 0x544   : > { %5961 = vmatpush.bf16.msrb.mxu0 %v12697_v5  ;;  %5987 = vmatpush.bf16.msrb.mxu2 %v12698_v36  ;;  %v12705_v5 = vld [vmem:[#allocation245_spill] sm:$0xff]  ;;  %v12706_v36 = vld [vmem:[#allocation246_spill] sm:$0xff]  ;;  %6277 = vst [vmem:[%s7283_s30 + $0x8] sm:$0x7f] %v6261_v27 }
 0x545   : > { %5917 = vmatmul.bf16.vlgmr.msra.gmra.mxu0 %v10871_v60  ;;  %5943 = vmatmul.bf16.vlgmr.msra.gmra.mxu2 %v10871_v60 }
 0x547   : > { %5981 = vmatpush.bf16.msrb.mxu1 %v12703_v43  ;;  %6007 = vmatpush.bf16.msrb.mxu3 %v12704_v21  ;;  %v12712_v43 = vld [vmem:[#allocation44_spill] sm:$0xff] }
 0x548   : > { %5962 = vmatpush.bf16.msrb.mxu0 %v12701_v45  ;;  %5988 = vmatpush.bf16.msrb.mxu2 %v12702_v1  ;;  %v5711_v45 = vadd.f32 %v5710_v3, %v10711_v32  ;;  %v12711_v1 = vld [vmem:[#allocation41_spill] sm:$0xff]  ;;  %v6067_v21 = vld [vmem:[%s7283_s30 + $0x10] sm:$0x7f]  ;;  %v6148_v32 = vsel %vm6147_vm12, 1, %v12686_v17  ;;  %v12717_v3 = vld [vmem:[#allocation86_spill] sm:$0xff]  ;;  %vm6187_vm12 = vcmp.gt.f32.partialorder %v11062_v2, 6.0 }
 0x54a   : > { %5982 = vmatmul.bf16.vlgmr.msrb.gmra.mxu1 %v10840_v38  ;;  %6008 = vmatmul.bf16.vlgmr.msrb.gmra.mxu3 %v10840_v38  ;;  %v5724_v27 = vadd.f32 %v5723_v0, %v5711_v45  ;;  %v12718_v0 = vld [vmem:[#allocation67_spill] sm:$0xff]  ;;  %v5775_v45 = vpop.f32.mrf.mxu1 }
 0x54b   : > { %6026 = vmatpush.bf16.msra.mxu1 %v12705_v5  ;;  %6052 = vmatpush.bf16.msra.mxu3 %v12706_v36  ;;  %v12713_v5 = vld [vmem:[#allocation30_spill] sm:$0xff]  ;;  %v12714_v36 = vld [vmem:[#allocation31_spill] sm:$0xff] }
 0x54c   : > { %5963 = vmatpush.bf16.msrb.mxu0 %v12707_v7  ;;  %5989 = vmatpush.bf16.msrb.mxu2 %v12708_v56  ;;  %v6083_v28 = vadd.f32 %v6067_v21, %v5724_v27  ;;  %v12715_v7 = vld [vmem:[#allocation71_spill] sm:$0xff]  ;;  %v12716_v56 = vld [vmem:[#allocation72_spill] sm:$0xff]  ;;  %v12719_v27 = vld [vmem:[#allocation62_spill] sm:$0xff] }
 0x54e   : > { %6099 = vst [vmem:[%s7283_s30 + $0x10] sm:$0x7f] %v6083_v28  ;;  %v12722_v28 = vld [vmem:[#allocation56_spill] sm:$0xff] }
 0x54f   : > { %6027 = vmatpush.bf16.msra.mxu1 %v12709_v11  ;;  %6053 = vmatpush.bf16.msra.mxu3 %v12710_v52  ;;  %v5736_v11 = vpop.f32.mrf.mxu2 }
 0x550   : > { %5964 = vmatpush.bf16.msrb.mxu0 %v12711_v1  ;;  %5990 = vmatpush.bf16.msrb.mxu2 %v12712_v43  ;;  %v5737_v52 = vadd.f32 %v5736_v11, %v10723_v22  ;;  %v6068_v1 = vld [vmem:[%s7283_s30 + $0x18] sm:$0x7f]  ;;  %v5712_v43 = vpop.f32.mrf.mxu0 }
 0x551   : > { %v12721_v22 = vld [vmem:[#allocation68_spill] sm:$0xff] }
 0x552   : > { %v5750_v21 = vadd.f32 %v5749_v33, %v5737_v52  ;;  %v5777_v52 = vpop.f32.mrf.mxu1 }
 0x553   : > { %6028 = vmatpush.bf16.msra.mxu1 %v12713_v5  ;;  %6054 = vmatpush.bf16.msra.mxu3 %v12714_v36  ;;  %v12720_v5 = vld [vmem:[#allocation28_spill] sm:$0xff]  ;;  %v6149_v36 = vperm.slane %v6148_v32, 0 }
 0x554   : > { %5965 = vmatpush.bf16.msrb.mxu0 %v12715_v7  ;;  %5991 = vmatpush.bf16.msrb.mxu2 %v12716_v56  ;;  %v6084_v7 = vadd.f32 %v6068_v1, %v5750_v21  ;;  %v6214_v1 = vld.sshfl [vmem:[#allocation1] sm:$0xff pattern:$0x75316420] }
 0x555   : > { %v6118_v56 = vld [vmem:[%s7283_s30 + $0x10] sm:$0x7f]  ;;  %vm6151_vm8 = vcmp.eq.s32.totalorder %v6149_v36, 1 }
 0x556   : > { %6100 = vst [vmem:[%s7283_s30 + $0x18] sm:$0x7f] %v6084_v7  ;;  %v6153_v33 = vsel %vm6151_vm8, %v6118_v56, %v11084_v34 }
 0x557   : > { %6029 = vmatpush.bf16.msra.mxu1 %v12717_v3  ;;  %6055 = vmatpush.bf16.msra.mxu3 %v12718_v0  ;;  %v5738_v11 = vpop.f32.mrf.mxu2  ;;  %v5801_v3 = vpop.f32.mrf.mxu3 }
 0x558   : > { %5966 = vmatpush.bf16.msrb.mxu0 %v12719_v27  ;;  %5992 = vmatpush.bf16.msrb.mxu2 %v12720_v5  ;;  %v6164_v11 = vsel %vm6163_vm15, 1, %v12686_v17 }
 0x55b   : > { %6030 = vmatpush.bf16.msra.mxu1 %v10624_v24  ;;  %6056 = vmatpush.bf16.msra.mxu3 %v10626_v49  ;;  %v6245_v24 = vsub.f32 %v6153_v33, %v11096_v26  ;;  %v6150_v49 = vperm.slane %v6148_v32, 1 }
 0x55c   : > { %5967 = vmatpush.bf16.msrb.mxu0 %v12721_v22  ;;  %5993 = vmatpush.bf16.msrb.mxu2 %v12722_v28  ;;  %v6071_v22 = vld [vmem:[%s7283_s30 + $0x30] sm:$0x7f] }
 0x55d   : > { %v6262_v0 = vsel %vm6259_vm1, %v6245_v24, %v6153_v33  ;;  %vm6152_vm9 = vcmp.eq.s32.totalorder %v6150_v49, 1  ;;  %v6072_v24 = vld [vmem:[%s7283_s30 + $0x38] sm:$0x7f] }
 0x55e   : > { %6278 = vst [vmem:[%s7283_s30 + $0x10] sm:$0x7f] %v6262_v0  ;;  %v6165_v0 = vperm.slane %v6164_v11, 0 }
 0x55f   : > { %6031 = vmatpush.bf16.msra.mxu1 %v10652_v54  ;;  %6057 = vmatpush.bf16.msra.mxu3 %v10654_v44  ;;  %v11161_v54 = vld.sshfl [vmem:[#allocation1 + $0x8] sm:$0xff pattern:$0x75316420]  ;;  %v6119_v44 = vld [vmem:[%s7283_s30 + $0x18] sm:$0x7f] }
 0x560   : > { %5968 = vmatpush.bf16.msrb.mxu0 %v10638_v16  ;;  %5994 = vmatpush.bf16.msrb.mxu2 %v10640_v12  ;;  %6218 = vst [vmem:[#allocation1] ss:$2 sm:$0xff] %v12655_v8  ;;  %v6154_v16 = vsel %vm6152_vm9, %v6119_v44, %v11107_v48  ;;  %vm6167_vm4 = vcmp.eq.s32.totalorder %v6165_v0, 1 }
 0x561   : > { %v6246_v12 = vsub.f32 %v6154_v16, %v11101_v15 }
 0x563   : > { %6032 = vmatpush.bf16.msra.mxu1 %v10682_v20  ;;  %6058 = vmatpush.bf16.msra.mxu3 %v10684_v37  ;;  %v5762_v20 = vpop.f32.mrf.mxu0 }
 0x564   : > { %6013 = vmatpush.bf16.msra.mxu0 %v10668_v50  ;;  %6039 = vmatpush.bf16.msra.mxu2 %v10670_v58  ;;  %v6263_v50 = vsel %vm6259_vm1, %v6246_v12, %v6154_v16  ;;  %v5803_v58 = vpop.f32.mrf.mxu3  ;;  %v5763_v37 = vadd.f32 %v5762_v20, %v10809_v39  ;;  %v6070_v39 = vld [vmem:[%s7283_s30 + $0x28] sm:$0x7f] }
 0x565   : > { %5969 = vmatmul.bf16.vlgmr.msrb.gmra.mxu0 %v10871_v60  ;;  %5995 = vmatmul.bf16.vlgmr.msrb.gmra.mxu2 %v10871_v60  ;;  %6279 = vst [vmem:[%s7283_s30 + $0x18] sm:$0x7f] %v6263_v50  ;;  %v6166_v50 = vperm.slane %v6164_v11, 1 }
 0x567   : > { %6033 = vmatpush.bf16.msra.mxu1 %v10713_v30  ;;  %6059 = vmatpush.bf16.msra.mxu3 %v10715_v62  ;;  %vm6168_vm5 = vcmp.eq.s32.totalorder %v6166_v50, 1 }
 0x568   : > { %6014 = vmatpush.bf16.msra.mxu0 %v10696_v4  ;;  %6040 = vmatpush.bf16.msra.mxu2 %v10698_v13  ;;  %v6069_v4 = vld [vmem:[%s7283_s30 + $0x20] sm:$0x7f]  ;;  %v5776_v13 = vadd.f32 %v5775_v45, %v5763_v37  ;;  %v5788_v62 = vpop.f32.mrf.mxu2 }
 0x56a   : > { %6060 = vmatmul.bf16.vlgmr.msra.gmra.mxu3 %v10840_v38  ;;  %6034 = vmatmul.bf16.vlgmr.msra.gmra.mxu1 %v10840_v38  ;;  %v6085_v30 = vadd.f32 %v6069_v4, %v5776_v13 }
 0x56c   : > { %6015 = vmatpush.bf16.msra.mxu0 %v10736_v18  ;;  %6041 = vmatpush.bf16.msra.mxu2 %v10738_v29  ;;  %6101 = vst [vmem:[%s7283_s30 + $0x20] sm:$0x7f] %v6085_v30  ;;  %v6156_v18 = vsel %vm6155_vm7, 1, %v12686_v17  ;;  %v5789_v29 = vadd.f32 %v5788_v62, %v10813_v41  ;;  %vm6195_vm7 = vcmp.gt.f32.partialorder %v11062_v2, 7.0 }
 0x56d   : > { %v6157_v26 = vperm.slane %v6156_v18, 0  ;;  %v6158_v43 = vperm.slane %v6156_v18, 1 }
 0x56e   : > { %v5802_v38 = vadd.f32 %v5801_v3, %v5789_v29 }
 0x56f   : > { %vm6159_vm13 = vcmp.eq.s32.totalorder %v6157_v26, 1  ;;  %vm6160_vm14 = vcmp.eq.s32.totalorder %v6158_v43, 1 }
 0x570   : > { %6016 = vmatpush.bf16.msra.mxu0 %v10761_v47  ;;  %6042 = vmatpush.bf16.msra.mxu2 %v10763_v23  ;;  %v5827_v47 = vpop.f32.mrf.mxu1  ;;  %v5764_v23 = vpop.f32.mrf.mxu0  ;;  %v6086_v15 = vadd.f32 %v6070_v39, %v5802_v38  ;;  %v6073_v39 = vld [vmem:[%s7283_s30 + $0x40] sm:$0x7f] }
 0x572   : > { %6102 = vst [vmem:[%s7283_s30 + $0x28] sm:$0x7f] %v6086_v15  ;;  %v6172_v15 = vsel %vm6171_vm2, 1, %v12686_v17 }
 0x573   : > { %v6173_v43 = vperm.slane %v6172_v15, 0 }
 0x574   : > { %6017 = vmatpush.bf16.msra.mxu0 %v10777_v31  ;;  %6043 = vmatpush.bf16.msra.mxu2 %v10779_v35  ;;  %v6120_v31 = vld [vmem:[%s7283_s30 + $0x20] sm:$0x7f]  ;;  %v5790_v35 = vpop.f32.mrf.mxu2 }
 0x575   : > { %v6161_v41 = vsel %vm6159_vm13, %v6120_v31, %v11084_v34  ;;  %vm6175_vm6 = vcmp.eq.s32.totalorder %v6173_v43, 1 }
 0x576   : > { %v6247_v45 = vsub.f32 %v6161_v41, %v6214_v1 }
 0x578   : > { %6018 = vmatpush.bf16.msra.mxu0 %v10793_v9  ;;  %6044 = vmatpush.bf16.msra.mxu2 %v10795_v40  ;;  %v5829_v32 = vpop.f32.mrf.mxu1  ;;  %v5853_v9 = vpop.f32.mrf.mxu3  ;;  %v6264_v40 = vsel %vm6259_vm1, %v6247_v45, %v6161_v41  ;;  %v6074_v41 = vld [vmem:[%s7283_s30 + $0x48] sm:$0x7f] }
 0x579   : > { %6280 = vst [vmem:[%s7283_s30 + $0x20] sm:$0x7f] %v6264_v40  ;;  %v6121_v21 = vld [vmem:[%s7283_s30 + $0x28] sm:$0x7f] }
 0x57a   : > { %v6162_v27 = vsel %vm6160_vm14, %v6121_v21, %v11107_v48 }
 0x57c   : > { %6019 = vmatpush.bf16.msra.mxu0 %v10815_v25  ;;  %6045 = vmatpush.bf16.msra.mxu2 %v10817_v51  ;;  %v6219_v25 = vld.sshfl [vmem:[#allocation1] sm:$0xff pattern:$0x75316420]  ;;  %v6220_v51 = vld.sshfl [vmem:[#allocation1 + $0x8] sm:$0xff pattern:$0x75316420] }
 0x57d   : > { %6223 = vst [vmem:[#allocation1] ss:$2 sm:$0xff] %v12655_v8 }
 0x580   : > { %6020 = vmatpush.bf16.msra.mxu0 %v10823_v57  ;;  %6046 = vmatpush.bf16.msra.mxu2 %v10825_v46  ;;  %v6248_v57 = vsub.f32 %v6162_v27, %v11161_v54  ;;  %v5855_v5 = vpop.f32.mrf.mxu3 }
 0x582   : > { %v6265_v46 = vsel %vm6259_vm1, %v6248_v57, %v6162_v27  ;;  %v5814_v36 = vpop.f32.mrf.mxu0  ;;  %v6174_v27 = vperm.slane %v6172_v15, 1 }
 0x583   : > { %6021 = vmatmul.bf16.vlgmr.msra.gmra.mxu0 %v10871_v60  ;;  %6047 = vmatmul.bf16.vlgmr.msra.gmra.mxu2 %v10871_v60  ;;  %6281 = vst [vmem:[%s7283_s30 + $0x28] sm:$0x7f] %v6265_v46  ;;  %v5815_v7 = vadd.f32 %v5814_v36, %v10844_v10 }
 0x584   : > { %v6224_v20 = vld.sshfl [vmem:[#allocation1] sm:$0xff pattern:$0x75316420]  ;;  %v6225_v37 = vld.sshfl [vmem:[#allocation1 + $0x8] sm:$0xff pattern:$0x75316420] }
 0x585   : > { %v5828_v28 = vadd.f32 %v5827_v47, %v5815_v7  ;;  %6228 = vst [vmem:[#allocation1] ss:$2 sm:$0xff] %v12655_v8  ;;  %vm6176_vm11 = vcmp.eq.s32.totalorder %v6174_v27, 1 }
 0x587   : > { %v6087_v60 = vadd.f32 %v6071_v22, %v5828_v28  ;;  %v5879_v52 = vpop.f32.mrf.mxu1 }
 0x588   : > { %v5840_v56 = vpop.f32.mrf.mxu2 }
 0x589   : > { %6103 = vst [vmem:[%s7283_s30 + $0x30] sm:$0x7f] %v6087_v60  ;;  %v5841_v33 = vadd.f32 %v5840_v56, %v10846_v6 }
 0x58a   : > { %v5816_v49 = vpop.f32.mrf.mxu0 }
 0x58b   : > { %v5854_v3 = vadd.f32 %v5853_v9, %v5841_v33  ;;  %v6075_v33 = vld [vmem:[%s7283_s30 + $0x50] sm:$0x7f] }
 0x58c   : > { %v6229_v46 = vld.sshfl [vmem:[#allocation1] sm:$0xff pattern:$0x75316420]  ;;  %v6230_v5 = vld.sshfl [vmem:[#allocation1 + $0x8] sm:$0xff pattern:$0x75316420] }
 0x58d   : > { %v6088_v10 = vadd.f32 %v6072_v24, %v5854_v3  ;;  %v5905_v6 = vpop.f32.mrf.mxu3  ;;  %6233 = vst [vmem:[#allocation1] ss:$2 sm:$0xff] %v12655_v8  ;;  %v6180_v3 = vsel %vm6179_vm10, 1, %v12686_v17 }
 0x58f   : > { %6104 = vst [vmem:[%s7283_s30 + $0x38] sm:$0x7f] %v6088_v10  ;;  %v5881_v16 = vpop.f32.mrf.mxu1 }
 0x590   : > { %v6122_v1 = vld [vmem:[%s7283_s30 + $0x30] sm:$0x7f]  ;;  %v5842_v54 = vpop.f32.mrf.mxu2  ;;  %v6181_v16 = vperm.slane %v6180_v3, 0 }
 0x591   : > { %v6169_v44 = vsel %vm6167_vm4, %v6122_v1, %v11084_v34  ;;  %v6076_v1 = vld [vmem:[%s7283_s30 + $0x58] sm:$0x7f] }
 0x592   : > { %v6249_v12 = vsub.f32 %v6169_v44, %v6219_v25  ;;  %vm6183_vm0 = vcmp.eq.s32.totalorder %v6181_v16, 1 }
 0x594   : > { %v6266_v58 = vsel %vm6259_vm1, %v6249_v12, %v6169_v44 }
 0x595   : > { %6282 = vst [vmem:[%s7283_s30 + $0x30] sm:$0x7f] %v6266_v58  ;;  %v5907_v18 = vpop.f32.mrf.mxu3 }
 0x596   : > { %v6123_v4 = vld [vmem:[%s7283_s30 + $0x38] sm:$0x7f] }
 0x597   : > { %v6170_v13 = vsel %vm6168_vm5, %v6123_v4, %v11107_v48 }
 0x598   : > { %v6250_v30 = vsub.f32 %v6170_v13, %v6220_v51 }
 0x59a   : > { %v6267_v62 = vsel %vm6259_vm1, %v6250_v30, %v6170_v13  ;;  %v6234_v13 = vld.sshfl [vmem:[#allocation1] sm:$0xff pattern:$0x75316420]  ;;  %v6235_v30 = vld.sshfl [vmem:[#allocation1 + $0x8] sm:$0xff pattern:$0x75316420] }
 0x59b   : > { %6283 = vst [vmem:[%s7283_s30 + $0x38] sm:$0x7f] %v6267_v62 }
 0x59c   : > { %6238 = vst [vmem:[#allocation1] ss:$2 sm:$0xff] %v12655_v8  ;;  %v6188_v8 = vsel %vm6187_vm12, 1, %v12686_v17 }
 0x5a2   : > { %v5866_v29 = vpop.f32.mrf.mxu0 }
 0x5a3   : > { %v5867_v47 = vadd.f32 %v5866_v29, %v10887_v19 }
 0x5a5   : > { %v5880_v23 = vadd.f32 %v5879_v52, %v5867_v47 }
 0x5a7   : > { %v6089_v38 = vadd.f32 %v6073_v39, %v5880_v23  ;;  %v5931_v35 = vpop.f32.mrf.mxu1 }
 0x5a8   : > { %v5892_v26 = vpop.f32.mrf.mxu2 }
 0x5a9   : > { %6105 = vst [vmem:[%s7283_s30 + $0x40] sm:$0x7f] %v6089_v38  ;;  %v5893_v31 = vadd.f32 %v5892_v26, %v10889_v14  ;;  %v6077_v26 = vld [vmem:[%s7283_s30 + $0x60] sm:$0x7f] }
 0x5aa   : > { %v5868_v32 = vpop.f32.mrf.mxu0 }
 0x5ab   : > { %v5906_v45 = vadd.f32 %v5905_v6, %v5893_v31 }
 0x5ad   : > { %v6090_v19 = vadd.f32 %v6074_v41, %v5906_v45  ;;  %v5957_v14 = vpop.f32.mrf.mxu3  ;;  %v6078_v45 = vld [vmem:[%s7283_s30 + $0x68] sm:$0x7f] }
 0x5af   : > { %6106 = vst [vmem:[%s7283_s30 + $0x48] sm:$0x7f] %v6090_v19  ;;  %v5933_v51 = vpop.f32.mrf.mxu1 }
 0x5b0   : > { %v6124_v9 = vld [vmem:[%s7283_s30 + $0x40] sm:$0x7f]  ;;  %v5894_v40 = vpop.f32.mrf.mxu2 }
 0x5b1   : > { %v6177_v25 = vsel %vm6175_vm6, %v6124_v9, %v11084_v34  ;;  %v6189_v9 = vperm.slane %v6188_v8, 0 }
 0x5b2   : > { %v6251_v21 = vsub.f32 %v6177_v25, %v6224_v20 }
 0x5b3   : > { %vm6191_vm8 = vcmp.eq.s32.totalorder %v6189_v9, 1 }
 0x5b4   : > { %v6268_v57 = vsel %vm6259_vm1, %v6251_v21, %v6177_v25 }
 0x5b5   : > { %6284 = vst [vmem:[%s7283_s30 + $0x40] sm:$0x7f] %v6268_v57  ;;  %v5959_v60 = vpop.f32.mrf.mxu3 }
 0x5b6   : > { %v6125_v36 = vld [vmem:[%s7283_s30 + $0x48] sm:$0x7f] }
 0x5b7   : > { %v6178_v7 = vsel %vm6176_vm11, %v6125_v36, %v11107_v48 }
 0x5b8   : > { %v6252_v22 = vsub.f32 %v6178_v7, %v6225_v37  ;;  %v6182_v37 = vperm.slane %v6180_v3, 1  ;;  %v6080_v3 = vld [vmem:[%s7283_s30 + $0x78] sm:$0x7f] }
 0x5ba   : > { %v6269_v28 = vsel %vm6259_vm1, %v6252_v22, %v6178_v7  ;;  %vm6184_vm3 = vcmp.eq.s32.totalorder %v6182_v37, 1 }
 0x5bb   : > { %6285 = vst [vmem:[%s7283_s30 + $0x48] sm:$0x7f] %v6269_v28 }
 0x5c2   : > { %v5918_v56 = vpop.f32.mrf.mxu0 }
 0x5c3   : > { %v5919_v11 = vadd.f32 %v5918_v56, %v10928_v53  ;;  %v6079_v56 = vld [vmem:[%s7283_s30 + $0x70] sm:$0x7f] }
 0x5c5   : > { %v5932_v52 = vadd.f32 %v5931_v35, %v5919_v11 }
 0x5c7   : > { %v6091_v24 = vadd.f32 %v6075_v33, %v5932_v52  ;;  %v5983_v10 = vpop.f32.mrf.mxu1 }
 0x5c8   : > { %v5944_v49 = vpop.f32.mrf.mxu2 }
 0x5c9   : > { %6107 = vst [vmem:[%s7283_s30 + $0x50] sm:$0x7f] %v6091_v24  ;;  %v5945_v0 = vadd.f32 %v5944_v49, %v10930_v42  ;;  %v6196_v24 = vsel %vm6195_vm7, 1, %v12686_v17 }
 0x5ca   : > { %v5920_v54 = vpop.f32.mrf.mxu0 }
 0x5cb   : > { %v5958_v44 = vadd.f32 %v5957_v14, %v5945_v0  ;;  %v6190_v14 = vperm.slane %v6188_v8, 1 }
 0x5cd   : > { %v6092_v53 = vadd.f32 %v6076_v1, %v5958_v44  ;;  %v6009_v42 = vpop.f32.mrf.mxu3  ;;  %vm6192_vm9 = vcmp.eq.s32.totalorder %v6190_v14, 1  ;;  %v6197_v1 = vperm.slane %v6196_v24, 0 }
 0x5cf   : > { %6108 = vst [vmem:[%s7283_s30 + $0x58] sm:$0x7f] %v6092_v53  ;;  %v5985_v58 = vpop.f32.mrf.mxu1  ;;  %vm6199_vm13 = vcmp.eq.s32.totalorder %v6197_v1, 1 }
 0x5d0   : > { %v6126_v12 = vld [vmem:[%s7283_s30 + $0x50] sm:$0x7f]  ;;  %v5946_v50 = vpop.f32.mrf.mxu2 }
 0x5d1   : > { %v6185_v6 = vsel %vm6183_vm0, %v6126_v12, %v11084_v34  ;;  %v6198_v12 = vperm.slane %v6196_v24, 1 }
 0x5d2   : > { %v6253_v20 = vsub.f32 %v6185_v6, %v6229_v46 }
 0x5d3   : > { %vm6200_vm14 = vcmp.eq.s32.totalorder %v6198_v12, 1 }
 0x5d4   : > { %v6270_v4 = vsel %vm6259_vm1, %v6253_v20, %v6185_v6 }
 0x5d5   : > { %6286 = vst [vmem:[%s7283_s30 + $0x50] sm:$0x7f] %v6270_v4  ;;  %v6011_v39 = vpop.f32.mrf.mxu3 }
 0x5d6   : > { %v6127_v62 = vld [vmem:[%s7283_s30 + $0x58] sm:$0x7f] }
 0x5d7   : > { %v6186_v18 = vsel %vm6184_vm3, %v6127_v62, %v11107_v48 }
 0x5d8   : > { %v6254_v29 = vsub.f32 %v6186_v18, %v6230_v5 }
 0x5da   : > { %v6271_v47 = vsel %vm6259_vm1, %v6254_v29, %v6186_v18 }
 0x5db   : > { %6287 = vst [vmem:[%s7283_s30 + $0x58] sm:$0x7f] %v6271_v47 }
 0x5e2   : > { %v5970_v23 = vpop.f32.mrf.mxu0 }
 0x5e3   : > { %v5971_v38 = vadd.f32 %v5970_v23, %v10968_v61 }
 0x5e5   : > { %v5984_v15 = vadd.f32 %v5983_v10, %v5971_v38 }
 0x5e7   : > { %v6093_v31 = vadd.f32 %v6077_v26, %v5984_v15  ;;  %v6035_v32 = vpop.f32.mrf.mxu1 }
 0x5e8   : > { %v5996_v35 = vpop.f32.mrf.mxu2 }
 0x5e9   : > { %6109 = vst [vmem:[%s7283_s30 + $0x60] sm:$0x7f] %v6093_v31  ;;  %v5997_v41 = vadd.f32 %v5996_v35, %v10970_v63 }
 0x5ea   : > { %v5972_v43 = vpop.f32.mrf.mxu0 }
 0x5eb   : > { %v6010_v19 = vadd.f32 %v6009_v42, %v5997_v41 }
 0x5ed   : > { %v6094_v61 = vadd.f32 %v6078_v45, %v6010_v19  ;;  %v6061_v63 = vpop.f32.mrf.mxu3 }
 0x5ef   : > { %6110 = vst [vmem:[%s7283_s30 + $0x68] sm:$0x7f] %v6094_v61  ;;  %v6037_v21 = vpop.f32.mrf.mxu1 }
 0x5f0   : > { %v6128_v40 = vld [vmem:[%s7283_s30 + $0x60] sm:$0x7f]  ;;  %v5998_v25 = vpop.f32.mrf.mxu2 }
 0x5f1   : > { %v6193_v51 = vsel %vm6191_vm8, %v6128_v40, %v11084_v34 }
 0x5f2   : > { %v6255_v27 = vsub.f32 %v6193_v51, %v6234_v13 }
 0x5f4   : > { %v6272_v57 = vsel %vm6259_vm1, %v6255_v27, %v6193_v51 }
 0x5f5   : > { %6288 = vst [vmem:[%s7283_s30 + $0x60] sm:$0x7f] %v6272_v57  ;;  %v6063_v22 = vpop.f32.mrf.mxu3 }
 0x5f6   : > { %v6129_v46 = vld [vmem:[%s7283_s30 + $0x68] sm:$0x7f] }
 0x5f7   : > { %v6194_v5 = vsel %vm6192_vm9, %v6129_v46, %v11107_v48 }
 0x5f8   : > { %v6256_v36 = vsub.f32 %v6194_v5, %v6235_v30 }
 0x5fa   : > { %v6273_v7 = vsel %vm6259_vm1, %v6256_v36, %v6194_v5 }
 0x5fb   : > { %6289 = vst [vmem:[%s7283_s30 + $0x68] sm:$0x7f] %v6273_v7 }
 0x600   : > { %v6022_v28 = vpop.f32.mrf.mxu0 }
 0x601   : > { %v6023_v60 = vadd.f32 %v6022_v28, %v11016_v55  ;;  %v6239_v55 = vld.sshfl [vmem:[#allocation1] sm:$0xff pattern:$0x75316420] }
 0x603   : > { %v6036_v11 = vadd.f32 %v6035_v32, %v6023_v60 }
 0x605   : > { %v6095_v33 = vadd.f32 %v6079_v56, %v6036_v11 }
 0x606   : > { %v6048_v52 = vpop.f32.mrf.mxu2 }
 0x607   : > { %6111 = vst [vmem:[%s7283_s30 + $0x70] sm:$0x7f] %v6095_v33  ;;  %v6049_v49 = vadd.f32 %v6048_v52, %v11024_v59  ;;  %v6240_v59 = vld.sshfl [vmem:[#allocation1 + $0x8] sm:$0xff pattern:$0x75316420] }
 0x608   : > { %v6024_v0 = vpop.f32.mrf.mxu0 }
 0x609   : > { %v6062_v10 = vadd.f32 %v6061_v63, %v6049_v49 }
 0x60b   : > { %v6096_v54 = vadd.f32 %v6080_v3, %v6062_v10 }
 0x60d   : > { %6112 = vst [vmem:[%s7283_s30 + $0x78] sm:$0x7f] %v6096_v54 }
 0x60e   : > { %v6130_v44 = vld [vmem:[%s7283_s30 + $0x70] sm:$0x7f]  ;;  %v6050_v2 = vpop.f32.mrf.mxu2 }
 0x60f   : > { %v6201_v16 = vsel %vm6199_vm13, %v6130_v44, %v11084_v34 }
 0x610   : > { %v6257_v53 = vsub.f32 %v6201_v16, %v6239_v55 }
 0x612   : > { %v6274_v17 = vsel %vm6259_vm1, %v6257_v53, %v6201_v16 }
 0x613   : > { %6290 = vst [vmem:[%s7283_s30 + $0x70] sm:$0x7f] %v6274_v17 }
 0x614   : > { %v6131_v50 = vld [vmem:[%s7283_s30 + $0x78] sm:$0x7f] }
 0x615   : > { %v6202_v6 = vsel %vm6200_vm14, %v6131_v50, %v11107_v48 }
 0x616   : > { %v6258_v58 = vsub.f32 %v6202_v6, %v6240_v59 }
 0x618   : > { %v6275_v20 = vsel %vm6259_vm1, %v6258_v58, %v6202_v6 }
 0x619   : > { %6291 = vst [vmem:[%s7283_s30 + $0x78] sm:$0x7f] %v6275_v20 }
 0x61a PF: > { %s14_s17 = sadd.s32 1, %s7158_s17   ;;  %s12723_s15 = smov %s7154_s16 }
 0x61b   : > { %p11_p5 = scmp.ge.s32.totalorder %s14_s17, 4   ;;  %s12724_s16 = smov %s12726_s18 }
 0x61d   :  { %13 = sbr.rel (!%p11_p5) target bundleno = 2 (0x2), region = 80 }

</bundles_post_ra>
